<compile_context>
chip_gen: v7x
topology: tpu7x:2x2x1
jax: 0.10.0
libtpu: 0.0.40
codegen_flags: <defaults>
</compile_context>

<pallas_src>
import functools

import jax
import jax.numpy as jnp
from jax.experimental import pallas as pl
from jax.experimental.pallas import tpu as pltpu

VMEM_LIMIT = 32 * 1024 * 1024  # safe scoped-VMEM budget on v5e/v6e/v7x


# -----------------------------------------------------------------------------
# helpers
# -----------------------------------------------------------------------------
def _rup(x: int, m: int) -> int:
    return (x + m - 1) // m * m


def _pick_tile(dim: int, cap: int, mult: int) -> int:
    """Largest multiple of `mult` that divides `dim` and is <= cap
    (dim is a multiple of `mult` by construction at the call sites)."""
    t = min(cap, dim)
    t = max((t // mult) * mult, mult)
    while dim % t:
        t -= mult
    return t


# -----------------------------------------------------------------------------
# Kernel 1: fused GEMM  out = relu(A @ B + bias)
#   A: (tm, K) bf16 activations (K = real channel count, single K block),
#   B: (K, tn) bf16 pre-packed weights, bias: (1, tn) f32.
# -----------------------------------------------------------------------------
def _gemm_bias_relu_kernel(a_ref, b_ref, bias_ref, o_ref, *, relu):
    y = jnp.dot(a_ref[...], b_ref[...], preferred_element_type=jnp.float32)
    y = y + bias_ref[...]
    if relu:
        y = jnp.maximum(y, 0.0)
    o_ref[...] = y.astype(o_ref.dtype)


def matmul_bias_relu(a, b_packed, bias, out_dtype=jnp.bfloat16, relu=True):
    """a: (M, K) bf16; b_packed: (K, Np) bf16; bias: (1, Np) f32.
    Returns (Mp, Np) `out_dtype` — caller slices the valid rows/cols."""
    M, K = a.shape
    Kb, Np = b_packed.shape
    assert K == Kb, (K, Kb)

    # tm <= 256 keeps >= 2 parallel M blocks at M >= 512 (v7x megacore).
    tm = min(256, _rup(M, 8))
    Mp = _rup(M, tm)
    if Mp != M:
        a = jnp.pad(a, ((0, Mp - M), (0, 0)))

    if Np <= 512:
        tn = Np                                # one lane-dense pass
    elif Np % 256 == 0:
        tn = _pick_tile(Np, 512, 256)          # 256-aligned for v6e/v7x MXU
    else:
        tn = _pick_tile(Np, 512, 128)

    return pl.pallas_call(
        functools.partial(_gemm_bias_relu_kernel, relu=relu),
        out_shape=jax.ShapeDtypeStruct((Mp, Np), out_dtype),
        grid_spec=pltpu.PrefetchScalarGridSpec(
            num_scalar_prefetch=0,
            grid=(Mp // tm, Np // tn),
            in_specs=[
                pl.BlockSpec((tm, K), lambda i, j: (i, 0)),
                pl.BlockSpec((K, tn), lambda i, j: (0, j)),
                pl.BlockSpec((1, tn), lambda i, j: (0, j)),
            ],
            out_specs=pl.BlockSpec((tm, tn), lambda i, j: (i, j)),
        ),
        compiler_params=pltpu.CompilerParams(
            dimension_semantics=("parallel", "parallel"),
            vmem_limit_bytes=VMEM_LIMIT,
        ),
    )(a, b_packed, bias)


# -----------------------------------------------------------------------------
# Kernel 2: KxK 'same' conv + bias + ReLU with in-kernel tap accumulation.
#   One grid step = one image: load the padded (Hp, Wp, Cin) block once and
#   accumulate the KH*KW shifted-window GEMMs into an f32 VMEM scratch.
# -----------------------------------------------------------------------------
def _conv_taps_kernel(x_ref, w_ref, bias_ref, o_ref, acc_ref, *, kh, kw, h, w):
    xv = x_ref[0]                                   # (h+kh-1, w+kw-1, cin) bf16
    acc_ref[...] = jnp.zeros_like(acc_ref)
    for dy in range(kh):
        for dx in range(kw):
            win = xv[dy:dy + h, dx:dx + w, :]       # static shifted window
            a = win.reshape(h * w, win.shape[-1])
            acc_ref[...] += jnp.dot(a, w_ref[dy * kw + dx],
                                    preferred_element_type=jnp.float32)
    y = acc_ref[...] + bias_ref[...]
    o_ref[0] = jnp.maximum(y, 0.0).astype(o_ref.dtype)


def conv_same_relu(xp, w_packed, bias, kh, kw):
    """xp: (N, H+kh-1, W+kw-1, Cin) bf16, already spatially zero-padded.
    w_packed: (kh*kw, Cin, Coutp) bf16; bias: (1, Coutp) f32.
    Returns (N, H*W, Coutp) f32 — caller slices the valid channels."""
    n, hp, wp, cin = xp.shape
    assert w_packed.shape[1] == cin
    h, w = hp - (kh - 1), wp - (kw - 1)
    coutp = w_packed.shape[-1]
    # TODO(synk): at large H, tile the grid over row blocks with a halo instead
    #             of whole-image blocks (needs element-offset index maps).
    return pl.pallas_call(
        functools.partial(_conv_taps_kernel, kh=kh, kw=kw, h=h, w=w),
        out_shape=jax.ShapeDtypeStruct((n, h * w, coutp), jnp.float32),
        grid_spec=pltpu.PrefetchScalarGridSpec(
            num_scalar_prefetch=0,
            grid=(n,),
            in_specs=[
                pl.BlockSpec((1, hp, wp, cin), lambda i: (i, 0, 0, 0)),
                pl.BlockSpec((kh * kw, cin, coutp), lambda i: (0, 0, 0)),
                pl.BlockSpec((1, coutp), lambda i: (0, 0)),
            ],
            out_specs=pl.BlockSpec((1, h * w, coutp), lambda i: (i, 0, 0)),
            scratch_shapes=[pltpu.VMEM((h * w, coutp), jnp.float32)],
        ),
        compiler_params=pltpu.CompilerParams(
            dimension_semantics=("parallel",),
            vmem_limit_bytes=VMEM_LIMIT,
        ),
    )(xp, w_packed, bias)


# -----------------------------------------------------------------------------
# Kernel 3: fused MaxPool(3x3, s1, p1) + 1x1 conv + bias + ReLU.
#   9-way max computed in-kernel from one padded block; pooled activation
#   never leaves VMEM.
# -----------------------------------------------------------------------------
def _maxpool3_conv1x1_kernel(x_ref, w_ref, bias_ref, o_ref, *, h, w):
    xv = x_ref[0]                                   # (h+2, w+2, cinp) bf16
    m = xv[0:h, 0:w, :]
    for dy in range(3):
        for dx in range(3):
            if dy == 0 and dx == 0:
                continue
            m = jnp.maximum(m, xv[dy:dy + h, dx:dx + w, :])
    a = m.reshape(h * w, m.shape[-1])
    y = jnp.dot(a, w_ref[...], preferred_element_type=jnp.float32) + bias_ref[...]
    o_ref[0] = jnp.maximum(y, 0.0).astype(o_ref.dtype)


def maxpool3_conv1x1_relu(xp, w_packed, bias):
    """xp: (N, H+2, W+2, Cinp) bf16 (spatial pad = -bf16_max, channel pad = 0).
    w_packed: (Cinp, Coutp) bf16; bias: (1, Coutp) f32.
    Returns (N, H*W, Coutp) f32."""
    n, hp, wp, cinp = xp.shape
    assert w_packed.shape[0] == cinp
    h, w = hp - 2, wp - 2
    coutp = w_packed.shape[-1]
    return pl.pallas_call(
        functools.partial(_maxpool3_conv1x1_kernel, h=h, w=w),
        out_shape=jax.ShapeDtypeStruct((n, h * w, coutp), jnp.float32),
        grid_spec=pltpu.PrefetchScalarGridSpec(
            num_scalar_prefetch=0,
            grid=(n,),
            in_specs=[
                pl.BlockSpec((1, hp, wp, cinp), lambda i: (i, 0, 0, 0)),
                pl.BlockSpec((cinp, coutp), lambda i: (0, 0)),
                pl.BlockSpec((1, coutp), lambda i: (0, 0)),
            ],
            out_specs=pl.BlockSpec((1, h * w, coutp), lambda i: (i, 0, 0)),
        ),
        compiler_params=pltpu.CompilerParams(
            dimension_semantics=("parallel",),
            vmem_limit_bytes=VMEM_LIMIT,
        ),
    )(xp, w_packed, bias)


# -----------------------------------------------------------------------------
# Parameter pre-packing (runs ONCE at init, never inside the forward pass)
# -----------------------------------------------------------------------------
def _pack_1x1(w, b, k_pad, n_pad):
    """w: (Cout, Cin, 1, 1); b: (Cout,). Returns (k_pad, n_pad) bf16, (n_pad,) f32."""
    cout, cin = w.shape[0], w.shape[1]
    wm = jnp.transpose(w[:, :, 0, 0], (1, 0))                       # (cin, cout)
    wm = jnp.pad(wm, ((0, k_pad - cin), (0, n_pad - cout))).astype(jnp.bfloat16)
    bb = jnp.pad(b, (0, n_pad - cout)).astype(jnp.float32)
    return wm, bb


def _pack_conv_taps(w, b, cin_slab):
    """w: (Cout, Cin, KH, KW). Returns (KH*KW, cin_slab, Coutp) bf16, (1, Coutp) f32."""
    cout, cin, kh, kw = w.shape
    coutp = _rup(cout, 128)
    wt = jnp.transpose(w, (2, 3, 1, 0)).reshape(kh * kw, cin, cout)  # tap-major
    wt = jnp.pad(wt, ((0, 0), (0, cin_slab - cin), (0, coutp - cout)))
    bb = jnp.pad(b, (0, coutp - cout)).astype(jnp.float32).reshape(1, coutp)
    return wt.astype(jnp.bfloat16), bb


def _init_conv_raw(key, cin, cout, k):
    kw_, kb_ = jax.random.split(key)
    fan_in = cin * k * k
    bound = 1.0 / fan_in ** 0.5
    w = jax.random.uniform(kw_, (cout, cin, k, k), jnp.float32, -bound, bound)
    b = jax.random.uniform(kb_, (cout,), jnp.float32, -bound, bound)
    return w, b


def init_params(key, cfg):
    ks = jax.random.split(key, 6)
    cin = cfg['input_1x1']
    w11, b11 = _init_conv_raw(ks[0], cin, cfg['output_1x1_1'], 1)
    w12, b12 = _init_conv_raw(ks[1], cin, cfg['input_3x3'], 1)
    w33, b33 = _init_conv_raw(ks[2], cfg['input_3x3'], cfg['output_3x3'], 3)
    w13, b13 = _init_conv_raw(ks[3], cin, cfg['input_5x5'], 1)
    w55, b55 = _init_conv_raw(ks[4], cfg['input_5x5'], cfg['output_5x5'], 5)
    w14, b14 = _init_conv_raw(ks[5], cin, cfg['output_1x1_4'], 1)

    # 128-wide lane slabs per fused bottleneck output so downstream convs can
    # consume their slab as a lane-aligned Cin block with zero re-padding.
    slab1 = _rup(cfg['output_1x1_1'], 128)
    slab2 = _rup(cfg['input_3x3'], 128)
    slab3 = _rup(cfg['input_5x5'], 128)

    w1s, b1s = _pack_1x1(w11, b11, cin, slab1)
    w2s, b2s = _pack_1x1(w12, b12, cin, slab2)
    w3s, b3s = _pack_1x1(w13, b13, cin, slab3)
    bneck_w = jnp.concatenate([w1s, w2s, w3s], axis=1)       # (cin, slab1+2+3)
    bneck_b = jnp.concatenate([b1s, b2s, b3s]).reshape(1, -1)

    c3_w, c3_b = _pack_conv_taps(w33, b33, slab2)
    c5_w, c5_b = _pack_conv_taps(w55, b55, slab3)

    cinp4 = _rup(cin, 128)
    coutp4 = _rup(cfg['output_1x1_4'], 128)
    c14_w, c14_b = _pack_1x1(w14, b14, cinp4, coutp4)
    c14_b = c14_b.reshape(1, coutp4)

    meta = dict(slab1=slab1, slab2=slab2, slab3=slab3,
                out1=cfg['output_1x1_1'], out3=cfg['output_3x3'],
                out5=cfg['output_5x5'], out4=cfg['output_1x1_4'])
    return dict(bneck_w=bneck_w, bneck_b=bneck_b,
                c3_w=c3_w, c3_b=c3_b, c5_w=c5_w, c5_b=c5_b,
                c14_w=c14_w, c14_b=c14_b, meta=meta)


# -----------------------------------------------------------------------------
# InceptionModule forward (mirrors the PyTorch module)
# -----------------------------------------------------------------------------
def inception_forward(params, x_nchw):
    meta = params['meta']
    # NCHW (PyTorch) -> NHWC bf16: the only per-forward layout/cast pass on x.
    x = jnp.transpose(x_nchw, (0, 2, 3, 1)).astype(jnp.bfloat16)
    n, hh, ww, cin = x.shape
    m = n * hh * ww

    # fused bottlenecks: [conv1x1_1 | conv1x1_2 | conv1x1_3] + ReLU, one GEMM.
    bneck = matmul_bias_relu(x.reshape(m, cin), params['bneck_w'],
                             params['bneck_b'], out_dtype=jnp.bfloat16)[:m]
    s1, s2, s3 = meta['slab1'], meta['slab2'], meta['slab3']
    bneck_sp = bneck.reshape(n, hh, ww, s1 + s2 + s3)

    # branch 1: valid channels of slab 1
    b1 = bneck[:, :meta['out1']].astype(jnp.float32).reshape(n, hh, ww, -1)

    # branch 2: 3x3 conv (pad 1) + ReLU on slab 2, taps accumulated in-kernel
    x2 = jnp.pad(bneck_sp[..., s1:s1 + s2], ((0, 0), (1, 1), (1, 1), (0, 0)))
    b2 = conv_same_relu(x2, params['c3_w'], params['c3_b'], 3, 3)
    b2 = b2[:, :, :meta['out3']].reshape(n, hh, ww, -1)

    # branch 3: 5x5 conv (pad 2) + ReLU on slab 3
    x3 = jnp.pad(bneck_sp[..., s1 + s2:], ((0, 0), (2, 2), (2, 2), (0, 0)))
    b3 = conv_same_relu(x3, params['c5_w'], params['c5_b'], 5, 5)
    b3 = b3[:, :, :meta['out5']].reshape(n, hh, ww, -1)

    # branch 4: fused maxpool(3x3, s1, p1) + conv1x1_4 + ReLU (one kernel)
    neg = float(jnp.finfo(jnp.bfloat16).min)
    cinp4 = params['c14_w'].shape[0]
    x4 = jnp.pad(x, ((0, 0), (0, 0), (0, 0), (0, cinp4 - cin)))          # ch pad = 0
    x4 = jnp.pad(x4, ((0, 0), (1, 1), (1, 1), (0, 0)), constant_values=neg)
    b4 = maxpool3_conv1x1_relu(x4, params['c14_w'], params['c14_b'])
    b4 = b4[:, :, :meta['out4']].reshape(n, hh, ww, -1)

    # TODO(synk): fuse this concat by writing each branch into its column
    #             offset of one preallocated (M, Ctot) buffer via offset
    #             out index_maps / input_output_aliases.
    y = jnp.concatenate([b1, b2, b3, b4], axis=-1)
    return jnp.transpose(y, (0, 3, 1, 2))


if __name__ == "__main__":
    key = jax.random.PRNGKey(0)
    k_params, k_x = jax.random.split(key)

    # Small InceptionModule config
    cfg = dict(input_1x1=16, output_1x1_1=16,
               input_3x3=8, output_3x3=32,
               input_5x5=8, output_5x5=16,
               output_1x1_4=16)

    params = init_params(k_params, cfg)           # pre-packed once, here
    x = jax.random.normal(k_x, (2, cfg['input_1x1'], 16, 16), jnp.float32)

    # params are closed over so static metadata (slabs / valid channel counts)
    # stays Python-side.
    fwd = jax.jit(functools.partial(inception_forward, params))
    out = jax.block_until_ready(fwd(x))

    expected_c = (cfg['output_1x1_1'] + cfg['output_3x3'] +
                  cfg['output_5x5'] + cfg['output_1x1_4'])
    assert out.shape == (2, expected_c, 16, 16), out.shape
    assert bool(jnp.all(jnp.isfinite(out)))
    print("KERNEL_OK")
</pallas_src>

<mosaic_0001>
module attributes {stable_mosaic.version = 11 : i64} {
  func.func @_maxpool3_conv1x1_kernel(%arg0: i32, %arg1: memref<1x18x18x128xbf16, #tpu.memory_space<vmem>>, %arg2: memref<128x128xbf16, #tpu.memory_space<vmem>>, %arg3: memref<1x128xf32, #tpu.memory_space<vmem>>, %arg4: memref<1x256x128xf32, #tpu.memory_space<vmem>>) attributes {dimension_semantics = [#tpu.dimension_semantics<parallel>], iteration_bounds = array<i64: 2>, scalar_prefetch = 0 : i64, scratch_operands = 0 : i64, tpu.core_type = #tpu.core_type<tc>, window_params = [{transform_indices = @transform_0, window_bounds = array<i64: 1, 18, 18, 128>}, {pipeline_mode = #tpu.pipeline_mode<synchronous>, transform_indices = @transform_1, window_bounds = array<i64: 128, 128>}, {pipeline_mode = #tpu.pipeline_mode<synchronous>, transform_indices = @transform_2, window_bounds = array<i64: 1, 128>}, {transform_indices = @transform_3, window_bounds = array<i64: 1, 256, 128>}]} {
    %c0 = arith.constant 0 : index
    %c0_0 = arith.constant 0 : index
    %c0_1 = arith.constant 0 : index
    %c0_2 = arith.constant 0 : index
    %0 = vector.load %arg1[%c0, %c0_0, %c0_1, %c0_2] : memref<1x18x18x128xbf16, #tpu.memory_space<vmem>>, vector<1x18x18x128xbf16>
    %1 = vector.shape_cast %0 : vector<1x18x18x128xbf16> to vector<18x18x128xbf16>
    %2 = vector.extract_strided_slice %1 {offsets = [0, 0, 0], sizes = [16, 16, 128], strides = [1, 1, 1]} : vector<18x18x128xbf16> to vector<16x16x128xbf16>
    %3 = vector.extract_strided_slice %1 {offsets = [0, 1, 0], sizes = [16, 16, 128], strides = [1, 1, 1]} : vector<18x18x128xbf16> to vector<16x16x128xbf16>
    %4 = arith.maximumf %2, %3 : vector<16x16x128xbf16>
    %5 = vector.extract_strided_slice %1 {offsets = [0, 2, 0], sizes = [16, 16, 128], strides = [1, 1, 1]} : vector<18x18x128xbf16> to vector<16x16x128xbf16>
    %6 = arith.maximumf %4, %5 : vector<16x16x128xbf16>
    %7 = vector.extract_strided_slice %1 {offsets = [1, 0, 0], sizes = [16, 16, 128], strides = [1, 1, 1]} : vector<18x18x128xbf16> to vector<16x16x128xbf16>
    %8 = arith.maximumf %6, %7 : vector<16x16x128xbf16>
    %9 = vector.extract_strided_slice %1 {offsets = [1, 1, 0], sizes = [16, 16, 128], strides = [1, 1, 1]} : vector<18x18x128xbf16> to vector<16x16x128xbf16>
    %10 = arith.maximumf %8, %9 : vector<16x16x128xbf16>
    %11 = vector.extract_strided_slice %1 {offsets = [1, 2, 0], sizes = [16, 16, 128], strides = [1, 1, 1]} : vector<18x18x128xbf16> to vector<16x16x128xbf16>
    %12 = arith.maximumf %10, %11 : vector<16x16x128xbf16>
    %13 = vector.extract_strided_slice %1 {offsets = [2, 0, 0], sizes = [16, 16, 128], strides = [1, 1, 1]} : vector<18x18x128xbf16> to vector<16x16x128xbf16>
    %14 = arith.maximumf %12, %13 : vector<16x16x128xbf16>
    %15 = vector.extract_strided_slice %1 {offsets = [2, 1, 0], sizes = [16, 16, 128], strides = [1, 1, 1]} : vector<18x18x128xbf16> to vector<16x16x128xbf16>
    %16 = arith.maximumf %14, %15 : vector<16x16x128xbf16>
    %17 = vector.extract_strided_slice %1 {offsets = [2, 2, 0], sizes = [16, 16, 128], strides = [1, 1, 1]} : vector<18x18x128xbf16> to vector<16x16x128xbf16>
    %18 = arith.maximumf %16, %17 : vector<16x16x128xbf16>
    %19 = vector.shape_cast %18 : vector<16x16x128xbf16> to vector<256x128xbf16>
    %c0_3 = arith.constant 0 : index
    %c0_4 = arith.constant 0 : index
    %20 = vector.load %arg2[%c0_3, %c0_4] : memref<128x128xbf16, #tpu.memory_space<vmem>>, vector<128x128xbf16>
    %cst = arith.constant dense<0.000000e+00> : vector<256x128xf32>
    %21 = tpu.matmul %19, %20, %cst {dimension_numbers = #tpu.dot_dimension_numbers<[1], [0], [0], [1], [0, 0, 1, 1], [], []>} : vector<256x128xbf16>, vector<128x128xbf16>, vector<256x128xf32> -> vector<256x128xf32>
    %c0_5 = arith.constant 0 : index
    %c0_6 = arith.constant 0 : index
    %22 = vector.load %arg3[%c0_5, %c0_6] : memref<1x128xf32, #tpu.memory_space<vmem>>, vector<1x128xf32>
    %23 = vector.broadcast %22 : vector<1x128xf32> to vector<256x128xf32>
    %24 = arith.addf %21, %23 : vector<256x128xf32>
    %cst_7 = arith.constant 0.000000e+00 : f32
    %25 = vector.broadcast %cst_7 : f32 to vector<256x128xf32>
    %26 = arith.maximumf %24, %25 : vector<256x128xf32>
    %c0_8 = arith.constant 0 : index
    %c0_9 = arith.constant 0 : index
    %c0_10 = arith.constant 0 : index
    %27 = vector.load %arg4[%c0_8, %c0_9, %c0_10] : memref<1x256x128xf32, #tpu.memory_space<vmem>>, vector<1x256x128xf32>
    %28 = vector.shape_cast %27 : vector<1x256x128xf32> to vector<256x128xf32>
    %29 = vector.shape_cast %26 : vector<256x128xf32> to vector<1x256x128xf32>
    tpu.vector_store %arg4[%c0_8, %c0_9, %c0_10], %29 {strides = array<i32>} : memref<1x256x128xf32, #tpu.memory_space<vmem>>, vector<1x256x128xf32>,
    return
  }
  func.func @transform_0(%arg0: i32) -> (i32, i32, i32, i32) {
    %c0_i32 = arith.constant 0 : i32
    %c0_i32_0 = arith.constant 0 : i32
    %c0_i32_1 = arith.constant 0 : i32
    %c0_i32_2 = arith.constant 0 : i32
    return %arg0, %c0_i32, %c0_i32_0, %c0_i32_1 : i32, i32, i32, i32
  }
  func.func @transform_1(%arg0: i32) -> (i32, i32) {
    %c0_i32 = arith.constant 0 : i32
    %c0_i32_0 = arith.constant 0 : i32
    %c0_i32_1 = arith.constant 0 : i32
    return %c0_i32, %c0_i32_0 : i32, i32
  }
  func.func @transform_2(%arg0: i32) -> (i32, i32) {
    %c0_i32 = arith.constant 0 : i32
    %c0_i32_0 = arith.constant 0 : i32
    %c0_i32_1 = arith.constant 0 : i32
    return %c0_i32, %c0_i32_0 : i32, i32
  }
  func.func @transform_3(%arg0: i32) -> (i32, i32, i32) {
    %c0_i32 = arith.constant 0 : i32
    %c0_i32_0 = arith.constant 0 : i32
    %c0_i32_1 = arith.constant 0 : i32
    return %arg0, %c0_i32, %c0_i32_0 : i32, i32, i32
  }
}

module attributes {stable_mosaic.version = 11 : i64} {
  func.func @_gemm_bias_relu_kernel(%arg0: i32, %arg1: i32, %arg2: memref<256x16xbf16, #tpu.memory_space<vmem>>, %arg3: memref<16x384xbf16, #tpu.memory_space<vmem>>, %arg4: memref<1x384xf32, #tpu.memory_space<vmem>>, %arg5: memref<256x384xbf16, #tpu.memory_space<vmem>>) attributes {dimension_semantics = [#tpu.dimension_semantics<parallel>, #tpu.dimension_semantics<parallel>], iteration_bounds = array<i64: 2, 1>, scalar_prefetch = 0 : i64, scratch_operands = 0 : i64, tpu.core_type = #tpu.core_type<tc>, window_params = [{transform_indices = @transform_0, window_bounds = array<i64: 256, 16>}, {transform_indices = @transform_1, window_bounds = array<i64: 16, 384>}, {transform_indices = @transform_2, window_bounds = array<i64: 1, 384>}, {transform_indices = @transform_3, window_bounds = array<i64: 256, 384>}]} {
    %c0 = arith.constant 0 : index
    %c0_0 = arith.constant 0 : index
    %0 = vector.load %arg2[%c0, %c0_0] : memref<256x16xbf16, #tpu.memory_space<vmem>>, vector<256x16xbf16>
    %c0_1 = arith.constant 0 : index
    %c0_2 = arith.constant 0 : index
    %1 = vector.load %arg3[%c0_1, %c0_2] : memref<16x384xbf16, #tpu.memory_space<vmem>>, vector<16x384xbf16>
    %cst = arith.constant dense<0.000000e+00> : vector<256x384xf32>
    %2 = tpu.matmul %0, %1, %cst {dimension_numbers = #tpu.dot_dimension_numbers<[1], [0], [0], [1], [0, 0, 1, 1], [], []>} : vector<256x16xbf16>, vector<16x384xbf16>, vector<256x384xf32> -> vector<256x384xf32>
    %c0_3 = arith.constant 0 : index
    %c0_4 = arith.constant 0 : index
    %3 = vector.load %arg4[%c0_3, %c0_4] : memref<1x384xf32, #tpu.memory_space<vmem>>, vector<1x384xf32>
    %4 = vector.broadcast %3 : vector<1x384xf32> to vector<256x384xf32>
    %5 = arith.addf %2, %4 : vector<256x384xf32>
    %cst_5 = arith.constant 0.000000e+00 : f32
    %6 = vector.broadcast %cst_5 : f32 to vector<256x384xf32>
    %7 = arith.maximumf %5, %6 : vector<256x384xf32>
    %8 = arith.truncf %7 : vector<256x384xf32> to vector<256x384xbf16>
    %c0_6 = arith.constant 0 : index
    %c0_7 = arith.constant 0 : index
    %9 = vector.load %arg5[%c0_6, %c0_7] : memref<256x384xbf16, #tpu.memory_space<vmem>>, vector<256x384xbf16>
    tpu.vector_store %arg5[%c0_6, %c0_7], %8 {strides = array<i32>} : memref<256x384xbf16, #tpu.memory_space<vmem>>, vector<256x384xbf16>,
    return
  }
  func.func @transform_0(%arg0: i32, %arg1: i32) -> (i32, i32) {
    %c0_i32 = arith.constant 0 : i32
    %c0_i32_0 = arith.constant 0 : i32
    return %arg0, %c0_i32 : i32, i32
  }
  func.func @transform_1(%arg0: i32, %arg1: i32) -> (i32, i32) {
    %c0_i32 = arith.constant 0 : i32
    %c0_i32_0 = arith.constant 0 : i32
    return %c0_i32, %arg1 : i32, i32
  }
  func.func @transform_2(%arg0: i32, %arg1: i32) -> (i32, i32) {
    %c0_i32 = arith.constant 0 : i32
    %c0_i32_0 = arith.constant 0 : i32
    return %c0_i32, %arg1 : i32, i32
  }
  func.func @transform_3(%arg0: i32, %arg1: i32) -> (i32, i32) {
    %c0_i32 = arith.constant 0 : i32
    return %arg0, %arg1 : i32, i32
  }
}

module attributes {stable_mosaic.version = 11 : i64} {
  func.func @_conv_taps_kernel(%arg0: i32, %arg1: memref<1x18x18x128xbf16, #tpu.memory_space<vmem>>, %arg2: memref<9x128x128xbf16, #tpu.memory_space<vmem>>, %arg3: memref<1x128xf32, #tpu.memory_space<vmem>>, %arg4: memref<1x256x128xf32, #tpu.memory_space<vmem>>, %arg5: memref<256x128xf32, #tpu.memory_space<vmem>>) attributes {dimension_semantics = [#tpu.dimension_semantics<parallel>], iteration_bounds = array<i64: 2>, scalar_prefetch = 0 : i64, scratch_operands = 1 : i64, tpu.core_type = #tpu.core_type<tc>, window_params = [{transform_indices = @transform_0, window_bounds = array<i64: 1, 18, 18, 128>}, {pipeline_mode = #tpu.pipeline_mode<synchronous>, transform_indices = @transform_1, window_bounds = array<i64: 9, 128, 128>}, {pipeline_mode = #tpu.pipeline_mode<synchronous>, transform_indices = @transform_2, window_bounds = array<i64: 1, 128>}, {transform_indices = @transform_3, window_bounds = array<i64: 1, 256, 128>}]} {
    %c0 = arith.constant 0 : index
    %c0_0 = arith.constant 0 : index
    %c0_1 = arith.constant 0 : index
    %c0_2 = arith.constant 0 : index
    %0 = vector.load %arg1[%c0, %c0_0, %c0_1, %c0_2] : memref<1x18x18x128xbf16, #tpu.memory_space<vmem>>, vector<1x18x18x128xbf16>
    %1 = vector.shape_cast %0 : vector<1x18x18x128xbf16> to vector<18x18x128xbf16>
    %cst = arith.constant 0.000000e+00 : f32
    %2 = vector.broadcast %cst : f32 to vector<256x128xf32>
    %c0_3 = arith.constant 0 : index
    %c0_4 = arith.constant 0 : index
    %3 = vector.load %arg5[%c0_3, %c0_4] : memref<256x128xf32, #tpu.memory_space<vmem>>, vector<256x128xf32>
    tpu.vector_store %arg5[%c0_3, %c0_4], %2 {strides = array<i32>} : memref<256x128xf32, #tpu.memory_space<vmem>>, vector<256x128xf32>,
    %4 = vector.extract_strided_slice %1 {offsets = [0, 0, 0], sizes = [16, 16, 128], strides = [1, 1, 1]} : vector<18x18x128xbf16> to vector<16x16x128xbf16>
    %5 = vector.shape_cast %4 : vector<16x16x128xbf16> to vector<256x128xbf16>
    %c0_5 = arith.constant 0 : index
    %c0_6 = arith.constant 0 : index
    %6 = vector.load %arg5[%c0_5, %c0_6] : memref<256x128xf32, #tpu.memory_space<vmem>>, vector<256x128xf32>
    %c0_7 = arith.constant 0 : index
    %c0_8 = arith.constant 0 : index
    %c0_9 = arith.constant 0 : index
    %7 = vector.load %arg2[%c0_7, %c0_8, %c0_9] : memref<9x128x128xbf16, #tpu.memory_space<vmem>>, vector<1x128x128xbf16>
    %8 = vector.shape_cast %7 : vector<1x128x128xbf16> to vector<128x128xbf16>
    %cst_10 = arith.constant dense<0.000000e+00> : vector<256x128xf32>
    %9 = tpu.matmul %5, %8, %cst_10 {dimension_numbers = #tpu.dot_dimension_numbers<[1], [0], [0], [1], [0, 0, 1, 1], [], []>} : vector<256x128xbf16>, vector<128x128xbf16>, vector<256x128xf32> -> vector<256x128xf32>
    %10 = arith.addf %6, %9 : vector<256x128xf32>
    %c0_11 = arith.constant 0 : index
    %c0_12 = arith.constant 0 : index
    %11 = vector.load %arg5[%c0_11, %c0_12] : memref<256x128xf32, #tpu.memory_space<vmem>>, vector<256x128xf32>
    tpu.vector_store %arg5[%c0_11, %c0_12], %10 {strides = array<i32>} : memref<256x128xf32, #tpu.memory_space<vmem>>, vector<256x128xf32>,
    %12 = vector.extract_strided_slice %1 {offsets = [0, 1, 0], sizes = [16, 16, 128], strides = [1, 1, 1]} : vector<18x18x128xbf16> to vector<16x16x128xbf16>
    %13 = vector.shape_cast %12 : vector<16x16x128xbf16> to vector<256x128xbf16>
    %c0_13 = arith.constant 0 : index
    %c0_14 = arith.constant 0 : index
    %14 = vector.load %arg5[%c0_13, %c0_14] : memref<256x128xf32, #tpu.memory_space<vmem>>, vector<256x128xf32>
    %c1 = arith.constant 1 : index
    %c0_15 = arith.constant 0 : index
    %c0_16 = arith.constant 0 : index
    %15 = vector.load %arg2[%c1, %c0_15, %c0_16] : memref<9x128x128xbf16, #tpu.memory_space<vmem>>, vector<1x128x128xbf16>
    %16 = vector.shape_cast %15 : vector<1x128x128xbf16> to vector<128x128xbf16>
    %cst_17 = arith.constant dense<0.000000e+00> : vector<256x128xf32>
    %17 = tpu.matmul %13, %16, %cst_17 {dimension_numbers = #tpu.dot_dimension_numbers<[1], [0], [0], [1], [0, 0, 1, 1], [], []>} : vector<256x128xbf16>, vector<128x128xbf16>, vector<256x128xf32> -> vector<256x128xf32>
    %18 = arith.addf %14, %17 : vector<256x128xf32>
    %c0_18 = arith.constant 0 : index
    %c0_19 = arith.constant 0 : index
    %19 = vector.load %arg5[%c0_18, %c0_19] : memref<256x128xf32, #tpu.memory_space<vmem>>, vector<256x128xf32>
    tpu.vector_store %arg5[%c0_18, %c0_19], %18 {strides = array<i32>} : memref<256x128xf32, #tpu.memory_space<vmem>>, vector<256x128xf32>,
    %20 = vector.extract_strided_slice %1 {offsets = [0, 2, 0], sizes = [16, 16, 128], strides = [1, 1, 1]} : vector<18x18x128xbf16> to vector<16x16x128xbf16>
    %21 = vector.shape_cast %20 : vector<16x16x128xbf16> to vector<256x128xbf16>
    %c0_20 = arith.constant 0 : index
    %c0_21 = arith.constant 0 : index
    %22 = vector.load %arg5[%c0_20, %c0_21] : memref<256x128xf32, #tpu.memory_space<vmem>>, vector<256x128xf32>
    %c2 = arith.constant 2 : index
    %c0_22 = arith.constant 0 : index
    %c0_23 = arith.constant 0 : index
    %23 = vector.load %arg2[%c2, %c0_22, %c0_23] : memref<9x128x128xbf16, #tpu.memory_space<vmem>>, vector<1x128x128xbf16>
    %24 = vector.shape_cast %23 : vector<1x128x128xbf16> to vector<128x128xbf16>
    %cst_24 = arith.constant dense<0.000000e+00> : vector<256x128xf32>
    %25 = tpu.matmul %21, %24, %cst_24 {dimension_numbers = #tpu.dot_dimension_numbers<[1], [0], [0], [1], [0, 0, 1, 1], [], []>} : vector<256x128xbf16>, vector<128x128xbf16>, vector<256x128xf32> -> vector<256x128xf32>
    %26 = arith.addf %22, %25 : vector<256x128xf32>
    %c0_25 = arith.constant 0 : index
    %c0_26 = arith.constant 0 : index
    %27 = vector.load %arg5[%c0_25, %c0_26] : memref<256x128xf32, #tpu.memory_space<vmem>>, vector<256x128xf32>
    tpu.vector_store %arg5[%c0_25, %c0_26], %26 {strides = array<i32>} : memref<256x128xf32, #tpu.memory_space<vmem>>, vector<256x128xf32>,
    %28 = vector.extract_strided_slice %1 {offsets = [1, 0, 0], sizes = [16, 16, 128], strides = [1, 1, 1]} : vector<18x18x128xbf16> to vector<16x16x128xbf16>
    %29 = vector.shape_cast %28 : vector<16x16x128xbf16> to vector<256x128xbf16>
    %c0_27 = arith.constant 0 : index
    %c0_28 = arith.constant 0 : index
    %30 = vector.load %arg5[%c0_27, %c0_28] : memref<256x128xf32, #tpu.memory_space<vmem>>, vector<256x128xf32>
    %c3 = arith.constant 3 : index
    %c0_29 = arith.constant 0 : index
    %c0_30 = arith.constant 0 : index
    %31 = vector.load %arg2[%c3, %c0_29, %c0_30] : memref<9x128x128xbf16, #tpu.memory_space<vmem>>, vector<1x128x128xbf16>
    %32 = vector.shape_cast %31 : vector<1x128x128xbf16> to vector<128x128xbf16>
    %cst_31 = arith.constant dense<0.000000e+00> : vector<256x128xf32>
    %33 = tpu.matmul %29, %32, %cst_31 {dimension_numbers = #tpu.dot_dimension_numbers<[1], [0], [0], [1], [0, 0, 1, 1], [], []>} : vector<256x128xbf16>, vector<128x128xbf16>, vector<256x128xf32> -> vector<256x128xf32>
    %34 = arith.addf %30, %33 : vector<256x128xf32>
    %c0_32 = arith.constant 0 : index
    %c0_33 = arith.constant 0 : index
    %35 = vector.load %arg5[%c0_32, %c0_33] : memref<256x128xf32, #tpu.memory_space<vmem>>, vector<256x128xf32>
    tpu.vector_store %arg5[%c0_32, %c0_33], %34 {strides = array<i32>} : memref<256x128xf32, #tpu.memory_space<vmem>>, vector<256x128xf32>,
    %36 = vector.extract_strided_slice %1 {offsets = [1, 1, 0], sizes = [16, 16, 128], strides = [1, 1, 1]} : vector<18x18x128xbf16> to vector<16x16x128xbf16>
    %37 = vector.shape_cast %36 : vector<16x16x128xbf16> to vector<256x128xbf16>
    %c0_34 = arith.constant 0 : index
    %c0_35 = arith.constant 0 : index
    %38 = vector.load %arg5[%c0_34, %c0_35] : memref<256x128xf32, #tpu.memory_space<vmem>>, vector<256x128xf32>
    %c4 = arith.constant 4 : index
    %c0_36 = arith.constant 0 : index
    %c0_37 = arith.constant 0 : index
    %39 = vector.load %arg2[%c4, %c0_36, %c0_37] : memref<9x128x128xbf16, #tpu.memory_space<vmem>>, vector<1x128x128xbf16>
    %40 = vector.shape_cast %39 : vector<1x128x128xbf16> to vector<128x128xbf16>
    %cst_38 = arith.constant dense<0.000000e+00> : vector<256x128xf32>
    %41 = tpu.matmul %37, %40, %cst_38 {dimension_numbers = #tpu.dot_dimension_numbers<[1], [0], [0], [1], [0, 0, 1, 1], [], []>} : vector<256x128xbf16>, vector<128x128xbf16>, vector<256x128xf32> -> vector<256x128xf32>
    %42 = arith.addf %38, %41 : vector<256x128xf32>
    %c0_39 = arith.constant 0 : index
    %c0_40 = arith.constant 0 : index
    %43 = vector.load %arg5[%c0_39, %c0_40] : memref<256x128xf32, #tpu.memory_space<vmem>>, vector<256x128xf32>
    tpu.vector_store %arg5[%c0_39, %c0_40], %42 {strides = array<i32>} : memref<256x128xf32, #tpu.memory_space<vmem>>, vector<256x128xf32>,
    %44 = vector.extract_strided_slice %1 {offsets = [1, 2, 0], sizes = [16, 16, 128], strides = [1, 1, 1]} : vector<18x18x128xbf16> to vector<16x16x128xbf16>
    %45 = vector.shape_cast %44 : vector<16x16x128xbf16> to vector<256x128xbf16>
    %c0_41 = arith.constant 0 : index
    %c0_42 = arith.constant 0 : index
    %46 = vector.load %arg5[%c0_41, %c0_42] : memref<256x128xf32, #tpu.memory_space<vmem>>, vector<256x128xf32>
    %c5 = arith.constant 5 : index
    %c0_43 = arith.constant 0 : index
    %c0_44 = arith.constant 0 : index
    %47 = vector.load %arg2[%c5, %c0_43, %c0_44] : memref<9x128x128xbf16, #tpu.memory_space<vmem>>, vector<1x128x128xbf16>
    %48 = vector.shape_cast %47 : vector<1x128x128xbf16> to vector<128x128xbf16>
    %cst_45 = arith.constant dense<0.000000e+00> : vector<256x128xf32>
    %49 = tpu.matmul %45, %48, %cst_45 {dimension_numbers = #tpu.dot_dimension_numbers<[1], [0], [0], [1], [0, 0, 1, 1], [], []>} : vector<256x128xbf16>, vector<128x128xbf16>, vector<256x128xf32> -> vector<256x128xf32>
    %50 = arith.addf %46, %49 : vector<256x128xf32>
    %c0_46 = arith.constant 0 : index
    %c0_47 = arith.constant 0 : index
    %51 = vector.load %arg5[%c0_46, %c0_47] : memref<256x128xf32, #tpu.memory_space<vmem>>, vector<256x128xf32>
    tpu.vector_store %arg5[%c0_46, %c0_47], %50 {strides = array<i32>} : memref<256x128xf32, #tpu.memory_space<vmem>>, vector<256x128xf32>,
    %52 = vector.extract_strided_slice %1 {offsets = [2, 0, 0], sizes = [16, 16, 128], strides = [1, 1, 1]} : vector<18x18x128xbf16> to vector<16x16x128xbf16>
    %53 = vector.shape_cast %52 : vector<16x16x128xbf16> to vector<256x128xbf16>
    %c0_48 = arith.constant 0 : index
    %c0_49 = arith.constant 0 : index
    %54 = vector.load %arg5[%c0_48, %c0_49] : memref<256x128xf32, #tpu.memory_space<vmem>>, vector<256x128xf32>
    %c6 = arith.constant 6 : index
    %c0_50 = arith.constant 0 : index
    %c0_51 = arith.constant 0 : index
    %55 = vector.load %arg2[%c6, %c0_50, %c0_51] : memref<9x128x128xbf16, #tpu.memory_space<vmem>>, vector<1x128x128xbf16>
    %56 = vector.shape_cast %55 : vector<1x128x128xbf16> to vector<128x128xbf16>
    %cst_52 = arith.constant dense<0.000000e+00> : vector<256x128xf32>
    %57 = tpu.matmul %53, %56, %cst_52 {dimension_numbers = #tpu.dot_dimension_numbers<[1], [0], [0], [1], [0, 0, 1, 1], [], []>} : vector<256x128xbf16>, vector<128x128xbf16>, vector<256x128xf32> -> vector<256x128xf32>
    %58 = arith.addf %54, %57 : vector<256x128xf32>
    %c0_53 = arith.constant 0 : index
    %c0_54 = arith.constant 0 : index
    %59 = vector.load %arg5[%c0_53, %c0_54] : memref<256x128xf32, #tpu.memory_space<vmem>>, vector<256x128xf32>
    tpu.vector_store %arg5[%c0_53, %c0_54], %58 {strides = array<i32>} : memref<256x128xf32, #tpu.memory_space<vmem>>, vector<256x128xf32>,
    %60 = vector.extract_strided_slice %1 {offsets = [2, 1, 0], sizes = [16, 16, 128], strides = [1, 1, 1]} : vector<18x18x128xbf16> to vector<16x16x128xbf16>
    %61 = vector.shape_cast %60 : vector<16x16x128xbf16> to vector<256x128xbf16>
    %c0_55 = arith.constant 0 : index
    %c0_56 = arith.constant 0 : index
    %62 = vector.load %arg5[%c0_55, %c0_56] : memref<256x128xf32, #tpu.memory_space<vmem>>, vector<256x128xf32>
    %c7 = arith.constant 7 : index
    %c0_57 = arith.constant 0 : index
    %c0_58 = arith.constant 0 : index
    %63 = vector.load %arg2[%c7, %c0_57, %c0_58] : memref<9x128x128xbf16, #tpu.memory_space<vmem>>, vector<1x128x128xbf16>
    %64 = vector.shape_cast %63 : vector<1x128x128xbf16> to vector<128x128xbf16>
    %cst_59 = arith.constant dense<0.000000e+00> : vector<256x128xf32>
    %65 = tpu.matmul %61, %64, %cst_59 {dimension_numbers = #tpu.dot_dimension_numbers<[1], [0], [0], [1], [0, 0, 1, 1], [], []>} : vector<256x128xbf16>, vector<128x128xbf16>, vector<256x128xf32> -> vector<256x128xf32>
    %66 = arith.addf %62, %65 : vector<256x128xf32>
    %c0_60 = arith.constant 0 : index
    %c0_61 = arith.constant 0 : index
    %67 = vector.load %arg5[%c0_60, %c0_61] : memref<256x128xf32, #tpu.memory_space<vmem>>, vector<256x128xf32>
    tpu.vector_store %arg5[%c0_60, %c0_61], %66 {strides = array<i32>} : memref<256x128xf32, #tpu.memory_space<vmem>>, vector<256x128xf32>,
    %68 = vector.extract_strided_slice %1 {offsets = [2, 2, 0], sizes = [16, 16, 128], strides = [1, 1, 1]} : vector<18x18x128xbf16> to vector<16x16x128xbf16>
    %69 = vector.shape_cast %68 : vector<16x16x128xbf16> to vector<256x128xbf16>
    %c0_62 = arith.constant 0 : index
    %c0_63 = arith.constant 0 : index
    %70 = vector.load %arg5[%c0_62, %c0_63] : memref<256x128xf32, #tpu.memory_space<vmem>>, vector<256x128xf32>
    %c8 = arith.constant 8 : index
    %c0_64 = arith.constant 0 : index
    %c0_65 = arith.constant 0 : index
    %71 = vector.load %arg2[%c8, %c0_64, %c0_65] : memref<9x128x128xbf16, #tpu.memory_space<vmem>>, vector<1x128x128xbf16>
    %72 = vector.shape_cast %71 : vector<1x128x128xbf16> to vector<128x128xbf16>
    %cst_66 = arith.constant dense<0.000000e+00> : vector<256x128xf32>
    %73 = tpu.matmul %69, %72, %cst_66 {dimension_numbers = #tpu.dot_dimension_numbers<[1], [0], [0], [1], [0, 0, 1, 1], [], []>} : vector<256x128xbf16>, vector<128x128xbf16>, vector<256x128xf32> -> vector<256x128xf32>
    %74 = arith.addf %70, %73 : vector<256x128xf32>
    %c0_67 = arith.constant 0 : index
    %c0_68 = arith.constant 0 : index
    %75 = vector.load %arg5[%c0_67, %c0_68] : memref<256x128xf32, #tpu.memory_space<vmem>>, vector<256x128xf32>
    tpu.vector_store %arg5[%c0_67, %c0_68], %74 {strides = array<i32>} : memref<256x128xf32, #tpu.memory_space<vmem>>, vector<256x128xf32>,
    %c0_69 = arith.constant 0 : index
    %c0_70 = arith.constant 0 : index
    %76 = vector.load %arg5[%c0_69, %c0_70] : memref<256x128xf32, #tpu.memory_space<vmem>>, vector<256x128xf32>
    %c0_71 = arith.constant 0 : index
    %c0_72 = arith.constant 0 : index
    %77 = vector.load %arg3[%c0_71, %c0_72] : memref<1x128xf32, #tpu.memory_space<vmem>>, vector<1x128xf32>
    %78 = vector.broadcast %77 : vector<1x128xf32> to vector<256x128xf32>
    %79 = arith.addf %76, %78 : vector<256x128xf32>
    %cst_73 = arith.constant 0.000000e+00 : f32
    %80 = vector.broadcast %cst_73 : f32 to vector<256x128xf32>
    %81 = arith.maximumf %79, %80 : vector<256x128xf32>
    %c0_74 = arith.constant 0 : index
    %c0_75 = arith.constant 0 : index
    %c0_76 = arith.constant 0 : index
    %82 = vector.load %arg4[%c0_74, %c0_75, %c0_76] : memref<1x256x128xf32, #tpu.memory_space<vmem>>, vector<1x256x128xf32>
    %83 = vector.shape_cast %82 : vector<1x256x128xf32> to vector<256x128xf32>
    %84 = vector.shape_cast %81 : vector<256x128xf32> to vector<1x256x128xf32>
    tpu.vector_store %arg4[%c0_74, %c0_75, %c0_76], %84 {strides = array<i32>} : memref<1x256x128xf32, #tpu.memory_space<vmem>>, vector<1x256x128xf32>,
    return
  }
  func.func @transform_0(%arg0: i32) -> (i32, i32, i32, i32) {
    %c0_i32 = arith.constant 0 : i32
    %c0_i32_0 = arith.constant 0 : i32
    %c0_i32_1 = arith.constant 0 : i32
    %c0_i32_2 = arith.constant 0 : i32
    return %arg0, %c0_i32, %c0_i32_0, %c0_i32_1 : i32, i32, i32, i32
  }
  func.func @transform_1(%arg0: i32) -> (i32, i32, i32) {
    %c0_i32 = arith.constant 0 : i32
    %c0_i32_0 = arith.constant 0 : i32
    %c0_i32_1 = arith.constant 0 : i32
    %c0_i32_2 = arith.constant 0 : i32
    return %c0_i32, %c0_i32_0, %c0_i32_1 : i32, i32, i32
  }
  func.func @transform_2(%arg0: i32) -> (i32, i32) {
    %c0_i32 = arith.constant 0 : i32
    %c0_i32_0 = arith.constant 0 : i32
    %c0_i32_1 = arith.constant 0 : i32
    return %c0_i32, %c0_i32_0 : i32, i32
  }
  func.func @transform_3(%arg0: i32) -> (i32, i32, i32) {
    %c0_i32 = arith.constant 0 : i32
    %c0_i32_0 = arith.constant 0 : i32
    %c0_i32_1 = arith.constant 0 : i32
    return %arg0, %c0_i32, %c0_i32_0 : i32, i32, i32
  }
}

module attributes {stable_mosaic.version = 11 : i64} {
  func.func @_conv_taps_kernel(%arg0: i32, %arg1: memref<1x20x20x128xbf16, #tpu.memory_space<vmem>>, %arg2: memref<25x128x128xbf16, #tpu.memory_space<vmem>>, %arg3: memref<1x128xf32, #tpu.memory_space<vmem>>, %arg4: memref<1x256x128xf32, #tpu.memory_space<vmem>>, %arg5: memref<256x128xf32, #tpu.memory_space<vmem>>) attributes {dimension_semantics = [#tpu.dimension_semantics<parallel>], iteration_bounds = array<i64: 2>, scalar_prefetch = 0 : i64, scratch_operands = 1 : i64, tpu.core_type = #tpu.core_type<tc>, window_params = [{transform_indices = @transform_0, window_bounds = array<i64: 1, 20, 20, 128>}, {pipeline_mode = #tpu.pipeline_mode<synchronous>, transform_indices = @transform_1, window_bounds = array<i64: 25, 128, 128>}, {pipeline_mode = #tpu.pipeline_mode<synchronous>, transform_indices = @transform_2, window_bounds = array<i64: 1, 128>}, {transform_indices = @transform_3, window_bounds = array<i64: 1, 256, 128>}]} {
    %c0 = arith.constant 0 : index
    %c0_0 = arith.constant 0 : index
    %c0_1 = arith.constant 0 : index
    %c0_2 = arith.constant 0 : index
    %0 = vector.load %arg1[%c0, %c0_0, %c0_1, %c0_2] : memref<1x20x20x128xbf16, #tpu.memory_space<vmem>>, vector<1x20x20x128xbf16>
    %1 = vector.shape_cast %0 : vector<1x20x20x128xbf16> to vector<20x20x128xbf16>
    %cst = arith.constant 0.000000e+00 : f32
    %2 = vector.broadcast %cst : f32 to vector<256x128xf32>
    %c0_3 = arith.constant 0 : index
    %c0_4 = arith.constant 0 : index
    %3 = vector.load %arg5[%c0_3, %c0_4] : memref<256x128xf32, #tpu.memory_space<vmem>>, vector<256x128xf32>
    tpu.vector_store %arg5[%c0_3, %c0_4], %2 {strides = array<i32>} : memref<256x128xf32, #tpu.memory_space<vmem>>, vector<256x128xf32>,
    %4 = vector.extract_strided_slice %1 {offsets = [0, 0, 0], sizes = [16, 16, 128], strides = [1, 1, 1]} : vector<20x20x128xbf16> to vector<16x16x128xbf16>
    %5 = vector.shape_cast %4 : vector<16x16x128xbf16> to vector<256x128xbf16>
    %c0_5 = arith.constant 0 : index
    %c0_6 = arith.constant 0 : index
    %6 = vector.load %arg5[%c0_5, %c0_6] : memref<256x128xf32, #tpu.memory_space<vmem>>, vector<256x128xf32>
    %c0_7 = arith.constant 0 : index
    %c0_8 = arith.constant 0 : index
    %c0_9 = arith.constant 0 : index
    %7 = vector.load %arg2[%c0_7, %c0_8, %c0_9] : memref<25x128x128xbf16, #tpu.memory_space<vmem>>, vector<1x128x128xbf16>
    %8 = vector.shape_cast %7 : vector<1x128x128xbf16> to vector<128x128xbf16>
    %cst_10 = arith.constant dense<0.000000e+00> : vector<256x128xf32>
    %9 = tpu.matmul %5, %8, %cst_10 {dimension_numbers = #tpu.dot_dimension_numbers<[1], [0], [0], [1], [0, 0, 1, 1], [], []>} : vector<256x128xbf16>, vector<128x128xbf16>, vector<256x128xf32> -> vector<256x128xf32>
    %10 = arith.addf %6, %9 : vector<256x128xf32>
    %c0_11 = arith.constant 0 : index
    %c0_12 = arith.constant 0 : index
    %11 = vector.load %arg5[%c0_11, %c0_12] : memref<256x128xf32, #tpu.memory_space<vmem>>, vector<256x128xf32>
    tpu.vector_store %arg5[%c0_11, %c0_12], %10 {strides = array<i32>} : memref<256x128xf32, #tpu.memory_space<vmem>>, vector<256x128xf32>,
    %12 = vector.extract_strided_slice %1 {offsets = [0, 1, 0], sizes = [16, 16, 128], strides = [1, 1, 1]} : vector<20x20x128xbf16> to vector<16x16x128xbf16>
    %13 = vector.shape_cast %12 : vector<16x16x128xbf16> to vector<256x128xbf16>
    %c0_13 = arith.constant 0 : index
    %c0_14 = arith.constant 0 : index
    %14 = vector.load %arg5[%c0_13, %c0_14] : memref<256x128xf32, #tpu.memory_space<vmem>>, vector<256x128xf32>
    %c1 = arith.constant 1 : index
    %c0_15 = arith.constant 0 : index
    %c0_16 = arith.constant 0 : index
    %15 = vector.load %arg2[%c1, %c0_15, %c0_16] : memref<25x128x128xbf16, #tpu.memory_space<vmem>>, vector<1x128x128xbf16>
    %16 = vector.shape_cast %15 : vector<1x128x128xbf16> to vector<128x128xbf16>
    %cst_17 = arith.constant dense<0.000000e+00> : vector<256x128xf32>
    %17 = tpu.matmul %13, %16, %cst_17 {dimension_numbers = #tpu.dot_dimension_numbers<[1], [0], [0], [1], [0, 0, 1, 1], [], []>} : vector<256x128xbf16>, vector<128x128xbf16>, vector<256x128xf32> -> vector<256x128xf32>
    %18 = arith.addf %14, %17 : vector<256x128xf32>
    %c0_18 = arith.constant 0 : index
    %c0_19 = arith.constant 0 : index
    %19 = vector.load %arg5[%c0_18, %c0_19] : memref<256x128xf32, #tpu.memory_space<vmem>>, vector<256x128xf32>
    tpu.vector_store %arg5[%c0_18, %c0_19], %18 {strides = array<i32>} : memref<256x128xf32, #tpu.memory_space<vmem>>, vector<256x128xf32>,
    %20 = vector.extract_strided_slice %1 {offsets = [0, 2, 0], sizes = [16, 16, 128], strides = [1, 1, 1]} : vector<20x20x128xbf16> to vector<16x16x128xbf16>
    %21 = vector.shape_cast %20 : vector<16x16x128xbf16> to vector<256x128xbf16>
    %c0_20 = arith.constant 0 : index
    %c0_21 = arith.constant 0 : index
    %22 = vector.load %arg5[%c0_20, %c0_21] : memref<256x128xf32, #tpu.memory_space<vmem>>, vector<256x128xf32>
    %c2 = arith.constant 2 : index
    %c0_22 = arith.constant 0 : index
    %c0_23 = arith.constant 0 : index
    %23 = vector.load %arg2[%c2, %c0_22, %c0_23] : memref<25x128x128xbf16, #tpu.memory_space<vmem>>, vector<1x128x128xbf16>
    %24 = vector.shape_cast %23 : vector<1x128x128xbf16> to vector<128x128xbf16>
    %cst_24 = arith.constant dense<0.000000e+00> : vector<256x128xf32>
    %25 = tpu.matmul %21, %24, %cst_24 {dimension_numbers = #tpu.dot_dimension_numbers<[1], [0], [0], [1], [0, 0, 1, 1], [], []>} : vector<256x128xbf16>, vector<128x128xbf16>, vector<256x128xf32> -> vector<256x128xf32>
    %26 = arith.addf %22, %25 : vector<256x128xf32>
    %c0_25 = arith.constant 0 : index
    %c0_26 = arith.constant 0 : index
    %27 = vector.load %arg5[%c0_25, %c0_26] : memref<256x128xf32, #tpu.memory_space<vmem>>, vector<256x128xf32>
    tpu.vector_store %arg5[%c0_25, %c0_26], %26 {strides = array<i32>} : memref<256x128xf32, #tpu.memory_space<vmem>>, vector<256x128xf32>,
    %28 = vector.extract_strided_slice %1 {offsets = [0, 3, 0], sizes = [16, 16, 128], strides = [1, 1, 1]} : vector<20x20x128xbf16> to vector<16x16x128xbf16>
    %29 = vector.shape_cast %28 : vector<16x16x128xbf16> to vector<256x128xbf16>
    %c0_27 = arith.constant 0 : index
    %c0_28 = arith.constant 0 : index
    %30 = vector.load %arg5[%c0_27, %c0_28] : memref<256x128xf32, #tpu.memory_space<vmem>>, vector<256x128xf32>
    %c3 = arith.constant 3 : index
    %c0_29 = arith.constant 0 : index
    %c0_30 = arith.constant 0 : index
    %31 = vector.load %arg2[%c3, %c0_29, %c0_30] : memref<25x128x128xbf16, #tpu.memory_space<vmem>>, vector<1x128x128xbf16>
    %32 = vector.shape_cast %31 : vector<1x128x128xbf16> to vector<128x128xbf16>
    %cst_31 = arith.constant dense<0.000000e+00> : vector<256x128xf32>
    %33 = tpu.matmul %29, %32, %cst_31 {dimension_numbers = #tpu.dot_dimension_numbers<[1], [0], [0], [1], [0, 0, 1, 1], [], []>} : vector<256x128xbf16>, vector<128x128xbf16>, vector<256x128xf32> -> vector<256x128xf32>
    %34 = arith.addf %30, %33 : vector<256x128xf32>
    %c0_32 = arith.constant 0 : index
    %c0_33 = arith.constant 0 : index
    %35 = vector.load %arg5[%c0_32, %c0_33] : memref<256x128xf32, #tpu.memory_space<vmem>>, vector<256x128xf32>
    tpu.vector_store %arg5[%c0_32, %c0_33], %34 {strides = array<i32>} : memref<256x128xf32, #tpu.memory_space<vmem>>, vector<256x128xf32>,
    %36 = vector.extract_strided_slice %1 {offsets = [0, 4, 0], sizes = [16, 16, 128], strides = [1, 1, 1]} : vector<20x20x128xbf16> to vector<16x16x128xbf16>
    %37 = vector.shape_cast %36 : vector<16x16x128xbf16> to vector<256x128xbf16>
    %c0_34 = arith.constant 0 : index
    %c0_35 = arith.constant 0 : index
    %38 = vector.load %arg5[%c0_34, %c0_35] : memref<256x128xf32, #tpu.memory_space<vmem>>, vector<256x128xf32>
    %c4 = arith.constant 4 : index
    %c0_36 = arith.constant 0 : index
    %c0_37 = arith.constant 0 : index
    %39 = vector.load %arg2[%c4, %c0_36, %c0_37] : memref<25x128x128xbf16, #tpu.memory_space<vmem>>, vector<1x128x128xbf16>
    %40 = vector.shape_cast %39 : vector<1x128x128xbf16> to vector<128x128xbf16>
    %cst_38 = arith.constant dense<0.000000e+00> : vector<256x128xf32>
    %41 = tpu.matmul %37, %40, %cst_38 {dimension_numbers = #tpu.dot_dimension_numbers<[1], [0], [0], [1], [0, 0, 1, 1], [], []>} : vector<256x128xbf16>, vector<128x128xbf16>, vector<256x128xf32> -> vector<256x128xf32>
    %42 = arith.addf %38, %41 : vector<256x128xf32>
    %c0_39 = arith.constant 0 : index
    %c0_40 = arith.constant 0 : index
    %43 = vector.load %arg5[%c0_39, %c0_40] : memref<256x128xf32, #tpu.memory_space<vmem>>, vector<256x128xf32>
    tpu.vector_store %arg5[%c0_39, %c0_40], %42 {strides = array<i32>} : memref<256x128xf32, #tpu.memory_space<vmem>>, vector<256x128xf32>,
    %44 = vector.extract_strided_slice %1 {offsets = [1, 0, 0], sizes = [16, 16, 128], strides = [1, 1, 1]} : vector<20x20x128xbf16> to vector<16x16x128xbf16>
    %45 = vector.shape_cast %44 : vector<16x16x128xbf16> to vector<256x128xbf16>
    %c0_41 = arith.constant 0 : index
    %c0_42 = arith.constant 0 : index
    %46 = vector.load %arg5[%c0_41, %c0_42] : memref<256x128xf32, #tpu.memory_space<vmem>>, vector<256x128xf32>
    %c5 = arith.constant 5 : index
    %c0_43 = arith.constant 0 : index
    %c0_44 = arith.constant 0 : index
    %47 = vector.load %arg2[%c5, %c0_43, %c0_44] : memref<25x128x128xbf16, #tpu.memory_space<vmem>>, vector<1x128x128xbf16>
    %48 = vector.shape_cast %47 : vector<1x128x128xbf16> to vector<128x128xbf16>
    %cst_45 = arith.constant dense<0.000000e+00> : vector<256x128xf32>
    %49 = tpu.matmul %45, %48, %cst_45 {dimension_numbers = #tpu.dot_dimension_numbers<[1], [0], [0], [1], [0, 0, 1, 1], [], []>} : vector<256x128xbf16>, vector<128x128xbf16>, vector<256x128xf32> -> vector<256x128xf32>
    %50 = arith.addf %46, %49 : vector<256x128xf32>
    %c0_46 = arith.constant 0 : index
    %c0_47 = arith.constant 0 : index
    %51 = vector.load %arg5[%c0_46, %c0_47] : memref<256x128xf32, #tpu.memory_space<vmem>>, vector<256x128xf32>
    tpu.vector_store %arg5[%c0_46, %c0_47], %50 {strides = array<i32>} : memref<256x128xf32, #tpu.memory_space<vmem>>, vector<256x128xf32>,
    %52 = vector.extract_strided_slice %1 {offsets = [1, 1, 0], sizes = [16, 16, 128], strides = [1, 1, 1]} : vector<20x20x128xbf16> to vector<16x16x128xbf16>
    %53 = vector.shape_cast %52 : vector<16x16x128xbf16> to vector<256x128xbf16>
    %c0_48 = arith.constant 0 : index
    %c0_49 = arith.constant 0 : index
    %54 = vector.load %arg5[%c0_48, %c0_49] : memref<256x128xf32, #tpu.memory_space<vmem>>, vector<256x128xf32>
    %c6 = arith.constant 6 : index
    %c0_50 = arith.constant 0 : index
    %c0_51 = arith.constant 0 : index
    %55 = vector.load %arg2[%c6, %c0_50, %c0_51] : memref<25x128x128xbf16, #tpu.memory_space<vmem>>, vector<1x128x128xbf16>
    %56 = vector.shape_cast %55 : vector<1x128x128xbf16> to vector<128x128xbf16>
    %cst_52 = arith.constant dense<0.000000e+00> : vector<256x128xf32>
    %57 = tpu.matmul %53, %56, %cst_52 {dimension_numbers = #tpu.dot_dimension_numbers<[1], [0], [0], [1], [0, 0, 1, 1], [], []>} : vector<256x128xbf16>, vector<128x128xbf16>, vector<256x128xf32> -> vector<256x128xf32>
    %58 = arith.addf %54, %57 : vector<256x128xf32>
    %c0_53 = arith.constant 0 : index
    %c0_54 = arith.constant 0 : index
    %59 = vector.load %arg5[%c0_53, %c0_54] : memref<256x128xf32, #tpu.memory_space<vmem>>, vector<256x128xf32>
    tpu.vector_store %arg5[%c0_53, %c0_54], %58 {strides = array<i32>} : memref<256x128xf32, #tpu.memory_space<vmem>>, vector<256x128xf32>,
    %60 = vector.extract_strided_slice %1 {offsets = [1, 2, 0], sizes = [16, 16, 128], strides = [1, 1, 1]} : vector<20x20x128xbf16> to vector<16x16x128xbf16>
    %61 = vector.shape_cast %60 : vector<16x16x128xbf16> to vector<256x128xbf16>
    %c0_55 = arith.constant 0 : index
    %c0_56 = arith.constant 0 : index
    %62 = vector.load %arg5[%c0_55, %c0_56] : memref<256x128xf32, #tpu.memory_space<vmem>>, vector<256x128xf32>
    %c7 = arith.constant 7 : index
    %c0_57 = arith.constant 0 : index
    %c0_58 = arith.constant 0 : index
    %63 = vector.load %arg2[%c7, %c0_57, %c0_58] : memref<25x128x128xbf16, #tpu.memory_space<vmem>>, vector<1x128x128xbf16>
    %64 = vector.shape_cast %63 : vector<1x128x128xbf16> to vector<128x128xbf16>
    %cst_59 = arith.constant dense<0.000000e+00> : vector<256x128xf32>
    %65 = tpu.matmul %61, %64, %cst_59 {dimension_numbers = #tpu.dot_dimension_numbers<[1], [0], [0], [1], [0, 0, 1, 1], [], []>} : vector<256x128xbf16>, vector<128x128xbf16>, vector<256x128xf32> -> vector<256x128xf32>
    %66 = arith.addf %62, %65 : vector<256x128xf32>
    %c0_60 = arith.constant 0 : index
    %c0_61 = arith.constant 0 : index
    %67 = vector.load %arg5[%c0_60, %c0_61] : memref<256x128xf32, #tpu.memory_space<vmem>>, vector<256x128xf32>
    tpu.vector_store %arg5[%c0_60, %c0_61], %66 {strides = array<i32>} : memref<256x128xf32, #tpu.memory_space<vmem>>, vector<256x128xf32>,
    %68 = vector.extract_strided_slice %1 {offsets = [1, 3, 0], sizes = [16, 16, 128], strides = [1, 1, 1]} : vector<20x20x128xbf16> to vector<16x16x128xbf16>
    %69 = vector.shape_cast %68 : vector<16x16x128xbf16> to vector<256x128xbf16>
    %c0_62 = arith.constant 0 : index
    %c0_63 = arith.constant 0 : index
    %70 = vector.load %arg5[%c0_62, %c0_63] : memref<256x128xf32, #tpu.memory_space<vmem>>, vector<256x128xf32>
    %c8 = arith.constant 8 : index
    %c0_64 = arith.constant 0 : index
    %c0_65 = arith.constant 0 : index
    %71 = vector.load %arg2[%c8, %c0_64, %c0_65] : memref<25x128x128xbf16, #tpu.memory_space<vmem>>, vector<1x128x128xbf16>
    %72 = vector.shape_cast %71 : vector<1x128x128xbf16> to vector<128x128xbf16>
    %cst_66 = arith.constant dense<0.000000e+00> : vector<256x128xf32>
    %73 = tpu.matmul %69, %72, %cst_66 {dimension_numbers = #tpu.dot_dimension_numbers<[1], [0], [0], [1], [0, 0, 1, 1], [], []>} : vector<256x128xbf16>, vector<128x128xbf16>, vector<256x128xf32> -> vector<256x128xf32>
    %74 = arith.addf %70, %73 : vector<256x128xf32>
    %c0_67 = arith.constant 0 : index
    %c0_68 = arith.constant 0 : index
    %75 = vector.load %arg5[%c0_67, %c0_68] : memref<256x128xf32, #tpu.memory_space<vmem>>, vector<256x128xf32>
    tpu.vector_store %arg5[%c0_67, %c0_68], %74 {strides = array<i32>} : memref<256x128xf32, #tpu.memory_space<vmem>>, vector<256x128xf32>,
    %76 = vector.extract_strided_slice %1 {offsets = [1, 4, 0], sizes = [16, 16, 128], strides = [1, 1, 1]} : vector<20x20x128xbf16> to vector<16x16x128xbf16>
    %77 = vector.shape_cast %76 : vector<16x16x128xbf16> to vector<256x128xbf16>
    %c0_69 = arith.constant 0 : index
    %c0_70 = arith.constant 0 : index
    %78 = vector.load %arg5[%c0_69, %c0_70] : memref<256x128xf32, #tpu.memory_space<vmem>>, vector<256x128xf32>
    %c9 = arith.constant 9 : index
    %c0_71 = arith.constant 0 : index
    %c0_72 = arith.constant 0 : index
    %79 = vector.load %arg2[%c9, %c0_71, %c0_72] : memref<25x128x128xbf16, #tpu.memory_space<vmem>>, vector<1x128x128xbf16>
    %80 = vector.shape_cast %79 : vector<1x128x128xbf16> to vector<128x128xbf16>
    %cst_73 = arith.constant dense<0.000000e+00> : vector<256x128xf32>
    %81 = tpu.matmul %77, %80, %cst_73 {dimension_numbers = #tpu.dot_dimension_numbers<[1], [0], [0], [1], [0, 0, 1, 1], [], []>} : vector<256x128xbf16>, vector<128x128xbf16>, vector<256x128xf32> -> vector<256x128xf32>
    %82 = arith.addf %78, %81 : vector<256x128xf32>
    %c0_74 = arith.constant 0 : index
    %c0_75 = arith.constant 0 : index
    %83 = vector.load %arg5[%c0_74, %c0_75] : memref<256x128xf32, #tpu.memory_space<vmem>>, vector<256x128xf32>
    tpu.vector_store %arg5[%c0_74, %c0_75], %82 {strides = array<i32>} : memref<256x128xf32, #tpu.memory_space<vmem>>, vector<256x128xf32>,
    %84 = vector.extract_strided_slice %1 {offsets = [2, 0, 0], sizes = [16, 16, 128], strides = [1, 1, 1]} : vector<20x20x128xbf16> to vector<16x16x128xbf16>
    %85 = vector.shape_cast %84 : vector<16x16x128xbf16> to vector<256x128xbf16>
    %c0_76 = arith.constant 0 : index
    %c0_77 = arith.constant 0 : index
    %86 = vector.load %arg5[%c0_76, %c0_77] : memref<256x128xf32, #tpu.memory_space<vmem>>, vector<256x128xf32>
    %c10 = arith.constant 10 : index
    %c0_78 = arith.constant 0 : index
    %c0_79 = arith.constant 0 : index
    %87 = vector.load %arg2[%c10, %c0_78, %c0_79] : memref<25x128x128xbf16, #tpu.memory_space<vmem>>, vector<1x128x128xbf16>
    %88 = vector.shape_cast %87 : vector<1x128x128xbf16> to vector<128x128xbf16>
    %cst_80 = arith.constant dense<0.000000e+00> : vector<256x128xf32>
    %89 = tpu.matmul %85, %88, %cst_80 {dimension_numbers = #tpu.dot_dimension_numbers<[1], [0], [0], [1], [0, 0, 1, 1], [], []>} : vector<256x128xbf16>, vector<128x128xbf16>, vector<256x128xf32> -> vector<256x128xf32>
    %90 = arith.addf %86, %89 : vector<256x128xf32>
    %c0_81 = arith.constant 0 : index
    %c0_82 = arith.constant 0 : index
    %91 = vector.load %arg5[%c0_81, %c0_82] : memref<256x128xf32, #tpu.memory_space<vmem>>, vector<256x128xf32>
    tpu.vector_store %arg5[%c0_81, %c0_82], %90 {strides = array<i32>} : memref<256x128xf32, #tpu.memory_space<vmem>>, vector<256x128xf32>,
    %92 = vector.extract_strided_slice %1 {offsets = [2, 1, 0], sizes = [16, 16, 128], strides = [1, 1, 1]} : vector<20x20x128xbf16> to vector<16x16x128xbf16>
    %93 = vector.shape_cast %92 : vector<16x16x128xbf16> to vector<256x128xbf16>
    %c0_83 = arith.constant 0 : index
    %c0_84 = arith.constant 0 : index
    %94 = vector.load %arg5[%c0_83, %c0_84] : memref<256x128xf32, #tpu.memory_space<vmem>>, vector<256x128xf32>
    %c11 = arith.constant 11 : index
    %c0_85 = arith.constant 0 : index
    %c0_86 = arith.constant 0 : index
    %95 = vector.load %arg2[%c11, %c0_85, %c0_86] : memref<25x128x128xbf16, #tpu.memory_space<vmem>>, vector<1x128x128xbf16>
    %96 = vector.shape_cast %95 : vector<1x128x128xbf16> to vector<128x128xbf16>
    %cst_87 = arith.constant dense<0.000000e+00> : vector<256x128xf32>
    %97 = tpu.matmul %93, %96, %cst_87 {dimension_numbers = #tpu.dot_dimension_numbers<[1], [0], [0], [1], [0, 0, 1, 1], [], []>} : vector<256x128xbf16>, vector<128x128xbf16>, vector<256x128xf32> -> vector<256x128xf32>
    %98 = arith.addf %94, %97 : vector<256x128xf32>
    %c0_88 = arith.constant 0 : index
    %c0_89 = arith.constant 0 : index
    %99 = vector.load %arg5[%c0_88, %c0_89] : memref<256x128xf32, #tpu.memory_space<vmem>>, vector<256x128xf32>
    tpu.vector_store %arg5[%c0_88, %c0_89], %98 {strides = array<i32>} : memref<256x128xf32, #tpu.memory_space<vmem>>, vector<256x128xf32>,
    %100 = vector.extract_strided_slice %1 {offsets = [2, 2, 0], sizes = [16, 16, 128], strides = [1, 1, 1]} : vector<20x20x128xbf16> to vector<16x16x128xbf16>
    %101 = vector.shape_cast %100 : vector<16x16x128xbf16> to vector<256x128xbf16>
    %c0_90 = arith.constant 0 : index
    %c0_91 = arith.constant 0 : index
    %102 = vector.load %arg5[%c0_90, %c0_91] : memref<256x128xf32, #tpu.memory_space<vmem>>, vector<256x128xf32>
    %c12 = arith.constant 12 : index
    %c0_92 = arith.constant 0 : index
    %c0_93 = arith.constant 0 : index
    %103 = vector.load %arg2[%c12, %c0_92, %c0_93] : memref<25x128x128xbf16, #tpu.memory_space<vmem>>, vector<1x128x128xbf16>
    %104 = vector.shape_cast %103 : vector<1x128x128xbf16> to vector<128x128xbf16>
    %cst_94 = arith.constant dense<0.000000e+00> : vector<256x128xf32>
    %105 = tpu.matmul %101, %104, %cst_94 {dimension_numbers = #tpu.dot_dimension_numbers<[1], [0], [0], [1], [0, 0, 1, 1], [], []>} : vector<256x128xbf16>, vector<128x128xbf16>, vector<256x128xf32> -> vector<256x128xf32>
    %106 = arith.addf %102, %105 : vector<256x128xf32>
    %c0_95 = arith.constant 0 : index
    %c0_96 = arith.constant 0 : index
    %107 = vector.load %arg5[%c0_95, %c0_96] : memref<256x128xf32, #tpu.memory_space<vmem>>, vector<256x128xf32>
    tpu.vector_store %arg5[%c0_95, %c0_96], %106 {strides = array<i32>} : memref<256x128xf32, #tpu.memory_space<vmem>>, vector<256x128xf32>,
    %108 = vector.extract_strided_slice %1 {offsets = [2, 3, 0], sizes = [16, 16, 128], strides = [1, 1, 1]} : vector<20x20x128xbf16> to vector<16x16x128xbf16>
    %109 = vector.shape_cast %108 : vector<16x16x128xbf16> to vector<256x128xbf16>
    %c0_97 = arith.constant 0 : index
    %c0_98 = arith.constant 0 : index
    %110 = vector.load %arg5[%c0_97, %c0_98] : memref<256x128xf32, #tpu.memory_space<vmem>>, vector<256x128xf32>
    %c13 = arith.constant 13 : index
    %c0_99 = arith.constant 0 : index
    %c0_100 = arith.constant 0 : index
    %111 = vector.load %arg2[%c13, %c0_99, %c0_100] : memref<25x128x128xbf16, #tpu.memory_space<vmem>>, vector<1x128x128xbf16>
    %112 = vector.shape_cast %111 : vector<1x128x128xbf16> to vector<128x128xbf16>
    %cst_101 = arith.constant dense<0.000000e+00> : vector<256x128xf32>
    %113 = tpu.matmul %109, %112, %cst_101 {dimension_numbers = #tpu.dot_dimension_numbers<[1], [0], [0], [1], [0, 0, 1, 1], [], []>} : vector<256x128xbf16>, vector<128x128xbf16>, vector<256x128xf32> -> vector<256x128xf32>
    %114 = arith.addf %110, %113 : vector<256x128xf32>
    %c0_102 = arith.constant 0 : index
    %c0_103 = arith.constant 0 : index
    %115 = vector.load %arg5[%c0_102, %c0_103] : memref<256x128xf32, #tpu.memory_space<vmem>>, vector<256x128xf32>
    tpu.vector_store %arg5[%c0_102, %c0_103], %114 {strides = array<i32>} : memref<256x128xf32, #tpu.memory_space<vmem>>, vector<256x128xf32>,
    %116 = vector.extract_strided_slice %1 {offsets = [2, 4, 0], sizes = [16, 16, 128], strides = [1, 1, 1]} : vector<20x20x128xbf16> to vector<16x16x128xbf16>
    %117 = vector.shape_cast %116 : vector<16x16x128xbf16> to vector<256x128xbf16>
    %c0_104 = arith.constant 0 : index
    %c0_105 = arith.constant 0 : index
    %118 = vector.load %arg5[%c0_104, %c0_105] : memref<256x128xf32, #tpu.memory_space<vmem>>, vector<256x128xf32>
    %c14 = arith.constant 14 : index
    %c0_106 = arith.constant 0 : index
    %c0_107 = arith.constant 0 : index
    %119 = vector.load %arg2[%c14, %c0_106, %c0_107] : memref<25x128x128xbf16, #tpu.memory_space<vmem>>, vector<1x128x128xbf16>
    %120 = vector.shape_cast %119 : vector<1x128x128xbf16> to vector<128x128xbf16>
    %cst_108 = arith.constant dense<0.000000e+00> : vector<256x128xf32>
    %121 = tpu.matmul %117, %120, %cst_108 {dimension_numbers = #tpu.dot_dimension_numbers<[1], [0], [0], [1], [0, 0, 1, 1], [], []>} : vector<256x128xbf16>, vector<128x128xbf16>, vector<256x128xf32> -> vector<256x128xf32>
    %122 = arith.addf %118, %121 : vector<256x128xf32>
    %c0_109 = arith.constant 0 : index
    %c0_110 = arith.constant 0 : index
    %123 = vector.load %arg5[%c0_109, %c0_110] : memref<256x128xf32, #tpu.memory_space<vmem>>, vector<256x128xf32>
    tpu.vector_store %arg5[%c0_109, %c0_110], %122 {strides = array<i32>} : memref<256x128xf32, #tpu.memory_space<vmem>>, vector<256x128xf32>,
    %124 = vector.extract_strided_slice %1 {offsets = [3, 0, 0], sizes = [16, 16, 128], strides = [1, 1, 1]} : vector<20x20x128xbf16> to vector<16x16x128xbf16>
    %125 = vector.shape_cast %124 : vector<16x16x128xbf16> to vector<256x128xbf16>
    %c0_111 = arith.constant 0 : index
    %c0_112 = arith.constant 0 : index
    %126 = vector.load %arg5[%c0_111, %c0_112] : memref<256x128xf32, #tpu.memory_space<vmem>>, vector<256x128xf32>
    %c15 = arith.constant 15 : index
    %c0_113 = arith.constant 0 : index
    %c0_114 = arith.constant 0 : index
    %127 = vector.load %arg2[%c15, %c0_113, %c0_114] : memref<25x128x128xbf16, #tpu.memory_space<vmem>>, vector<1x128x128xbf16>
    %128 = vector.shape_cast %127 : vector<1x128x128xbf16> to vector<128x128xbf16>
    %cst_115 = arith.constant dense<0.000000e+00> : vector<256x128xf32>
    %129 = tpu.matmul %125, %128, %cst_115 {dimension_numbers = #tpu.dot_dimension_numbers<[1], [0], [0], [1], [0, 0, 1, 1], [], []>} : vector<256x128xbf16>, vector<128x128xbf16>, vector<256x128xf32> -> vector<256x128xf32>
    %130 = arith.addf %126, %129 : vector<256x128xf32>
    %c0_116 = arith.constant 0 : index
    %c0_117 = arith.constant 0 : index
    %131 = vector.load %arg5[%c0_116, %c0_117] : memref<256x128xf32, #tpu.memory_space<vmem>>, vector<256x128xf32>
    tpu.vector_store %arg5[%c0_116, %c0_117], %130 {strides = array<i32>} : memref<256x128xf32, #tpu.memory_space<vmem>>, vector<256x128xf32>,
    %132 = vector.extract_strided_slice %1 {offsets = [3, 1, 0], sizes = [16, 16, 128], strides = [1, 1, 1]} : vector<20x20x128xbf16> to vector<16x16x128xbf16>
    %133 = vector.shape_cast %132 : vector<16x16x128xbf16> to vector<256x128xbf16>
    %c0_118 = arith.constant 0 : index
    %c0_119 = arith.constant 0 : index
    %134 = vector.load %arg5[%c0_118, %c0_119] : memref<256x128xf32, #tpu.memory_space<vmem>>, vector<256x128xf32>
    %c16 = arith.constant 16 : index
    %c0_120 = arith.constant 0 : index
    %c0_121 = arith.constant 0 : index
    %135 = vector.load %arg2[%c16, %c0_120, %c0_121] : memref<25x128x128xbf16, #tpu.memory_space<vmem>>, vector<1x128x128xbf16>
    %136 = vector.shape_cast %135 : vector<1x128x128xbf16> to vector<128x128xbf16>
    %cst_122 = arith.constant dense<0.000000e+00> : vector<256x128xf32>
    %137 = tpu.matmul %133, %136, %cst_122 {dimension_numbers = #tpu.dot_dimension_numbers<[1], [0], [0], [1], [0, 0, 1, 1], [], []>} : vector<256x128xbf16>, vector<128x128xbf16>, vector<256x128xf32> -> vector<256x128xf32>
    %138 = arith.addf %134, %137 : vector<256x128xf32>
    %c0_123 = arith.constant 0 : index
    %c0_124 = arith.constant 0 : index
    %139 = vector.load %arg5[%c0_123, %c0_124] : memref<256x128xf32, #tpu.memory_space<vmem>>, vector<256x128xf32>
    tpu.vector_store %arg5[%c0_123, %c0_124], %138 {strides = array<i32>} : memref<256x128xf32, #tpu.memory_space<vmem>>, vector<256x128xf32>,
    %140 = vector.extract_strided_slice %1 {offsets = [3, 2, 0], sizes = [16, 16, 128], strides = [1, 1, 1]} : vector<20x20x128xbf16> to vector<16x16x128xbf16>
    %141 = vector.shape_cast %140 : vector<16x16x128xbf16> to vector<256x128xbf16>
    %c0_125 = arith.constant 0 : index
    %c0_126 = arith.constant 0 : index
    %142 = vector.load %arg5[%c0_125, %c0_126] : memref<256x128xf32, #tpu.memory_space<vmem>>, vector<256x128xf32>
    %c17 = arith.constant 17 : index
    %c0_127 = arith.constant 0 : index
    %c0_128 = arith.constant 0 : index
    %143 = vector.load %arg2[%c17, %c0_127, %c0_128] : memref<25x128x128xbf16, #tpu.memory_space<vmem>>, vector<1x128x128xbf16>
    %144 = vector.shape_cast %143 : vector<1x128x128xbf16> to vector<128x128xbf16>
    %cst_129 = arith.constant dense<0.000000e+00> : vector<256x128xf32>
    %145 = tpu.matmul %141, %144, %cst_129 {dimension_numbers = #tpu.dot_dimension_numbers<[1], [0], [0], [1], [0, 0, 1, 1], [], []>} : vector<256x128xbf16>, vector<128x128xbf16>, vector<256x128xf32> -> vector<256x128xf32>
    %146 = arith.addf %142, %145 : vector<256x128xf32>
    %c0_130 = arith.constant 0 : index
    %c0_131 = arith.constant 0 : index
    %147 = vector.load %arg5[%c0_130, %c0_131] : memref<256x128xf32, #tpu.memory_space<vmem>>, vector<256x128xf32>
    tpu.vector_store %arg5[%c0_130, %c0_131], %146 {strides = array<i32>} : memref<256x128xf32, #tpu.memory_space<vmem>>, vector<256x128xf32>,
    %148 = vector.extract_strided_slice %1 {offsets = [3, 3, 0], sizes = [16, 16, 128], strides = [1, 1, 1]} : vector<20x20x128xbf16> to vector<16x16x128xbf16>
    %149 = vector.shape_cast %148 : vector<16x16x128xbf16> to vector<256x128xbf16>
    %c0_132 = arith.constant 0 : index
    %c0_133 = arith.constant 0 : index
    %150 = vector.load %arg5[%c0_132, %c0_133] : memref<256x128xf32, #tpu.memory_space<vmem>>, vector<256x128xf32>
    %c18 = arith.constant 18 : index
    %c0_134 = arith.constant 0 : index
    %c0_135 = arith.constant 0 : index
    %151 = vector.load %arg2[%c18, %c0_134, %c0_135] : memref<25x128x128xbf16, #tpu.memory_space<vmem>>, vector<1x128x128xbf16>
    %152 = vector.shape_cast %151 : vector<1x128x128xbf16> to vector<128x128xbf16>
    %cst_136 = arith.constant dense<0.000000e+00> : vector<256x128xf32>
    %153 = tpu.matmul %149, %152, %cst_136 {dimension_numbers = #tpu.dot_dimension_numbers<[1], [0], [0], [1], [0, 0, 1, 1], [], []>} : vector<256x128xbf16>, vector<128x128xbf16>, vector<256x128xf32> -> vector<256x128xf32>
    %154 = arith.addf %150, %153 : vector<256x128xf32>
    %c0_137 = arith.constant 0 : index
    %c0_138 = arith.constant 0 : index
    %155 = vector.load %arg5[%c0_137, %c0_138] : memref<256x128xf32, #tpu.memory_space<vmem>>, vector<256x128xf32>
    tpu.vector_store %arg5[%c0_137, %c0_138], %154 {strides = array<i32>} : memref<256x128xf32, #tpu.memory_space<vmem>>, vector<256x128xf32>,
    %156 = vector.extract_strided_slice %1 {offsets = [3, 4, 0], sizes = [16, 16, 128], strides = [1, 1, 1]} : vector<20x20x128xbf16> to vector<16x16x128xbf16>
    %157 = vector.shape_cast %156 : vector<16x16x128xbf16> to vector<256x128xbf16>
    %c0_139 = arith.constant 0 : index
    %c0_140 = arith.constant 0 : index
    %158 = vector.load %arg5[%c0_139, %c0_140] : memref<256x128xf32, #tpu.memory_space<vmem>>, vector<256x128xf32>
    %c19 = arith.constant 19 : index
    %c0_141 = arith.constant 0 : index
    %c0_142 = arith.constant 0 : index
    %159 = vector.load %arg2[%c19, %c0_141, %c0_142] : memref<25x128x128xbf16, #tpu.memory_space<vmem>>, vector<1x128x128xbf16>
    %160 = vector.shape_cast %159 : vector<1x128x128xbf16> to vector<128x128xbf16>
    %cst_143 = arith.constant dense<0.000000e+00> : vector<256x128xf32>
    %161 = tpu.matmul %157, %160, %cst_143 {dimension_numbers = #tpu.dot_dimension_numbers<[1], [0], [0], [1], [0, 0, 1, 1], [], []>} : vector<256x128xbf16>, vector<128x128xbf16>, vector<256x128xf32> -> vector<256x128xf32>
    %162 = arith.addf %158, %161 : vector<256x128xf32>
    %c0_144 = arith.constant 0 : index
    %c0_145 = arith.constant 0 : index
    %163 = vector.load %arg5[%c0_144, %c0_145] : memref<256x128xf32, #tpu.memory_space<vmem>>, vector<256x128xf32>
    tpu.vector_store %arg5[%c0_144, %c0_145], %162 {strides = array<i32>} : memref<256x128xf32, #tpu.memory_space<vmem>>, vector<256x128xf32>,
    %164 = vector.extract_strided_slice %1 {offsets = [4, 0, 0], sizes = [16, 16, 128], strides = [1, 1, 1]} : vector<20x20x128xbf16> to vector<16x16x128xbf16>
    %165 = vector.shape_cast %164 : vector<16x16x128xbf16> to vector<256x128xbf16>
    %c0_146 = arith.constant 0 : index
    %c0_147 = arith.constant 0 : index
    %166 = vector.load %arg5[%c0_146, %c0_147] : memref<256x128xf32, #tpu.memory_space<vmem>>, vector<256x128xf32>
    %c20 = arith.constant 20 : index
    %c0_148 = arith.constant 0 : index
    %c0_149 = arith.constant 0 : index
    %167 = vector.load %arg2[%c20, %c0_148, %c0_149] : memref<25x128x128xbf16, #tpu.memory_space<vmem>>, vector<1x128x128xbf16>
    %168 = vector.shape_cast %167 : vector<1x128x128xbf16> to vector<128x128xbf16>
    %cst_150 = arith.constant dense<0.000000e+00> : vector<256x128xf32>
    %169 = tpu.matmul %165, %168, %cst_150 {dimension_numbers = #tpu.dot_dimension_numbers<[1], [0], [0], [1], [0, 0, 1, 1], [], []>} : vector<256x128xbf16>, vector<128x128xbf16>, vector<256x128xf32> -> vector<256x128xf32>
    %170 = arith.addf %166, %169 : vector<256x128xf32>
    %c0_151 = arith.constant 0 : index
    %c0_152 = arith.constant 0 : index
    %171 = vector.load %arg5[%c0_151, %c0_152] : memref<256x128xf32, #tpu.memory_space<vmem>>, vector<256x128xf32>
    tpu.vector_store %arg5[%c0_151, %c0_152], %170 {strides = array<i32>} : memref<256x128xf32, #tpu.memory_space<vmem>>, vector<256x128xf32>,
    %172 = vector.extract_strided_slice %1 {offsets = [4, 1, 0], sizes = [16, 16, 128], strides = [1, 1, 1]} : vector<20x20x128xbf16> to vector<16x16x128xbf16>
    %173 = vector.shape_cast %172 : vector<16x16x128xbf16> to vector<256x128xbf16>
    %c0_153 = arith.constant 0 : index
    %c0_154 = arith.constant 0 : index
    %174 = vector.load %arg5[%c0_153, %c0_154] : memref<256x128xf32, #tpu.memory_space<vmem>>, vector<256x128xf32>
    %c21 = arith.constant 21 : index
    %c0_155 = arith.constant 0 : index
    %c0_156 = arith.constant 0 : index
    %175 = vector.load %arg2[%c21, %c0_155, %c0_156] : memref<25x128x128xbf16, #tpu.memory_space<vmem>>, vector<1x128x128xbf16>
    %176 = vector.shape_cast %175 : vector<1x128x128xbf16> to vector<128x128xbf16>
    %cst_157 = arith.constant dense<0.000000e+00> : vector<256x128xf32>
    %177 = tpu.matmul %173, %176, %cst_157 {dimension_numbers = #tpu.dot_dimension_numbers<[1], [0], [0], [1], [0, 0, 1, 1], [], []>} : vector<256x128xbf16>, vector<128x128xbf16>, vector<256x128xf32> -> vector<256x128xf32>
    %178 = arith.addf %174, %177 : vector<256x128xf32>
    %c0_158 = arith.constant 0 : index
    %c0_159 = arith.constant 0 : index
    %179 = vector.load %arg5[%c0_158, %c0_159] : memref<256x128xf32, #tpu.memory_space<vmem>>, vector<256x128xf32>
    tpu.vector_store %arg5[%c0_158, %c0_159], %178 {strides = array<i32>} : memref<256x128xf32, #tpu.memory_space<vmem>>, vector<256x128xf32>,
    %180 = vector.extract_strided_slice %1 {offsets = [4, 2, 0], sizes = [16, 16, 128], strides = [1, 1, 1]} : vector<20x20x128xbf16> to vector<16x16x128xbf16>
    %181 = vector.shape_cast %180 : vector<16x16x128xbf16> to vector<256x128xbf16>
    %c0_160 = arith.constant 0 : index
    %c0_161 = arith.constant 0 : index
    %182 = vector.load %arg5[%c0_160, %c0_161] : memref<256x128xf32, #tpu.memory_space<vmem>>, vector<256x128xf32>
    %c22 = arith.constant 22 : index
    %c0_162 = arith.constant 0 : index
    %c0_163 = arith.constant 0 : index
    %183 = vector.load %arg2[%c22, %c0_162, %c0_163] : memref<25x128x128xbf16, #tpu.memory_space<vmem>>, vector<1x128x128xbf16>
    %184 = vector.shape_cast %183 : vector<1x128x128xbf16> to vector<128x128xbf16>
    %cst_164 = arith.constant dense<0.000000e+00> : vector<256x128xf32>
    %185 = tpu.matmul %181, %184, %cst_164 {dimension_numbers = #tpu.dot_dimension_numbers<[1], [0], [0], [1], [0, 0, 1, 1], [], []>} : vector<256x128xbf16>, vector<128x128xbf16>, vector<256x128xf32> -> vector<256x128xf32>
    %186 = arith.addf %182, %185 : vector<256x128xf32>
    %c0_165 = arith.constant 0 : index
    %c0_166 = arith.constant 0 : index
    %187 = vector.load %arg5[%c0_165, %c0_166] : memref<256x128xf32, #tpu.memory_space<vmem>>, vector<256x128xf32>
    tpu.vector_store %arg5[%c0_165, %c0_166], %186 {strides = array<i32>} : memref<256x128xf32, #tpu.memory_space<vmem>>, vector<256x128xf32>,
    %188 = vector.extract_strided_slice %1 {offsets = [4, 3, 0], sizes = [16, 16, 128], strides = [1, 1, 1]} : vector<20x20x128xbf16> to vector<16x16x128xbf16>
    %189 = vector.shape_cast %188 : vector<16x16x128xbf16> to vector<256x128xbf16>
    %c0_167 = arith.constant 0 : index
    %c0_168 = arith.constant 0 : index
    %190 = vector.load %arg5[%c0_167, %c0_168] : memref<256x128xf32, #tpu.memory_space<vmem>>, vector<256x128xf32>
    %c23 = arith.constant 23 : index
    %c0_169 = arith.constant 0 : index
    %c0_170 = arith.constant 0 : index
    %191 = vector.load %arg2[%c23, %c0_169, %c0_170] : memref<25x128x128xbf16, #tpu.memory_space<vmem>>, vector<1x128x128xbf16>
    %192 = vector.shape_cast %191 : vector<1x128x128xbf16> to vector<128x128xbf16>
    %cst_171 = arith.constant dense<0.000000e+00> : vector<256x128xf32>
    %193 = tpu.matmul %189, %192, %cst_171 {dimension_numbers = #tpu.dot_dimension_numbers<[1], [0], [0], [1], [0, 0, 1, 1], [], []>} : vector<256x128xbf16>, vector<128x128xbf16>, vector<256x128xf32> -> vector<256x128xf32>
    %194 = arith.addf %190, %193 : vector<256x128xf32>
    %c0_172 = arith.constant 0 : index
    %c0_173 = arith.constant 0 : index
    %195 = vector.load %arg5[%c0_172, %c0_173] : memref<256x128xf32, #tpu.memory_space<vmem>>, vector<256x128xf32>
    tpu.vector_store %arg5[%c0_172, %c0_173], %194 {strides = array<i32>} : memref<256x128xf32, #tpu.memory_space<vmem>>, vector<256x128xf32>,
    %196 = vector.extract_strided_slice %1 {offsets = [4, 4, 0], sizes = [16, 16, 128], strides = [1, 1, 1]} : vector<20x20x128xbf16> to vector<16x16x128xbf16>
    %197 = vector.shape_cast %196 : vector<16x16x128xbf16> to vector<256x128xbf16>
    %c0_174 = arith.constant 0 : index
    %c0_175 = arith.constant 0 : index
    %198 = vector.load %arg5[%c0_174, %c0_175] : memref<256x128xf32, #tpu.memory_space<vmem>>, vector<256x128xf32>
    %c24 = arith.constant 24 : index
    %c0_176 = arith.constant 0 : index
    %c0_177 = arith.constant 0 : index
    %199 = vector.load %arg2[%c24, %c0_176, %c0_177] : memref<25x128x128xbf16, #tpu.memory_space<vmem>>, vector<1x128x128xbf16>
    %200 = vector.shape_cast %199 : vector<1x128x128xbf16> to vector<128x128xbf16>
    %cst_178 = arith.constant dense<0.000000e+00> : vector<256x128xf32>
    %201 = tpu.matmul %197, %200, %cst_178 {dimension_numbers = #tpu.dot_dimension_numbers<[1], [0], [0], [1], [0, 0, 1, 1], [], []>} : vector<256x128xbf16>, vector<128x128xbf16>, vector<256x128xf32> -> vector<256x128xf32>
    %202 = arith.addf %198, %201 : vector<256x128xf32>
    %c0_179 = arith.constant 0 : index
    %c0_180 = arith.constant 0 : index
    %203 = vector.load %arg5[%c0_179, %c0_180] : memref<256x128xf32, #tpu.memory_space<vmem>>, vector<256x128xf32>
    tpu.vector_store %arg5[%c0_179, %c0_180], %202 {strides = array<i32>} : memref<256x128xf32, #tpu.memory_space<vmem>>, vector<256x128xf32>,
    %c0_181 = arith.constant 0 : index
    %c0_182 = arith.constant 0 : index
    %204 = vector.load %arg5[%c0_181, %c0_182] : memref<256x128xf32, #tpu.memory_space<vmem>>, vector<256x128xf32>
    %c0_183 = arith.constant 0 : index
    %c0_184 = arith.constant 0 : index
    %205 = vector.load %arg3[%c0_183, %c0_184] : memref<1x128xf32, #tpu.memory_space<vmem>>, vector<1x128xf32>
    %206 = vector.broadcast %205 : vector<1x128xf32> to vector<256x128xf32>
    %207 = arith.addf %204, %206 : vector<256x128xf32>
    %cst_185 = arith.constant 0.000000e+00 : f32
    %208 = vector.broadcast %cst_185 : f32 to vector<256x128xf32>
    %209 = arith.maximumf %207, %208 : vector<256x128xf32>
    %c0_186 = arith.constant 0 : index
    %c0_187 = arith.constant 0 : index
    %c0_188 = arith.constant 0 : index
    %210 = vector.load %arg4[%c0_186, %c0_187, %c0_188] : memref<1x256x128xf32, #tpu.memory_space<vmem>>, vector<1x256x128xf32>
    %211 = vector.shape_cast %210 : vector<1x256x128xf32> to vector<256x128xf32>
    %212 = vector.shape_cast %209 : vector<256x128xf32> to vector<1x256x128xf32>
    tpu.vector_store %arg4[%c0_186, %c0_187, %c0_188], %212 {strides = array<i32>} : memref<1x256x128xf32, #tpu.memory_space<vmem>>, vector<1x256x128xf32>,
    return
  }
  func.func @transform_0(%arg0: i32) -> (i32, i32, i32, i32) {
    %c0_i32 = arith.constant 0 : i32
    %c0_i32_0 = arith.constant 0 : i32
    %c0_i32_1 = arith.constant 0 : i32
    %c0_i32_2 = arith.constant 0 : i32
    return %arg0, %c0_i32, %c0_i32_0, %c0_i32_1 : i32, i32, i32, i32
  }
  func.func @transform_1(%arg0: i32) -> (i32, i32, i32) {
    %c0_i32 = arith.constant 0 : i32
    %c0_i32_0 = arith.constant 0 : i32
    %c0_i32_1 = arith.constant 0 : i32
    %c0_i32_2 = arith.constant 0 : i32
    return %c0_i32, %c0_i32_0, %c0_i32_1 : i32, i32, i32
  }
  func.func @transform_2(%arg0: i32) -> (i32, i32) {
    %c0_i32 = arith.constant 0 : i32
    %c0_i32_0 = arith.constant 0 : i32
    %c0_i32_1 = arith.constant 0 : i32
    return %c0_i32, %c0_i32_0 : i32, i32
  }
  func.func @transform_3(%arg0: i32) -> (i32, i32, i32) {
    %c0_i32 = arith.constant 0 : i32
    %c0_i32_0 = arith.constant 0 : i32
    %c0_i32_1 = arith.constant 0 : i32
    return %arg0, %c0_i32, %c0_i32_0 : i32, i32, i32
  }
}

</mosaic_0001>

<bundles_post_ra>
// kernel: inception_forward.7
= control target key start
LH: loop header
LB: loop body
LE: loop exit
PB: predicated region body
PF: predicated region fallthrough
CT: control target
= control target key end

     0   :  { %s1810_s12 = smov 0   ;;  %s2763_s0 = inlined_call_operand.vmem [shape: bf16[2,18,18,128], index: 0, kind: input, shape index: {}]   ;;  %s2764_s1 = inlined_call_operand.vmem [shape: bf16[128,128], index: 1, kind: input, shape index: {}]   ;;  %s2765_s2 = inlined_call_operand.vmem [shape: f32[1,128], index: 2, kind: input, shape index: {}]   ;;  %s2766_s3 = inlined_call_operand.vmem [shape: f32[2,256,128], index: 3, kind: output, shape index: {}]  }
   0x1 LB: > { %s1619_s13 = sadd.s32 4294967295, %s1788_s12   ;;  %p1623_p0 = scmp.ge.s32.totalorder %s1788_s12, 1  ;;  %s1788_s12 = sphi %s1810_s12, %s13_s12  }
   0x2   : > { %p137_p1 = scmp.lt.s32.totalorder %s1788_s12, 3 }
   0x4   : > { %p138_p2 = pnand %p1623_p0, %p137_p1 }
   0x5   : > { %v1770_v0 = vld [vmem:[%s2764_s1] sm:$0xff] (!%p138_p2)   ;;  %p161_p3 = scmp.lt.s32.totalorder (!%p138_p2), %s1619_s13, 1  ;;  %v1771_v1 = vld [vmem:[%s2764_s1 + $0x8] sm:$0xff] (!%p138_p2)   ;;  %v1772_v2 = vld [vmem:[%s2764_s1 + $0x10] sm:$0xff] (!%p138_p2)   ;;  %vm226_vm0 = vsmask.f32 (!%p138_p2), 3328 }
   0x6   : > { %141 = sbr.rel (%p138_p2) target bundleno = 413 (0x19d), region = 32  ;;  %1697 = vmatprep.subr.bf16.mxu0 (!%p138_p2), %v1770_v0  ;;  %1745 = vmatprep.subr.bf16.mxu1 (!%p138_p2), %v1770_v0  ;;  %v1773_v3 = vld [vmem:[%s2764_s1 + $0x18] sm:$0xff] (!%p138_p2)   ;;  %v1774_v9 = vld [vmem:[%s2764_s1 + $0x20] sm:$0xff] (!%p138_p2)   ;;  %vm227_vm1 = vsmask.f32 (!%p138_p2), 7440  ;;  %vm725_vm2 = vcmask (!%p138_p2), 1042432  }
   0x7   : > { %1698 = vmatpush3.bf16.msra.mxu0 (!%p138_p2), %v1770_v0  ;;  %1753 = vmatpush3.bf16.msra.mxu1 (!%p138_p2), %v1770_v0  ;;  %vm726_vm3 = vcmask (!%p138_p2), 1046532   ;;  %v1775_v28 = vld [vmem:[%s2764_s1 + $0x28] sm:$0xff] (!%p138_p2)   ;;  %vm1880_vm4 = vmor (!%p138_p2), %vm226_vm0, %vm227_vm1  ;;  %v1776_v47 = vld [vmem:[%s2764_s1 + $0x30] sm:$0xff] (!%p138_p2)  }
   0x8   : > { %1699 = vmatprep.subr.bf16.mxu0 (!%p138_p2), %v1771_v1  ;;  %1746 = vmatprep.subr.bf16.mxu1 (!%p138_p2), %v1771_v1  ;;  %vm1909_vm5 = vmor (!%p138_p2), %vm725_vm2, %vm726_vm3 }
   0xb   : > { %1700 = vmatpush3.bf16.msra.mxu0 (!%p138_p2), %v1771_v1  ;;  %1754 = vmatpush3.bf16.msra.mxu1 (!%p138_p2), %v1771_v1  ;;  %v1777_v1 = vld [vmem:[%s2764_s1 + $0x38] sm:$0xff] (!%p138_p2)  }
   0xc   : > { %1701 = vmatprep.subr.bf16.mxu0 (!%p138_p2), %v1772_v2  ;;  %1747 = vmatprep.subr.bf16.mxu1 (!%p138_p2), %v1772_v2 }
   0xd   : > { %s2772_s13 = smov (!%p161_p3, %s1619_s13), 1 }
   0xe   : > { %s1761_s20 = smul.u32 216, %s2772_s13  ;;  %s1672_s9 = sshll.u32 %s2772_s13, 8 }
   0xf   : > { %1702 = vmatpush3.bf16.msra.mxu0 %v1772_v2  ;;  %1755 = vmatpush3.bf16.msra.mxu1 %v1772_v2  ;;  %s2695_s14 = scalar_lea.vmem %s2766_s3, %s1672_s9 }
  0x10   : > { %s1833_s23 = scalar_lea.vmem %s2763_s0, %s1761_s20  ;;  %1703 = vmatprep.subr.bf16.mxu0 %v1773_v3  ;;  %1748 = vmatprep.subr.bf16.mxu1 %v1773_v3 }
  0x11   : > { %v1839_v4 = vld [vmem:[%s1833_s23] sm:$0xf]  ;;  %v1842_v5 = vld [vmem:[%s1833_s23 + $0x4] sm:$0xf]  ;;  %v1845_v6 = vld [vmem:[%s1833_s23 + $0x8] sm:$0x1] }
  0x12   : > { %v1848_v7 = vld [vmem:[%s1833_s23 + $0xc] sm:$0xf]  ;;  %v1851_v8 = vld [vmem:[%s1833_s23 + $0x10] sm:$0xf]  ;;  %v230_v10 = vshrl.u32 %v1839_v4, 16  ;;  %v233_v11 = vshll.u32 %v1839_v4, 16 }
  0x13   : > { %v239_v12 = vshll.u32 %v1842_v5, 16  ;;  %v1860_v13 = vld [vmem:[%s1833_s23 + $0x14] sm:$0x1]  ;;  %v243_v14 = vshrl.u32 %v1842_v5, 16  ;;  %v249_v15 = vshll.u32 %v1845_v6, 16  ;;  %v254_v16 = vshrl.u32 %v1848_v7, 16  ;;  %1704 = vmatpush3.bf16.msra.mxu0 %v1773_v3  ;;  %1756 = vmatpush3.bf16.msra.mxu1 %v1773_v3 }
  0x14   : > { %v257_v17 = vshll.u32 %v1848_v7, 16  ;;  %v1867_v18 = vld [vmem:[%s1833_s23 + $0x18] sm:$0xf]  ;;  %v232_v19 = vrot.slane %v230_v10, 4  ;;  %v235_v20 = vrot.slane %v233_v11, 5  ;;  %v263_v22 = vshll.u32 %v1851_v8, 16  ;;  %1705 = vmatprep.subr.bf16.mxu0 %v1774_v9  ;;  %1749 = vmatprep.subr.bf16.mxu1 %v1774_v9 }
  0x15   : > { %v241_v21 = vrot.slane %v239_v12, 5  ;;  %v1871_v23 = vld [vmem:[%s1833_s23 + $0x1c] sm:$0xf]  ;;  %v245_v24 = vrot.slane %v243_v14, 4  ;;  %v251_v25 = vrot.slane %v249_v15, 5  ;;  %v256_v26 = vrot.slane %v254_v16, 4 }
  0x16   : > { %v259_v27 = vrot.slane %v257_v17, 5  ;;  %v236_v29 = vor.u32 %v235_v20, %v232_v19  ;;  %v265_v30 = vrot.slane %v263_v22, 5  ;;  %v267_v31 = vshrl.u32 %v1851_v8, 16  ;;  %v1887_v38 = vld [vmem:[%s1833_s23 + $0x20] sm:$0x1] }
  0x17   : > { %v273_v32 = vshll.u32 %v1860_v13, 16  ;;  %v246_v34 = vor.u32 %v245_v24, %v241_v21  ;;  %v278_v36 = vshrl.u32 %v1867_v18, 16  ;;  %v281_v37 = vshll.u32 %v1867_v18, 16  ;;  %1706 = vmatpush3.bf16.msra.mxu0 %v1774_v9  ;;  %1757 = vmatpush3.bf16.msra.mxu1 %v1774_v9 }
  0x18   : > { %v260_v35 = vor.u32 %v259_v27, %v256_v26  ;;  %v237_v39 = vrot.slane %v236_v29, 4  ;;  %v269_v40 = vrot.slane %v267_v31, 4  ;;  %v287_v42 = vshll.u32 %v1871_v23, 16  ;;  %1707 = vmatprep.subr.bf16.mxu0 %v1775_v28  ;;  %1750 = vmatprep.subr.bf16.mxu1 %v1775_v28  ;;  %v1943_v27 = vld [vmem:[%s1833_s23 + $0x60] sm:$0xf] }
  0x19   : > { %v275_v41 = vrot.slane %v273_v32, 5  ;;  %v247_v43 = vrot.slane %v246_v34, 4  ;;  %v280_v45 = vrot.slane %v278_v36, 4  ;;  %v283_v46 = vrot.slane %v281_v37, 5 }
  0x1a   : > { %v261_v44 = vrot.slane %v260_v35, 4  ;;  %v242_v48 = vsel %vm1880_vm4, %v237_v39, %v241_v21  ;;  %v270_v49 = vor.u32 %v269_v40, %v265_v30  ;;  %v289_v50 = vrot.slane %v287_v42, 5  ;;  %v1959_v40 = vld [vmem:[%s1833_s23 + $0x24] sm:$0xf] }
  0x1b   : > { %v291_v51 = vshrl.u32 %v1871_v23, 16  ;;  %v252_v52 = vsel %vm1880_vm4, %v247_v43, %v251_v25  ;;  %v284_v54 = vor.u32 %v283_v46, %v280_v45  ;;  %v297_v55 = vshll.u32 %v1887_v38, 16  ;;  %1708 = vmatpush3.bf16.msra.mxu0 %v1775_v28  ;;  %1758 = vmatpush3.bf16.msra.mxu1 %v1775_v28 }
  0x1c   : > { %v1900_v53 = vsel %vm1880_vm4, %v261_v44, %v265_v30  ;;  %v271_v56 = vrot.slane %v270_v49, 4  ;;  %v645_v58 = vmax.bf16 %v242_v48, %v1839_v4  ;;  %v646_v59 = vmax.bf16 %v252_v52, %v1842_v5  ;;  %1709 = vmatprep.subr.bf16.mxu0 %v1776_v47  ;;  %1751 = vmatprep.subr.bf16.mxu1 %v1776_v47  ;;  %v1966_v44 = vld [vmem:[%s1833_s23 + $0x64] sm:$0xf]  ;;  %v1975_v48 = vld [vmem:[%s1833_s23 + $0x28] sm:$0xf] }
  0x1d   : > { %v293_v57 = vrot.slane %v291_v51, 4  ;;  %v285_v60 = vrot.slane %v284_v54, 4  ;;  %v299_v61 = vrot.slane %v297_v55, 5  ;;  %v647_v62 = vmax.bf16 %v1900_v53, %v1848_v7  ;;  %v1979_v51 = vld [vmem:[%s1833_s23 + $0x68] sm:$0x1] }
  0x1e   : > { %v1627_v0 = vrot.slane %v1839_v4, 9  ;;  %v276_v2 = vsel %vm1880_vm4, %v271_v56, %v275_v41  ;;  %v730_v9 = vrot.slane %v1842_v5, 5  ;;  %v733_v10 = vrot.slane %v1845_v6, 5 }
  0x1f   : > { %v294_v3 = vor.u32 %v293_v57, %v289_v50  ;;  %v1923_v11 = vsel %vm1880_vm4, %v285_v60, %v289_v50  ;;  %v648_v4 = vmax.bf16 %v276_v2, %v1851_v8  ;;  %v1628_v12 = vrot.slane %v1848_v7, 9  ;;  %1710 = vmatpush3.bf16.msra.mxu0 %v1776_v47  ;;  %1759 = vmatpush3.bf16.msra.mxu1 %v1776_v47  ;;  %v1986_v60 = vld [vmem:[%s1833_s23 + $0x6c] sm:$0xf] }
  0x20   : > { %v737_v14 = vrot.slane %v1851_v8, 5  ;;  %v649_v16 = vmax.bf16 %v1923_v11, %v1867_v18  ;;  %v731_v5 = vsel %vm1909_vm5, %v1627_v0, %v730_v9  ;;  %v732_v17 = vrot.slane %v730_v9, 4  ;;  %1711 = vmatprep.subr.bf16.mxu0 %v1777_v1  ;;  %1752 = vmatprep.subr.bf16.mxu1 %v1777_v1 }
  0x21   : > { %v295_v15 = vrot.slane %v294_v3, 4  ;;  %v740_v20 = vrot.slane %v1860_v13, 5  ;;  %v1629_v21 = vrot.slane %v1867_v18, 9  ;;  %v744_v25 = vrot.slane %v1871_v23, 5 }
  0x22   : > { %v738_v6 = vsel %vm1909_vm5, %v1628_v12, %v737_v14  ;;  %v739_v19 = vrot.slane %v737_v14, 4  ;;  %v734_v24 = vsel %vm1909_vm5, %v732_v17, %v733_v10  ;;  %v747_v26 = vrot.slane %v1887_v38, 5  ;;  %v2007_v17 = vld [vmem:[%s1833_s23 + $0x78] sm:$0xf] }
  0x23   : > { %v300_v22 = vsel %vm1880_vm4, %v295_v15, %v299_v61  ;;  %v872_v29 = vmax.bf16 %v731_v5, %v645_v58  ;;  %v873_v30 = vmax.bf16 %v734_v24, %v646_v59  ;;  %v1950_v31 = vsel %vm1909_vm5, %v1629_v21, %v744_v25  ;;  %1712 = vmatpush3.bf16.msra.mxu0 %v1777_v1  ;;  %v2017_v24 = vld [vmem:[%s1833_s23 + $0x7c] sm:$0xf] }
  0x24   : > { %v650_v28 = vmax.bf16 %v300_v22, %v1871_v23  ;;  %v741_v13 = vsel %vm1909_vm5, %v739_v19, %v740_v20  ;;  %v746_v32 = vrot.slane %v744_v25, 4  ;;  %v874_v34 = vmax.bf16 %v738_v6, %v647_v62  ;;  %1760 = vmatpush3.bf16.msra.mxu1 %v1777_v1 }
  0x25   : > { %v875_v35 = vmax.bf16 %v741_v13, %v648_v4  ;;  %v1953_v36 = vmax.bf16 %v1950_v31, %v649_v16  ;;  %v904_v37 = vmax.bf16 %v872_v29, %v1848_v7  ;;  %v905_v38 = vmax.bf16 %v873_v30, %v1851_v8 }
  0x26   : > { %v422_v39 = vshrl.u32 %v1943_v27, 16  ;;  %v748_v41 = vsel %vm1909_vm5, %v746_v32, %v747_v26  ;;  %v906_v42 = vmax.bf16 %v874_v34, %v1867_v18  ;;  %v425_v45 = vshll.u32 %v1943_v27, 16  ;;  %v204_v34 = vld [vmem:[%s1833_s23 + $0x80] sm:$0x1] }
  0x27   : > { %v907_v43 = vmax.bf16 %v875_v35, %v1871_v23  ;;  %v1969_v46 = vmax.bf16 %v748_v41, %v650_v28  ;;  %v908_v7 = vmax.bf16 %v1953_v36, %v1959_v40  ;;  %v962_v8 = vmax.bf16 %v904_v37, %v1900_v53 }
  0x28   : > { %v963_v47 = vmax.bf16 %v905_v38, %v276_v2  ;;  %v964_v49 = vmax.bf16 %v906_v42, %v1923_v11  ;;  %v424_v52 = vrot.slane %v422_v39, 4  ;;  %v427_v54 = vrot.slane %v425_v45, 5  ;;  %v1992_v2 = vld [vmem:[%s1833_s23 + $0x70] sm:$0xf] }
  0x29   : > { %v965_v50 = vmax.bf16 %v907_v43, %v300_v22  ;;  %v909_v55 = vmax.bf16 %v1969_v46, %v1975_v48  ;;  %v1006_v56 = vmax.bf16 %v962_v8, %v738_v6  ;;  %v431_v58 = vshll.u32 %v1966_v44, 16 }
  0x2a   : > { %v1007_v57 = vmax.bf16 %v963_v47, %v741_v13  ;;  %v1008_v53 = vmax.bf16 %v964_v49, %v1950_v31  ;;  %v428_v61 = vor.u32 %v427_v54, %v424_v52  ;;  %v435_v62 = vshrl.u32 %v1966_v44, 16 }
  0x2b   : > { %v1009_v59 = vmax.bf16 %v965_v50, %v748_v41  ;;  %v1038_v0 = vmax.bf16 %v1006_v56, %v1867_v18  ;;  %v433_v3 = vrot.slane %v431_v58, 5  ;;  %v441_v9 = vshll.u32 %v1979_v51, 16  ;;  %v2003_v18 = vld [vmem:[%s1833_s23 + $0x74] sm:$0x1] }
  0x2c   : > { %v1039_v1 = vmax.bf16 %v1007_v57, %v1871_v23  ;;  %v1996_v10 = vmax.bf16 %v1008_v53, %v1959_v40  ;;  %v429_v12 = vrot.slane %v428_v61, 4  ;;  %v437_v14 = vrot.slane %v435_v62, 4 }
  0x2d   : > { %v1999_v4 = vmax.bf16 %v1009_v59, %v1975_v48  ;;  %v1096_v15 = vmax.bf16 %v1038_v0, %v1923_v11  ;;  %v443_v23 = vrot.slane %v441_v9, 5  ;;  %v446_v5 = vshrl.u32 %v1986_v60, 16 }
  0x2e   : > { %v1097_v16 = vmax.bf16 %v1039_v1, %v300_v22  ;;  %v2011_v6 = vsel %vm1880_vm4, %v429_v12, %v433_v3  ;;  %v438_v19 = vor.u32 %v437_v14, %v433_v3  ;;  %v449_v20 = vshll.u32 %v1986_v60, 16 }
  0x2f   : > { %v455_v21 = vshll.u32 %v1992_v2, 16  ;;  %v1140_v11 = vmax.bf16 %v1096_v15, %v1950_v31  ;;  %v448_v25 = vrot.slane %v446_v5, 4  ;;  %v459_v26 = vshrl.u32 %v1992_v2, 16 }
  0x30   : > { %v1141_v22 = vmax.bf16 %v1097_v16, %v748_v41  ;;  %v439_v28 = vrot.slane %v438_v19, 4  ;;  %v451_v13 = vrot.slane %v449_v20, 5  ;;  %v465_v30 = vshll.u32 %v2003_v18, 16 }
  0x31   : > { %v457_v29 = vrot.slane %v455_v21, 5  ;;  %v461_v35 = vrot.slane %v459_v26, 4  ;;  %v470_v37 = vshrl.u32 %v2007_v17, 16  ;;  %v473_v38 = vshll.u32 %v2007_v17, 16 }
  0x32   : > { %v1646_v32 = vcombine.low %v1140_v11, %v1141_v22  ;;  %v2026_v31 = vsel %vm1880_vm4, %v439_v28, %v443_v23  ;;  %v452_v39 = vor.u32 %v451_v13, %v448_v25  ;;  %v467_v41 = vrot.slane %v465_v30, 5 }
  0x33   : > { %v479_v42 = vshll.u32 %v2017_v24, 16  ;;  %v462_v43 = vor.u32 %v461_v35, %v457_v29  ;;  %v472_v45 = vrot.slane %v470_v37, 4  ;;  %v475_v8 = vrot.slane %v473_v38, 5 }
  0x34   : > { %1713 = vmatprep.mubr.bf16.mxu0 %v1646_v32  ;;  %v483_v47 = vshrl.u32 %v2017_v24, 16  ;;  %v453_v49 = vrot.slane %v452_v39, 4  ;;  %v489_v52 = vshll.u32 %v204_v34, 16  ;;  %v661_v54 = vmax.bf16 %v2011_v6, %v1943_v27 }
  0x35   : > { %v481_v50 = vrot.slane %v479_v42, 5  ;;  %v463_v56 = vrot.slane %v462_v43, 4  ;;  %v476_v57 = vor.u32 %v475_v8, %v472_v45  ;;  %v662_v53 = vmax.bf16 %v2026_v31, %v1966_v44  ;;  %v2090_v43 = vld [vmem:[%s1833_s23 + $0x84] sm:$0xf] }
  0x36   : > { %v485_v58 = vrot.slane %v483_v47, 4  ;;  %v2036_v59 = vsel %vm1880_vm4, %v453_v49, %v457_v29  ;;  %v491_v61 = vrot.slane %v489_v52, 5  ;;  %v1635_v62 = vrot.slane %v1943_v27, 9 }
  0x37   : > { %v786_v0 = vrot.slane %v1966_v44, 5  ;;  %v2042_v1 = vsel %vm1880_vm4, %v463_v56, %v467_v41  ;;  %v477_v3 = vrot.slane %v476_v57, 4  ;;  %v663_v12 = vmax.bf16 %v2036_v59, %v1986_v60 }
  0x38   : > { %v486_v9 = vor.u32 %v485_v58, %v481_v50  ;;  %v664_v14 = vmax.bf16 %v2042_v1, %v1992_v2  ;;  %v789_v27 = vrot.slane %v1979_v51, 5  ;;  %v1636_v5 = vrot.slane %v1986_v60, 9  ;;  %v183_v58 = vld [vmem:[%s1833_s23 + $0x2c] sm:$0x1] }
  0x39   : > { %v2050_v15 = vsel %vm1909_vm5, %v1635_v62, %v786_v0  ;;  %v788_v16 = vrot.slane %v786_v0, 4  ;;  %v2055_v44 = vsel %vm1880_vm4, %v477_v3, %v481_v50  ;;  %v793_v19 = vrot.slane %v1992_v2, 5 }
  0x3a   : > { %v487_v23 = vrot.slane %v486_v9, 4  ;;  %v665_v20 = vmax.bf16 %v2055_v44, %v2007_v17  ;;  %v796_v11 = vrot.slane %v2003_v18, 5  ;;  %v1637_v51 = vrot.slane %v2007_v17, 9 }
  0x3b   : > { %v2063_v21 = vsel %vm1909_vm5, %v788_v16, %v789_v27  ;;  %v2071_v25 = vsel %vm1909_vm5, %v1636_v5, %v793_v19  ;;  %v795_v26 = vrot.slane %v793_v19, 4  ;;  %v800_v28 = vrot.slane %v2017_v24, 5 }
  0x3c   : > { %v492_v22 = vsel %vm1880_vm4, %v487_v23, %v491_v61  ;;  %v803_v29 = vrot.slane %v204_v34, 5  ;;  %v888_v30 = vmax.bf16 %v2050_v15, %v661_v54  ;;  %v889_v18 = vmax.bf16 %v2063_v21, %v662_v53  ;;  %v2104_v54 = vld [vmem:[%s1833_s23 + $0x88] sm:$0xf] }
  0x3d   : > { %v666_v13 = vmax.bf16 %v492_v22, %v2017_v24  ;;  %v2079_v32 = vsel %vm1909_vm5, %v795_v26, %v796_v11  ;;  %v801_v35 = vsel %vm1909_vm5, %v1637_v51, %v800_v28  ;;  %v802_v37 = vrot.slane %v800_v28, 4 }
  0x3e   : > { %v890_v38 = vmax.bf16 %v2071_v25, %v663_v12  ;;  %v891_v39 = vmax.bf16 %v2079_v32, %v664_v14  ;;  %v2085_v41 = vmax.bf16 %v801_v35, %v665_v20  ;;  %v920_v34 = vmax.bf16 %v888_v30, %v1986_v60 }
  0x3f   : > { %v921_v42 = vmax.bf16 %v889_v18, %v1992_v2  ;;  %v804_v45 = vsel %vm1909_vm5, %v802_v37, %v803_v29  ;;  %v302_v47 = vshrl.u32 %v1959_v40, 16  ;;  %v305_v49 = vshll.u32 %v1959_v40, 16 }
  0x40   : > { %v922_v8 = vmax.bf16 %v890_v38, %v2007_v17  ;;  %v2097_v50 = vmax.bf16 %v804_v45, %v666_v13  ;;  %v923_v52 = vmax.bf16 %v891_v39, %v2017_v24  ;;  %v924_v60 = vmax.bf16 %v2085_v41, %v2090_v43 }
  0x41   : > { %v978_v2 = vmax.bf16 %v920_v34, %v2036_v59  ;;  %v979_v56 = vmax.bf16 %v921_v42, %v2042_v1  ;;  %v304_v53 = vrot.slane %v302_v47, 4  ;;  %v307_v61 = vrot.slane %v305_v49, 5 }
  0x42   : > { %v980_v57 = vmax.bf16 %v922_v8, %v2055_v44  ;;  %v925_v62 = vmax.bf16 %v2097_v50, %v2104_v54  ;;  %v981_v0 = vmax.bf16 %v923_v52, %v492_v22  ;;  %v311_v9 = vshll.u32 %v1975_v48, 16 }
  0x43   : > { %v1022_v3 = vmax.bf16 %v978_v2, %v2071_v25  ;;  %v1023_v12 = vmax.bf16 %v979_v56, %v2079_v32  ;;  %v308_v16 = vor.u32 %v307_v61, %v304_v53  ;;  %v315_v27 = vshrl.u32 %v1975_v48, 16 }
  0x44   : > { %v1024_v14 = vmax.bf16 %v980_v57, %v801_v35  ;;  %v1025_v23 = vmax.bf16 %v981_v0, %v804_v45  ;;  %v313_v19 = vrot.slane %v311_v9, 5  ;;  %v321_v20 = vshll.u32 %v183_v58, 16  ;;  %v207_v0 = vld [vmem:[%s1833_s23 + $0x8c] sm:$0x1] }
  0x45   : > { %v1054_v5 = vmax.bf16 %v1022_v3, %v2007_v17  ;;  %v1055_v11 = vmax.bf16 %v1023_v12, %v2017_v24  ;;  %v309_v26 = vrot.slane %v308_v16, 4  ;;  %v317_v28 = vrot.slane %v315_v27, 4 }
  0x46   : > { %v2118_v51 = vmax.bf16 %v1024_v14, %v2090_v43  ;;  %v2121_v13 = vmax.bf16 %v1025_v23, %v2104_v54  ;;  %v323_v30 = vrot.slane %v321_v20, 5  ;;  %v1630_v18 = vrot.slane %v1959_v40, 9 }
  0x47   : > { %v1112_v29 = vmax.bf16 %v1054_v5, %v2055_v44  ;;  %v1113_v37 = vmax.bf16 %v1055_v11, %v492_v22  ;;  %v314_v17 = vsel %vm1880_vm4, %v309_v26, %v313_v19  ;;  %v318_v38 = vor.u32 %v317_v28, %v313_v19 }
  0x48   : > { %v751_v24 = vrot.slane %v1975_v48, 5  ;;  %v651_v34 = vmax.bf16 %v314_v17, %v1959_v40  ;;  %v754_v42 = vrot.slane %v183_v58, 5  ;;  %v2132_v8 = vmax.bf16 %v908_v7, %v314_v17  ;;  %v2146_v7 = vld [vmem:[%s1833_s23 + $0x30] sm:$0xf] }
  0x49   : > { %v1156_v39 = vmax.bf16 %v1112_v29, %v801_v35  ;;  %v1157_v44 = vmax.bf16 %v1113_v37, %v804_v45  ;;  %v319_v47 = vrot.slane %v318_v38, 4  ;;  %v1098_v2 = vmax.bf16 %v1996_v10, %v314_v17 }
  0x4a   : > { %v2136_v22 = vsel %vm1909_vm5, %v1630_v18, %v751_v24  ;;  %v753_v49 = vrot.slane %v751_v24, 4  ;;  %v494_v36 = vshrl.u32 %v2090_v43, 16  ;;  %v497_v57 = vshll.u32 %v2090_v43, 16 }
  0x4b   : > { %v2139_v52 = vmax.bf16 %v2136_v22, %v651_v34  ;;  %v1010_v35 = vmax.bf16 %v2132_v8, %v2136_v22  ;;  %v1654_v40 = vcombine.low %v1156_v39, %v1157_v44  ;;  %v324_v45 = vsel %vm1880_vm4, %v319_v47, %v323_v30 }
  0x4c   : > { %v2152_v56 = vsel %vm1909_vm5, %v753_v49, %v754_v42  ;;  %v652_v58 = vmax.bf16 %v324_v45, %v1975_v48  ;;  %v2161_v53 = vmax.bf16 %v909_v55, %v324_v45  ;;  %v1099_v61 = vmax.bf16 %v1999_v4, %v324_v45  ;;  %v2175_v55 = vld [vmem:[%s1833_s23 + $0x34] sm:$0xf]  ;;  %v186_v42 = vld [vmem:[%s1833_s23 + $0x38] sm:$0x1] }
  0x4d   : > { %v910_v10 = vmax.bf16 %v2139_v52, %v2146_v7  ;;  %1729 = vmatprep.mubr.bf16.mxu1 %v1654_v40  ;;  %v1142_v3 = vmax.bf16 %v1098_v2, %v2136_v22  ;;  %v496_v9 = vrot.slane %v494_v36, 4  ;;  %v499_v12 = vrot.slane %v497_v57, 5 }
  0x4e   : > { %v503_v14 = vshll.u32 %v2104_v54, 16  ;;  %v2168_v16 = vmax.bf16 %v2152_v56, %v652_v58  ;;  %v1011_v27 = vmax.bf16 %v2161_v53, %v2152_v56  ;;  %v1143_v46 = vmax.bf16 %v1099_v61, %v2152_v56 }
  0x4f   : > { %v507_v48 = vshrl.u32 %v2104_v54, 16  ;;  %v500_v4 = vor.u32 %v499_v12, %v496_v9  ;;  %v513_v5 = vshll.u32 %v207_v0, 16  ;;  %v1638_v19 = vrot.slane %v2090_v43, 9  ;;  %v2211_v12 = vld [vmem:[%s1833_s23 + $0x90] sm:$0xf] }
  0x50   : > { %v505_v23 = vrot.slane %v503_v14, 5  ;;  %v911_v20 = vmax.bf16 %v2168_v16, %v2175_v55  ;;  %v1647_v11 = vcombine.low %v1142_v3, %v1143_v46  ;;  %v807_v28 = vrot.slane %v2104_v54, 5 }
  0x51   : > { %v509_v26 = vrot.slane %v507_v48, 4  ;;  %v501_v29 = vrot.slane %v500_v4, 4  ;;  %v515_v30 = vrot.slane %v513_v5, 5  ;;  %v810_v18 = vrot.slane %v207_v0, 5 }
  0x52   : > { %v326_v37 = vshrl.u32 %v2146_v7, 16  ;;  %1714 = vmatmul.mubr.bf16.vlgmr.msra.gmra.mrb[0].mxu0 %v1647_v11  ;;  %v2184_v38 = vsel %vm1909_vm5, %v1638_v19, %v807_v28  ;;  %v809_v24 = vrot.slane %v807_v28, 4  ;;  %v329_v39 = vshll.u32 %v2146_v7, 16 }
  0x53   : > { %v510_v17 = vor.u32 %v509_v26, %v505_v23  ;;  %v506_v34 = vsel %vm1880_vm4, %v501_v29, %v505_v23  ;;  %v335_v47 = vshll.u32 %v2175_v55, 16  ;;  %v339_v49 = vshrl.u32 %v2175_v55, 16 }
  0x54   : > { %v328_v44 = vrot.slane %v326_v37, 4  ;;  %v667_v36 = vmax.bf16 %v506_v34, %v2090_v43  ;;  %v2195_v40 = vsel %vm1909_vm5, %v809_v24, %v810_v18  ;;  %v2200_v45 = vmax.bf16 %v924_v60, %v506_v34 }
  0x55   : > { %v511_v2 = vrot.slane %v510_v17, 4  ;;  %v1114_v56 = vmax.bf16 %v2118_v51, %v506_v34  ;;  %v331_v57 = vrot.slane %v329_v39, 5  ;;  %v337_v58 = vrot.slane %v335_v47, 5 }
  0x56   : > { %v341_v53 = vrot.slane %v339_v49, 4  ;;  %v2206_v0 = vmax.bf16 %v2184_v38, %v667_v36  ;;  %v1026_v3 = vmax.bf16 %v2200_v45, %v2184_v38  ;;  %v345_v9 = vshll.u32 %v186_v42, 16  ;;  %v2275_v49 = vld [vmem:[%s1833_s23 + $0x40] sm:$0xf] }
  0x57   : > { %v516_v61 = vsel %vm1880_vm4, %v511_v2, %v515_v30  ;;  %v1158_v51 = vmax.bf16 %v1114_v56, %v2184_v38  ;;  %v332_v16 = vor.u32 %v331_v57, %v328_v44  ;;  %v1631_v50 = vrot.slane %v2146_v7, 9 }
  0x58   : > { %v668_v41 = vmax.bf16 %v516_v61, %v2104_v54  ;;  %v983_v43 = vmax.bf16 %v925_v62, %v516_v61  ;;  %v1115_v60 = vmax.bf16 %v2121_v13, %v516_v61  ;;  %v926_v14 = vmax.bf16 %v2206_v0, %v2211_v12  ;;  %v2228_v54 = vld [vmem:[%s1833_s23 + $0x94] sm:$0xf] }
  0x59   : > { %v342_v46 = vor.u32 %v341_v53, %v337_v58  ;;  %v347_v48 = vrot.slane %v345_v9, 5  ;;  %v333_v62 = vrot.slane %v332_v16, 4  ;;  %v758_v19 = vrot.slane %v2175_v55, 5 }
  0x5a   : > { %v2222_v4 = vmax.bf16 %v2195_v40, %v668_v41  ;;  %v1027_v23 = vmax.bf16 %v983_v43, %v2195_v40  ;;  %v1159_v5 = vmax.bf16 %v1115_v60, %v2195_v40  ;;  %v761_v11 = vrot.slane %v186_v42, 5 }
  0x5b   : > { %v343_v13 = vrot.slane %v342_v46, 4  ;;  %v1042_v29 = vmax.bf16 %v1010_v35, %v2146_v7  ;;  %v1043_v30 = vmax.bf16 %v1011_v27, %v2175_v55  ;;  %v338_v18 = vsel %vm1880_vm4, %v333_v62, %v337_v58 }
  0x5c   : > { %v927_v26 = vmax.bf16 %v2222_v4, %v2228_v54  ;;  %v1655_v28 = vcombine.low %v1158_v51, %v1159_v5  ;;  %v2244_v17 = vsel %vm1909_vm5, %v1631_v50, %v758_v19  ;;  %v760_v24 = vrot.slane %v758_v19, 4  ;;  %v189_v19 = vld [vmem:[%s1833_s23 + $0x44] sm:$0x1] }
  0x5d   : > { %v348_v37 = vsel %vm1880_vm4, %v343_v13, %v347_v48  ;;  %v653_v8 = vmax.bf16 %v338_v18, %v2146_v7  ;;  %v2251_v35 = vmax.bf16 %v910_v10, %v338_v18  ;;  %v1100_v34 = vmax.bf16 %v1042_v29, %v338_v18  ;;  %v210_v10 = vld [vmem:[%s1833_s23 + $0x98] sm:$0x1] }
  0x5e   : > { %1730 = vmatmul.mubr.bf16.vlgmr.msra.gmra.mrb[0].mxu1 %v1655_v28  ;;  %v654_v22 = vmax.bf16 %v348_v37, %v2175_v55  ;;  %v2253_v27 = vmax.bf16 %v911_v20, %v348_v37  ;;  %v2257_v39 = vsel %vm1909_vm5, %v760_v24, %v761_v11  ;;  %v1101_v42 = vmax.bf16 %v1043_v30, %v348_v37  ;;  %v2272_v20 = vld [vmem:[%s1833_s23 + $0x3c] sm:$0xf] }
  0x5f   : > { %v518_v44 = vshrl.u32 %v2211_v12, 16  ;;  %v2261_v47 = vmax.bf16 %v2244_v17, %v653_v8  ;;  %v1012_v52 = vmax.bf16 %v2251_v35, %v2244_v17  ;;  %v1144_v2 = vmax.bf16 %v1100_v34, %v2244_v17 }
  0x60   : > { %v2264_v55 = vmax.bf16 %v2257_v39, %v654_v22  ;;  %v1013_v7 = vmax.bf16 %v2253_v27, %v2257_v39  ;;  %v1145_v36 = vmax.bf16 %v1101_v42, %v2257_v39  ;;  %v521_v56 = vshll.u32 %v2211_v12, 16  ;;  %v2398_v39 = vld [vmem:[%s1833_s23 + $0x4c] sm:$0xf] }
  0x61   : > { %v520_v40 = vrot.slane %v518_v44, 4  ;;  %v912_v57 = vmax.bf16 %v2261_v47, %v2272_v20  ;;  %v527_v53 = vshll.u32 %v2228_v54, 16  ;;  %v531_v61 = vshrl.u32 %v2228_v54, 16 }
  0x62   : > { %v913_v58 = vmax.bf16 %v2264_v55, %v2275_v49  ;;  %v1648_v9 = vcombine.low %v1144_v2, %v1145_v36  ;;  %v523_v41 = vrot.slane %v521_v56, 5  ;;  %v537_v43 = vshll.u32 %v210_v10, 16 }
  0x63   : > { %v1639_v60 = vrot.slane %v2211_v12, 9  ;;  %v529_v51 = vrot.slane %v527_v53, 5  ;;  %v533_v16 = vrot.slane %v531_v61, 4  ;;  %v814_v46 = vrot.slane %v2228_v54, 5 }
  0x64   : > { %v817_v48 = vrot.slane %v210_v10, 5  ;;  %1717 = vmatprep.mubr.bf16.mxu0 %v1648_v9  ;;  %v524_v5 = vor.u32 %v523_v41, %v520_v40  ;;  %v539_v50 = vrot.slane %v537_v43, 5  ;;  %v1058_v62 = vmax.bf16 %v1026_v3, %v2211_v12 }
  0x65   : > { %v1059_v13 = vmax.bf16 %v1027_v23, %v2228_v54  ;;  %v534_v11 = vor.u32 %v533_v16, %v529_v51  ;;  %v2296_v28 = vsel %vm1909_vm5, %v1639_v60, %v814_v46  ;;  %v816_v29 = vrot.slane %v814_v46, 4 }
  0x66   : > { %v350_v30 = vshrl.u32 %v2272_v20, 16  ;;  %v525_v18 = vrot.slane %v524_v5, 4  ;;  %v353_v37 = vshll.u32 %v2272_v20, 16  ;;  %v359_v24 = vshll.u32 %v2275_v49, 16 }
  0x67   : > { %v363_v8 = vshrl.u32 %v2275_v49, 16  ;;  %v535_v38 = vrot.slane %v534_v11, 4  ;;  %v2304_v45 = vsel %vm1909_vm5, %v816_v29, %v817_v48  ;;  %v369_v23 = vshll.u32 %v189_v19, 16 }
  0x68   : > { %v352_v3 = vrot.slane %v350_v30, 4  ;;  %v530_v22 = vsel %vm1880_vm4, %v525_v18, %v529_v51  ;;  %v355_v34 = vrot.slane %v353_v37, 5  ;;  %v361_v42 = vrot.slane %v359_v24, 5  ;;  %v2338_v51 = vld [vmem:[%s1833_s23 + $0xa0] sm:$0xf] }
  0x69   : > { %v365_v44 = vrot.slane %v363_v8, 4  ;;  %v540_v10 = vsel %vm1880_vm4, %v535_v38, %v539_v50  ;;  %v669_v2 = vmax.bf16 %v530_v22, %v2211_v12  ;;  %v2314_v36 = vmax.bf16 %v926_v14, %v530_v22  ;;  %v2329_v14 = vld [vmem:[%s1833_s23 + $0x9c] sm:$0xf] }
  0x6a   : > { %v1116_v40 = vmax.bf16 %v1058_v62, %v530_v22  ;;  %v670_v56 = vmax.bf16 %v540_v10, %v2228_v54  ;;  %v2320_v53 = vmax.bf16 %v927_v26, %v540_v10  ;;  %v1117_v61 = vmax.bf16 %v1059_v13, %v540_v10 }
  0x6b   : > { %v356_v9 = vor.u32 %v355_v34, %v352_v3  ;;  %v2323_v41 = vmax.bf16 %v2296_v28, %v669_v2  ;;  %v1028_v43 = vmax.bf16 %v2314_v36, %v2296_v28  ;;  %v366_v12 = vor.u32 %v365_v44, %v361_v42  ;;  %v213_v3 = vld [vmem:[%s1833_s23 + $0xa4] sm:$0x1] }
  0x6c   : > { %v1160_v0 = vmax.bf16 %v1116_v40, %v2296_v28  ;;  %v2332_v60 = vmax.bf16 %v2304_v45, %v670_v56  ;;  %v1029_v4 = vmax.bf16 %v2320_v53, %v2304_v45  ;;  %v1161_v54 = vmax.bf16 %v1117_v61, %v2304_v45 }
  0x6d   : > { %v357_v26 = vrot.slane %v356_v9, 4  ;;  %v928_v16 = vmax.bf16 %v2323_v41, %v2329_v14  ;;  %v367_v46 = vrot.slane %v366_v12, 4  ;;  %v371_v48 = vrot.slane %v369_v23, 5 }
  0x6e   : > { %v1632_v5 = vrot.slane %v2272_v20, 9  ;;  %v929_v50 = vmax.bf16 %v2332_v60, %v2338_v51  ;;  %v1656_v62 = vcombine.low %v1160_v0, %v1161_v54  ;;  %v765_v11 = vrot.slane %v2275_v49, 5 }
  0x6f   : > { %v362_v13 = vsel %vm1880_vm4, %v357_v26, %v361_v42  ;;  %v372_v28 = vsel %vm1880_vm4, %v367_v46, %v371_v48  ;;  %v768_v30 = vrot.slane %v189_v19, 5  ;;  %v2367_v19 = vld [vmem:[%s1833_s23 + $0x48] sm:$0xf]  ;;  %v1044_v45 = vmax.bf16 %v1012_v52, %v2272_v20 }
  0x70   : > { %v655_v29 = vmax.bf16 %v362_v13, %v2272_v20  ;;  %v2354_v18 = vmax.bf16 %v912_v57, %v362_v13  ;;  %1733 = vmatprep.mubr.bf16.mxu1 %v1656_v62  ;;  %v656_v37 = vmax.bf16 %v372_v28, %v2275_v49  ;;  %v2359_v24 = vsel %vm1909_vm5, %v1632_v5, %v765_v11 }
  0x71   : > { %v767_v8 = vrot.slane %v765_v11, 4  ;;  %v2364_v38 = vmax.bf16 %v913_v58, %v372_v28  ;;  %v1045_v55 = vmax.bf16 %v1013_v7, %v2275_v49  ;;  %v542_v23 = vshrl.u32 %v2329_v14, 16 }
  0x72   : > { %v2370_v47 = vmax.bf16 %v2359_v24, %v655_v29  ;;  %v1014_v57 = vmax.bf16 %v2354_v18, %v2359_v24  ;;  %v545_v22 = vshll.u32 %v2329_v14, 16  ;;  %v551_v34 = vshll.u32 %v2338_v51, 16 }
  0x73   : > { %v2384_v58 = vsel %vm1909_vm5, %v767_v8, %v768_v30  ;;  %v1102_v27 = vmax.bf16 %v1044_v45, %v362_v13  ;;  %v1103_v52 = vmax.bf16 %v1045_v55, %v372_v28  ;;  %v544_v7 = vrot.slane %v542_v23, 4 }
  0x74   : > { %v2391_v42 = vmax.bf16 %v2384_v58, %v656_v37  ;;  %v914_v17 = vmax.bf16 %v2370_v47, %v2367_v19  ;;  %v1015_v35 = vmax.bf16 %v2364_v38, %v2384_v58  ;;  %v547_v20 = vrot.slane %v545_v22, 5 }
  0x75   : > { %v553_v49 = vrot.slane %v551_v34, 5  ;;  %v1146_v10 = vmax.bf16 %v1102_v27, %v2359_v24  ;;  %v555_v2 = vshrl.u32 %v2338_v51, 16  ;;  %v561_v36 = vshll.u32 %v213_v3, 16 }
  0x76   : > { %v915_v44 = vmax.bf16 %v2391_v42, %v2398_v39  ;;  %v1147_v40 = vmax.bf16 %v1103_v52, %v2384_v58  ;;  %v548_v56 = vor.u32 %v547_v20, %v544_v7  ;;  %v1640_v53 = vrot.slane %v2329_v14, 9 }
  0x77   : > { %v821_v61 = vrot.slane %v2338_v51, 5  ;;  %v557_v9 = vrot.slane %v555_v2, 4  ;;  %v563_v0 = vrot.slane %v561_v36, 5  ;;  %v824_v12 = vrot.slane %v213_v3, 5  ;;  %v192_v3 = vld [vmem:[%s1833_s23 + $0x50] sm:$0x1] }
  0x78   : > { %v1060_v54 = vmax.bf16 %v1028_v43, %v2329_v14  ;;  %v1649_v26 = vcombine.low %v1146_v10, %v1147_v40  ;;  %v549_v46 = vrot.slane %v548_v56, 4  ;;  %v1061_v13 = vmax.bf16 %v1029_v4, %v2338_v51 }
  0x79   : > { %v2410_v48 = vsel %vm1909_vm5, %v1640_v53, %v821_v61  ;;  %v823_v5 = vrot.slane %v821_v61, 4  ;;  %v558_v62 = vor.u32 %v557_v9, %v553_v49  ;;  %v374_v11 = vshrl.u32 %v2367_v19, 16 }
  0x7a   : > { %v377_v28 = vshll.u32 %v2367_v19, 16  ;;  %1718 = vmatmul.mubr.bf16.gmra.mrb[4].mxu0 %v1649_v26  ;;  %v554_v29 = vsel %vm1880_vm4, %v549_v46, %v553_v49  ;;  %v383_v30 = vshll.u32 %v2398_v39, 16  ;;  %v387_v37 = vshrl.u32 %v2398_v39, 16 }
  0x7b   : > { %v2419_v43 = vsel %vm1909_vm5, %v823_v5, %v824_v12  ;;  %v559_v8 = vrot.slane %v558_v62, 4  ;;  %v671_v4 = vmax.bf16 %v554_v29, %v2329_v14  ;;  %v2427_v45 = vmax.bf16 %v928_v16, %v554_v29  ;;  %v2439_v14 = vld [vmem:[%s1833_s23 + $0xa8] sm:$0xf] }
  0x7c   : > { %v1118_v55 = vmax.bf16 %v1060_v54, %v554_v29  ;;  %v376_v23 = vrot.slane %v374_v11, 4  ;;  %v379_v22 = vrot.slane %v377_v28, 5  ;;  %v385_v34 = vrot.slane %v383_v30, 5 }
  0x7d   : > { %v389_v27 = vrot.slane %v387_v37, 4  ;;  %v564_v52 = vsel %vm1880_vm4, %v559_v8, %v563_v0  ;;  %v2433_v7 = vmax.bf16 %v2410_v48, %v671_v4  ;;  %v1030_v20 = vmax.bf16 %v2427_v45, %v2410_v48 }
  0x7e   : > { %v1162_v41 = vmax.bf16 %v1118_v55, %v2410_v48  ;;  %v672_v16 = vmax.bf16 %v564_v52, %v2338_v51  ;;  %v2445_v49 = vmax.bf16 %v929_v50, %v564_v52  ;;  %v1119_v10 = vmax.bf16 %v1061_v13, %v564_v52  ;;  %v2457_v51 = vld [vmem:[%s1833_s23 + $0xac] sm:$0xf] }
  0x7f   : > { %v380_v2 = vor.u32 %v379_v22, %v376_v23  ;;  %v930_v36 = vmax.bf16 %v2433_v7, %v2439_v14  ;;  %v390_v40 = vor.u32 %v389_v27, %v385_v34  ;;  %v393_v56 = vshll.u32 %v192_v3, 16 }
  0x80   : > { %v1633_v53 = vrot.slane %v2367_v19, 9  ;;  %v2451_v61 = vmax.bf16 %v2419_v43, %v672_v16  ;;  %v1031_v9 = vmax.bf16 %v2445_v49, %v2419_v43  ;;  %v1163_v0 = vmax.bf16 %v1119_v10, %v2419_v43 }
  0x81   : > { %v381_v60 = vrot.slane %v380_v2, 4  ;;  %v391_v50 = vrot.slane %v390_v40, 4  ;;  %v395_v12 = vrot.slane %v393_v56, 5  ;;  %v772_v54 = vrot.slane %v2398_v39, 5 }
  0x82   : > { %v775_v26 = vrot.slane %v192_v3, 5  ;;  %v931_v46 = vmax.bf16 %v2451_v61, %v2457_v51  ;;  %v1657_v5 = vcombine.low %v1162_v41, %v1163_v0  ;;  %v1046_v13 = vmax.bf16 %v1014_v57, %v2367_v19 }
  0x83   : > { %v386_v62 = vsel %vm1880_vm4, %v381_v60, %v385_v34  ;;  %v396_v11 = vsel %vm1880_vm4, %v391_v50, %v395_v12  ;;  %v2473_v29 = vsel %vm1909_vm5, %v1633_v53, %v772_v54  ;;  %v774_v43 = vrot.slane %v772_v54, 4  ;;  %v195_v54 = vld [vmem:[%s1833_s23 + $0x5c] sm:$0x1] }
  0x84   : > { %v657_v28 = vmax.bf16 %v386_v62, %v2367_v19  ;;  %1734 = vmatmul.mubr.bf16.gmra.mrb[4].mxu1 %v1657_v5  ;;  %v658_v30 = vmax.bf16 %v396_v11, %v2398_v39  ;;  %v2479_v18 = vmax.bf16 %v914_v17, %v386_v62  ;;  %v2484_v24 = vmax.bf16 %v915_v44, %v396_v11  ;;  %v2499_v17 = vld [vmem:[%s1833_s23 + $0x54] sm:$0xf] }
  0x85   : > { %v1047_v57 = vmax.bf16 %v1015_v35, %v2398_v39  ;;  %v2492_v37 = vsel %vm1909_vm5, %v774_v43, %v775_v26  ;;  %v1104_v19 = vmax.bf16 %v1046_v13, %v386_v62  ;;  %v566_v47 = vshrl.u32 %v2439_v14, 16  ;;  %v216_v35 = vld [vmem:[%s1833_s23 + $0xb0] sm:$0x1]  ;;  %v2510_v39 = vld [vmem:[%s1833_s23 + $0x58] sm:$0xf] }
  0x86   : > { %v2495_v8 = vmax.bf16 %v2473_v29, %v657_v28  ;;  %v2502_v42 = vmax.bf16 %v2492_v37, %v658_v30  ;;  %v1016_v44 = vmax.bf16 %v2479_v18, %v2473_v29  ;;  %v1017_v38 = vmax.bf16 %v2484_v24, %v2492_v37 }
  0x87   : > { %v1105_v58 = vmax.bf16 %v1047_v57, %v396_v11  ;;  %v1148_v55 = vmax.bf16 %v1104_v19, %v2473_v29  ;;  %v568_v3 = vrot.slane %v566_v47, 4  ;;  %v569_v23 = vshll.u32 %v2439_v14, 16 }
  0x88   : > { %v916_v4 = vmax.bf16 %v2495_v8, %v2499_v17  ;;  %v917_v22 = vmax.bf16 %v2502_v42, %v2510_v39  ;;  %v575_v27 = vshll.u32 %v2457_v51, 16  ;;  %v579_v52 = vshrl.u32 %v2457_v51, 16 }
  0x89   : > { %v1149_v34 = vmax.bf16 %v1105_v58, %v2492_v37  ;;  %v571_v41 = vrot.slane %v569_v23, 5  ;;  %v585_v16 = vshll.u32 %v216_v35, 16  ;;  %v1641_v49 = vrot.slane %v2439_v14, 9 }
  0x8a   : > { %v828_v10 = vrot.slane %v2457_v51, 5  ;;  %v577_v40 = vrot.slane %v575_v27, 5  ;;  %v581_v56 = vrot.slane %v579_v52, 4  ;;  %v831_v53 = vrot.slane %v216_v35, 5 }
  0x8b   : > { %v1650_v2 = vcombine.low %v1148_v55, %v1149_v34  ;;  %v572_v0 = vor.u32 %v571_v41, %v568_v3  ;;  %v587_v60 = vrot.slane %v585_v16, 5  ;;  %v1062_v5 = vmax.bf16 %v1030_v20, %v2439_v14 }
  0x8c   : > { %v2525_v50 = vsel %vm1909_vm5, %v1641_v49, %v828_v10  ;;  %v830_v12 = vrot.slane %v828_v10, 4  ;;  %v582_v26 = vor.u32 %v581_v56, %v577_v40  ;;  %v1063_v62 = vmax.bf16 %v1031_v9, %v2457_v51 }
  0x8d   : > { %1721 = vmatprep.mubr.bf16.mxu0 %v1650_v2  ;;  %v398_v13 = vshrl.u32 %v2499_v17, 16  ;;  %v573_v11 = vrot.slane %v572_v0, 4  ;;  %v401_v43 = vshll.u32 %v2499_v17, 16  ;;  %v407_v30 = vshll.u32 %v2510_v39, 16  ;;  %v2574_v2 = vld [vmem:[%s1833_s23 + $0xb8] sm:$0xf] }
  0x8e   : > { %v2536_v28 = vsel %vm1909_vm5, %v830_v12, %v831_v53  ;;  %v583_v57 = vrot.slane %v582_v26, 4  ;;  %v411_v47 = vshrl.u32 %v2510_v39, 16  ;;  %v417_v58 = vshll.u32 %v195_v54, 16 }
  0x8f   : > { %v400_v19 = vrot.slane %v398_v13, 4  ;;  %v578_v48 = vsel %vm1880_vm4, %v573_v11, %v577_v40  ;;  %v403_v45 = vrot.slane %v401_v43, 5  ;;  %v409_v20 = vrot.slane %v407_v30, 5 }
  0x90   : > { %v1634_v9 = vrot.slane %v2499_v17, 9  ;;  %v588_v35 = vsel %vm1880_vm4, %v583_v57, %v587_v60  ;;  %v673_v55 = vmax.bf16 %v578_v48, %v2439_v14  ;;  %v2550_v3 = vmax.bf16 %v930_v36, %v578_v48  ;;  %v2565_v36 = vld [vmem:[%s1833_s23 + $0xb4] sm:$0xf] }
  0x91   : > { %v1120_v23 = vmax.bf16 %v1062_v5, %v578_v48  ;;  %v674_v34 = vmax.bf16 %v588_v35, %v2457_v51  ;;  %v2556_v27 = vmax.bf16 %v931_v46, %v588_v35  ;;  %v1121_v52 = vmax.bf16 %v1063_v62, %v588_v35 }
  0x92   : > { %v404_v41 = vor.u32 %v403_v45, %v400_v19  ;;  %v2559_v16 = vmax.bf16 %v2525_v50, %v673_v55  ;;  %v1032_v49 = vmax.bf16 %v2550_v3, %v2525_v50  ;;  %v413_v14 = vrot.slane %v411_v47, 4  ;;  %v2620_v3 = vld [vmem:[%s1833_s23 + $0x64] sm:$0xf] }
  0x93   : > { %v1164_v7 = vmax.bf16 %v1120_v23, %v2525_v50  ;;  %v2568_v10 = vmax.bf16 %v2536_v28, %v674_v34  ;;  %v1033_v61 = vmax.bf16 %v2556_v27, %v2536_v28  ;;  %v1165_v51 = vmax.bf16 %v1121_v52, %v2536_v28 }
  0x94   : > { %v405_v46 = vrot.slane %v404_v41, 4  ;;  %v932_v40 = vmax.bf16 %v2559_v16, %v2565_v36  ;;  %v414_v56 = vor.u32 %v413_v14, %v409_v20  ;;  %v419_v53 = vrot.slane %v417_v58, 5 }
  0x95   : > { %v779_v0 = vrot.slane %v2510_v39, 5  ;;  %v933_v60 = vmax.bf16 %v2568_v10, %v2574_v2  ;;  %v1658_v50 = vcombine.low %v1164_v7, %v1165_v51  ;;  %v782_v26 = vrot.slane %v195_v54, 5 }
  0x96   : > { %v410_v12 = vsel %vm1880_vm4, %v405_v46, %v409_v20  ;;  %v415_v5 = vrot.slane %v414_v56, 4  ;;  %v1048_v43 = vmax.bf16 %v1016_v44, %v2499_v17  ;;  %v1049_v54 = vmax.bf16 %v1017_v38, %v2510_v39  ;;  %v2611_v44 = vld [vmem:[%s1833_s23 + $0x60] sm:$0xf] }
  0x97   : > { %v659_v62 = vmax.bf16 %v410_v12, %v2499_v17  ;;  %v780_v13 = vsel %vm1909_vm5, %v1634_v9, %v779_v0  ;;  %v781_v11 = vrot.slane %v779_v0, 4  ;;  %1737 = vmatprep.mubr.bf16.mxu1 %v1658_v50  ;;  %v974_v28 = vmax.bf16 %v916_v4, %v410_v12  ;;  %v219_v17 = vld [vmem:[%s1833_s23 + $0xbc] sm:$0x1]  ;;  %v220_v0 = vld [vmem:[%s1833_s23 + $0xc0] sm:$0xf] }
  0x98   : > { %v590_v30 = vshrl.u32 %v2565_v36, 16  ;;  %v420_v57 = vsel %vm1880_vm4, %v415_v5, %v419_v53  ;;  %v593_v4 = vshll.u32 %v2565_v36, 16  ;;  %v1106_v37 = vmax.bf16 %v1048_v43, %v410_v12 }
  0x99   : > { %v783_v19 = vsel %vm1909_vm5, %v781_v11, %v782_v26  ;;  %v2602_v8 = vmax.bf16 %v780_v13, %v659_v62  ;;  %v660_v29 = vmax.bf16 %v420_v57, %v2510_v39  ;;  %v975_v18 = vmax.bf16 %v917_v22, %v420_v57 }
  0x9a   : > { %v1018_v24 = vmax.bf16 %v974_v28, %v780_v13  ;;  %v1107_v47 = vmax.bf16 %v1049_v54, %v420_v57  ;;  %v592_v58 = vrot.slane %v590_v30, 4  ;;  %v595_v48 = vrot.slane %v593_v4, 5 }
  0x9b   : > { %v918_v38 = vmax.bf16 %v2611_v44, %v2602_v8  ;;  %v2615_v45 = vmax.bf16 %v783_v19, %v660_v29  ;;  %v1019_v20 = vmax.bf16 %v975_v18, %v783_v19  ;;  %v1150_v9 = vmax.bf16 %v1106_v37, %v780_v13 }
  0x9c   : > { %v599_v35 = vshll.u32 %v2574_v2, 16  ;;  %v1151_v42 = vmax.bf16 %v1107_v47, %v783_v19  ;;  %v596_v39 = vor.u32 %v595_v48, %v592_v58  ;;  %v603_v22 = vshrl.u32 %v2574_v2, 16 }
  0x9d   : > { %v609_v55 = vshll.u32 %v219_v17, 16  ;;  %v919_v23 = vmax.bf16 %v2620_v3, %v2615_v45  ;;  %v1642_v27 = vrot.slane %v2565_v36, 9  ;;  %v835_v52 = vrot.slane %v2574_v2, 5 }
  0x9e   : > { %v601_v34 = vrot.slane %v599_v35, 5  ;;  %v1651_v41 = vcombine.low %v1150_v9, %v1151_v42  ;;  %v597_v16 = vrot.slane %v596_v39, 4  ;;  %v605_v7 = vrot.slane %v603_v22, 4 }
  0x9f   : > { %v611_v14 = vrot.slane %v609_v55, 5  ;;  %v836_v51 = vsel %vm1909_vm5, %v1642_v27, %v835_v52  ;;  %v837_v46 = vrot.slane %v835_v52, 4  ;;  %v838_v56 = vrot.slane %v219_v17, 5 }
  0xa0   : > { %v1064_v53 = vmax.bf16 %v1032_v49, %v2565_v36  ;;  %1722 = vmatmul.mubr.bf16.gmra.mrb[8].mxu0 %v1651_v41  ;;  %v602_v50 = vsel %vm1880_vm4, %v597_v16, %v601_v34  ;;  %v606_v12 = vor.u32 %v605_v7, %v601_v34  ;;  %v1065_v26 = vmax.bf16 %v1033_v61, %v2574_v2  ;;  %v221_v61 = vld [vmem:[%s1833_s23 + $0xc4] sm:$0xf] }
  0xa1   : > { %v1050_v5 = vmax.bf16 %v2611_v44, %v1018_v24  ;;  %v675_v62 = vmax.bf16 %v602_v50, %v2565_v36  ;;  %v839_v13 = vsel %vm1909_vm5, %v837_v46, %v838_v56  ;;  %v990_v11 = vmax.bf16 %v932_v40, %v602_v50  ;;  %v222_v40 = vld [vmem:[%s1833_s23 + $0xc8] sm:$0x1] }
  0xa2   : > { %v1122_v28 = vmax.bf16 %v1064_v53, %v602_v50  ;;  %v607_v49 = vrot.slane %v606_v12, 4  ;;  %v1051_v43 = vmax.bf16 %v2620_v3, %v1019_v20  ;;  %v937_v30 = vshrl.u32 %v220_v0, 16 }
  0xa3   : > { %v1108_v54 = vmax.bf16 %v1050_v5, %v2011_v6  ;;  %v902_v57 = vmax.bf16 %v836_v51, %v675_v62  ;;  %v1034_v19 = vmax.bf16 %v990_v11, %v836_v51  ;;  %v940_v29 = vshll.u32 %v220_v0, 16  ;;  %v223_v5 = vld [vmem:[%s1833_s23 + $0xcc] sm:$0xf] }
  0xa4   : > { %v1166_v4 = vmax.bf16 %v1122_v28, %v836_v51  ;;  %v612_v36 = vsel %vm1880_vm4, %v607_v49, %v611_v14  ;;  %v1109_v18 = vmax.bf16 %v1051_v43, %v2026_v31  ;;  %v939_v37 = vrot.slane %v937_v30, 4 }
  0xa5   : > { %v1152_v24 = vmax.bf16 %v1108_v54, %v2050_v15  ;;  %v676_v17 = vmax.bf16 %v612_v36, %v2574_v2  ;;  %v991_v47 = vmax.bf16 %v933_v60, %v612_v36  ;;  %v1123_v58 = vmax.bf16 %v1065_v26, %v612_v36 }
  0xa6   : > { %v934_v48 = vmax.bf16 %v902_v57, %v220_v0  ;;  %v1153_v20 = vmax.bf16 %v1109_v18, %v2063_v21  ;;  %v942_v9 = vrot.slane %v940_v29, 5  ;;  %v946_v35 = vshll.u32 %v221_v61, 16  ;;  %v1780_v57 = vld [vmem:[%s1833_s23 + $0x6c] sm:$0xf] }
  0xa7   : > { %v950_v42 = vshrl.u32 %v221_v61, 16  ;;  %v903_v39 = vmax.bf16 %v839_v13, %v676_v17  ;;  %v1035_v22 = vmax.bf16 %v991_v47, %v839_v13  ;;  %v1167_v55 = vmax.bf16 %v1123_v58, %v839_v13 }
  0xa8   : > { %v956_v34 = vshll.u32 %v222_v40, 16  ;;  %v1652_v27 = vcombine.low %v1152_v24, %v1153_v20  ;;  %v943_v52 = vor.u32 %v942_v9, %v939_v37  ;;  %v948_v41 = vrot.slane %v946_v35, 5 }
  0xa9   : > { %v952_v16 = vrot.slane %v950_v42, 4  ;;  %v1659_v7 = vcombine.low %v1166_v4, %v1167_v55  ;;  %v935_v14 = vmax.bf16 %v903_v39, %v221_v61  ;;  %v1643_v2 = vrot.slane %v220_v0, 9  ;;  %v1781_v4 = vld [vmem:[%s1833_s23 + $0x70] sm:$0xf] }
  0xaa   : > { %v958_v10 = vrot.slane %v956_v34, 5  ;;  %1725 = vmatprep.mubr.bf16.mxu0 %v1652_v27  ;;  %v944_v60 = vrot.slane %v943_v52, 4  ;;  %v999_v46 = vrot.slane %v221_v61, 5  ;;  %v1002_v56 = vrot.slane %v222_v40, 5 }
  0xab   : > { %v953_v51 = vor.u32 %v952_v16, %v948_v41  ;;  %1738 = vmatmul.mubr.bf16.gmra.mrb[8].mxu1 %v1659_v7  ;;  %v1066_v53 = vmax.bf16 %v1034_v19, %v220_v0  ;;  %v1067_v50 = vmax.bf16 %v1035_v22, %v221_v61  ;;  %v976_v12 = vmax.bf16 %v918_v38, %v2011_v6  ;;  %v224_v38 = vld [vmem:[%s1833_s23 + $0xd0] sm:$0xf] }
  0xac   : > { %v977_v26 = vmax.bf16 %v919_v23, %v2026_v31  ;;  %v949_v62 = vsel %vm1880_vm4, %v944_v60, %v948_v41  ;;  %v1000_v0 = vsel %vm1909_vm5, %v1643_v2, %v999_v46  ;;  %v1001_v11 = vrot.slane %v999_v46, 4 }
  0xad   : > { %v954_v13 = vrot.slane %v953_v51, 4  ;;  %v992_v28 = vmax.bf16 %v949_v62, %v934_v48  ;;  %v1124_v49 = vmax.bf16 %v1066_v53, %v949_v62  ;;  %v1020_v6 = vmax.bf16 %v976_v12, %v2050_v15  ;;  %v225_v15 = vld [vmem:[%s1833_s23 + $0xd4] sm:$0x1]  ;;  %v2688_v53 = vld [vmem:[%s2765_s2] ss:$0 sm:$0xff] }
  0xae   : > { %v1021_v8 = vmax.bf16 %v977_v26, %v2063_v21  ;;  %v1003_v44 = vsel %vm1909_vm5, %v1001_v11, %v1002_v56  ;;  %v1071_v45 = vshrl.u32 %v223_v5, 16  ;;  %v1074_v3 = vshll.u32 %v223_v5, 16 }
  0xaf   : > { %v959_v31 = vsel %vm1880_vm4, %v954_v13, %v958_v10  ;;  %v1036_v43 = vmax.bf16 %v1000_v0, %v992_v28  ;;  %v1168_v30 = vmax.bf16 %v1124_v49, %v1000_v0  ;;  %v1052_v19 = vmax.bf16 %v1780_v57, %v1020_v6 }
  0xb0   : > { %v993_v23 = vmax.bf16 %v959_v31, %v935_v14  ;;  %v1125_v54 = vmax.bf16 %v1067_v50, %v959_v31  ;;  %v1053_v61 = vmax.bf16 %v1781_v4, %v1021_v8  ;;  %v1073_v29 = vrot.slane %v1071_v45, 4 }
  0xb1   : > { %v1076_v21 = vrot.slane %v1074_v3, 5  ;;  %v1080_v24 = vshll.u32 %v224_v38, 16  ;;  %v1110_v40 = vmax.bf16 %v1052_v19, %v2036_v59  ;;  %v1084_v47 = vshrl.u32 %v224_v38, 16 }
  0xb2   : > { %v1037_v36 = vmax.bf16 %v1003_v44, %v993_v23  ;;  %v1169_v18 = vmax.bf16 %v1125_v54, %v1003_v44  ;;  %v1111_v37 = vmax.bf16 %v1053_v61, %v2042_v1  ;;  %v1068_v48 = vmax.bf16 %v1036_v43, %v223_v5 }
  0xb3   : > { %v1077_v17 = vor.u32 %v1076_v21, %v1073_v29  ;;  %v1082_v20 = vrot.slane %v1080_v24, 5  ;;  %v1090_v9 = vshll.u32 %v225_v15, 16  ;;  %v1154_v35 = vmax.bf16 %v1110_v40, %v2071_v25 }
  0xb4   : > { %v1660_v58 = vcombine.low %v1168_v30, %v1169_v18  ;;  %v1155_v42 = vmax.bf16 %v1111_v37, %v2079_v32  ;;  %v1086_v22 = vrot.slane %v1084_v47, 4  ;;  %v1644_v34 = vrot.slane %v223_v5, 9 }
  0xb5   : > { %v1078_v39 = vrot.slane %v1077_v17, 4  ;;  %v1092_v55 = vrot.slane %v1090_v9, 5  ;;  %v1133_v27 = vrot.slane %v224_v38, 5  ;;  %v1136_v41 = vrot.slane %v225_v15, 5 }
  0xb6   : > { %1741 = vmatprep.mubr.bf16.mxu1 %v1660_v58  ;;  %v1653_v52 = vcombine.low %v1154_v35, %v1155_v42  ;;  %v1087_v1 = vor.u32 %v1086_v22, %v1082_v20  ;;  %v1069_v16 = vmax.bf16 %v1037_v36, %v224_v38 }
  0xb7   : > { %v1083_v59 = vsel %vm1880_vm4, %v1078_v39, %v1082_v20  ;;  %v1135_v14 = vrot.slane %v1133_v27, 4  ;;  %v1134_v32 = vsel %vm1909_vm5, %v1644_v34, %v1133_v27 }
  0xb8   : > { %v1126_v7 = vmax.bf16 %v1083_v59, %v1068_v48  ;;  %1726 = vmatmul.mubr.bf16.gmra.mrb[12].mxu0 %v1653_v52  ;;  %v1088_v25 = vrot.slane %v1087_v1, 4 }
  0xb9   : > { %v1137_v2 = vsel %vm1909_vm5, %v1135_v14, %v1136_v41 }
  0xba   : > { %v1093_v10 = vsel %vm1880_vm4, %v1088_v25, %v1092_v55  ;;  %v1170_v51 = vmax.bf16 %v1134_v32, %v1126_v7 }
  0xbb   : > { %v1127_v60 = vmax.bf16 %v1093_v10, %v1069_v16 }
  0xbd   : > { %v1171_v46 = vmax.bf16 %v1137_v2, %v1127_v60 }
  0xbf   : > { %v1661_v56 = vcombine.low %v1170_v51, %v1171_v46 }
  0xc1   : > { %1742 = vmatmul.mubr.bf16.gmra.mrb[12].mxu1 %v1661_v56 }
 0x125   : > { %v1715_v50 = vpop.f32.mrb[0].mxu0 }
 0x126   : > { %v1382_v12 = vadd.f32 %v1715_v50, %v2688_v53  ;;  %v1373_v26 = vpop.f32.mrb[1].mxu0 }
 0x127   : > { %v1374_v33 = vadd.f32 %v2688_v53, %v1373_v26  ;;  %v1716_v63 = vpop.f32.mrb[2].mxu0 }
 0x128   : > { %v1502_v5 = vmax.f32 %v1382_v12, 0.0  ;;  %v1385_v62 = vadd.f32 %v1716_v63, %v2688_v53  ;;  %v1376_v13 = vpop.f32.mrb[3].mxu0 }
 0x129   : > { %v1500_v0 = vmax.f32 %v1374_v33, 0.0  ;;  %v1377_v11 = vadd.f32 %v2688_v53, %v1376_v13 }
 0x12a   : > { %1534 = vst [vmem:[%s2695_s14 + $0x10] sm:$0xff] %v1502_v5  ;;  %v1503_v28 = vmax.f32 %v1385_v62, 0.0 }
 0x12b   : > { %1532 = vst [vmem:[%s2695_s14] sm:$0xff] %v1500_v0  ;;  %v1501_v49 = vmax.f32 %v1377_v11, 0.0 }
 0x12c   : > { %1535 = vst [vmem:[%s2695_s14 + $0x18] sm:$0xff] %v1503_v28 }
 0x12d   : > { %1533 = vst [vmem:[%s2695_s14 + $0x8] sm:$0xff] %v1501_v49 }
 0x131   : > { %v1731_v6 = vpop.f32.mrb[0].mxu1 }
 0x132   : > { %v1446_v8 = vadd.f32 %v1731_v6, %v2688_v53  ;;  %v1437_v31 = vpop.f32.mrb[1].mxu1 }
 0x133   : > { %v1438_v44 = vadd.f32 %v2688_v53, %v1437_v31  ;;  %v1732_v38 = vpop.f32.mrb[2].mxu1 }
 0x134   : > { %v1518_v45 = vmax.f32 %v1446_v8, 0.0  ;;  %v1449_v3 = vadd.f32 %v1732_v38, %v2688_v53  ;;  %v1440_v23 = vpop.f32.mrb[3].mxu1 }
 0x135   : > { %v1516_v43 = vmax.f32 %v1438_v44, 0.0  ;;  %v1441_v54 = vadd.f32 %v2688_v53, %v1440_v23 }
 0x136   : > { %1550 = vst [vmem:[%s2695_s14 + $0x90] sm:$0xff] %v1518_v45  ;;  %v1519_v30 = vmax.f32 %v1449_v3, 0.0 }
 0x137   : > { %1548 = vst [vmem:[%s2695_s14 + $0x80] sm:$0xff] %v1516_v43  ;;  %v1517_v57 = vmax.f32 %v1441_v54, 0.0 }
 0x138   : > { %1551 = vst [vmem:[%s2695_s14 + $0x98] sm:$0xff] %v1519_v30 }
 0x139   : > { %1549 = vst [vmem:[%s2695_s14 + $0x88] sm:$0xff] %v1517_v57 }
 0x14d   : > { %v1719_v19 = vpop.f32.mrb[4].mxu0 }
 0x14e   : > { %v1398_v4 = vadd.f32 %v1719_v19, %v2688_v53  ;;  %v1389_v61 = vpop.f32.mrb[5].mxu0 }
 0x14f   : > { %v1390_v15 = vadd.f32 %v2688_v53, %v1389_v61  ;;  %v1720_v29 = vpop.f32.mrb[6].mxu0 }
 0x150   : > { %v1506_v21 = vmax.f32 %v1398_v4, 0.0  ;;  %v1401_v36 = vadd.f32 %v1720_v29, %v2688_v53  ;;  %v1392_v18 = vpop.f32.mrb[7].mxu0 }
 0x151   : > { %v1504_v24 = vmax.f32 %v1390_v15, 0.0  ;;  %v1393_v40 = vadd.f32 %v2688_v53, %v1392_v18 }
 0x152   : > { %1538 = vst [vmem:[%s2695_s14 + $0x30] sm:$0xff] %v1506_v21  ;;  %v1507_v37 = vmax.f32 %v1401_v36, 0.0 }
 0x153   : > { %1536 = vst [vmem:[%s2695_s14 + $0x20] sm:$0xff] %v1504_v24  ;;  %v1505_v17 = vmax.f32 %v1393_v40, 0.0 }
 0x154   : > { %1539 = vst [vmem:[%s2695_s14 + $0x38] sm:$0xff] %v1507_v37 }
 0x155   : > { %1537 = vst [vmem:[%s2695_s14 + $0x28] sm:$0xff] %v1505_v17 }
 0x157   : > { %v1735_v47 = vpop.f32.mrb[4].mxu1 }
 0x158   : > { %v1462_v58 = vadd.f32 %v1735_v47, %v2688_v53  ;;  %v1453_v48 = vpop.f32.mrb[5].mxu1 }
 0x159   : > { %v1454_v20 = vadd.f32 %v2688_v53, %v1453_v48  ;;  %v1736_v9 = vpop.f32.mrb[6].mxu1 }
 0x15a   : > { %v1522_v35 = vmax.f32 %v1462_v58, 0.0  ;;  %v1465_v42 = vadd.f32 %v1736_v9, %v2688_v53  ;;  %v1456_v39 = vpop.f32.mrb[7].mxu1 }
 0x15b   : > { %v1520_v22 = vmax.f32 %v1454_v20, 0.0  ;;  %v1457_v55 = vadd.f32 %v2688_v53, %v1456_v39 }
 0x15c   : > { %1554 = vst [vmem:[%s2695_s14 + $0xb0] sm:$0xff] %v1522_v35  ;;  %v1523_v34 = vmax.f32 %v1465_v42, 0.0 }
 0x15d   : > { %1552 = vst [vmem:[%s2695_s14 + $0xa0] sm:$0xff] %v1520_v22  ;;  %v1521_v27 = vmax.f32 %v1457_v55, 0.0 }
 0x15e   : > { %1555 = vst [vmem:[%s2695_s14 + $0xb8] sm:$0xff] %v1523_v34 }
 0x15f   : > { %1553 = vst [vmem:[%s2695_s14 + $0xa8] sm:$0xff] %v1521_v27 }
 0x173   : > { %v1723_v52 = vpop.f32.mrb[8].mxu0 }
 0x174   : > { %v1414_v59 = vadd.f32 %v1723_v52, %v2688_v53  ;;  %v1405_v1 = vpop.f32.mrb[9].mxu0 }
 0x175   : > { %v1406_v41 = vadd.f32 %v2688_v53, %v1405_v1  ;;  %v1724_v16 = vpop.f32.mrb[10].mxu0 }
 0x176   : > { %v1510_v7 = vmax.f32 %v1414_v59, 0.0  ;;  %v1417_v14 = vadd.f32 %v1724_v16, %v2688_v53  ;;  %v1408_v25 = vpop.f32.mrb[11].mxu0 }
 0x177   : > { %v1508_v32 = vmax.f32 %v1406_v41, 0.0  ;;  %v1409_v10 = vadd.f32 %v2688_v53, %v1408_v25 }
 0x178   : > { %1542 = vst [vmem:[%s2695_s14 + $0x50] sm:$0xff] %v1510_v7  ;;  %v1511_v2 = vmax.f32 %v1417_v14, 0.0 }
 0x179   : > { %1540 = vst [vmem:[%s2695_s14 + $0x40] sm:$0xff] %v1508_v32  ;;  %v1509_v60 = vmax.f32 %v1409_v10, 0.0 }
 0x17a   : > { %1543 = vst [vmem:[%s2695_s14 + $0x58] sm:$0xff] %v1511_v2 }
 0x17b   : > { %1541 = vst [vmem:[%s2695_s14 + $0x48] sm:$0xff] %v1509_v60 }
 0x17e   : > { %v1739_v51 = vpop.f32.mrb[8].mxu1 }
 0x17f   : > { %v1478_v46 = vadd.f32 %v1739_v51, %v2688_v53  ;;  %v1469_v56 = vpop.f32.mrb[9].mxu1 }
 0x180   : > { %v1470_v50 = vadd.f32 %v2688_v53, %v1469_v56  ;;  %v1740_v12 = vpop.f32.mrb[10].mxu1 }
 0x181   : > { %v1526_v26 = vmax.f32 %v1478_v46, 0.0  ;;  %v1481_v33 = vadd.f32 %v1740_v12, %v2688_v53  ;;  %v1472_v63 = vpop.f32.mrb[11].mxu1 }
 0x182   : > { %v1524_v5 = vmax.f32 %v1470_v50, 0.0  ;;  %v1473_v62 = vadd.f32 %v2688_v53, %v1472_v63 }
 0x183   : > { %1558 = vst [vmem:[%s2695_s14 + $0xd0] sm:$0xff] %v1526_v26  ;;  %v1527_v13 = vmax.f32 %v1481_v33, 0.0 }
 0x184   : > { %1556 = vst [vmem:[%s2695_s14 + $0xc0] sm:$0xff] %v1524_v5  ;;  %v1525_v0 = vmax.f32 %v1473_v62, 0.0 }
 0x185   : > { %1559 = vst [vmem:[%s2695_s14 + $0xd8] sm:$0xff] %v1527_v13 }
 0x186   : > { %1557 = vst [vmem:[%s2695_s14 + $0xc8] sm:$0xff] %v1525_v0 }
 0x18b   : > { %v1727_v11 = vpop.f32.mrb[12].mxu0 }
 0x18c   : > { %v1430_v28 = vadd.f32 %v1727_v11, %v2688_v53  ;;  %v1421_v49 = vpop.f32.mrb[13].mxu0 }
 0x18d   : > { %v1422_v6 = vadd.f32 %v2688_v53, %v1421_v49  ;;  %v1728_v8 = vpop.f32.mrb[14].mxu0 }
 0x18e   : > { %v1514_v31 = vmax.f32 %v1430_v28, 0.0  ;;  %v1433_v44 = vadd.f32 %v1728_v8, %v2688_v53  ;;  %v1424_v38 = vpop.f32.mrb[15].mxu0 }
 0x18f   : > { %v1512_v45 = vmax.f32 %v1422_v6, 0.0  ;;  %v1425_v3 = vadd.f32 %v2688_v53, %v1424_v38 }
 0x190   : > { %1546 = vst [vmem:[%s2695_s14 + $0x70] sm:$0xff] %v1514_v31  ;;  %v1515_v23 = vmax.f32 %v1433_v44, 0.0 }
 0x191   : > { %1544 = vst [vmem:[%s2695_s14 + $0x60] sm:$0xff] %v1512_v45  ;;  %v1513_v43 = vmax.f32 %v1425_v3, 0.0 }
 0x192   : > { %1547 = vst [vmem:[%s2695_s14 + $0x78] sm:$0xff] %v1515_v23 }
 0x193   : > { %1545 = vst [vmem:[%s2695_s14 + $0x68] sm:$0xff] %v1513_v43 }
 0x194   : > { %v1743_v54 = vpop.f32.mrb[12].mxu1 }
 0x195   : > { %v1494_v30 = vadd.f32 %v1743_v54, %v2688_v53  ;;  %v1485_v57 = vpop.f32.mrb[13].mxu1 }
 0x196   : > { %v1486_v19 = vadd.f32 %v2688_v53, %v1485_v57  ;;  %v1744_v4 = vpop.f32.mrb[14].mxu1 }
 0x197   : > { %v1530_v61 = vmax.f32 %v1494_v30, 0.0  ;;  %v1497_v15 = vadd.f32 %v1744_v4, %v2688_v53  ;;  %v1488_v29 = vpop.f32.mrb[15].mxu1 }
 0x198   : > { %v1528_v21 = vmax.f32 %v1486_v19, 0.0  ;;  %v1489_v36 = vadd.f32 %v2688_v53, %v1488_v29 }
 0x199   : > { %1562 = vst [vmem:[%s2695_s14 + $0xf0] sm:$0xff] %v1530_v61  ;;  %v1531_v18 = vmax.f32 %v1497_v15, 0.0 }
 0x19a   : > { %1560 = vst [vmem:[%s2695_s14 + $0xe0] sm:$0xff] %v1528_v21  ;;  %v1529_v24 = vmax.f32 %v1489_v36, 0.0 }
 0x19b   : > { %1563 = vst [vmem:[%s2695_s14 + $0xf8] sm:$0xff] %v1531_v18 }
 0x19c   : > { %1561 = vst [vmem:[%s2695_s14 + $0xe8] sm:$0xff] %v1529_v24 }
 0x19d PF: > { %s13_s12 = sadd.s32 1, %s1788_s12  }
 0x19e   : > { %p10_p4 = scmp.ge.s32.totalorder %s13_s12, 4  }
 0x1a0   :  { %12 = sbr.rel (!%p10_p4) target bundleno = 1 (0x1), region = 62 }

// kernel: inception_forward.4
= control target key start
LH: loop header
LB: loop body
LE: loop exit
PB: predicated region body
PF: predicated region fallthrough
CT: control target
= control target key end

     0   :  { %s1720_s12 = smov 0   ;;  %s1722_s13 = smov 0   ;;  %s2013_s0 = inlined_call_operand.vmem [shape: bf16[512,16], index: 0, kind: input, shape index: {}]   ;;  %s2014_s1 = inlined_call_operand.vmem [shape: bf16[16,384], index: 1, kind: input, shape index: {}]   ;;  %s2015_s2 = inlined_call_operand.vmem [shape: f32[1,384], index: 2, kind: input, shape index: {}]   ;;  %s2016_s3 = inlined_call_operand.vmem [shape: bf16[512,384], index: 3, kind: output, shape index: {}]  }
   0x1   :  { %s1724_s14 = smov 0  }
   0x2 LB: > { %s25_s15 = sadd.s32 1, %s1693_s13  ;;  %p1390_p0 = scmp.ge.s32.totalorder %s1697_s14, 1  ;;  %s1697_s14 = sphi %s1724_s14, %s13_s14   ;;  %s1693_s13 = sphi %s1722_s13, %s2018_s13   ;;  %s1689_s12 = sphi %s1720_s12, %s2017_s12  }
   0x3   : > { %p27_p1 = scmp.ge.s32.totalorder %s25_s15, 2  ;;  %p173_p2 = scmp.lt.s32.totalorder %s1697_s14, 3 }
   0x5   : > { %s2020_s15 = smov (%p27_p1, %s25_s15), 0  ;;  %p174_p3 = pnand %p1390_p0, %p173_p2 }
   0x6   : > { %v1655_v0 = vld [vmem:[%s2014_s1 + $0x4] ss:$12 sps:$4 sm:$0xff] (!%p174_p3)   ;;  %s1391_s18 = sshll.u32 (!%p174_p3), %s1689_s12, 5  ;;  %v1657_v1 = vld [vmem:[%s2014_s1] ss:$12 sps:$4 sm:$0xff] (!%p174_p3)   ;;  %v1699_v2 = vmov (!%p174_p3), 0   ;;  %v279_v20 = vlaneseq (!%p174_p3) }
   0x7   : > { %177 = sbr.rel (%p174_p3) target bundleno = 329 (0x149), region = 32  ;;  %471 = vmatprep.mubr.bf16.mxu0 (!%p174_p3), %v1699_v2  ;;  %591 = vmatprep.mubr.bf16.mxu1 (!%p174_p3), %v1699_v2  ;;  %v1658_v3 = vld [vmem:[%s2014_s1 + $0x8] ss:$12 sps:$4 sm:$0xff] (!%p174_p3)   ;;  %p212_p4 = scmp.lt.s32.totalorder (!%p174_p3), %s1391_s18, 63  ;;  %vm390_vm0 = vcmask (!%p174_p3), 130048  }
   0x8   : > { %1627 = vmatprep.subr.bf16.mxu1 (!%p174_p3), %v1655_v0  ;;  %439 = vmatprep.subr.bf16.mxu0 (!%p174_p3), %v1655_v0  ;;  %v1819_v21 = vshrl.u32 (!%p174_p3), %v279_v20, 7  ;;  %v1825_v23 = vld [vmem:[%s2015_s2] sm:$0x7] (!%p174_p3) }
   0x9   : > { %1628 = vmatpush1.bf16.msra.mxu1 (!%p174_p3), %v1657_v1  ;;  %440 = vmatpush1.bf16.msra.mxu0 (!%p174_p3), %v1657_v1 }
   0xa   : > { %1593 = vmatprep.subr.bf16.mxu1 (!%p174_p3), %v1658_v3  ;;  %v281_v22 = vsub.s32 (!%p174_p3), 0, %v1819_v21  ;;  %v285_v24 = vsub.s32 (!%p174_p3), 1, %v1819_v21 }
   0xc   : > { %v1829_v25 = vrot.slane (!%p174_p3), %v1825_v23, %v281_v22  ;;  %v1832_v26 = vrot.slane (!%p174_p3), %v1825_v23, %v285_v24 }
   0xe   : > { %s2022_s18 = smov (!%p212_p4, %s1391_s18), 63 }
   0xf   : > { %s1392_s23 = sshll.u32 %s2022_s18, 2  ;;  %s1629_s29 = smul.u32 12, %s2022_s18 }
  0x10   : > { %s1755_s26 = scalar_lea.vmem %s2013_s0, %s1392_s23 }
  0x11   : > { %v1659_v4 = vld [vmem:[%s1755_s26] sm:$0xff]   ;;  %v1661_v6 = vld [vmem:[%s1755_s26 + $0x8] sm:$0xff]   ;;  %v1663_v8 = vld [vmem:[%s1755_s26 + $0x10] sm:$0xff]   ;;  %s1845_s5 = scalar_lea.vmem %s2016_s3, %s1629_s29 }
  0x12   : > { %v1660_v5 = vld [vmem:[%s1755_s26 + $0x60] sm:$0xff]   ;;  %1414 = vmatmul.mubr.msk.bf16.vlgmr.msra.gmra.mrb[0].mxu0 %vm390_vm0, %v1659_v4  ;;  %v1662_v7 = vld [vmem:[%s1755_s26 + $0x68] sm:$0xff]   ;;  %v1664_v9 = vld [vmem:[%s1755_s26 + $0x70] sm:$0xff]  }
  0x13   : > { %1426 = vmatmul.mubr.msk.bf16.vlgmr.msra.gmra.mrb[0].mxu1 %vm390_vm0, %v1660_v5  ;;  %481 = vmatprep.mubr.bf16.mxu0 %v1699_v2  ;;  %v1665_v10 = vld [vmem:[%s1755_s26 + $0x18] sm:$0xff]   ;;  %v1667_v12 = vld [vmem:[%s1755_s26 + $0x20] sm:$0xff]   ;;  %v1668_v13 = vld [vmem:[%s1755_s26 + $0x28] sm:$0xff]  }
  0x14   : > { %1594 = vmatpush3.bf16.msra.mxu1 %v1658_v3  ;;  %601 = vmatprep.mubr.bf16.mxu1 %v1699_v2  ;;  %v1666_v11 = vld [vmem:[%s1755_s26 + $0x78] sm:$0xff]   ;;  %v1669_v14 = vld [vmem:[%s1755_s26 + $0x30] sm:$0xff]   ;;  %v1671_v16 = vld [vmem:[%s1755_s26 + $0x40] sm:$0xff]  }
  0x15   : > { %v1670_v15 = vld [vmem:[%s1755_s26 + $0x38] sm:$0xff]   ;;  %v1672_v17 = vld [vmem:[%s1755_s26 + $0x48] sm:$0xff]   ;;  %v1673_v18 = vld [vmem:[%s1755_s26 + $0x50] sm:$0xff]  }
  0x16   : > { %v1674_v19 = vld [vmem:[%s1755_s26 + $0x58] sm:$0xff]  }
  0x1a   : > { %1415 = vmatmul.mubr.msk.bf16.gmra.mrb[4].mxu0 %vm390_vm0, %v1661_v6 }
  0x1b   : > { %1427 = vmatmul.mubr.msk.bf16.gmra.mrb[4].mxu1 %vm390_vm0, %v1662_v7  ;;  %491 = vmatprep.mubr.bf16.mxu0 %v1699_v2 }
  0x1c   : > { %611 = vmatprep.mubr.bf16.mxu1 %v1699_v2 }
  0x22   : > { %1416 = vmatmul.mubr.msk.bf16.gmra.mrb[8].mxu0 %vm390_vm0, %v1663_v8 }
  0x23   : > { %1428 = vmatmul.mubr.msk.bf16.gmra.mrb[8].mxu1 %vm390_vm0, %v1664_v9  ;;  %501 = vmatprep.mubr.bf16.mxu0 %v1699_v2 }
  0x24   : > { %621 = vmatprep.mubr.bf16.mxu1 %v1699_v2 }
  0x2a   : > { %1417 = vmatmul.mubr.msk.bf16.gmra.mrb[12].mxu0 %vm390_vm0, %v1665_v10 }
  0x2b   : > { %1429 = vmatmul.mubr.msk.bf16.gmra.mrb[12].mxu1 %vm390_vm0, %v1666_v11  ;;  %511 = vmatprep.mubr.bf16.mxu0 %v1699_v2 }
  0x2c   : > { %1595 = vmatprep.mubr.msk.bf16.mxu1 %vm390_vm0, %v1659_v4 }
  0x32   : > { %1418 = vmatmul.mubr.msk.bf16.gmra.mrb[16].mxu0 %vm390_vm0, %v1667_v12 }
  0x33   : > { %1596 = vmatmul.mubr.msk.bf16.vlgmr.msra.gmra.mrb[16].mxu1 %vm390_vm0, %v1661_v6  ;;  %521 = vmatprep.mubr.bf16.mxu0 %v1699_v2 }
  0x34   : > { %1599 = vmatprep.mubr.msk.bf16.mxu1 %vm390_vm0, %v1663_v8 }
  0x3a   : > { %1419 = vmatmul.mubr.msk.bf16.gmra.mrb[20].mxu0 %vm390_vm0, %v1668_v13 }
  0x3b   : > { %1600 = vmatmul.mubr.msk.bf16.gmra.mrb[20].mxu1 %vm390_vm0, %v1665_v10  ;;  %531 = vmatprep.mubr.bf16.mxu0 %v1699_v2 }
  0x3c   : > { %1603 = vmatprep.mubr.msk.bf16.mxu1 %vm390_vm0, %v1667_v12 }
  0x42   : > { %1420 = vmatmul.mubr.msk.bf16.gmra.mrb[24].mxu0 %vm390_vm0, %v1669_v14 }
  0x43   : > { %1604 = vmatmul.mubr.msk.bf16.gmra.mrb[24].mxu1 %vm390_vm0, %v1668_v13  ;;  %541 = vmatprep.mubr.bf16.mxu0 %v1699_v2 }
  0x44   : > { %1607 = vmatprep.mubr.msk.bf16.mxu1 %vm390_vm0, %v1669_v14 }
  0x4a   : > { %1421 = vmatmul.mubr.msk.bf16.gmra.mrb[28].mxu0 %vm390_vm0, %v1670_v15 }
  0x4b   : > { %1608 = vmatmul.mubr.msk.bf16.gmra.mrb[28].mxu1 %vm390_vm0, %v1670_v15  ;;  %551 = vmatprep.mubr.bf16.mxu0 %v1699_v2 }
  0x4c   : > { %1611 = vmatprep.mubr.msk.bf16.mxu1 %vm390_vm0, %v1671_v16 }
  0x52   : > { %1422 = vmatmul.mubr.msk.bf16.gmra.mrb[32].mxu0 %vm390_vm0, %v1671_v16 }
  0x53   : > { %1612 = vmatmul.mubr.msk.bf16.gmra.mrb[32].mxu1 %vm390_vm0, %v1672_v17  ;;  %561 = vmatprep.mubr.bf16.mxu0 %v1699_v2 }
  0x54   : > { %1615 = vmatprep.mubr.msk.bf16.mxu1 %vm390_vm0, %v1673_v18 }
  0x5a   : > { %1423 = vmatmul.mubr.msk.bf16.gmra.mrb[36].mxu0 %vm390_vm0, %v1672_v17 }
  0x5b   : > { %1616 = vmatmul.mubr.msk.bf16.gmra.mrb[36].mxu1 %vm390_vm0, %v1674_v19  ;;  %571 = vmatprep.mubr.bf16.mxu0 %v1699_v2 }
  0x5c   : > { %1619 = vmatprep.mubr.msk.bf16.mxu1 %vm390_vm0, %v1660_v5 }
  0x62   : > { %1424 = vmatmul.mubr.msk.bf16.gmra.mrb[40].mxu0 %vm390_vm0, %v1673_v18 }
  0x63   : > { %1620 = vmatmul.mubr.msk.bf16.gmra.mrb[40].mxu1 %vm390_vm0, %v1662_v7  ;;  %581 = vmatprep.mubr.bf16.mxu0 %v1699_v2 }
  0x64   : > { %1623 = vmatprep.mubr.msk.bf16.mxu1 %vm390_vm0, %v1664_v9 }
  0x6a   : > { %1425 = vmatmul.mubr.msk.bf16.gmra.mrb[44].mxu0 %vm390_vm0, %v1674_v19 }
  0x6b   : > { %1624 = vmatmul.mubr.msk.bf16.gmra.mrb[44].mxu1 %vm390_vm0, %v1666_v11 }
  0xe5   : > { %v473_v27 = vpop.f32.mrb[0].mxu0 }
  0xe6   : > { %v474_v28 = vadd.f32 %v473_v27, %v1829_v25  ;;  %v593_v29 = vpop.f32.mrb[0].mxu1  ;;  %v475_v30 = vpop.f32.mrb[1].mxu0 }
  0xe7   : > { %v594_v31 = vadd.f32 %v593_v29, %v1829_v25  ;;  %v476_v32 = vadd.f32 %v475_v30, %v1832_v26  ;;  %v595_v33 = vpop.f32.mrb[1].mxu1  ;;  %v477_v34 = vpop.f32.mrb[2].mxu0 }
  0xe8   : > { %v793_v35 = vmax.f32 %v474_v28, 0.0  ;;  %v596_v36 = vadd.f32 %v595_v33, %v1832_v26  ;;  %v478_v37 = vadd.f32 %v477_v34, %v1829_v25  ;;  %v597_v38 = vpop.f32.mrb[2].mxu1  ;;  %v479_v39 = vpop.f32.mrb[3].mxu0 }
  0xe9   : > { %v865_v40 = vmax.f32 %v594_v31, 0.0  ;;  %v794_v41 = vmax.f32 %v476_v32, 0.0  ;;  %v598_v42 = vadd.f32 %v597_v38, %v1829_v25  ;;  %v480_v43 = vadd.f32 %v479_v39, %v1832_v26  ;;  %v599_v44 = vpop.f32.mrb[3].mxu1 }
  0xea   : > { %v866_v45 = vmax.f32 %v596_v36, 0.0  ;;  %v796_v46 = vmax.f32 %v478_v37, 0.0  ;;  %v600_v47 = vadd.f32 %v599_v44, %v1832_v26 }
  0xeb   : > { %v1512_v48 = vpack.c.bf16 %v794_v41, %v793_v35  ;;  %v868_v49 = vmax.f32 %v598_v42, 0.0  ;;  %v797_v50 = vmax.f32 %v480_v43, 0.0 }
  0xec   : > { %v1560_v51 = vpack.c.bf16 %v866_v45, %v865_v40  ;;  %v869_v52 = vmax.f32 %v600_v47, 0.0 }
  0xed   : > { %1209 = vst [vmem:[%s1845_s5] sm:$0xff] %v1512_v48  ;;  %v1514_v53 = vpack.c.bf16 %v797_v50, %v796_v46  ;;  %v483_v54 = vpop.f32.mrb[4].mxu0 }
  0xee   : > { %1257 = vst [vmem:[%s1845_s5 + $0x120] sm:$0xff] %v1560_v51  ;;  %v1562_v55 = vpack.c.bf16 %v869_v52, %v868_v49  ;;  %v484_v56 = vadd.f32 %v483_v54, %v1829_v25  ;;  %v603_v57 = vpop.f32.mrb[4].mxu1  ;;  %v485_v58 = vpop.f32.mrb[5].mxu0 }
  0xef   : > { %1211 = vst [vmem:[%s1845_s5 + $0xc] sm:$0xff] %v1514_v53  ;;  %v604_v59 = vadd.f32 %v603_v57, %v1829_v25  ;;  %v486_v60 = vadd.f32 %v485_v58, %v1832_v26  ;;  %v605_v61 = vpop.f32.mrb[5].mxu1  ;;  %v487_v62 = vpop.f32.mrb[6].mxu0 }
  0xf0   : > { %1259 = vst [vmem:[%s1845_s5 + $0x12c] sm:$0xff] %v1562_v55  ;;  %v799_v63 = vmax.f32 %v484_v56, 0.0  ;;  %v606_v0 = vadd.f32 %v605_v61, %v1832_v26  ;;  %v488_v1 = vadd.f32 %v487_v62, %v1829_v25  ;;  %v607_v2 = vpop.f32.mrb[6].mxu1  ;;  %v489_v3 = vpop.f32.mrb[7].mxu0 }
  0xf1   : > { %v871_v4 = vmax.f32 %v604_v59, 0.0  ;;  %v800_v5 = vmax.f32 %v486_v60, 0.0  ;;  %v608_v6 = vadd.f32 %v607_v2, %v1829_v25  ;;  %v490_v7 = vadd.f32 %v489_v3, %v1832_v26  ;;  %v609_v8 = vpop.f32.mrb[7].mxu1 }
  0xf2   : > { %v872_v9 = vmax.f32 %v606_v0, 0.0  ;;  %v802_v10 = vmax.f32 %v488_v1, 0.0  ;;  %v610_v11 = vadd.f32 %v609_v8, %v1832_v26  ;;  %v289_v59 = vsub.s32 2, %v1819_v21 }
  0xf3   : > { %v1516_v12 = vpack.c.bf16 %v800_v5, %v799_v63  ;;  %v874_v13 = vmax.f32 %v608_v6, 0.0  ;;  %v803_v14 = vmax.f32 %v490_v7, 0.0 }
  0xf4   : > { %v1564_v15 = vpack.c.bf16 %v872_v9, %v871_v4  ;;  %v875_v16 = vmax.f32 %v610_v11, 0.0  ;;  %v1886_v11 = vrot.slane %v1825_v23, %v289_v59 }
  0xf5   : > { %1213 = vst [vmem:[%s1845_s5 + $0x18] sm:$0xff] %v1516_v12  ;;  %v1518_v17 = vpack.c.bf16 %v803_v14, %v802_v10  ;;  %v493_v18 = vpop.f32.mrb[8].mxu0 }
  0xf6   : > { %1261 = vst [vmem:[%s1845_s5 + $0x138] sm:$0xff] %v1564_v15  ;;  %v1566_v19 = vpack.c.bf16 %v875_v16, %v874_v13  ;;  %v494_v20 = vadd.f32 %v493_v18, %v1829_v25  ;;  %v613_v22 = vpop.f32.mrb[8].mxu1  ;;  %v495_v24 = vpop.f32.mrb[9].mxu0 }
  0xf7   : > { %1215 = vst [vmem:[%s1845_s5 + $0x24] sm:$0xff] %v1518_v17  ;;  %v614_v27 = vadd.f32 %v613_v22, %v1829_v25  ;;  %v496_v28 = vadd.f32 %v495_v24, %v1832_v26  ;;  %v615_v29 = vpop.f32.mrb[9].mxu1  ;;  %v497_v30 = vpop.f32.mrb[10].mxu0 }
  0xf8   : > { %1263 = vst [vmem:[%s1845_s5 + $0x144] sm:$0xff] %v1566_v19  ;;  %v805_v31 = vmax.f32 %v494_v20, 0.0  ;;  %v616_v32 = vadd.f32 %v615_v29, %v1832_v26  ;;  %v498_v33 = vadd.f32 %v497_v30, %v1829_v25  ;;  %v617_v34 = vpop.f32.mrb[10].mxu1  ;;  %v499_v35 = vpop.f32.mrb[11].mxu0 }
  0xf9   : > { %v877_v36 = vmax.f32 %v614_v27, 0.0  ;;  %v806_v37 = vmax.f32 %v496_v28, 0.0  ;;  %v618_v38 = vadd.f32 %v617_v34, %v1829_v25  ;;  %v500_v39 = vadd.f32 %v499_v35, %v1832_v26  ;;  %v619_v40 = vpop.f32.mrb[11].mxu1 }
  0xfa   : > { %v878_v41 = vmax.f32 %v616_v32, 0.0  ;;  %v808_v42 = vmax.f32 %v498_v33, 0.0  ;;  %v620_v43 = vadd.f32 %v619_v40, %v1832_v26 }
  0xfb   : > { %v1520_v44 = vpack.c.bf16 %v806_v37, %v805_v31  ;;  %v880_v45 = vmax.f32 %v618_v38, 0.0  ;;  %v809_v46 = vmax.f32 %v500_v39, 0.0 }
  0xfc   : > { %v1568_v47 = vpack.c.bf16 %v878_v41, %v877_v36  ;;  %v881_v48 = vmax.f32 %v620_v43, 0.0 }
  0xfd   : > { %1217 = vst [vmem:[%s1845_s5 + $0x30] sm:$0xff] %v1520_v44  ;;  %v1522_v49 = vpack.c.bf16 %v809_v46, %v808_v42  ;;  %v503_v50 = vpop.f32.mrb[12].mxu0 }
  0xfe   : > { %1265 = vst [vmem:[%s1845_s5 + $0x150] sm:$0xff] %v1568_v47  ;;  %v1570_v51 = vpack.c.bf16 %v881_v48, %v880_v45  ;;  %v504_v52 = vadd.f32 %v503_v50, %v1829_v25  ;;  %v623_v53 = vpop.f32.mrb[12].mxu1  ;;  %v505_v54 = vpop.f32.mrb[13].mxu0 }
  0xff   : > { %1219 = vst [vmem:[%s1845_s5 + $0x3c] sm:$0xff] %v1522_v49  ;;  %v624_v55 = vadd.f32 %v623_v53, %v1829_v25  ;;  %v506_v56 = vadd.f32 %v505_v54, %v1832_v26  ;;  %v625_v57 = vpop.f32.mrb[13].mxu1  ;;  %v507_v58 = vpop.f32.mrb[14].mxu0 }
 0x100   : > { %1267 = vst [vmem:[%s1845_s5 + $0x15c] sm:$0xff] %v1570_v51  ;;  %v811_v60 = vmax.f32 %v504_v52, 0.0  ;;  %v626_v61 = vadd.f32 %v625_v57, %v1832_v26  ;;  %v508_v62 = vadd.f32 %v507_v58, %v1829_v25  ;;  %v627_v63 = vpop.f32.mrb[14].mxu1  ;;  %v509_v0 = vpop.f32.mrb[15].mxu0 }
 0x101   : > { %v883_v1 = vmax.f32 %v624_v55, 0.0  ;;  %v812_v2 = vmax.f32 %v506_v56, 0.0  ;;  %v628_v3 = vadd.f32 %v627_v63, %v1829_v25  ;;  %v510_v4 = vadd.f32 %v509_v0, %v1832_v26  ;;  %v629_v5 = vpop.f32.mrb[15].mxu1 }
 0x102   : > { %v884_v6 = vmax.f32 %v626_v61, 0.0  ;;  %v814_v7 = vmax.f32 %v508_v62, 0.0  ;;  %v630_v21 = vadd.f32 %v629_v5, %v1832_v26 }
 0x103   : > { %v1524_v8 = vpack.c.bf16 %v812_v2, %v811_v60  ;;  %v886_v9 = vmax.f32 %v628_v3, 0.0  ;;  %v815_v10 = vmax.f32 %v510_v4, 0.0 }
 0x104   : > { %v1572_v12 = vpack.c.bf16 %v884_v6, %v883_v1  ;;  %v887_v13 = vmax.f32 %v630_v21, 0.0 }
 0x105   : > { %1221 = vst [vmem:[%s1845_s5 + $0x48] sm:$0xff] %v1524_v8  ;;  %v1526_v14 = vpack.c.bf16 %v815_v10, %v814_v7  ;;  %v513_v15 = vpop.f32.mrb[16].mxu0 }
 0x106   : > { %1269 = vst [vmem:[%s1845_s5 + $0x168] sm:$0xff] %v1572_v12  ;;  %v1574_v16 = vpack.c.bf16 %v887_v13, %v886_v9  ;;  %v514_v17 = vadd.f32 %v513_v15, %v1829_v25  ;;  %v1597_v18 = vpop.f32.mrb[16].mxu1  ;;  %v515_v19 = vpop.f32.mrb[17].mxu0 }
 0x107   : > { %1223 = vst [vmem:[%s1845_s5 + $0x54] sm:$0xff] %v1526_v14  ;;  %v675_v20 = vadd.f32 %v1597_v18, %v1886_v11  ;;  %v516_v22 = vadd.f32 %v515_v19, %v1832_v26  ;;  %v666_v24 = vpop.f32.mrb[17].mxu1  ;;  %v517_v23 = vpop.f32.mrb[18].mxu0 }
 0x108   : > { %1271 = vst [vmem:[%s1845_s5 + $0x174] sm:$0xff] %v1574_v16  ;;  %v817_v27 = vmax.f32 %v514_v17, 0.0  ;;  %v667_v28 = vadd.f32 %v666_v24, %v1886_v11  ;;  %v518_v29 = vadd.f32 %v517_v23, %v1829_v25  ;;  %v1598_v30 = vpop.f32.mrb[18].mxu1  ;;  %v519_v31 = vpop.f32.mrb[19].mxu0 }
 0x109   : > { %v801_v32 = vmax.f32 %v675_v20, 0.0  ;;  %v818_v33 = vmax.f32 %v516_v22, 0.0  ;;  %v678_v34 = vadd.f32 %v1598_v30, %v1886_v11  ;;  %v520_v35 = vadd.f32 %v519_v31, %v1832_v26  ;;  %v669_v36 = vpop.f32.mrb[19].mxu1 }
 0x10a   : > { %v795_v37 = vmax.f32 %v667_v28, 0.0  ;;  %v820_v38 = vmax.f32 %v518_v29, 0.0  ;;  %v670_v39 = vadd.f32 %v669_v36, %v1886_v11 }
 0x10b   : > { %v1517_v40 = vpack.c.bf16 %v801_v32, %v801_v32  ;;  %v1528_v41 = vpack.c.bf16 %v818_v33, %v817_v27  ;;  %v804_v42 = vmax.f32 %v678_v34, 0.0  ;;  %v821_v43 = vmax.f32 %v520_v35, 0.0 }
 0x10c   : > { %v1513_v44 = vpack.c.bf16 %v795_v37, %v795_v37  ;;  %v798_v45 = vmax.f32 %v670_v39, 0.0 }
 0x10d   : > { %1214 = vst [vmem:[%s1845_s5 + $0x20] sm:$0xf] %v1517_v40  ;;  %1225 = vst [vmem:[%s1845_s5 + $0x60] sm:$0xff] %v1528_v41  ;;  %v1519_v46 = vpack.c.bf16 %v804_v42, %v804_v42  ;;  %v1530_v47 = vpack.c.bf16 %v821_v43, %v820_v38  ;;  %v523_v48 = vpop.f32.mrb[20].mxu0 }
 0x10e   : > { %1210 = vst [vmem:[%s1845_s5 + $0x8] sm:$0xf] %v1513_v44  ;;  %v1515_v49 = vpack.c.bf16 %v798_v45, %v798_v45  ;;  %v524_v50 = vadd.f32 %v523_v48, %v1829_v25  ;;  %v1601_v51 = vpop.f32.mrb[20].mxu1  ;;  %v525_v52 = vpop.f32.mrb[21].mxu0 }
 0x10f   : > { %1216 = vst [vmem:[%s1845_s5 + $0x2c] sm:$0xf] %v1519_v46  ;;  %1227 = vst [vmem:[%s1845_s5 + $0x6c] sm:$0xff] %v1530_v47  ;;  %v691_v53 = vadd.f32 %v1601_v51, %v1886_v11  ;;  %v526_v54 = vadd.f32 %v525_v52, %v1832_v26  ;;  %v682_v55 = vpop.f32.mrb[21].mxu1  ;;  %v527_v56 = vpop.f32.mrb[22].mxu0 }
 0x110   : > { %1212 = vst [vmem:[%s1845_s5 + $0x14] sm:$0xf] %v1515_v49  ;;  %v823_v57 = vmax.f32 %v524_v50, 0.0  ;;  %v683_v58 = vadd.f32 %v682_v55, %v1886_v11  ;;  %v528_v59 = vadd.f32 %v527_v56, %v1829_v25  ;;  %v1602_v60 = vpop.f32.mrb[22].mxu1  ;;  %v529_v61 = vpop.f32.mrb[23].mxu0 }
 0x111   : > { %v813_v62 = vmax.f32 %v691_v53, 0.0  ;;  %v824_v63 = vmax.f32 %v526_v54, 0.0  ;;  %v694_v0 = vadd.f32 %v1602_v60, %v1886_v11  ;;  %v530_v1 = vadd.f32 %v529_v61, %v1832_v26  ;;  %v685_v2 = vpop.f32.mrb[23].mxu1 }
 0x112   : > { %v807_v3 = vmax.f32 %v683_v58, 0.0  ;;  %v826_v4 = vmax.f32 %v528_v59, 0.0  ;;  %v686_v5 = vadd.f32 %v685_v2, %v1886_v11 }
 0x113   : > { %v1525_v6 = vpack.c.bf16 %v813_v62, %v813_v62  ;;  %v1532_v7 = vpack.c.bf16 %v824_v63, %v823_v57  ;;  %v816_v21 = vmax.f32 %v694_v0, 0.0  ;;  %v827_v8 = vmax.f32 %v530_v1, 0.0 }
 0x114   : > { %v1521_v9 = vpack.c.bf16 %v807_v3, %v807_v3  ;;  %v810_v10 = vmax.f32 %v686_v5, 0.0 }
 0x115   : > { %1222 = vst [vmem:[%s1845_s5 + $0x50] sm:$0xf] %v1525_v6  ;;  %1229 = vst [vmem:[%s1845_s5 + $0x78] sm:$0xff] %v1532_v7  ;;  %v1527_v12 = vpack.c.bf16 %v816_v21, %v816_v21  ;;  %v1534_v13 = vpack.c.bf16 %v827_v8, %v826_v4  ;;  %v533_v14 = vpop.f32.mrb[24].mxu0 }
 0x116   : > { %1218 = vst [vmem:[%s1845_s5 + $0x38] sm:$0xf] %v1521_v9  ;;  %v1523_v15 = vpack.c.bf16 %v810_v10, %v810_v10  ;;  %v534_v16 = vadd.f32 %v533_v14, %v1829_v25  ;;  %v1605_v17 = vpop.f32.mrb[24].mxu1  ;;  %v535_v18 = vpop.f32.mrb[25].mxu0 }
 0x117   : > { %1224 = vst [vmem:[%s1845_s5 + $0x5c] sm:$0xf] %v1527_v12  ;;  %1231 = vst [vmem:[%s1845_s5 + $0x84] sm:$0xff] %v1534_v13  ;;  %v707_v19 = vadd.f32 %v1605_v17, %v1886_v11  ;;  %v536_v20 = vadd.f32 %v535_v18, %v1832_v26  ;;  %v698_v22 = vpop.f32.mrb[25].mxu1  ;;  %v537_v24 = vpop.f32.mrb[26].mxu0 }
 0x118   : > { %1220 = vst [vmem:[%s1845_s5 + $0x44] sm:$0xf] %v1523_v15  ;;  %v829_v23 = vmax.f32 %v534_v16, 0.0  ;;  %v699_v27 = vadd.f32 %v698_v22, %v1886_v11  ;;  %v538_v28 = vadd.f32 %v537_v24, %v1829_v25  ;;  %v1606_v29 = vpop.f32.mrb[26].mxu1  ;;  %v539_v30 = vpop.f32.mrb[27].mxu0 }
 0x119   : > { %v825_v31 = vmax.f32 %v707_v19, 0.0  ;;  %v830_v32 = vmax.f32 %v536_v20, 0.0  ;;  %v710_v33 = vadd.f32 %v1606_v29, %v1886_v11  ;;  %v540_v34 = vadd.f32 %v539_v30, %v1832_v26  ;;  %v701_v35 = vpop.f32.mrb[27].mxu1 }
 0x11a   : > { %v819_v36 = vmax.f32 %v699_v27, 0.0  ;;  %v832_v37 = vmax.f32 %v538_v28, 0.0  ;;  %v702_v38 = vadd.f32 %v701_v35, %v1886_v11 }
 0x11b   : > { %v1533_v39 = vpack.c.bf16 %v825_v31, %v825_v31  ;;  %v1536_v40 = vpack.c.bf16 %v830_v32, %v829_v23  ;;  %v828_v41 = vmax.f32 %v710_v33, 0.0  ;;  %v833_v42 = vmax.f32 %v540_v34, 0.0 }
 0x11c   : > { %v1529_v43 = vpack.c.bf16 %v819_v36, %v819_v36  ;;  %v822_v44 = vmax.f32 %v702_v38, 0.0 }
 0x11d   : > { %1230 = vst [vmem:[%s1845_s5 + $0x80] sm:$0xf] %v1533_v39  ;;  %1233 = vst [vmem:[%s1845_s5 + $0x90] sm:$0xff] %v1536_v40  ;;  %v1535_v45 = vpack.c.bf16 %v828_v41, %v828_v41  ;;  %v1538_v46 = vpack.c.bf16 %v833_v42, %v832_v37  ;;  %v543_v47 = vpop.f32.mrb[28].mxu0 }
 0x11e   : > { %1226 = vst [vmem:[%s1845_s5 + $0x68] sm:$0xf] %v1529_v43  ;;  %v1531_v48 = vpack.c.bf16 %v822_v44, %v822_v44  ;;  %v544_v49 = vadd.f32 %v543_v47, %v1829_v25  ;;  %v1609_v50 = vpop.f32.mrb[28].mxu1  ;;  %v545_v51 = vpop.f32.mrb[29].mxu0 }
 0x11f   : > { %1232 = vst [vmem:[%s1845_s5 + $0x8c] sm:$0xf] %v1535_v45  ;;  %1235 = vst [vmem:[%s1845_s5 + $0x9c] sm:$0xff] %v1538_v46  ;;  %v723_v52 = vadd.f32 %v1609_v50, %v1886_v11  ;;  %v546_v53 = vadd.f32 %v545_v51, %v1832_v26  ;;  %v714_v54 = vpop.f32.mrb[29].mxu1  ;;  %v547_v55 = vpop.f32.mrb[30].mxu0 }
 0x120   : > { %1228 = vst [vmem:[%s1845_s5 + $0x74] sm:$0xf] %v1531_v48  ;;  %v835_v56 = vmax.f32 %v544_v49, 0.0  ;;  %v715_v57 = vadd.f32 %v714_v54, %v1886_v11  ;;  %v548_v58 = vadd.f32 %v547_v55, %v1829_v25  ;;  %v1610_v59 = vpop.f32.mrb[30].mxu1  ;;  %v549_v60 = vpop.f32.mrb[31].mxu0 }
 0x121   : > { %v837_v61 = vmax.f32 %v723_v52, 0.0  ;;  %v836_v62 = vmax.f32 %v546_v53, 0.0  ;;  %v726_v63 = vadd.f32 %v1610_v59, %v1886_v11  ;;  %v550_v0 = vadd.f32 %v549_v60, %v1832_v26  ;;  %v717_v1 = vpop.f32.mrb[31].mxu1 }
 0x122   : > { %v831_v2 = vmax.f32 %v715_v57, 0.0  ;;  %v838_v3 = vmax.f32 %v548_v58, 0.0  ;;  %v718_v4 = vadd.f32 %v717_v1, %v1886_v11 }
 0x123   : > { %v1541_v5 = vpack.c.bf16 %v837_v61, %v837_v61  ;;  %v1540_v6 = vpack.c.bf16 %v836_v62, %v835_v56  ;;  %v840_v7 = vmax.f32 %v726_v63, 0.0  ;;  %v839_v21 = vmax.f32 %v550_v0, 0.0 }
 0x124   : > { %v1537_v8 = vpack.c.bf16 %v831_v2, %v831_v2  ;;  %v834_v9 = vmax.f32 %v718_v4, 0.0 }
 0x125   : > { %1238 = vst [vmem:[%s1845_s5 + $0xb0] sm:$0xf] %v1541_v5  ;;  %1237 = vst [vmem:[%s1845_s5 + $0xa8] sm:$0xff] %v1540_v6  ;;  %v1543_v10 = vpack.c.bf16 %v840_v7, %v840_v7  ;;  %v1542_v12 = vpack.c.bf16 %v839_v21, %v838_v3  ;;  %v553_v13 = vpop.f32.mrb[32].mxu0 }
 0x126   : > { %1234 = vst [vmem:[%s1845_s5 + $0x98] sm:$0xf] %v1537_v8  ;;  %v1539_v14 = vpack.c.bf16 %v834_v9, %v834_v9  ;;  %v554_v15 = vadd.f32 %v553_v13, %v1829_v25  ;;  %v1613_v16 = vpop.f32.mrb[32].mxu1  ;;  %v555_v17 = vpop.f32.mrb[33].mxu0 }
 0x127   : > { %1240 = vst [vmem:[%s1845_s5 + $0xbc] sm:$0xf] %v1543_v10  ;;  %1239 = vst [vmem:[%s1845_s5 + $0xb4] sm:$0xff] %v1542_v12  ;;  %v739_v18 = vadd.f32 %v1613_v16, %v1886_v11  ;;  %v556_v19 = vadd.f32 %v555_v17, %v1832_v26  ;;  %v730_v20 = vpop.f32.mrb[33].mxu1  ;;  %v557_v22 = vpop.f32.mrb[34].mxu0 }
 0x128   : > { %1236 = vst [vmem:[%s1845_s5 + $0xa4] sm:$0xf] %v1539_v14  ;;  %v841_v24 = vmax.f32 %v554_v15, 0.0  ;;  %v731_v23 = vadd.f32 %v730_v20, %v1886_v11  ;;  %v558_v27 = vadd.f32 %v557_v22, %v1829_v25  ;;  %v1614_v28 = vpop.f32.mrb[34].mxu1  ;;  %v559_v29 = vpop.f32.mrb[35].mxu0 }
 0x129   : > { %v849_v30 = vmax.f32 %v739_v18, 0.0  ;;  %v842_v31 = vmax.f32 %v556_v19, 0.0  ;;  %v742_v32 = vadd.f32 %v1614_v28, %v1886_v11  ;;  %v560_v33 = vadd.f32 %v559_v29, %v1832_v26  ;;  %v733_v34 = vpop.f32.mrb[35].mxu1 }
 0x12a   : > { %v843_v35 = vmax.f32 %v731_v23, 0.0  ;;  %v844_v36 = vmax.f32 %v558_v27, 0.0  ;;  %v734_v37 = vadd.f32 %v733_v34, %v1886_v11 }
 0x12b   : > { %v1549_v38 = vpack.c.bf16 %v849_v30, %v849_v30  ;;  %v1544_v39 = vpack.c.bf16 %v842_v31, %v841_v24  ;;  %v852_v40 = vmax.f32 %v742_v32, 0.0  ;;  %v845_v41 = vmax.f32 %v560_v33, 0.0 }
 0x12c   : > { %v1545_v42 = vpack.c.bf16 %v843_v35, %v843_v35  ;;  %v846_v43 = vmax.f32 %v734_v37, 0.0 }
 0x12d   : > { %1246 = vst [vmem:[%s1845_s5 + $0xe0] sm:$0xf] %v1549_v38  ;;  %1241 = vst [vmem:[%s1845_s5 + $0xc0] sm:$0xff] %v1544_v39  ;;  %v1551_v44 = vpack.c.bf16 %v852_v40, %v852_v40  ;;  %v1546_v45 = vpack.c.bf16 %v845_v41, %v844_v36  ;;  %v563_v46 = vpop.f32.mrb[36].mxu0 }
 0x12e   : > { %1242 = vst [vmem:[%s1845_s5 + $0xc8] sm:$0xf] %v1545_v42  ;;  %v1547_v47 = vpack.c.bf16 %v846_v43, %v846_v43  ;;  %v564_v48 = vadd.f32 %v563_v46, %v1829_v25  ;;  %v1617_v49 = vpop.f32.mrb[36].mxu1  ;;  %v565_v50 = vpop.f32.mrb[37].mxu0 }
 0x12f   : > { %1248 = vst [vmem:[%s1845_s5 + $0xec] sm:$0xf] %v1551_v44  ;;  %1243 = vst [vmem:[%s1845_s5 + $0xcc] sm:$0xff] %v1546_v45  ;;  %v755_v51 = vadd.f32 %v1617_v49, %v1886_v11  ;;  %v566_v52 = vadd.f32 %v565_v50, %v1832_v26  ;;  %v746_v53 = vpop.f32.mrb[37].mxu1  ;;  %v567_v54 = vpop.f32.mrb[38].mxu0 }
 0x130   : > { %1244 = vst [vmem:[%s1845_s5 + $0xd4] sm:$0xf] %v1547_v47  ;;  %v847_v55 = vmax.f32 %v564_v48, 0.0  ;;  %v747_v56 = vadd.f32 %v746_v53, %v1886_v11  ;;  %v568_v57 = vadd.f32 %v567_v54, %v1829_v25  ;;  %v1618_v58 = vpop.f32.mrb[38].mxu1  ;;  %v569_v59 = vpop.f32.mrb[39].mxu0 }
 0x131   : > { %v861_v60 = vmax.f32 %v755_v51, 0.0  ;;  %v848_v61 = vmax.f32 %v566_v52, 0.0  ;;  %v758_v62 = vadd.f32 %v1618_v58, %v1886_v11  ;;  %v570_v63 = vadd.f32 %v569_v59, %v1832_v26  ;;  %v749_v0 = vpop.f32.mrb[39].mxu1 }
 0x132   : > { %v855_v1 = vmax.f32 %v747_v56, 0.0  ;;  %v850_v2 = vmax.f32 %v568_v57, 0.0  ;;  %v750_v3 = vadd.f32 %v749_v0, %v1886_v11 }
 0x133   : > { %v1557_v4 = vpack.c.bf16 %v861_v60, %v861_v60  ;;  %v1548_v5 = vpack.c.bf16 %v848_v61, %v847_v55  ;;  %v864_v6 = vmax.f32 %v758_v62, 0.0  ;;  %v851_v7 = vmax.f32 %v570_v63, 0.0 }
 0x134   : > { %v1553_v21 = vpack.c.bf16 %v855_v1, %v855_v1  ;;  %v858_v8 = vmax.f32 %v750_v3, 0.0 }
 0x135   : > { %1254 = vst [vmem:[%s1845_s5 + $0x110] sm:$0xf] %v1557_v4  ;;  %1245 = vst [vmem:[%s1845_s5 + $0xd8] sm:$0xff] %v1548_v5  ;;  %v1559_v9 = vpack.c.bf16 %v864_v6, %v864_v6  ;;  %v1550_v10 = vpack.c.bf16 %v851_v7, %v850_v2  ;;  %v573_v12 = vpop.f32.mrb[40].mxu0 }
 0x136   : > { %1250 = vst [vmem:[%s1845_s5 + $0xf8] sm:$0xf] %v1553_v21  ;;  %v1555_v13 = vpack.c.bf16 %v858_v8, %v858_v8  ;;  %v574_v14 = vadd.f32 %v573_v12, %v1829_v25  ;;  %v1621_v15 = vpop.f32.mrb[40].mxu1  ;;  %v575_v16 = vpop.f32.mrb[41].mxu0 }
 0x137   : > { %1256 = vst [vmem:[%s1845_s5 + $0x11c] sm:$0xf] %v1559_v9  ;;  %1247 = vst [vmem:[%s1845_s5 + $0xe4] sm:$0xff] %v1550_v10  ;;  %v771_v17 = vadd.f32 %v1621_v15, %v1886_v11  ;;  %v576_v18 = vadd.f32 %v575_v16, %v1832_v26  ;;  %v762_v19 = vpop.f32.mrb[41].mxu1  ;;  %v577_v20 = vpop.f32.mrb[42].mxu0 }
 0x138   : > { %1252 = vst [vmem:[%s1845_s5 + $0x104] sm:$0xf] %v1555_v13  ;;  %v853_v22 = vmax.f32 %v574_v14, 0.0  ;;  %v763_v24 = vadd.f32 %v762_v19, %v1886_v11  ;;  %v578_v23 = vadd.f32 %v577_v20, %v1829_v25  ;;  %v1622_v27 = vpop.f32.mrb[42].mxu1  ;;  %v579_v28 = vpop.f32.mrb[43].mxu0 }
 0x139   : > { %v873_v29 = vmax.f32 %v771_v17, 0.0  ;;  %v854_v30 = vmax.f32 %v576_v18, 0.0  ;;  %v774_v31 = vadd.f32 %v1622_v27, %v1886_v11  ;;  %v580_v32 = vadd.f32 %v579_v28, %v1832_v26  ;;  %v765_v33 = vpop.f32.mrb[43].mxu1 }
 0x13a   : > { %v867_v34 = vmax.f32 %v763_v24, 0.0  ;;  %v856_v35 = vmax.f32 %v578_v23, 0.0  ;;  %v766_v36 = vadd.f32 %v765_v33, %v1886_v11 }
 0x13b   : > { %v1565_v37 = vpack.c.bf16 %v873_v29, %v873_v29  ;;  %v1552_v38 = vpack.c.bf16 %v854_v30, %v853_v22  ;;  %v876_v39 = vmax.f32 %v774_v31, 0.0  ;;  %v857_v40 = vmax.f32 %v580_v32, 0.0 }
 0x13c   : > { %v1561_v41 = vpack.c.bf16 %v867_v34, %v867_v34  ;;  %v870_v42 = vmax.f32 %v766_v36, 0.0 }
 0x13d   : > { %1262 = vst [vmem:[%s1845_s5 + $0x140] sm:$0xf] %v1565_v37  ;;  %1249 = vst [vmem:[%s1845_s5 + $0xf0] sm:$0xff] %v1552_v38  ;;  %v1567_v43 = vpack.c.bf16 %v876_v39, %v876_v39  ;;  %v1554_v44 = vpack.c.bf16 %v857_v40, %v856_v35  ;;  %v583_v45 = vpop.f32.mrb[44].mxu0 }
 0x13e   : > { %1258 = vst [vmem:[%s1845_s5 + $0x128] sm:$0xf] %v1561_v41  ;;  %v1563_v46 = vpack.c.bf16 %v870_v42, %v870_v42  ;;  %v584_v47 = vadd.f32 %v583_v45, %v1829_v25  ;;  %v1625_v48 = vpop.f32.mrb[44].mxu1  ;;  %v585_v49 = vpop.f32.mrb[45].mxu0 }
 0x13f   : > { %1264 = vst [vmem:[%s1845_s5 + $0x14c] sm:$0xf] %v1567_v43  ;;  %1251 = vst [vmem:[%s1845_s5 + $0xfc] sm:$0xff] %v1554_v44  ;;  %v787_v50 = vadd.f32 %v1625_v48, %v1886_v11  ;;  %v586_v51 = vadd.f32 %v585_v49, %v1832_v26  ;;  %v778_v52 = vpop.f32.mrb[45].mxu1  ;;  %v587_v53 = vpop.f32.mrb[46].mxu0 }
 0x140   : > { %1260 = vst [vmem:[%s1845_s5 + $0x134] sm:$0xf] %v1563_v46  ;;  %v859_v54 = vmax.f32 %v584_v47, 0.0  ;;  %v779_v55 = vadd.f32 %v778_v52, %v1886_v11  ;;  %v588_v56 = vadd.f32 %v587_v53, %v1829_v25  ;;  %v1626_v57 = vpop.f32.mrb[46].mxu1  ;;  %v589_v58 = vpop.f32.mrb[47].mxu0 }
 0x141   : > { %v885_v59 = vmax.f32 %v787_v50, 0.0  ;;  %v860_v60 = vmax.f32 %v586_v51, 0.0  ;;  %v790_v61 = vadd.f32 %v1626_v57, %v1886_v11  ;;  %v590_v62 = vadd.f32 %v589_v58, %v1832_v26  ;;  %v781_v63 = vpop.f32.mrb[47].mxu1 }
 0x142   : > { %v879_v0 = vmax.f32 %v779_v55, 0.0  ;;  %v862_v1 = vmax.f32 %v588_v56, 0.0  ;;  %v782_v2 = vadd.f32 %v781_v63, %v1886_v11 }
 0x143   : > { %v1573_v25 = vpack.c.bf16 %v885_v59, %v885_v59  ;;  %v1556_v3 = vpack.c.bf16 %v860_v60, %v859_v54  ;;  %v888_v4 = vmax.f32 %v790_v61, 0.0  ;;  %v863_v5 = vmax.f32 %v590_v62, 0.0 }
 0x144   : > { %v1569_v6 = vpack.c.bf16 %v879_v0, %v879_v0  ;;  %v882_v7 = vmax.f32 %v782_v2, 0.0 }
 0x145   : > { %1270 = vst [vmem:[%s1845_s5 + $0x170] sm:$0xf] %v1573_v25  ;;  %1253 = vst [vmem:[%s1845_s5 + $0x108] sm:$0xff] %v1556_v3  ;;  %v1575_v21 = vpack.c.bf16 %v888_v4, %v888_v4  ;;  %v1558_v8 = vpack.c.bf16 %v863_v5, %v862_v1 }
 0x146   : > { %1266 = vst [vmem:[%s1845_s5 + $0x158] sm:$0xf] %v1569_v6  ;;  %v1571_v26 = vpack.c.bf16 %v882_v7, %v882_v7 }
 0x147   : > { %1272 = vst [vmem:[%s1845_s5 + $0x17c] sm:$0xf] %v1575_v21  ;;  %1255 = vst [vmem:[%s1845_s5 + $0x114] sm:$0xff] %v1558_v8 }
 0x148   : > { %1268 = vst [vmem:[%s1845_s5 + $0x164] sm:$0xf] %v1571_v26 }
 0x149 PF: > { %s13_s14 = sadd.s32 1, %s1697_s14   ;;  %s2017_s12 = smov %s1693_s13 }
 0x14a   : > { %p10_p5 = scmp.ge.s32.totalorder %s13_s14, 4   ;;  %s2018_s13 = smov %s2020_s15 }
 0x14c   :  { %12 = sbr.rel (!%p10_p5) target bundleno = 2 (0x2), region = 68 }

// kernel: inception_forward.5
= control target key start
LH: loop header
LB: loop body
LE: loop exit
PB: predicated region body
PF: predicated region fallthrough
CT: control target
= control target key end

     0   :  { %s5518_s12 = smov 0   ;;  %s6710_s0 = inlined_call_operand.vmem [shape: bf16[2,18,18,128], index: 0, kind: input, shape index: {}]   ;;  %s6711_s1 = inlined_call_operand.vmem [shape: bf16[9,128,128], index: 1, kind: input, shape index: {}]   ;;  %s6712_s2 = inlined_call_operand.vmem [shape: f32[1,128], index: 2, kind: input, shape index: {}]   ;;  %s6713_s3 = inlined_call_operand.vmem [shape: f32[2,256,128], index: 3, kind: output, shape index: {}]  }
   0x1 LB: > { %s4179_s13 = sadd.s32 4294967295, %s5496_s12   ;;  %p4183_p0 = scmp.ge.s32.totalorder %s5496_s12, 1  ;;  %s5496_s12 = sphi %s5518_s12, %s13_s12  }
   0x2   : > { %p137_p1 = scmp.lt.s32.totalorder %s5496_s12, 3 }
   0x4   : > { %p138_p2 = pnand %p4183_p0, %p137_p1 }
   0x6   : > { %141 = sbr.rel (%p138_p2) target bundleno = 552 (0x228), region = 32 }
   0xd   : > { %v5392_v0 = vld [vmem:[%s6711_s1] sm:$0xff]   ;;  %p161_p3 = scmp.lt.s32.totalorder %s4179_s13, 1  ;;  %v5394_v2 = vld [vmem:[%s6711_s1 + $0x8] sm:$0xff]   ;;  %v5396_v4 = vld [vmem:[%s6711_s1 + $0x10] sm:$0xff]   ;;  %vm675_vm0 = vsmask.f32 3328 }
   0xe   : > { %v5393_v1 = vld [vmem:[%s6711_s1 + $0x100] sm:$0xff]   ;;  %4679 = vmatprep.subr.bf16.mxu1 %v5392_v0  ;;  %v5395_v3 = vld [vmem:[%s6711_s1 + $0x108] sm:$0xff]   ;;  %v5397_v5 = vld [vmem:[%s6711_s1 + $0x110] sm:$0xff]   ;;  %vm676_vm1 = vsmask.f32 7440  ;;  %vm1464_vm3 = vcmask 1042432  }
   0xf   : > { %4871 = vmatprep.subr.bf16.mxu0 %v5393_v1  ;;  %4680 = vmatpush3.bf16.msra.mxu1 %v5392_v0  ;;  %s6851_s13 = smov (!%p161_p3, %s4179_s13), 1  ;;  %v5398_v6 = vld [vmem:[%s6711_s1 + $0x18] sm:$0xff]   ;;  %v5400_v8 = vld [vmem:[%s6711_s1 + $0x20] sm:$0xff]   ;;  %v5402_v10 = vld [vmem:[%s6711_s1 + $0x28] sm:$0xff]   ;;  %vm1465_vm4 = vcmask 1046532  }
  0x10   : > { %4872 = vmatpush3.bf16.msra.mxu0 %v5393_v1  ;;  %4681 = vmatprep.subr.bf16.mxu1 %v5394_v2  ;;  %v5399_v7 = vld [vmem:[%s6711_s1 + $0x118] sm:$0xff]   ;;  %s5383_s30 = smul.u32 216, %s6851_s13  ;;  %v5401_v9 = vld [vmem:[%s6711_s1 + $0x120] sm:$0xff]   ;;  %v5403_v14 = vld [vmem:[%s6711_s1 + $0x128] sm:$0xff]   ;;  %s4462_s7 = sshll.u32 %s6851_s13, 8 }
  0x11   : > { %4873 = vmatprep.subr.bf16.mxu0 %v5395_v3  ;;  %v5404_v19 = vld [vmem:[%s6711_s1 + $0x30] sm:$0xff]   ;;  %v5406_v34 = vld [vmem:[%s6711_s1 + $0x38] sm:$0xff]   ;;  %vm5621_vm2 = vmor %vm675_vm0, %vm676_vm1  ;;  %s6638_s11 = scalar_lea.vmem %s6713_s3, %s4462_s7 }
  0x12   : > { %s5562_s10 = scalar_lea.vmem %s6710_s0, %s5383_s30  ;;  %v5405_v22 = vld [vmem:[%s6711_s1 + $0x130] sm:$0xff]   ;;  %v5407_v40 = vld [vmem:[%s6711_s1 + $0x138] sm:$0xff]   ;;  %v5410_v52 = vld [vmem:[%s6711_s1 + $0x40] sm:$0xff]  }
  0x13   : > { %4682 = vmatpush3.bf16.msra.mxu1 %v5394_v2  ;;  %v5568_v11 = vld [vmem:[%s5562_s10] sm:$0xf]  ;;  %v5571_v12 = vld [vmem:[%s5562_s10 + $0x4] sm:$0xf]  ;;  %v5574_v13 = vld [vmem:[%s5562_s10 + $0xc] sm:$0xf] }
  0x14   : > { %4874 = vmatpush3.bf16.msra.mxu0 %v5395_v3  ;;  %4683 = vmatprep.subr.bf16.mxu1 %v5396_v4  ;;  %v4187_v15 = vcombine.low %v5568_v11, %v5571_v12  ;;  %v5582_v16 = vld [vmem:[%s5562_s10 + $0x10] sm:$0xf]  ;;  %v5585_v17 = vld [vmem:[%s5562_s10 + $0x14] sm:$0x1]  ;;  %v703_v18 = vshrl.u32 %v5574_v13, 16  ;;  %v706_v21 = vshll.u32 %v5574_v13, 16  ;;  %vm5709_vm5 = vmor %vm1464_vm3, %vm1465_vm4 }
  0x15   : > { %4875 = vmatprep.subr.bf16.mxu0 %v5397_v5  ;;  %v712_v23 = vshll.u32 %v5582_v16, 16  ;;  %v716_v24 = vshrl.u32 %v5582_v16, 16  ;;  %v722_v25 = vshll.u32 %v5585_v17, 16  ;;  %v4251_v26 = vrot.slane %v5568_v11, 9  ;;  %v5600_v28 = vld [vmem:[%s5562_s10 + $0x18] sm:$0xf] }
  0x16   : > { %4695 = vmatprep.mubr.bf16.mxu1 %v4187_v15  ;;  %v705_v20 = vrot.slane %v703_v18, 4  ;;  %v708_v27 = vrot.slane %v706_v21, 5  ;;  %v6714_v29 = vrot.slane %v5571_v12, 5  ;;  %v5604_v32 = vld [vmem:[%s5562_s10 + $0x1c] sm:$0xf]  ;;  %v727_v33 = vshrl.u32 %v5600_v28, 16 }
  0x17   : > { %4684 = vmatpush3.bf16.msra.mxu1 %v5396_v4  ;;  %v714_v30 = vrot.slane %v712_v23, 5  ;;  %v718_v31 = vrot.slane %v716_v24, 4  ;;  %v5611_v36 = vld [vmem:[%s5562_s10 + $0x20] sm:$0x1]  ;;  %v730_v37 = vshll.u32 %v5600_v28, 16  ;;  %v736_v38 = vshll.u32 %v5604_v32, 16 }
  0x18   : > { %4876 = vmatpush3.bf16.msra.mxu0 %v5397_v5  ;;  %4685 = vmatprep.subr.bf16.mxu1 %v5398_v6  ;;  %v709_v35 = vor.u32 %v708_v27, %v705_v20  ;;  %v740_v39 = vshrl.u32 %v5604_v32, 16  ;;  %v724_v43 = vrot.slane %v722_v25, 5  ;;  %v729_v44 = vrot.slane %v727_v33, 4  ;;  %v5640_v58 = vld [vmem:[%s5562_s10 + $0x24] sm:$0xf]  ;;  %v5415_v21 = vld [vmem:[%s6711_s1 + $0x48] sm:$0xff]  }
  0x19   : > { %4877 = vmatprep.subr.bf16.mxu0 %v5399_v7  ;;  %v719_v42 = vor.u32 %v718_v31, %v714_v30  ;;  %v746_v45 = vshll.u32 %v5611_v36, 16  ;;  %v732_v47 = vrot.slane %v730_v37, 5  ;;  %v738_v48 = vrot.slane %v736_v38, 5  ;;  %v5643_v59 = vld [vmem:[%s5562_s10 + $0x28] sm:$0xf]  ;;  %v5411_v62 = vld [vmem:[%s6711_s1 + $0x140] sm:$0xff]  }
  0x1a   : > { %v710_v46 = vrot.slane %v709_v35, 4  ;;  %v742_v49 = vrot.slane %v740_v39, 4  ;;  %v5628_v51 = vcombine.low %v5574_v13, %v5582_v16  ;;  %v5635_v54 = vcombine.low %v5600_v28, %v5604_v32  ;;  %v5646_v60 = vld [vmem:[%s5562_s10 + $0x2c] sm:$0x1]  ;;  %v5682_v23 = vld [vmem:[%s5562_s10 + $0x38] sm:$0x1] }
  0x1b   : > { %4686 = vmatpush3.bf16.msra.mxu1 %v5398_v6  ;;  %v720_v50 = vrot.slane %v719_v42, 4  ;;  %v748_v53 = vrot.slane %v746_v45, 5  ;;  %v733_v56 = vor.u32 %v732_v47, %v729_v44  ;;  %v751_v63 = vshrl.u32 %v5640_v58, 16  ;;  %v5412_v6 = vld [vmem:[%s6711_s1 + $0x148] sm:$0xff]  }
  0x1c   : > { %4878 = vmatpush3.bf16.msra.mxu0 %v5399_v7  ;;  %4687 = vmatprep.subr.bf16.mxu1 %v5400_v8  ;;  %6767 = vst [vmem:[#allocation3_spill] sm:$0xff] %v5628_v51  ;;  %v715_v55 = vsel %vm5621_vm2, %v710_v46, %v714_v30  ;;  %v743_v57 = vor.u32 %v742_v49, %v738_v48  ;;  %v754_v0 = vshll.u32 %v5640_v58, 16  ;;  %v760_v1 = vshll.u32 %v5643_v59, 16 }
  0x1d   : > { %4879 = vmatprep.subr.bf16.mxu0 %v5401_v9  ;;  %v725_v61 = vsel %vm5621_vm2, %v720_v50, %v724_v43  ;;  %v734_v3 = vrot.slane %v733_v56, 4  ;;  %v764_v5 = vshrl.u32 %v5643_v59, 16  ;;  %v753_v7 = vrot.slane %v751_v63, 4  ;;  %v5420_v43 = vld [vmem:[%s6711_s1 + $0x50] sm:$0xff]  }
  0x1e   : > { %v5656_v2 = vcombine.low %v715_v55, %v725_v61  ;;  %v744_v4 = vrot.slane %v743_v57, 4  ;;  %v5673_v20 = vcombine.low %v5640_v58, %v5643_v59  ;;  %v794_v39 = vshll.u32 %v5682_v23, 16  ;;  %v5719_v55 = vld [vmem:[%s5562_s10 + $0x44] sm:$0x1] }
  0x1f   : > { %4688 = vmatpush3.bf16.msra.mxu1 %v5400_v8  ;;  %v756_v8 = vrot.slane %v754_v0, 5  ;;  %v739_v15 = vsel %vm5621_vm2, %v734_v3, %v738_v48  ;;  %v5705_v48 = vld [vmem:[%s5562_s10 + $0x3c] sm:$0xf]  ;;  %v5728_v57 = vsel %vm5709_vm5, %v4251_v26, %v6714_v29 }
  0x20   : > { %4880 = vmatpush3.bf16.msra.mxu0 %v5401_v9  ;;  %4689 = vmatprep.subr.bf16.mxu1 %v5402_v10  ;;  %v762_v9 = vrot.slane %v760_v1, 5  ;;  %v749_v18 = vsel %vm5621_vm2, %v744_v4, %v748_v53  ;;  %v5716_v53 = vld [vmem:[%s5562_s10 + $0x40] sm:$0xf]  ;;  %v799_v56 = vshrl.u32 %v5705_v48, 16  ;;  %v802_v0 = vshll.u32 %v5705_v48, 16  ;;  %v5425_v26 = vld [vmem:[%s6711_s1 + $0x58] sm:$0xff]  }
  0x21   : > { %4881 = vmatprep.subr.bf16.mxu0 %v5403_v14  ;;  %4887 = vmatprep.mubr.bf16.mxu0 %v5656_v2  ;;  %v5684_v24 = vcombine.low %v739_v15, %v749_v18  ;;  %v757_v25 = vor.u32 %v756_v8, %v753_v7  ;;  %v808_v4 = vshll.u32 %v5716_v53, 16  ;;  %v5738_v7 = vld [vmem:[%s5562_s10 + $0x48] sm:$0xf]  ;;  %v818_v15 = vshll.u32 %v5719_v55, 16  ;;  %v5745_v18 = vld [vmem:[%s5562_s10 + $0x4c] sm:$0xf] }
  0x22   : > { %v801_v3 = vrot.slane %v799_v56, 4  ;;  %v5774_v56 = vld [vmem:[%s5562_s10 + $0x54] sm:$0xf] }
  0x23   : > { %4690 = vmatpush3.bf16.msra.mxu1 %v5402_v10  ;;  %v770_v10 = vshll.u32 %v5646_v60, 16  ;;  %6768 = vst [vmem:[#allocation4_spill] sm:$0xff] %v5684_v24  ;;  %v758_v37 = vrot.slane %v757_v25, 4 }
  0x24   : > { %4882 = vmatpush3.bf16.msra.mxu0 %v5403_v14  ;;  %4691 = vmatprep.subr.bf16.mxu1 %v5404_v19  ;;  %v5664_v14 = vld [vmem:[%s5562_s10 + $0x30] sm:$0xf] }
  0x25   : > { %4883 = vmatprep.subr.bf16.mxu0 %v5405_v22  ;;  %v772_v27 = vrot.slane %v770_v10, 5  ;;  %v775_v30 = vshrl.u32 %v5664_v14, 16  ;;  %v778_v33 = vshll.u32 %v5664_v14, 16  ;;  %v763_v50 = vsel %vm5621_vm2, %v758_v37, %v762_v9 }
  0x26   : > { %v804_v10 = vrot.slane %v802_v0, 5  ;;  %v5789_v0 = vld [vmem:[%s5562_s10 + $0x5c] sm:$0x1] }
  0x27   : > { %4692 = vmatpush3.bf16.msra.mxu1 %v5404_v19  ;;  %v766_v19 = vrot.slane %v764_v5, 4  ;;  %v777_v38 = vrot.slane %v775_v30, 4  ;;  %v780_v45 = vrot.slane %v778_v33, 5  ;;  %v812_v5 = vshrl.u32 %v5716_v53, 16 }
  0x28   : > { %4884 = vmatpush3.bf16.msra.mxu0 %v5405_v22  ;;  %4693 = vmatprep.subr.bf16.mxu1 %v5406_v34  ;;  %v5679_v22 = vld [vmem:[%s5562_s10 + $0x34] sm:$0xf]  ;;  %v805_v33 = vor.u32 %v804_v10, %v801_v3 }
  0x29   : > { %4885 = vmatprep.subr.bf16.mxu0 %v5407_v40  ;;  %v767_v31 = vor.u32 %v766_v19, %v762_v9  ;;  %v788_v35 = vshrl.u32 %v5679_v22, 16  ;;  %v5698_v42 = vcombine.low %v5664_v14, %v5679_v22  ;;  %v5417_v19 = vld [vmem:[%s6711_s1 + $0x158] sm:$0xff]   ;;  %v814_v25 = vrot.slane %v812_v5, 4 }
  0x2b   : > { %4694 = vmatpush3.bf16.msra.mxu1 %v5406_v34  ;;  %v784_v34 = vshll.u32 %v5679_v22, 16  ;;  %6769 = vst [vmem:[#allocation5_spill] sm:$0xff] %v5698_v42  ;;  %v768_v44 = vrot.slane %v767_v31, 4  ;;  %v790_v47 = vrot.slane %v788_v35, 4  ;;  %v5430_v35 = vld [vmem:[%s6711_s1 + $0x60] sm:$0xff]  }
  0x2c   : > { %4886 = vmatpush3.bf16.msra.mxu0 %v5407_v40  ;;  %4727 = vmatprep.subr.bf16.mxu1 %v5410_v52  ;;  %v5416_v40 = vld [vmem:[%s6711_s1 + $0x150] sm:$0xff]  }
  0x2d   : > { %4919 = vmatprep.subr.bf16.mxu0 %v5411_v62  ;;  %v786_v46 = vrot.slane %v784_v34, 5  ;;  %v773_v61 = vsel %vm5621_vm2, %v768_v44, %v772_v27  ;;  %v5752_v27 = vld [vmem:[%s5562_s10 + $0x50] sm:$0x1]  ;;  %v820_v34 = vrot.slane %v818_v15, 5  ;;  %v826_v44 = vshll.u32 %v5738_v7, 16  ;;  %v5422_v15 = vld [vmem:[%s6711_s1 + $0x168] sm:$0xff]  }
  0x2e   : > { %4696 = vmatmul.mubr.bf16.vlgmr.msra.gmra.mrb[0].mxu1 %v5628_v51  ;;  %v5733_v1 = vcombine.low %v763_v50, %v773_v61  ;;  %v836_v50 = vshrl.u32 %v5745_v18, 16 }
  0x2f   : > { %4888 = vmatmul.mubr.bf16.vlgmr.msra.gmra.mrb[0].mxu0 %v5684_v24  ;;  %4728 = vmatpush3.bf16.msra.mxu1 %v5410_v52  ;;  %v796_v52 = vrot.slane %v794_v39, 5  ;;  %v791_v63 = vor.u32 %v790_v47, %v786_v46  ;;  %v832_v47 = vshll.u32 %v5745_v18, 16 }
  0x30   : > { %4920 = vmatpush3.bf16.msra.mxu0 %v5411_v62  ;;  %4699 = vmatprep.mubr.bf16.mxu1 %v5635_v54  ;;  %v781_v62 = vor.u32 %v780_v45, %v777_v38  ;;  %6772 = vst [vmem:[#allocation6_spill] sm:$0xff] %v5733_v1  ;;  %v5421_v45 = vld [vmem:[%s6711_s1 + $0x160] sm:$0xff]   ;;  %v838_v5 = vrot.slane %v836_v50, 4  ;;  %v5815_v50 = vld [vmem:[%s5562_s10 + $0x68] sm:$0x1] }
  0x31   : > { %4921 = vmatprep.subr.bf16.mxu0 %v5412_v6  ;;  %4729 = vmatprep.subr.bf16.mxu1 %v5415_v21  ;;  %v792_v9 = vrot.slane %v791_v63, 4  ;;  %v5786_v63 = vld [vmem:[%s5562_s10 + $0x58] sm:$0xf] }
  0x32   : > { %v782_v8 = vrot.slane %v781_v62, 4  ;;  %4891 = vmatprep.mubr.bf16.mxu0 %v5733_v1  ;;  %v5779_v62 = vcombine.low %v5705_v48, %v5716_v53 }
  0x33   : > { %4730 = vmatpush3.bf16.msra.mxu1 %v5415_v21  ;;  %v810_v21 = vrot.slane %v808_v4, 5  ;;  %v797_v31 = vsel %vm5621_vm2, %v792_v9, %v796_v52  ;;  %v842_v52 = vshll.u32 %v5752_v27, 16  ;;  %v834_v4 = vrot.slane %v832_v47, 5 }
  0x34   : > { %4922 = vmatpush3.bf16.msra.mxu0 %v5412_v6  ;;  %4731 = vmatprep.subr.bf16.mxu1 %v5420_v43  ;;  %v823_v6 = vshrl.u32 %v5738_v7, 16  ;;  %v787_v30 = vsel %vm5621_vm2, %v782_v8, %v786_v46  ;;  %v806_v46 = vrot.slane %v805_v33, 4  ;;  %6774 = vst [vmem:[#allocation8_spill] sm:$0xff] %v5779_v62  ;;  %v856_v33 = vshll.u32 %v5786_v63, 16 }
  0x35   : > { %4923 = vmatprep.subr.bf16.mxu0 %v5416_v40  ;;  %v5763_v37 = vcombine.low %v787_v30, %v797_v31  ;;  %v815_v38 = vor.u32 %v814_v25, %v810_v21  ;;  %v844_v8 = vrot.slane %v842_v52, 5  ;;  %v847_v25 = vshrl.u32 %v5774_v56, 16 }
  0x36   : > { %4700 = vmatmul.mubr.bf16.gmra.mrb[4].mxu1 %v5673_v20  ;;  %v825_v39 = vrot.slane %v823_v6, 4  ;;  %v811_v3 = vsel %vm5621_vm2, %v806_v46, %v810_v21  ;;  %v850_v6 = vshll.u32 %v5774_v56, 16  ;;  %v5434_v21 = vld [vmem:[%s6711_s1 + $0x68] sm:$0xff]   ;;  %v839_v31 = vor.u32 %v838_v5, %v834_v4 }
  0x37   : > { %6773 = vst [vmem:[#allocation7_spill] sm:$0xff] %v5763_v37  ;;  %4703 = vmatprep.mubr.bf16.mxu1 %v5698_v42  ;;  %4732 = vmatpush3.bf16.msra.mxu1 %v5420_v43  ;;  %v816_v61 = vrot.slane %v815_v38, 4  ;;  %v828_v43 = vrot.slane %v826_v44, 5  ;;  %v5808_v38 = vld [vmem:[%s5562_s10 + $0x60] sm:$0xf]  ;;  %v866_v47 = vshll.u32 %v5789_v0, 16 }
  0x38   : > { %4924 = vmatpush3.bf16.msra.mxu0 %v5416_v40  ;;  %4733 = vmatprep.subr.bf16.mxu1 %v5425_v26  ;;  %v5783_v40 = vcombine.low %v5738_v7, %v5745_v18  ;;  %v852_v46 = vrot.slane %v850_v6, 5  ;;  %v858_v52 = vrot.slane %v856_v33, 5 }
  0x39   : > { %4892 = vmatmul.mubr.bf16.gmra.mrb[4].mxu0 %v5763_v37  ;;  %4925 = vmatprep.subr.bf16.mxu0 %v5417_v19  ;;  %v821_v9 = vsel %vm5621_vm2, %v816_v61, %v820_v34  ;;  %v829_v10 = vor.u32 %v828_v43, %v825_v39  ;;  %v860_v34 = vshrl.u32 %v5786_v63, 16  ;;  %v5811_v39 = vld [vmem:[%s5562_s10 + $0x64] sm:$0xf]  ;;  %v5821_v43 = vcombine.low %v5774_v56, %v5786_v63 }
  0x3a   : > { %6775 = vst [vmem:[#allocation9_spill] sm:$0xff] %v5783_v40  ;;  %v5803_v30 = vcombine.low %v811_v3, %v821_v9  ;;  %v868_v9 = vrot.slane %v866_v47, 5  ;;  %v880_v33 = vshll.u32 %v5811_v39, 16 }
  0x3b   : > { %4734 = vmatpush3.bf16.msra.mxu1 %v5425_v26  ;;  %v830_v44 = vrot.slane %v829_v10, 4  ;;  %v849_v26 = vrot.slane %v847_v25, 4  ;;  %v862_v61 = vrot.slane %v860_v34, 4  ;;  %6776 = vst [vmem:[#allocation10_spill] sm:$0xff] %v5821_v43  ;;  %v871_v10 = vshrl.u32 %v5808_v38, 16 }
  0x3c   : > { %4926 = vmatpush3.bf16.msra.mxu0 %v5417_v19  ;;  %4735 = vmatprep.subr.bf16.mxu1 %v5430_v35  ;;  %v840_v19 = vrot.slane %v839_v31, 4  ;;  %v874_v31 = vshll.u32 %v5808_v38, 16  ;;  %v882_v47 = vrot.slane %v880_v33, 5 }
  0x3d   : > { %4927 = vmatprep.subr.bf16.mxu0 %v5421_v45  ;;  %4895 = vmatprep.mubr.bf16.mxu0 %v5803_v30  ;;  %v835_v3 = vsel %vm5621_vm2, %v830_v44, %v834_v4  ;;  %v853_v5 = vor.u32 %v852_v46, %v849_v26  ;;  %v863_v6 = vor.u32 %v862_v61, %v858_v52  ;;  %v5438_v4 = vld [vmem:[%s6711_s1 + $0x70] sm:$0xff]   ;;  %v873_v26 = vrot.slane %v871_v10, 4 }
  0x3e   : > { %4704 = vmatmul.mubr.bf16.gmra.mrb[8].mxu1 %v5779_v62  ;;  %v845_v25 = vsel %vm5621_vm2, %v840_v19, %v844_v8  ;;  %v876_v46 = vrot.slane %v874_v31, 5  ;;  %v890_v19 = vshll.u32 %v5815_v50, 16  ;;  %v4252_v10 = vrot.slane %v5574_v13, 9  ;;  %v5427_v13 = vld [vmem:[%s6711_s1 + $0x178] sm:$0xff]  }
  0x3f   : > { %4707 = vmatprep.mubr.bf16.mxu1 %v5783_v40  ;;  %4736 = vmatpush3.bf16.msra.mxu1 %v5430_v35  ;;  %v5834_v34 = vcombine.low %v835_v3, %v845_v25  ;;  %v854_v44 = vrot.slane %v853_v5, 4  ;;  %v884_v35 = vshrl.u32 %v5811_v39, 16  ;;  %v864_v8 = vrot.slane %v863_v6, 4 }
  0x40   : > { %4928 = vmatpush3.bf16.msra.mxu0 %v5421_v45  ;;  %4737 = vmatprep.subr.bf16.mxu1 %v5434_v21  ;;  %v5426_v45 = vld [vmem:[%s6711_s1 + $0x170] sm:$0xff]   ;;  %v5846_v5 = vcombine.low %v5808_v38, %v5811_v39  ;;  %v877_v6 = vor.u32 %v876_v46, %v873_v26  ;;  %v1476_v31 = vrot.slane %v5582_v16, 5  ;;  %v5442_v16 = vld [vmem:[%s6711_s1 + $0x78] sm:$0xff]  }
  0x41   : > { %4929 = vmatprep.subr.bf16.mxu0 %v5422_v15  ;;  %4896 = vmatmul.mubr.bf16.gmra.mrb[8].mxu0 %v5834_v34  ;;  %v859_v61 = vsel %vm5621_vm2, %v854_v44, %v858_v52  ;;  %v886_v3 = vrot.slane %v884_v35, 4  ;;  %v869_v25 = vsel %vm5621_vm2, %v864_v8, %v868_v9  ;;  %v892_v44 = vrot.slane %v890_v19, 5  ;;  %v5862_v9 = vld [vmem:[%s5562_s10 + $0x70] sm:$0xf]  ;;  %v5871_v46 = vld [vmem:[%s5562_s10 + $0x78] sm:$0xf] }
  0x42   : > { %6777 = vst [vmem:[#allocation11_spill] sm:$0xff] %v5846_v5  ;;  %v5852_v52 = vcombine.low %v859_v61, %v869_v25  ;;  %v878_v26 = vrot.slane %v877_v6, 4  ;;  %v1477_v35 = vsel %vm5709_vm5, %v4252_v10, %v1476_v31  ;;  %v1478_v8 = vrot.slane %v1476_v31, 4  ;;  %v5876_v19 = vld [vmem:[%s5562_s10 + $0x7c] sm:$0xf] }
  0x43   : > { %4738 = vmatpush3.bf16.msra.mxu1 %v5434_v21  ;;  %v887_v33 = vor.u32 %v886_v3, %v882_v47  ;;  %v5859_v21 = vld [vmem:[%s5562_s10 + $0x6c] sm:$0xf]  ;;  %v1483_v25 = vrot.slane %v5604_v32, 5  ;;  %v1486_v10 = vrot.slane %v5611_v36, 5  ;;  %v5431_v32 = vld [vmem:[%s6711_s1 + $0x180] sm:$0xff]   ;;  %v5900_v36 = vcombine.low %v5871_v46, %v5876_v19 }
  0x44   : > { %4930 = vmatpush3.bf16.msra.mxu0 %v5422_v15  ;;  %4739 = vmatprep.subr.bf16.mxu1 %v5438_v4  ;;  %v1479_v15 = vrot.slane %v5585_v17, 5  ;;  %v883_v61 = vsel %vm5621_vm2, %v878_v26, %v882_v47  ;;  %v679_v26 = vshrl.u32 %v5568_v11, 16  ;;  %v6798_v40 = vshll.u32 %v5859_v21, 16 }
  0x45   : > { %4931 = vmatprep.subr.bf16.mxu0 %v5426_v45  ;;  %4899 = vmatprep.mubr.bf16.mxu0 %v5852_v52  ;;  %v888_v17 = vrot.slane %v887_v33, 4  ;;  %v4253_v33 = vrot.slane %v5600_v28, 9  ;;  %v1485_v47 = vrot.slane %v1483_v25, 4  ;;  %6780 = vst [vmem:[#allocation14_spill] sm:$0xff] %v5900_v36  ;;  %v1490_v28 = vrot.slane %v5643_v59, 5 }
  0x46   : > { %4708 = vmatmul.mubr.bf16.gmra.mrb[12].mxu1 %v5821_v43  ;;  %v1480_v3 = vsel %vm5709_vm5, %v1478_v8, %v1479_v15  ;;  %v5908_v15 = vld [vmem:[%s6711_s1 + $0x80] sm:$0xff]   ;;  %v688_v8 = vshll.u32 %v5571_v12, 16  ;;  %v900_v62 = vrot.slane %v6798_v40, 5 }
  0x47   : > { %4711 = vmatprep.mubr.bf16.mxu1 %v5846_v5  ;;  %4740 = vmatpush3.bf16.msra.mxu1 %v5438_v4  ;;  %v893_v6 = vsel %vm5621_vm2, %v888_v17, %v892_v44  ;;  %v5886_v31 = vcombine.low %v1477_v35, %v1480_v3  ;;  %v4254_v4 = vrot.slane %v5640_v58, 9  ;;  %v1493_v44 = vrot.slane %v5646_v60, 5  ;;  %v5928_v3 = vld [vmem:[%s5562_s10 + $0x84] sm:$0xf]  ;;  %v6192_v5 = vld [vmem:[%s5562_s10 + $0xc8] sm:$0x1] }
  0x48   : > { %4932 = vmatpush3.bf16.msra.mxu0 %v5426_v45  ;;  %4741 = vmatprep.subr.bf16.mxu1 %v5442_v16  ;;  %v5889_v29 = vcombine.low %v883_v61, %v893_v6  ;;  %v5893_v45 = vcombine.low %v5859_v21, %v5862_v9  ;;  %v1484_v58 = vsel %vm5709_vm5, %v4253_v33, %v1483_v25  ;;  %v1492_v60 = vrot.slane %v1490_v28, 4  ;;  %v5941_v6 = vld [vmem:[%s5562_s10 + $0x94] sm:$0xf] }
  0x49   : > { %4933 = vmatprep.subr.bf16.mxu0 %v5427_v13  ;;  %6778 = vst [vmem:[#allocation12_spill] sm:$0xff] %v5886_v31  ;;  %v1487_v59 = vsel %vm5709_vm5, %v1485_v47, %v1486_v10  ;;  %v682_v35 = vshll.u32 %v5568_v11, 16  ;;  %v692_v17 = vshrl.u32 %v5571_v12, 16  ;;  %v5931_v11 = vld [vmem:[%s5562_s10 + $0x88] sm:$0xf]  ;;  %v4255_v10 = vrot.slane %v5664_v14, 9 }
  0x4a   : > { %6779 = vst [vmem:[#allocation13_spill] sm:$0xff] %v5893_v45  ;;  %4900 = vmatmul.mubr.bf16.gmra.mrb[12].mxu0 %v5889_v29  ;;  %v1494_v61 = vsel %vm5709_vm5, %v1492_v60, %v1493_v44  ;;  %v5934_v25 = vcombine.low %v1484_v58, %v1487_v59  ;;  %v1504_v33 = vrot.slane %v5716_v53, 5  ;;  %v5435_v44 = vld [vmem:[%s6711_s1 + $0x188] sm:$0xff]   ;;  %v4256_v58 = vrot.slane %v5705_v48, 9  ;;  %v5964_v48 = vld [vmem:[%s5562_s10 + $0x9c] sm:$0xf] }
  0x4b   : > { %4742 = vmatpush3.bf16.msra.mxu1 %v5442_v16  ;;  %4935 = vmatprep.mubr.bf16.mxu0 %v5886_v31  ;;  %v1497_v16 = vrot.slane %v5679_v22, 5  ;;  %v5938_v22 = vld [vmem:[%s5562_s10 + $0x90] sm:$0xf]  ;;  %v5953_v14 = vcombine.low %v5928_v3, %v5931_v11  ;;  %v1507_v60 = vrot.slane %v5719_v55, 5  ;;  %v681_v53 = vrot.slane %v679_v26, 4 }
  0x4c   : > { %4934 = vmatpush3.bf16.msra.mxu0 %v5427_v13  ;;  %v1491_v13 = vsel %vm5709_vm5, %v4254_v4, %v1490_v28  ;;  %4775 = vmatprep.subr.bf16.mxu1 %v5908_v15  ;;  %6781 = vst [vmem:[#allocation15_spill] sm:$0xff] %v5934_v25  ;;  %v1500_v28 = vrot.slane %v5682_v23, 5  ;;  %v1506_v59 = vrot.slane %v1504_v33, 4  ;;  %v684_v51 = vrot.slane %v682_v35, 5  ;;  %v5967_v31 = vld [vmem:[%s5562_s10 + $0xa0] sm:$0xf] }
  0x4d   : > { %4967 = vmatprep.subr.bf16.mxu0 %v5431_v32  ;;  %v5944_v47 = vcombine.low %v1491_v13, %v1494_v61  ;;  %v1499_v4 = vrot.slane %v1497_v16, 4  ;;  %6783 = vst [vmem:[#allocation17_spill] sm:$0xff] %v5953_v14  ;;  %v5958_v13 = vcombine.low %v5938_v22, %v5941_v6  ;;  %v5960_v23 = vrot.slane %v688_v8, 5 }
  0x4e   : > { %4712 = vmatmul.mubr.bf16.gmra.mrb[16].mxu1 %v5893_v45  ;;  %v694_v61 = vrot.slane %v692_v17, 4  ;;  %v1498_v55 = vsel %vm5709_vm5, %v4255_v10, %v1497_v16  ;;  %v1511_v35 = vrot.slane %v5745_v18, 5  ;;  %v1505_v8 = vsel %vm5709_vm5, %v4256_v58, %v1504_v33  ;;  %v5439_v17 = vld [vmem:[%s6711_s1 + $0x190] sm:$0xff]   ;;  %v5987_v18 = vld [vmem:[%s5562_s10 + $0x8] sm:$0x1] }
  0x4f   : > { %4715 = vmatprep.mubr.bf16.mxu1 %v5900_v36  ;;  %6782 = vst [vmem:[#allocation16_spill] sm:$0xff] %v5944_v47  ;;  %6784 = vst [vmem:[#allocation18_spill] sm:$0xff] %v5958_v13  ;;  %v1501_v26 = vsel %vm5709_vm5, %v1499_v4, %v1500_v28  ;;  %v1518_v16 = vrot.slane %v5786_v63, 5  ;;  %v5993_v33 = vcombine.low %v5964_v48, %v5967_v31  ;;  %v5996_v28 = vld [vmem:[%s5562_s10 + $0xa8] sm:$0xf]  ;;  %v4257_v10 = vrot.slane %v5738_v7, 9 }
  0x50   : > { %v5989_v4 = vcombine.low %v1498_v55, %v1501_v26  ;;  %v5999_v58 = vld [vmem:[%s5562_s10 + $0xac] sm:$0xf]  ;;  %v1514_v55 = vrot.slane %v5752_v27, 5  ;;  %v5443_v26 = vld [vmem:[%s6711_s1 + $0x198] sm:$0xff]   ;;  %v928_v36 = vshll.u32 %v5876_v19, 16  ;;  %v952_v40 = vshll.u32 %v5931_v11, 16 }
  0x51   : > { %6786 = vst [vmem:[#allocation20_spill] sm:$0xff] %v5993_v33  ;;  %v6017_v27 = vcombine.low %v5996_v28, %v5999_v58  ;;  %v1512_v7 = vsel %vm5709_vm5, %v4257_v10, %v1511_v35  ;;  %v2649_v42 = vrot.slane %v6192_v5, 5 }
  0x52   : > { %4936 = vmatmul.mubr.bf16.vlgmr.msra.gmra.mrb[0].mxu0 %v5934_v25  ;;  %6785 = vst [vmem:[#allocation19_spill] sm:$0xff] %v5989_v4  ;;  %v4260_v25 = vrot.slane %v5859_v21, 9 }
  0x53   : > { %4968 = vmatpush3.bf16.msra.mxu0 %v5431_v32  ;;  %4939 = vmatprep.mubr.bf16.mxu0 %v5944_v47  ;;  %v1508_v32 = vsel %vm5709_vm5, %v1506_v59, %v1507_v60  ;;  %v685_v59 = vor.u32 %v684_v51, %v681_v53  ;;  %v695_v60 = vor.u32 %v694_v61, %v5960_v23  ;;  %v1513_v47 = vrot.slane %v1511_v35, 4  ;;  %v6028_v53 = vld [vmem:[%s5562_s10 + $0xb4] sm:$0xf] }
  0x54   : > { %4969 = vmatprep.subr.bf16.mxu0 %v5435_v44  ;;  %v6002_v63 = vcombine.low %v1505_v8, %v1508_v32  ;;  %v1521_v51 = vrot.slane %v5789_v0, 5  ;;  %6788 = vst [vmem:[#allocation22_spill] sm:$0xff] %v6017_v27  ;;  %v1525_v8 = vrot.slane %v5811_v39, 5  ;;  %v6043_v39 = vld [vmem:[%s5562_s10 + $0xb8] sm:$0xf] }
  0x55   : > { %v696_v32 = vrot.slane %v695_v60, 4  ;;  %v1515_v61 = vsel %vm5709_vm5, %v1513_v47, %v1514_v55  ;;  %v1532_v47 = vrot.slane %v5862_v9, 5  ;;  %v4259_v55 = vrot.slane %v5808_v38, 9 }
  0x56   : > { %4716 = vmatmul.mubr.bf16.gmra.mrb[20].mxu1 %v5953_v14  ;;  %6787 = vst [vmem:[#allocation21_spill] sm:$0xff] %v6002_v63  ;;  %v1520_v14 = vrot.slane %v1518_v16, 4  ;;  %v6048_v10 = vcombine.low %v1512_v7, %v1515_v61  ;;  %v1528_v60 = vrot.slane %v5815_v50, 5  ;;  %v5447_v7 = vld [vmem:[%s6711_s1 + $0x1a8] sm:$0xff]   ;;  %v6065_v38 = vcombine.low %v6028_v53, %v6043_v39 }
  0x57   : > { %4719 = vmatprep.mubr.bf16.mxu1 %v5958_v13  ;;  %4970 = vmatpush3.bf16.msra.mxu0 %v5435_v44  ;;  %v4258_v13 = vrot.slane %v5774_v56, 9  ;;  %v698_v44 = vshll.u32 %v5987_v18, 16  ;;  %v686_v56 = vrot.slane %v685_v59, 4  ;;  %v5445_v59 = vld [vmem:[%s6711_s1 + $0x1a0] sm:$0xff]  }
  0x58   : > { %4971 = vmatprep.subr.bf16.mxu0 %v5439_v17  ;;  %v1522_v35 = vsel %vm5709_vm5, %v1520_v14, %v1521_v51  ;;  %6789 = vst [vmem:[#allocation23_spill] sm:$0xff] %v6048_v10  ;;  %v1527_v51 = vrot.slane %v1525_v8, 4  ;;  %6791 = vst [vmem:[#allocation25_spill] sm:$0xff] %v6065_v38 }
  0x59   : > { %v700_v0 = vrot.slane %v698_v44, 5  ;;  %v1519_v44 = vsel %vm5709_vm5, %v4258_v13, %v1518_v16  ;;  %v691_v13 = vsel %vm5621_vm2, %v686_v56, %v5960_v23  ;;  %v1534_v23 = vrot.slane %v1532_v47, 4 }
  0x5a   : > { %4940 = vmatmul.mubr.bf16.gmra.mrb[4].mxu0 %v5989_v4  ;;  %v6056_v16 = vcombine.low %v1519_v44, %v1522_v35  ;;  %v6086_v35 = vld [vmem:[%s5562_s10 + $0x80] sm:$0x1]  ;;  %v1533_v56 = vsel %vm5709_vm5, %v4260_v25, %v1532_v47  ;;  %v4261_v47 = vrot.slane %v5871_v46, 9  ;;  %v6119_v44 = vld [vmem:[%s5562_s10 + $0x98] sm:$0x1] }
  0x5b   : > { %4943 = vmatprep.mubr.bf16.mxu0 %v6002_v63  ;;  %4972 = vmatpush3.bf16.msra.mxu0 %v5439_v17  ;;  %v6046_v17 = vld [vmem:[%s5562_s10 + $0x74] sm:$0x1]  ;;  %v701_v14 = vsel %vm5621_vm2, %v696_v32, %v700_v0  ;;  %v1539_v63 = vrot.slane %v5876_v19, 5  ;;  %v5450_v4 = vld [vmem:[%s6711_s1 + $0x98] sm:$0xff]  }
  0x5c   : > { %4973 = vmatprep.subr.bf16.mxu0 %v5443_v26  ;;  %6790 = vst [vmem:[#allocation24_spill] sm:$0xff] %v6056_v16  ;;  %v1535_v61 = vrot.slane %v6046_v17, 5  ;;  %v4227_v32 = vcombine.low %v691_v13, %v701_v14  ;;  %v1526_v13 = vsel %vm5709_vm5, %v4259_v55, %v1525_v8  ;;  %v1529_v14 = vsel %vm5709_vm5, %v1527_v51, %v1528_v60  ;;  %v6099_v51 = vld [vmem:[%s5562_s10 + $0x8c] sm:$0x1] }
  0x5d   : > { %v1546_v8 = vrot.slane %v5931_v11, 5  ;;  %v6103_v25 = vcombine.low %v1526_v13, %v1529_v14  ;;  %v1541_v55 = vrot.slane %v1539_v63, 4  ;;  %v4262_v60 = vrot.slane %v5928_v3, 9  ;;  %v5446_v13 = vld [vmem:[%s6711_s1 + $0x88] sm:$0xff]  }
  0x5e   : > { %4720 = vmatmul.mubr.bf16.gmra.mrb[24].mxu1 %v5993_v33  ;;  %v1536_v0 = vsel %vm5709_vm5, %v1534_v23, %v1535_v61  ;;  %v5451_v23 = vld [vmem:[%s6711_s1 + $0x1b8] sm:$0xff]   ;;  %v1553_v14 = vrot.slane %v5941_v6, 5  ;;  %v1540_v50 = vsel %vm5709_vm5, %v4261_v47, %v1539_v63 }
  0x5f   : > { %4723 = vmatprep.mubr.bf16.mxu1 %v6017_v27  ;;  %4974 = vmatpush3.bf16.msra.mxu0 %v5443_v26  ;;  %v5449_v27 = vld [vmem:[%s6711_s1 + $0x1b0] sm:$0xff]   ;;  %6792 = vst [vmem:[#allocation26_spill] sm:$0xff] %v6103_v25  ;;  %v6109_v61 = vcombine.low %v1533_v56, %v1536_v0  ;;  %v1549_v26 = vrot.slane %v6099_v51, 5  ;;  %v6122_v56 = vld [vmem:[%s5562_s10 + $0xa4] sm:$0x1] }
  0x60   : > { %4975 = vmatprep.subr.bf16.mxu0 %v5445_v59  ;;  %v6136_v0 = vld [vmem:[%s6711_s1 + $0x1c0] sm:$0xff]   ;;  %v1555_v47 = vrot.slane %v1553_v14, 4 }
  0x61   : > { %6793 = vst [vmem:[#allocation27_spill] sm:$0xff] %v6109_v61 }
  0x62   : > { %4944 = vmatmul.mubr.bf16.gmra.mrb[8].mxu0 %v6048_v10 }
  0x63   : > { %4947 = vmatprep.mubr.bf16.mxu0 %v6056_v16  ;;  %4976 = vmatpush3.bf16.msra.mxu0 %v5445_v59  ;;  %v1548_v59 = vrot.slane %v1546_v8, 4 }
  0x64   : > { %4977 = vmatprep.subr.bf16.mxu0 %v5447_v7 }
  0x65   : > { %v1550_v63 = vsel %vm5709_vm5, %v1548_v59, %v1549_v26  ;;  %v1567_v26 = vrot.slane %v5999_v58, 5 }
  0x66   : > { %4724 = vmatmul.mubr.bf16.gmra.mrb[28].mxu1 %v6065_v38  ;;  %v4263_v38 = vrot.slane %v5938_v22, 9 }
  0x67   : > { %4743 = vmatprep.mubr.bf16.mxu1 %v4227_v32  ;;  %v1542_v32 = vrot.slane %v6086_v35, 5  ;;  %4978 = vmatpush3.bf16.msra.mxu0 %v5447_v7  ;;  %v1560_v7 = vrot.slane %v5967_v31, 5 }
  0x68   : > { %4979 = vmatprep.subr.bf16.mxu0 %v5449_v27 }
  0x69   : > { %v1543_v16 = vsel %vm5709_vm5, %v1541_v55, %v1542_v32  ;;  %v1556_v55 = vrot.slane %v6119_v44, 5  ;;  %v1562_v59 = vrot.slane %v1560_v7, 4  ;;  %v1563_v32 = vrot.slane %v6122_v56, 5 }
  0x6a   : > { %4948 = vmatmul.mubr.bf16.gmra.mrb[12].mxu0 %v6103_v25  ;;  %v6158_v25 = vld [vmem:[%s5562_s10 + $0xbc] sm:$0x1] }
  0x6b   : > { %4951 = vmatprep.mubr.bf16.mxu0 %v6109_v61  ;;  %4980 = vmatpush3.bf16.msra.mxu0 %v5449_v27  ;;  %v1547_v61 = vsel %vm5709_vm5, %v4262_v60, %v1546_v8  ;;  %v5448_v27 = vld [vmem:[%s6711_s1 + $0x90] sm:$0xff]   ;;  %v6154_v60 = vcombine.low %v1540_v50, %v1543_v16  ;;  %6795 = vst [vmem:[#allocation29_spill] sm:$0xff] %v6158_v25  ;;  %v4265_v16 = vrot.slane %v5996_v28, 9 }
  0x6c   : > { %4981 = vmatprep.subr.bf16.mxu0 %v5451_v23  ;;  %v6151_v8 = vld [vmem:[%s5562_s10 + $0xb0] sm:$0x1]  ;;  %v6160_v10 = vcombine.low %v1547_v61, %v1550_v63  ;;  %v1557_v33 = vsel %vm5709_vm5, %v1555_v47, %v1556_v55  ;;  %v6175_v61 = vld [vmem:[%s5562_s10 + $0xc4] sm:$0xf]  ;;  %v904_v63 = vshll.u32 %v5862_v9, 16  ;;  %v1577_v55 = vrot.slane %v6158_v25, 5 }
  0x6d   : > { %6794 = vst [vmem:[#allocation28_spill] sm:$0xff] %v6154_v60  ;;  %v1570_v50 = vrot.slane %v6151_v8, 5  ;;  %v1564_v45 = vsel %vm5709_vm5, %v1562_v59, %v1563_v32  ;;  %v6800_v32 = vshll.u32 %v5871_v46, 16 }
  0x6e   : > { %4744 = vmatmul.mubr.bf16.vlgmr.msra.gmra.mrb[0].mxu1 %v5656_v2  ;;  %v4264_v2 = vrot.slane %v5964_v48, 9  ;;  %6796 = vst [vmem:[#allocation30_spill] sm:$0xff] %v6160_v10 }
  0x6f   : > { %4776 = vmatpush3.bf16.msra.mxu1 %v5908_v15  ;;  %4747 = vmatprep.mubr.bf16.mxu1 %v5684_v24  ;;  %v6163_v15 = vld [vmem:[%s5562_s10 + $0xc0] sm:$0xf]  ;;  %v1554_v24 = vsel %vm5709_vm5, %v4263_v38, %v1553_v14  ;;  %v4266_v38 = vrot.slane %v6028_v53, 9  ;;  %v1574_v14 = vrot.slane %v6043_v39, 5  ;;  %v924_v43 = vrot.slane %v6800_v32, 5 }
  0x70   : > { %4777 = vmatprep.subr.bf16.mxu1 %v5446_v13  ;;  %4982 = vmatpush3.bf16.msra.mxu0 %v5451_v23  ;;  %v1569_v23 = vrot.slane %v1567_v26, 4  ;;  %v1561_v47 = vsel %vm5709_vm5, %v4264_v2, %v1560_v7  ;;  %v6797_v7 = vshrl.u32 %v5859_v21, 16  ;;  %v6802_v32 = vshrl.u32 %v5876_v19, 16 }
  0x71   : > { %5015 = vmatprep.subr.bf16.mxu0 %v6136_v0 }
  0x72   : > { %4952 = vmatmul.mubr.bf16.gmra.mrb[16].mxu0 %v6154_v60  ;;  %v897_v2 = vrot.slane %v6797_v7, 4  ;;  %v1576_v60 = vrot.slane %v1574_v14, 4  ;;  %v6801_v7 = vshrl.u32 %v5862_v9, 16 }
  0x73   : > { %4778 = vmatpush3.bf16.msra.mxu1 %v5446_v13  ;;  %4955 = vmatprep.mubr.bf16.mxu0 %v6160_v10  ;;  %v6187_v13 = vcombine.low %v1554_v24, %v1557_v33  ;;  %v5452_v24 = vld [vmem:[%s6711_s1 + $0xa0] sm:$0xff]   ;;  %v6799_v33 = vshrl.u32 %v5871_v46, 16  ;;  %v6209_v10 = vrot.slane %v904_v63, 5  ;;  %v6218_v46 = vrot.slane %v928_v36, 5 }
  0x74   : > { %4779 = vmatprep.subr.bf16.mxu1 %v5448_v27  ;;  %v910_v21 = vrot.slane %v6801_v7, 4  ;;  %v6803_v63 = vshrl.u32 %v5928_v3, 16  ;;  %v6804_v7 = vshll.u32 %v5928_v3, 16  ;;  %v6233_v36 = vrot.slane %v952_v40, 5 }
  0x75   : > { %v921_v59 = vrot.slane %v6799_v33, 4  ;;  %v1571_v33 = vsel %vm5709_vm5, %v1569_v23, %v1570_v50  ;;  %v6808_v40 = vrot.slane %v6175_v61, 5 }
  0x76   : > { %4748 = vmatmul.mubr.bf16.gmra.mrb[4].mxu1 %v5733_v1  ;;  %v1568_v1 = vsel %vm5709_vm5, %v4265_v16, %v1567_v26  ;;  %v945_v9 = vrot.slane %v6803_v63, 4  ;;  %v948_v25 = vrot.slane %v6804_v7, 5  ;;  %v901_v26 = vor.u32 %v900_v62, %v897_v2 }
  0x77   : > { %4751 = vmatprep.mubr.bf16.mxu1 %v5763_v37  ;;  %4780 = vmatpush3.bf16.msra.mxu1 %v5448_v27  ;;  %v934_v27 = vrot.slane %v6802_v32, 4  ;;  %v6222_v37 = vcombine.low %v1561_v47, %v1564_v45  ;;  %v914_v16 = vshll.u32 %v6046_v17, 16  ;;  %v925_v50 = vor.u32 %v924_v43, %v921_v59 }
  0x78   : > { %4781 = vmatprep.subr.bf16.mxu1 %v5450_v4  ;;  %v6230_v23 = vcombine.low %v1568_v1, %v1571_v33  ;;  %v911_v19 = vor.u32 %v910_v21, %v6209_v10  ;;  %v6805_v45 = vshrl.u32 %v5931_v11, 16  ;;  %v938_v62 = vshll.u32 %v6086_v35, 16  ;;  %v5454_v1 = vld [vmem:[%s6711_s1 + $0xa8] sm:$0xff]  }
  0x79   : > { %v935_v3 = vor.u32 %v934_v27, %v6218_v46  ;;  %v6806_v43 = vshrl.u32 %v5938_v22, 16  ;;  %v6807_v17 = vshll.u32 %v5938_v22, 16  ;;  %v1575_v11 = vsel %vm5709_vm5, %v4266_v38, %v1574_v14 }
  0x7a   : > { %v958_v47 = vrot.slane %v6805_v45, 4  ;;  %4956 = vmatmul.mubr.bf16.gmra.mrb[20].mxu0 %v6187_v13  ;;  %v1578_v59 = vsel %vm5709_vm5, %v1576_v60, %v1577_v55  ;;  %v949_v21 = vor.u32 %v948_v25, %v945_v9  ;;  %v962_v35 = vshll.u32 %v6099_v51, 16  ;;  %v5456_v51 = vld [vmem:[%s6711_s1 + $0xb0] sm:$0xff]  }
  0x7b   : > { %4782 = vmatpush3.bf16.msra.mxu1 %v5450_v4  ;;  %v969_v4 = vrot.slane %v6806_v43, 4  ;;  %v972_v2 = vrot.slane %v6807_v17, 5  ;;  %4959 = vmatprep.mubr.bf16.mxu0 %v6222_v37  ;;  %v2648_v33 = vrot.slane %v6808_v40, 4  ;;  %v902_v32 = vrot.slane %v901_v26, 4 }
  0x7c   : > { %4783 = vmatprep.subr.bf16.mxu1 %v5452_v24  ;;  %v916_v27 = vrot.slane %v914_v16, 5  ;;  %v926_v22 = vrot.slane %v925_v50, 4  ;;  %v912_v63 = vrot.slane %v911_v19, 4  ;;  %v959_v38 = vor.u32 %v958_v47, %v6233_v36 }
  0x7d   : > { %v976_v14 = vshll.u32 %v5941_v6, 16  ;;  %v6809_v25 = vrot.slane %v5571_v12, 5  ;;  %v6264_v55 = vcombine.low %v1575_v11, %v1578_v59  ;;  %v936_v9 = vrot.slane %v935_v3, 4 }
  0x7e   : > { %4752 = vmatmul.mubr.bf16.gmra.mrb[8].mxu1 %v5803_v30  ;;  %v940_v7 = vrot.slane %v938_v62, 5  ;;  %v973_v26 = vor.u32 %v972_v2, %v969_v4  ;;  %v6266_v16 = vrot.slane %v949_v21, 4  ;;  %v6810_v50 = vshrl.u32 %v5941_v6, 16  ;;  %v5458_v6 = vld [vmem:[%s6711_s1 + $0xb8] sm:$0xff]  }
  0x7f   : > { %4755 = vmatprep.mubr.bf16.mxu1 %v5834_v34  ;;  %4784 = vmatpush3.bf16.msra.mxu1 %v5452_v24  ;;  %v1471_v60 = vrot.slane %v6809_v25, 4  ;;  %v6268_v24 = vrot.slane %v962_v35, 5  ;;  %v1472_v45 = vrot.slane %v5987_v18, 5  ;;  %v6811_v47 = vmov %v6808_v40 }
  0x80   : > { %4785 = vmatprep.subr.bf16.mxu1 %v5454_v1  ;;  %v982_v19 = vrot.slane %v6810_v50, 4  ;;  %v6812_v12 = vrot.slane %v6163_v15, 9  ;;  %v2650_v3 = vsel %vm5709_vm5, %v2648_v33, %v2649_v42  ;;  %v986_v62 = vshll.u32 %v6119_v44, 16  ;;  %v6320_v33 = vld [vmem:[%s6711_s1 + $0xc0] sm:$0xff]  }
  0x81   : > { %v6813_v4 = vshrl.u32 %v5964_v48, 16  ;;  %v907_v18 = vsel %vm5621_vm2, %v902_v32, %v6209_v10  ;;  %v6292_v2 = vrot.slane %v959_v38, 4  ;;  %v6294_v11 = vrot.slane %v976_v14, 5 }
  0x82   : > { %v2647_v43 = vsel %vm5709_vm5, %v6812_v12, %v6811_v47  ;;  %v6298_v42 = vsel %vm5709_vm5, %v1471_v60, %v1472_v45  ;;  %4960 = vmatmul.mubr.bf16.gmra.mrb[24].mxu0 %v6230_v23  ;;  %v931_v44 = vsel %vm5621_vm2, %v926_v22, %v6218_v46  ;;  %v6304_v59 = vrot.slane %v973_v26, 4 }
  0x83   : > { %v6284_v17 = vrot.slane %v6813_v4, 4  ;;  %4786 = vmatpush3.bf16.msra.mxu1 %v5454_v1  ;;  %v1000_v21 = vshll.u32 %v5967_v31, 16  ;;  %v4283_v10 = vcombine.low %v5728_v57, %v6298_v42  ;;  %4963 = vmatprep.mubr.bf16.mxu0 %v6264_v55  ;;  %v917_v1 = vsel %vm5621_vm2, %v912_v63, %v916_v27  ;;  %v5471_v57 = vld [vmem:[%s6711_s1 + $0x200] sm:$0xff]  }
  0x84   : > { %4787 = vmatprep.subr.bf16.mxu1 %v5456_v51  ;;  %v941_v35 = vsel %vm5621_vm2, %v936_v9, %v940_v7  ;;  %v1024_v40 = vshll.u32 %v5999_v58, 16  ;;  %v2294_v46 = vshrl.u32 %v6163_v15, 16  ;;  %v6322_v32 = vcombine.low %v2647_v43, %v2650_v3  ;;  %v6831_v42 = vld [vmem:[#allocation15_spill] sm:$0xff] }
  0x85   : > { %v983_v27 = vor.u32 %v982_v19, %v6294_v11  ;;  %v6326_v22 = vcombine.low %v907_v18, %v917_v1  ;;  %v6328_v63 = vcombine.low %v931_v44, %v941_v35  ;;  %v2297_v14 = vshll.u32 %v6163_v15, 16 }
  0x86   : > { %4756 = vmatmul.mubr.bf16.gmra.mrb[12].mxu1 %v5852_v52  ;;  %v2296_v38 = vrot.slane %v2294_v46, 4  ;;  %v988_v25 = vrot.slane %v986_v62, 5  ;;  %v2303_v60 = vshll.u32 %v6175_v61, 16  ;;  %v2307_v9 = vshrl.u32 %v6175_v61, 16 }
  0x87   : > { %4759 = vmatprep.mubr.bf16.mxu1 %v5889_v29  ;;  %4788 = vmatpush3.bf16.msra.mxu1 %v5456_v51  ;;  %v2313_v7 = vshll.u32 %v6192_v5, 16  ;;  %v6814_v26 = vshll.u32 %v5964_v48, 16  ;;  %v6336_v19 = vrot.slane %v1000_v21, 5  ;;  %v6815_v51 = vshrl.u32 %v5967_v31, 16 }
  0x88   : > { %4789 = vmatprep.subr.bf16.mxu1 %v5458_v6  ;;  %v2299_v47 = vrot.slane %v2297_v14, 5  ;;  %v984_v12 = vrot.slane %v983_v27, 4  ;;  %v6816_v43 = vshrl.u32 %v5996_v28, 16  ;;  %v2305_v62 = vrot.slane %v2303_v60, 5 }
  0x89   : > { %v996_v50 = vrot.slane %v6814_v26, 5  ;;  %v1006_v45 = vrot.slane %v6815_v51, 4  ;;  %v2309_v4 = vrot.slane %v2307_v9, 4  ;;  %v6817_v5 = vshll.u32 %v5996_v28, 16 }
  0x8a   : > { %v1017_v3 = vrot.slane %v6816_v43, 4  ;;  %4964 = vmatmul.mubr.bf16.gmra.mrb[28].mxu0 %v6322_v32  ;;  %v1026_v48 = vrot.slane %v1024_v40, 5  ;;  %v6818_v44 = vshrl.u32 %v5999_v58, 16  ;;  %v2300_v31 = vor.u32 %v2299_v47, %v2296_v38 }
  0x8b   : > { %4790 = vmatpush3.bf16.msra.mxu1 %v5458_v6  ;;  %v1020_v18 = vrot.slane %v6817_v5, 5  ;;  %4983 = vmatprep.mubr.bf16.mxu0 %v5635_v54  ;;  %v955_v6 = vsel %vm5621_vm2, %v6266_v16, %v6233_v36  ;;  %v1010_v1 = vshll.u32 %v6122_v56, 16  ;;  %v2310_v35 = vor.u32 %v2309_v4, %v2305_v62 }
  0x8c   : > { %v1030_v21 = vrot.slane %v6818_v44, 4  ;;  %4823 = vmatprep.subr.bf16.mxu1 %v6320_v33  ;;  %v2315_v46 = vrot.slane %v2313_v7, 5  ;;  %v965_v28 = vsel %vm5621_vm2, %v6292_v2, %v6268_v24  ;;  %v979_v58 = vsel %vm5621_vm2, %v6304_v59, %v6294_v11 }
  0x8d   : > { %v997_v40 = vor.u32 %v996_v50, %v6284_v17  ;;  %v2301_v27 = vrot.slane %v2300_v31, 4  ;;  %v989_v56 = vsel %vm5621_vm2, %v984_v12, %v988_v25  ;;  %v1007_v36 = vor.u32 %v1006_v45, %v6336_v19  ;;  %v5455_v25 = vld [vmem:[%s6711_s1 + $0x1c8] sm:$0xff]   ;;  %v6823_v31 = vld [vmem:[#allocation29_spill] sm:$0xff] }
  0x8e   : > { %4760 = vmatmul.mubr.bf16.gmra.mrb[16].mxu1 %v6326_v22  ;;  %v1048_v16 = vshll.u32 %v6043_v39, 16  ;;  %v2311_v38 = vrot.slane %v2310_v35, 4  ;;  %v1021_v14 = vor.u32 %v1020_v18, %v1017_v3  ;;  %v1031_v24 = vor.u32 %v1030_v21, %v1026_v48  ;;  %v6822_v18 = vld [vmem:[#allocation5_spill] sm:$0xff] }
  0x8f   : > { %4763 = vmatprep.mubr.bf16.mxu1 %v6328_v63  ;;  %v1034_v2 = vshll.u32 %v6151_v8, 16  ;;  %v2306_v11 = vsel %vm5621_vm2, %v2301_v27, %v2305_v62  ;;  %v6372_v59 = vcombine.low %v955_v6, %v965_v28  ;;  %v1012_v17 = vrot.slane %v1010_v1, 5 }
  0x90   : > { %v2316_v60 = vsel %vm5621_vm2, %v2311_v38, %v2315_v46  ;;  %v6379_v9 = vcombine.low %v979_v58, %v989_v56  ;;  %v998_v7 = vrot.slane %v997_v40, 4  ;;  %v6819_v26 = vshrl.u32 %v6028_v53, 16  ;;  %v5459_v46 = vld [vmem:[%s6711_s1 + $0x1d8] sm:$0xff]   ;;  %v6824_v56 = vld [vmem:[#allocation8_spill] sm:$0xff] }
  0x91   : > { %v6383_v8 = vcombine.low %v2306_v11, %v2316_v60  ;;  %v1008_v51 = vrot.slane %v1007_v36, 4  ;;  %v6820_v45 = vshll.u32 %v6028_v53, 16  ;;  %v1050_v12 = vrot.slane %v1048_v16, 5  ;;  %v6825_v36 = vld [vmem:[#allocation9_spill] sm:$0xff]  ;;  %v6827_v11 = vld [vmem:[#allocation11_spill] sm:$0xff]  ;;  %v5469_v60 = vld [vmem:[%s6711_s1 + $0x1f8] sm:$0xff]  }
  0x92   : > { %v1041_v50 = vrot.slane %v6819_v26, 4  ;;  %v6821_v43 = vshrl.u32 %v6043_v39, 16  ;;  %4984 = vmatmul.mubr.bf16.vlgmr.msra.gmra.mrb[0].mxu0 %v5673_v20  ;;  %v1022_v62 = vrot.slane %v1021_v14, 4  ;;  %v1032_v4 = vrot.slane %v1031_v24, 4  ;;  %v5457_v39 = vld [vmem:[%s6711_s1 + $0x1d0] sm:$0xff]   ;;  %v5463_v24 = vld [vmem:[%s6711_s1 + $0x1e8] sm:$0xff]  }
  0x93   : > { %v1044_v47 = vrot.slane %v6820_v45, 5  ;;  %v1036_v5 = vrot.slane %v1034_v2, 5  ;;  %5016 = vmatpush3.bf16.msra.mxu0 %v6136_v0  ;;  %4987 = vmatprep.mubr.bf16.mxu0 %v6822_v18  ;;  %v1003_v53 = vsel %vm5621_vm2, %v998_v7, %v6336_v19  ;;  %v1013_v44 = vsel %vm5621_vm2, %v1008_v51, %v1012_v17  ;;  %v6826_v2 = vld [vmem:[#allocation10_spill] sm:$0xff]  ;;  %v5465_v17 = vld [vmem:[%s6711_s1 + $0x1f0] sm:$0xff]   ;;  %v5462_v7 = vld [vmem:[%s6711_s1 + $0xc8] sm:$0xff]  }
  0x94   : > { %v1054_v3 = vrot.slane %v6821_v43, 4  ;;  %5017 = vmatprep.subr.bf16.mxu0 %v5455_v25  ;;  %v1058_v6 = vshll.u32 %v6823_v31, 16  ;;  %v1027_v1 = vsel %vm5621_vm2, %v1022_v62, %v1026_v48  ;;  %v6407_v19 = vcombine.low %v1003_v53, %v1013_v44  ;;  %v5461_v48 = vld [vmem:[%s6711_s1 + $0x1e0] sm:$0xff]   ;;  %v6829_v26 = vld [vmem:[#allocation14_spill] sm:$0xff]  ;;  %v6832_v51 = vld [vmem:[#allocation17_spill] sm:$0xff] }
  0x95   : > { %v1045_v21 = vor.u32 %v1044_v47, %v1041_v50  ;;  %v1037_v35 = vsel %vm5621_vm2, %v1032_v4, %v1036_v5  ;;  %v6830_v50 = vld [vmem:[#allocation12_spill] sm:$0xff]  ;;  %v5467_v45 = vld [vmem:[%s6711_s1 + $0xd8] sm:$0xff]   ;;  %v5470_v43 = vld [vmem:[%s6711_s1 + $0xe0] sm:$0xff]   ;;  %v6478_v44 = vcombine.low %v6163_v15, %v6175_v61 }
  0x96   : > { %4764 = vmatmul.mubr.bf16.gmra.mrb[20].mxu1 %v6372_v59  ;;  %v1055_v0 = vor.u32 %v1054_v3, %v1050_v12  ;;  %v6412_v28 = vcombine.low %v1027_v1, %v1037_v35  ;;  %v1060_v27 = vrot.slane %v1058_v6, 5  ;;  %v6833_v47 = vld [vmem:[#allocation18_spill] sm:$0xff]  ;;  %v6836_v3 = vld [vmem:[#allocation20_spill] sm:$0xff]  ;;  %v6838_v5 = vld [vmem:[#allocation21_spill] sm:$0xff] }
  0x97   : > { %4767 = vmatprep.mubr.bf16.mxu1 %v6379_v9  ;;  %5018 = vmatpush3.bf16.msra.mxu0 %v5455_v25  ;;  %v1046_v58 = vrot.slane %v1045_v21, 4  ;;  %v6828_v25 = vld [vmem:[#allocation13_spill] sm:$0xff]  ;;  %v5472_v62 = vld [vmem:[%s6711_s1 + $0xe8] sm:$0xff]   ;;  %v6837_v4 = vld [vmem:[#allocation22_spill] sm:$0xff] }
  0x98   : > { %5019 = vmatprep.subr.bf16.mxu0 %v5457_v39  ;;  %v1056_v40 = vrot.slane %v1055_v0, 4  ;;  %v6839_v53 = vld [vmem:[#allocation23_spill] sm:$0xff]  ;;  %v6840_v21 = vld [vmem:[#allocation25_spill] sm:$0xff]  ;;  %v5476_v0 = vld [vmem:[%s6711_s1 + $0xf8] sm:$0xff]  }
  0x99   : > { %v1051_v16 = vsel %vm5621_vm2, %v1046_v58, %v1050_v12  ;;  %v6835_v12 = vld [vmem:[#allocation19_spill] sm:$0xff]  ;;  %v6486_v31 = vld [vmem:[%s5562_s10 + $0xcc] sm:$0xf]  ;;  %v6489_v6 = vld [vmem:[%s5562_s10 + $0xd0] sm:$0xf] }
  0x9a   : > { %4988 = vmatmul.mubr.bf16.gmra.mrb[4].mxu0 %v6824_v56  ;;  %v1061_v38 = vsel %vm5621_vm2, %v1056_v40, %v1060_v27  ;;  %v6841_v1 = vld [vmem:[#allocation24_spill] sm:$0xff]  ;;  %v6842_v35 = vld [vmem:[#allocation26_spill] sm:$0xff]  ;;  %v4399_v15 = vcombine.low %v6486_v31, %v6489_v6  ;;  %v5482_v61 = vld [vmem:[%s6711_s1 + $0x100] sm:$0xff]   ;;  %v3658_v41 = vrot.slane %v6489_v6, 5 }
  0x9b   : > { %4991 = vmatprep.mubr.bf16.mxu0 %v6825_v36  ;;  %5020 = vmatpush3.bf16.msra.mxu0 %v5457_v39  ;;  %v6425_v14 = vcombine.low %v1051_v16, %v1061_v38  ;;  %v5474_v39 = vld [vmem:[%s6711_s1 + $0xf0] sm:$0xff]   ;;  %v6844_v58 = vld [vmem:[#allocation27_spill] sm:$0xff]  ;;  %v6845_v40 = vld [vmem:[#allocation28_spill] sm:$0xff] }
  0x9c   : > { %5021 = vmatprep.subr.bf16.mxu0 %v5459_v46  ;;  %v5473_v27 = vld [vmem:[%s6711_s1 + $0x208] sm:$0xff]   ;;  %v6847_v16 = vld [vmem:[#allocation7_spill] sm:$0xff]  ;;  %v6848_v38 = vld [vmem:[#allocation30_spill] sm:$0xff] }
  0x9e   : > { %4768 = vmatmul.mubr.bf16.gmra.mrb[24].mxu1 %v6407_v19 }
  0x9f   : > { %4771 = vmatprep.mubr.bf16.mxu1 %v6412_v28  ;;  %5022 = vmatpush3.bf16.msra.mxu0 %v5459_v46  ;;  %v6843_v46 = vld [vmem:[#allocation4_spill] sm:$0xff] }
  0xa0   : > { %5023 = vmatprep.subr.bf16.mxu0 %v5461_v48 }
  0xa2   : > { %4992 = vmatmul.mubr.bf16.gmra.mrb[8].mxu0 %v6826_v2 }
  0xa3   : > { %4995 = vmatprep.mubr.bf16.mxu0 %v6827_v11  ;;  %5024 = vmatpush3.bf16.msra.mxu0 %v5461_v48  ;;  %v6846_v48 = vld [vmem:[#allocation6_spill] sm:$0xff] }
  0xa4   : > { %5025 = vmatprep.subr.bf16.mxu0 %v5463_v24 }
  0xa6   : > { %4772 = vmatmul.mubr.bf16.gmra.mrb[28].mxu1 %v6425_v14 }
  0xa7   : > { %4791 = vmatprep.mubr.bf16.mxu1 %v4283_v10  ;;  %5026 = vmatpush3.bf16.msra.mxu0 %v5463_v24  ;;  %v5464_v10 = vld [vmem:[%s6711_s1 + $0xd0] sm:$0xff]  }
  0xa8   : > { %5027 = vmatprep.subr.bf16.mxu0 %v5465_v17  ;;  %v5475_v24 = vld [vmem:[%s6711_s1 + $0x210] sm:$0xff]  }
  0xaa   : > { %4996 = vmatmul.mubr.bf16.gmra.mrb[12].mxu0 %v6828_v25 }
  0xab   : > { %4999 = vmatprep.mubr.bf16.mxu0 %v6829_v26  ;;  %5028 = vmatpush3.bf16.msra.mxu0 %v5465_v17  ;;  %v5477_v17 = vld [vmem:[%s6711_s1 + $0x218] sm:$0xff]  }
  0xac   : > { %5029 = vmatprep.subr.bf16.mxu0 %v5469_v60 }
  0xae   : > { %4792 = vmatmul.mubr.bf16.vlgmr.msra.gmra.mrb[0].mxu1 %v6830_v50  ;;  %v5481_v50 = vld [vmem:[%s6711_s1 + $0x238] sm:$0xff]  }
  0xaf   : > { %4824 = vmatpush3.bf16.msra.mxu1 %v6320_v33  ;;  %4795 = vmatprep.mubr.bf16.mxu1 %v6831_v42  ;;  %v6834_v33 = vld [vmem:[#allocation16_spill] sm:$0xff] }
  0xb0   : > { %4825 = vmatprep.subr.bf16.mxu1 %v5462_v7  ;;  %5030 = vmatpush3.bf16.msra.mxu0 %v5469_v60  ;;  %v5478_v60 = vld [vmem:[%s6711_s1 + $0x220] sm:$0xff]  }
  0xb1   : > { %5063 = vmatprep.subr.bf16.mxu0 %v5471_v57 }
  0xb2   : > { %5000 = vmatmul.mubr.bf16.gmra.mrb[16].mxu0 %v6832_v51 }
  0xb3   : > { %4826 = vmatpush3.bf16.msra.mxu1 %v5462_v7  ;;  %5003 = vmatprep.mubr.bf16.mxu0 %v6833_v47  ;;  %v5479_v7 = vld [vmem:[%s6711_s1 + $0x228] sm:$0xff]  }
  0xb4   : > { %4827 = vmatprep.subr.bf16.mxu1 %v5464_v10 }
  0xb6   : > { %4796 = vmatmul.mubr.bf16.gmra.mrb[4].mxu1 %v6834_v33 }
  0xb7   : > { %4799 = vmatprep.mubr.bf16.mxu1 %v6835_v12  ;;  %4828 = vmatpush3.bf16.msra.mxu1 %v5464_v10  ;;  %v3315_v10 = vshll.u32 %v6489_v6, 16 }
  0xb8   : > { %4829 = vmatprep.subr.bf16.mxu1 %v5467_v45 }
  0xba   : > { %5004 = vmatmul.mubr.bf16.gmra.mrb[20].mxu0 %v6836_v3 }
  0xbb   : > { %4830 = vmatpush3.bf16.msra.mxu1 %v5467_v45  ;;  %5007 = vmatprep.mubr.bf16.mxu0 %v6837_v4  ;;  %v5485_v45 = vld [vmem:[%s6711_s1 + $0x118] sm:$0xff]  }
  0xbc   : > { %4831 = vmatprep.subr.bf16.mxu1 %v5470_v43 }
  0xbe   : > { %4800 = vmatmul.mubr.bf16.gmra.mrb[8].mxu1 %v6838_v5 }
  0xbf   : > { %4803 = vmatprep.mubr.bf16.mxu1 %v6839_v53  ;;  %4832 = vmatpush3.bf16.msra.mxu1 %v5470_v43 }
  0xc0   : > { %4833 = vmatprep.subr.bf16.mxu1 %v5472_v62 }
  0xc2   : > { %5008 = vmatmul.mubr.bf16.gmra.mrb[24].mxu0 %v6840_v21 }
  0xc3   : > { %4834 = vmatpush3.bf16.msra.mxu1 %v5472_v62  ;;  %5011 = vmatprep.mubr.bf16.mxu0 %v6478_v44 }
  0xc4   : > { %4835 = vmatprep.subr.bf16.mxu1 %v5474_v39 }
  0xc6   : > { %4804 = vmatmul.mubr.bf16.gmra.mrb[12].mxu1 %v6841_v1 }
  0xc7   : > { %4807 = vmatprep.mubr.bf16.mxu1 %v6842_v35  ;;  %4836 = vmatpush3.bf16.msra.mxu1 %v5474_v39  ;;  %v3317_v39 = vrot.slane %v3315_v10, 5 }
  0xc8   : > { %4837 = vmatprep.subr.bf16.mxu1 %v5476_v0 }
  0xca   : > { %5012 = vmatmul.mubr.bf16.gmra.mrb[28].mxu0 %v4399_v15  ;;  %v6556_v15 = vld [vmem:[%s5562_s10 + $0xd4] sm:$0x1] }
  0xcb   : > { %4838 = vmatpush3.bf16.msra.mxu1 %v5476_v0  ;;  %5031 = vmatprep.mubr.bf16.mxu0 %v6843_v46  ;;  %v3325_v46 = vshll.u32 %v6556_v15, 16 }
  0xcc   : > { %5111 = vmatprep.subr.bf16.mxu1 %v5482_v61 }
  0xce   : > { %4808 = vmatmul.mubr.bf16.gmra.mrb[16].mxu1 %v6844_v58 }
  0xcf   : > { %4811 = vmatprep.mubr.bf16.mxu1 %v6845_v40 }
  0xd2   : > { %5032 = vmatmul.mubr.bf16.vlgmr.msra.gmra.mrb[0].mxu0 %v6846_v48 }
  0xd3   : > { %5064 = vmatpush3.bf16.msra.mxu0 %v5471_v57  ;;  %5035 = vmatprep.mubr.bf16.mxu0 %v6847_v16  ;;  %v3309_v57 = vshll.u32 %v6486_v31, 16 }
  0xd4   : > { %5065 = vmatprep.subr.bf16.mxu0 %v5473_v27 }
  0xd5   : > { %v3311_v62 = vrot.slane %v3309_v57, 5 }
  0xd6   : > { %4812 = vmatmul.mubr.bf16.gmra.mrb[20].mxu1 %v6848_v38 }
  0xd7   : > { %4815 = vmatprep.mubr.bf16.mxu1 %v6187_v13  ;;  %5066 = vmatpush3.bf16.msra.mxu0 %v5473_v27  ;;  %v5487_v27 = vld [vmem:[%s6711_s1 + $0x128] sm:$0xff]  }
  0xd8   : > { %5067 = vmatprep.subr.bf16.mxu0 %v5475_v24 }
  0xda   : > { %5036 = vmatmul.mubr.bf16.gmra.mrb[4].mxu0 %v5803_v30  ;;  %v5480_v30 = vld [vmem:[%s6711_s1 + $0x230] sm:$0xff]  }
  0xdb   : > { %5039 = vmatprep.mubr.bf16.mxu0 %v5834_v34  ;;  %5068 = vmatpush3.bf16.msra.mxu0 %v5475_v24  ;;  %v6849_v34 = vld [vmem:[#allocation3_spill] sm:$0xff]  ;;  %v3327_v24 = vrot.slane %v3325_v46, 5 }
  0xdc   : > { %5069 = vmatprep.subr.bf16.mxu0 %v5477_v17 }
  0xde   : > { %4816 = vmatmul.mubr.bf16.gmra.mrb[24].mxu1 %v6222_v37 }
  0xdf   : > { %4819 = vmatprep.mubr.bf16.mxu1 %v6230_v23  ;;  %5070 = vmatpush3.bf16.msra.mxu0 %v5477_v17  ;;  %v5488_v17 = vld [vmem:[%s6711_s1 + $0x130] sm:$0xff]  }
  0xe0   : > { %5071 = vmatprep.subr.bf16.mxu0 %v5478_v60 }
  0xe2   : > { %5040 = vmatmul.mubr.bf16.gmra.mrb[8].mxu0 %v5852_v52  ;;  %v5484_v52 = vld [vmem:[%s6711_s1 + $0x110] sm:$0xff]  }
  0xe3   : > { %5043 = vmatprep.mubr.bf16.mxu0 %v5889_v29  ;;  %5072 = vmatpush3.bf16.msra.mxu0 %v5478_v60  ;;  %v5483_v29 = vld [vmem:[%s6711_s1 + $0x108] sm:$0xff]  }
  0xe4   : > { %5073 = vmatprep.subr.bf16.mxu0 %v5479_v7 }
  0xe6   : > { %4820 = vmatmul.mubr.bf16.gmra.mrb[28].mxu1 %v6264_v55 }
  0xe7   : > { %4839 = vmatprep.mubr.bf16.mxu1 %v6849_v34  ;;  %5074 = vmatpush3.bf16.msra.mxu0 %v5479_v7  ;;  %v5489_v7 = vld [vmem:[%s6711_s1 + $0x138] sm:$0xff]  }
  0xe8   : > { %5075 = vmatprep.subr.bf16.mxu0 %v5480_v30 }
  0xea   : > { %5044 = vmatmul.mubr.bf16.gmra.mrb[12].mxu0 %v6326_v22 }
  0xeb   : > { %5047 = vmatprep.mubr.bf16.mxu0 %v6328_v63  ;;  %5076 = vmatpush3.bf16.msra.mxu0 %v5480_v30 }
  0xec   : > { %5077 = vmatprep.subr.bf16.mxu0 %v5481_v50 }
  0xee   : > { %4840 = vmatmul.mubr.bf16.vlgmr.msra.gmra.mrb[0].mxu1 %v5635_v54  ;;  %v3306_v54 = vshrl.u32 %v6486_v31, 16 }
  0xef   : > { %5119 = vmatpush3.bf16.msra.mxu1 %v5482_v61  ;;  %4843 = vmatprep.mubr.bf16.mxu1 %v5673_v20  ;;  %v3319_v20 = vshrl.u32 %v6489_v6, 16 }
  0xf0   : > { %5112 = vmatprep.subr.bf16.mxu1 %v5483_v29  ;;  %5078 = vmatpush3.bf16.msra.mxu0 %v5481_v50  ;;  %v3308_v43 = vrot.slane %v3306_v54, 4 }
  0xf1   : > { %v3321_v0 = vrot.slane %v3319_v20, 4 }
  0xf2   : > { %5048 = vmatmul.mubr.bf16.gmra.mrb[16].mxu0 %v6372_v59 }
  0xf3   : > { %5120 = vmatpush3.bf16.msra.mxu1 %v5483_v29  ;;  %5051 = vmatprep.mubr.bf16.mxu0 %v6379_v9  ;;  %v3322_v61 = vor.u32 %v3321_v0, %v3317_v39 }
  0xf4   : > { %5113 = vmatprep.subr.bf16.mxu1 %v5484_v52 }
  0xf5   : > { %v3323_v16 = vrot.slane %v3322_v61, 4 }
  0xf6   : > { %4844 = vmatmul.mubr.bf16.gmra.mrb[4].mxu1 %v6822_v18  ;;  %v5486_v18 = vld [vmem:[%s6711_s1 + $0x120] sm:$0xff]  }
  0xf7   : > { %4847 = vmatprep.mubr.bf16.mxu1 %v6824_v56  ;;  %5121 = vmatpush3.bf16.msra.mxu1 %v5484_v52  ;;  %v3312_v56 = vor.u32 %v3311_v62, %v3308_v43 }
  0xf8   : > { %5114 = vmatprep.subr.bf16.mxu1 %v5485_v45 }
  0xf9   : > { %v3313_v48 = vrot.slane %v3312_v56, 4 }
  0xfa   : > { %5052 = vmatmul.mubr.bf16.gmra.mrb[20].mxu0 %v6407_v19 }
  0xfb   : > { %5122 = vmatpush3.bf16.msra.mxu1 %v5485_v45  ;;  %5055 = vmatprep.mubr.bf16.mxu0 %v6412_v28 }
  0xfc   : > { %5115 = vmatprep.subr.bf16.mxu1 %v5486_v18 }
  0xfe   : > { %4848 = vmatmul.mubr.bf16.gmra.mrb[8].mxu1 %v6825_v36  ;;  %v3318_v36 = vsel %vm5621_vm2, %v3313_v48, %v3317_v39 }
  0xff   : > { %4851 = vmatprep.mubr.bf16.mxu1 %v6826_v2  ;;  %5123 = vmatpush3.bf16.msra.mxu1 %v5486_v18  ;;  %v3328_v2 = vsel %vm5621_vm2, %v3323_v16, %v3327_v24 }
 0x100   : > { %5116 = vmatprep.subr.bf16.mxu1 %v5487_v27  ;;  %v4424_v60 = vcombine.low %v3318_v36, %v3328_v2 }
 0x102   : > { %5056 = vmatmul.mubr.bf16.gmra.mrb[24].mxu0 %v6425_v14 }
 0x103   : > { %5124 = vmatpush3.bf16.msra.mxu1 %v5487_v27  ;;  %5059 = vmatprep.mubr.bf16.mxu0 %v6383_v8 }
 0x104   : > { %5117 = vmatprep.subr.bf16.mxu1 %v5488_v17 }
 0x106   : > { %4852 = vmatmul.mubr.bf16.gmra.mrb[12].mxu1 %v6827_v11 }
 0x107   : > { %4855 = vmatprep.mubr.bf16.mxu1 %v6828_v25  ;;  %5125 = vmatpush3.bf16.msra.mxu1 %v5488_v17 }
 0x108   : > { %5118 = vmatprep.subr.bf16.mxu1 %v5489_v7 }
 0x10a   : > { %5060 = vmatmul.mubr.bf16.gmra.mrb[28].mxu0 %v4424_v60 }
 0x10b   : > { %5126 = vmatpush3.bf16.msra.mxu1 %v5489_v7  ;;  %5079 = vmatprep.mubr.bf16.mxu0 %v6831_v42 }
 0x10e   : > { %4856 = vmatmul.mubr.bf16.gmra.mrb[16].mxu1 %v6829_v26 }
 0x10f   : > { %4859 = vmatprep.mubr.bf16.mxu1 %v6832_v51 }
 0x112   : > { %5080 = vmatmul.mubr.bf16.vlgmr.msra.gmra.mrb[0].mxu0 %v6834_v33 }
 0x113   : > { %5083 = vmatprep.mubr.bf16.mxu0 %v6835_v12 }
 0x116   : > { %4860 = vmatmul.mubr.bf16.gmra.mrb[20].mxu1 %v6833_v47 }
 0x117   : > { %4863 = vmatprep.mubr.bf16.mxu1 %v6836_v3 }
 0x11a   : > { %5084 = vmatmul.mubr.bf16.gmra.mrb[4].mxu0 %v6838_v5 }
 0x11b   : > { %5087 = vmatprep.mubr.bf16.mxu0 %v6839_v53 }
 0x11e   : > { %4864 = vmatmul.mubr.bf16.gmra.mrb[24].mxu1 %v6837_v4  ;;  %v6631_v4 = vld [vmem:[%s6712_s2] ss:$0 sm:$0xff] }
 0x11f   : > { %4867 = vmatprep.mubr.bf16.mxu1 %v6840_v21 }
 0x122   : > { %5088 = vmatmul.mubr.bf16.gmra.mrb[8].mxu0 %v6841_v1 }
 0x123   : > { %5091 = vmatprep.mubr.bf16.mxu0 %v6842_v35 }
 0x126   : > { %4868 = vmatmul.mubr.bf16.gmra.mrb[28].mxu1 %v6478_v44 }
 0x127   : > { %4903 = vmatprep.mubr.bf16.mxu1 %v6326_v22  ;;  %v4433_v22 = vrot.slane %v6486_v31, 9 }
 0x12a   : > { %5092 = vmatmul.mubr.bf16.gmra.mrb[12].mxu0 %v6844_v58 }
 0x12b   : > { %5095 = vmatprep.mubr.bf16.mxu0 %v6845_v40 }
 0x12e   : > { %4904 = vmatmul.mubr.bf16.vlgmr.msra.gmra.mrb[16].mxu1 %v6328_v63  ;;  %v3660_v63 = vrot.slane %v3658_v41, 4 }
 0x12f   : > { %4907 = vmatprep.mubr.bf16.mxu1 %v6372_v59  ;;  %v3661_v59 = vrot.slane %v6556_v15, 5 }
 0x132   : > { %5096 = vmatmul.mubr.bf16.gmra.mrb[16].mxu0 %v6848_v38 }
 0x133   : > { %5099 = vmatprep.mubr.bf16.mxu0 %v6187_v13  ;;  %v3662_v13 = vsel %vm5709_vm5, %v3660_v63, %v3661_v59 }
 0x136   : > { %4908 = vmatmul.mubr.bf16.gmra.mrb[20].mxu1 %v6379_v9 }
 0x137   : > { %4911 = vmatprep.mubr.bf16.mxu1 %v6407_v19 }
 0x13a   : > { %5100 = vmatmul.mubr.bf16.gmra.mrb[20].mxu0 %v6222_v37  ;;  %v3659_v37 = vsel %vm5709_vm5, %v4433_v22, %v3658_v41 }
 0x13b   : > { %5103 = vmatprep.mubr.bf16.mxu0 %v6230_v23  ;;  %v4450_v23 = vcombine.low %v3659_v37, %v3662_v13 }
 0x13e   : > { %4912 = vmatmul.mubr.bf16.gmra.mrb[24].mxu1 %v6412_v28 }
 0x13f   : > { %4915 = vmatprep.mubr.bf16.mxu1 %v6425_v14 }
 0x142   : > { %5104 = vmatmul.mubr.bf16.gmra.mrb[24].mxu0 %v6264_v55 }
 0x143   : > { %5107 = vmatprep.mubr.bf16.mxu0 %v6322_v32 }
 0x146   : > { %4916 = vmatmul.mubr.bf16.gmra.mrb[28].mxu1 %v6383_v8 }
 0x14a   : > { %5108 = vmatmul.mubr.bf16.gmra.mrb[28].mxu0 %v4450_v23 }
 0x1c1   : > { %v4841_v9 = vpop.f32.mrb[0].mxu1 }
 0x1c2   : > { %v2102_v19 = vpop.f32.mrb[1].mxu1 }
 0x1c3   : > { %v4842_v28 = vpop.f32.mrb[2].mxu1 }
 0x1c4   : > { %v2105_v14 = vpop.f32.mrb[3].mxu1 }
 0x1c9   : > { %v4845_v11 = vpop.f32.mrb[4].mxu1 }
 0x1ca   : > { %v2118_v25 = vpop.f32.mrb[5].mxu1 }
 0x1cb   : > { %v4846_v55 = vpop.f32.mrb[6].mxu1 }
 0x1cc   : > { %v2121_v26 = vpop.f32.mrb[7].mxu1 }
 0x1d1   : > { %v4849_v32 = vpop.f32.mrb[8].mxu1 }
 0x1d2   : > { %v2134_v42 = vpop.f32.mrb[9].mxu1 }
 0x1d3   : > { %v4850_v51 = vpop.f32.mrb[10].mxu1 }
 0x1d4   : > { %v2137_v47 = vpop.f32.mrb[11].mxu1 }
 0x1d9   : > { %v6620_v33 = vpop.f32.mrb[12].mxu1 }
 0x1da   : > { %v6622_v49 = vpop.f32.mrb[13].mxu1 }
 0x1db   : > { %v6624_v8 = vpop.f32.mrb[14].mxu1 }
 0x1dc   : > { %v6626_v12 = vpop.f32.mrb[15].mxu1 }
 0x1e5   : > { %v5081_v3 = vpop.f32.mrb[0].mxu0 }
 0x1e6   : > { %v5127_v5 = vadd.f32 %v5081_v3, %v4841_v9  ;;  %v3798_v53 = vpop.f32.mrb[1].mxu0 }
 0x1e7   : > { %v5128_v44 = vadd.f32 %v3798_v53, %v2102_v19  ;;  %v5082_v21 = vpop.f32.mrb[2].mxu0 }
 0x1e8   : > { %v4030_v31 = vadd.f32 %v5127_v5, %v6631_v4  ;;  %v5129_v6 = vadd.f32 %v5082_v21, %v4842_v28  ;;  %v3801_v1 = vpop.f32.mrb[3].mxu0 }
 0x1e9   : > { %v4028_v35 = vadd.f32 %v5128_v44, %v6631_v4  ;;  %v5130_v58 = vadd.f32 %v3801_v1, %v2105_v14 }
 0x1ea   : > { %v4062_v40 = vmax.f32 %v4030_v31, 0.0  ;;  %v4031_v38 = vadd.f32 %v5129_v6, %v6631_v4 }
 0x1eb   : > { %v4060_v30 = vmax.f32 %v4028_v35, 0.0  ;;  %v4029_v34 = vadd.f32 %v5130_v58, %v6631_v4 }
 0x1ec   : > { %4094 = vst [vmem:[%s6638_s11 + $0x10] sm:$0xff] %v4062_v40  ;;  %v4063_v50 = vmax.f32 %v4031_v38, 0.0 }
 0x1ed   : > { %4092 = vst [vmem:[%s6638_s11] sm:$0xff] %v4060_v30  ;;  %v4061_v29 = vmax.f32 %v4029_v34, 0.0  ;;  %v5085_v52 = vpop.f32.mrb[4].mxu0 }
 0x1ee   : > { %4095 = vst [vmem:[%s6638_s11 + $0x18] sm:$0xff] %v4063_v50  ;;  %v5131_v54 = vadd.f32 %v5085_v52, %v4845_v11  ;;  %v3814_v57 = vpop.f32.mrb[5].mxu0 }
 0x1ef   : > { %4093 = vst [vmem:[%s6638_s11 + $0x8] sm:$0xff] %v4061_v29  ;;  %v5132_v20 = vadd.f32 %v3814_v57, %v2118_v25  ;;  %v5086_v10 = vpop.f32.mrb[6].mxu0 }
 0x1f0   : > { %v4034_v45 = vadd.f32 %v5131_v54, %v6631_v4  ;;  %v5133_v43 = vadd.f32 %v5086_v10, %v4846_v55  ;;  %v3817_v62 = vpop.f32.mrb[7].mxu0 }
 0x1f1   : > { %v4032_v39 = vadd.f32 %v5132_v20, %v6631_v4  ;;  %v5134_v0 = vadd.f32 %v3817_v62, %v2121_v26 }
 0x1f2   : > { %v4066_v15 = vmax.f32 %v4034_v45, 0.0  ;;  %v4035_v18 = vadd.f32 %v5133_v43, %v6631_v4 }
 0x1f3   : > { %v4064_v56 = vmax.f32 %v4032_v39, 0.0  ;;  %v4033_v61 = vadd.f32 %v5134_v0, %v6631_v4 }
 0x1f4   : > { %4098 = vst [vmem:[%s6638_s11 + $0x30] sm:$0xff] %v4066_v15  ;;  %v4067_v46 = vmax.f32 %v4035_v18, 0.0 }
 0x1f5   : > { %4096 = vst [vmem:[%s6638_s11 + $0x20] sm:$0xff] %v4064_v56  ;;  %v4065_v27 = vmax.f32 %v4033_v61, 0.0  ;;  %v5089_v48 = vpop.f32.mrb[8].mxu0 }
 0x1f6   : > { %4099 = vst [vmem:[%s6638_s11 + $0x38] sm:$0xff] %v4067_v46  ;;  %v5135_v16 = vadd.f32 %v5089_v48, %v4849_v32  ;;  %v3830_v24 = vpop.f32.mrb[9].mxu0 }
 0x1f7   : > { %4097 = vst [vmem:[%s6638_s11 + $0x28] sm:$0xff] %v4065_v27  ;;  %v5136_v17 = vadd.f32 %v3830_v24, %v2134_v42  ;;  %v5090_v36 = vpop.f32.mrb[10].mxu0 }
 0x1f8   : > { %v4038_v2 = vadd.f32 %v5135_v16, %v6631_v4  ;;  %v5137_v60 = vadd.f32 %v5090_v36, %v4850_v51  ;;  %v3833_v7 = vpop.f32.mrb[11].mxu0 }
 0x1f9   : > { %v4036_v41 = vadd.f32 %v5136_v17, %v6631_v4  ;;  %v5138_v22 = vadd.f32 %v3833_v7, %v2137_v47 }
 0x1fa   : > { %v4070_v63 = vmax.f32 %v4038_v2, 0.0  ;;  %v4039_v59 = vadd.f32 %v5137_v60, %v6631_v4 }
 0x1fb   : > { %v4068_v37 = vmax.f32 %v4036_v41, 0.0  ;;  %v4037_v13 = vadd.f32 %v5138_v22, %v6631_v4 }
 0x1fc   : > { %4102 = vst [vmem:[%s6638_s11 + $0x50] sm:$0xff] %v4070_v63  ;;  %v4071_v23 = vmax.f32 %v4039_v59, 0.0 }
 0x1fd   : > { %4100 = vst [vmem:[%s6638_s11 + $0x40] sm:$0xff] %v4068_v37  ;;  %v4069_v9 = vmax.f32 %v4037_v13, 0.0  ;;  %v5093_v19 = vpop.f32.mrb[12].mxu0 }
 0x1fe   : > { %4103 = vst [vmem:[%s6638_s11 + $0x58] sm:$0xff] %v4071_v23  ;;  %v5139_v28 = vadd.f32 %v5093_v19, %v6620_v33  ;;  %v3846_v14 = vpop.f32.mrb[13].mxu0 }
 0x1ff   : > { %4101 = vst [vmem:[%s6638_s11 + $0x48] sm:$0xff] %v4069_v9  ;;  %v5140_v11 = vadd.f32 %v3846_v14, %v6622_v49  ;;  %v5094_v25 = vpop.f32.mrb[14].mxu0 }
 0x200   : > { %v4042_v26 = vadd.f32 %v5139_v28, %v6631_v4  ;;  %v5141_v32 = vadd.f32 %v5094_v25, %v6624_v8  ;;  %v3849_v42 = vpop.f32.mrb[15].mxu0 }
 0x201   : > { %v4905_v55 = vpop.f32.mrb[16].mxu1  ;;  %v4040_v47 = vadd.f32 %v5140_v11, %v6631_v4  ;;  %v5142_v33 = vadd.f32 %v3849_v42, %v6626_v12 }
 0x202   : > { %v2516_v51 = vpop.f32.mrb[17].mxu1  ;;  %v4074_v5 = vmax.f32 %v4042_v26, 0.0  ;;  %v4043_v53 = vadd.f32 %v5141_v32, %v6631_v4 }
 0x203   : > { %v4906_v3 = vpop.f32.mrb[18].mxu1  ;;  %v4072_v44 = vmax.f32 %v4040_v47, 0.0  ;;  %v4041_v21 = vadd.f32 %v5142_v33, %v6631_v4 }
 0x204   : > { %v2519_v49 = vpop.f32.mrb[19].mxu1  ;;  %4106 = vst [vmem:[%s6638_s11 + $0x70] sm:$0xff] %v4074_v5  ;;  %v4075_v31 = vmax.f32 %v4043_v53, 0.0 }
 0x205   : > { %4104 = vst [vmem:[%s6638_s11 + $0x60] sm:$0xff] %v4072_v44  ;;  %v4073_v8 = vmax.f32 %v4041_v21, 0.0  ;;  %v5097_v6 = vpop.f32.mrb[16].mxu0 }
 0x206   : > { %4107 = vst [vmem:[%s6638_s11 + $0x78] sm:$0xff] %v4075_v31  ;;  %v5143_v1 = vadd.f32 %v5097_v6, %v4905_v55  ;;  %v3862_v35 = vpop.f32.mrb[17].mxu0 }
 0x207   : > { %4105 = vst [vmem:[%s6638_s11 + $0x68] sm:$0xff] %v4073_v8  ;;  %v5144_v58 = vadd.f32 %v3862_v35, %v2516_v51  ;;  %v5098_v12 = vpop.f32.mrb[18].mxu0 }
 0x208   : > { %v4046_v38 = vadd.f32 %v5143_v1, %v6631_v4  ;;  %v5145_v30 = vadd.f32 %v5098_v12, %v4906_v3  ;;  %v3865_v34 = vpop.f32.mrb[19].mxu0 }
 0x209   : > { %v4909_v40 = vpop.f32.mrb[20].mxu1  ;;  %v4044_v29 = vadd.f32 %v5144_v58, %v6631_v4  ;;  %v5146_v52 = vadd.f32 %v3865_v34, %v2519_v49 }
 0x20a   : > { %v2532_v50 = vpop.f32.mrb[21].mxu1  ;;  %v4078_v57 = vmax.f32 %v4046_v38, 0.0  ;;  %v4047_v20 = vadd.f32 %v5145_v30, %v6631_v4 }
 0x20b   : > { %v4910_v54 = vpop.f32.mrb[22].mxu1  ;;  %v4076_v45 = vmax.f32 %v4044_v29, 0.0  ;;  %v4045_v43 = vadd.f32 %v5146_v52, %v6631_v4 }
 0x20c   : > { %v2535_v10 = vpop.f32.mrb[23].mxu1  ;;  %4110 = vst [vmem:[%s6638_s11 + $0x90] sm:$0xff] %v4078_v57  ;;  %v4079_v62 = vmax.f32 %v4047_v20, 0.0 }
 0x20d   : > { %4108 = vst [vmem:[%s6638_s11 + $0x80] sm:$0xff] %v4076_v45  ;;  %v4077_v39 = vmax.f32 %v4045_v43, 0.0  ;;  %v5101_v0 = vpop.f32.mrb[20].mxu0 }
 0x20e   : > { %4111 = vst [vmem:[%s6638_s11 + $0x98] sm:$0xff] %v4079_v62  ;;  %v5147_v15 = vadd.f32 %v5101_v0, %v4909_v40  ;;  %v3878_v18 = vpop.f32.mrb[21].mxu0 }
 0x20f   : > { %4109 = vst [vmem:[%s6638_s11 + $0x88] sm:$0xff] %v4077_v39  ;;  %v5148_v56 = vadd.f32 %v3878_v18, %v2532_v50  ;;  %v5102_v61 = vpop.f32.mrb[22].mxu0 }
 0x210   : > { %v4050_v27 = vadd.f32 %v5147_v15, %v6631_v4  ;;  %v5149_v48 = vadd.f32 %v5102_v61, %v4910_v54  ;;  %v3881_v16 = vpop.f32.mrb[23].mxu0 }
 0x211   : > { %v4913_v46 = vpop.f32.mrb[24].mxu1  ;;  %v4048_v17 = vadd.f32 %v5148_v56, %v6631_v4  ;;  %v5150_v36 = vadd.f32 %v3881_v16, %v2535_v10 }
 0x212   : > { %v2548_v24 = vpop.f32.mrb[25].mxu1  ;;  %v4082_v60 = vmax.f32 %v4050_v27, 0.0  ;;  %v4051_v7 = vadd.f32 %v5149_v48, %v6631_v4 }
 0x213   : > { %v4914_v2 = vpop.f32.mrb[26].mxu1  ;;  %v4080_v22 = vmax.f32 %v4048_v17, 0.0  ;;  %v4049_v63 = vadd.f32 %v5150_v36, %v6631_v4 }
 0x214   : > { %v2551_v41 = vpop.f32.mrb[27].mxu1  ;;  %4114 = vst [vmem:[%s6638_s11 + $0xb0] sm:$0xff] %v4082_v60  ;;  %v4083_v59 = vmax.f32 %v4051_v7, 0.0 }
 0x215   : > { %4112 = vst [vmem:[%s6638_s11 + $0xa0] sm:$0xff] %v4080_v22  ;;  %v4081_v37 = vmax.f32 %v4049_v63, 0.0  ;;  %v5105_v13 = vpop.f32.mrb[24].mxu0 }
 0x216   : > { %4115 = vst [vmem:[%s6638_s11 + $0xb8] sm:$0xff] %v4083_v59  ;;  %v5151_v23 = vadd.f32 %v5105_v13, %v4913_v46  ;;  %v3894_v9 = vpop.f32.mrb[25].mxu0 }
 0x217   : > { %4113 = vst [vmem:[%s6638_s11 + $0xa8] sm:$0xff] %v4081_v37  ;;  %v5152_v19 = vadd.f32 %v3894_v9, %v2548_v24  ;;  %v5106_v28 = vpop.f32.mrb[26].mxu0 }
 0x218   : > { %v4054_v11 = vadd.f32 %v5151_v23, %v6631_v4  ;;  %v5153_v25 = vadd.f32 %v5106_v28, %v4914_v2  ;;  %v3897_v55 = vpop.f32.mrb[27].mxu0 }
 0x219   : > { %v4917_v14 = vpop.f32.mrb[28].mxu1  ;;  %v4052_v32 = vadd.f32 %v5152_v19, %v6631_v4  ;;  %v5154_v42 = vadd.f32 %v3897_v55, %v2551_v41 }
 0x21a   : > { %v2564_v26 = vpop.f32.mrb[29].mxu1  ;;  %v4086_v47 = vmax.f32 %v4054_v11, 0.0  ;;  %v4055_v33 = vadd.f32 %v5153_v25, %v6631_v4 }
 0x21b   : > { %v4918_v51 = vpop.f32.mrb[30].mxu1  ;;  %v4084_v5 = vmax.f32 %v4052_v32, 0.0  ;;  %v4053_v53 = vadd.f32 %v5154_v42, %v6631_v4 }
 0x21c   : > { %v2567_v3 = vpop.f32.mrb[31].mxu1  ;;  %4118 = vst [vmem:[%s6638_s11 + $0xd0] sm:$0xff] %v4086_v47  ;;  %v4087_v49 = vmax.f32 %v4055_v33, 0.0 }
 0x21d   : > { %4116 = vst [vmem:[%s6638_s11 + $0xc0] sm:$0xff] %v4084_v5  ;;  %v4085_v44 = vmax.f32 %v4053_v53, 0.0  ;;  %v5109_v21 = vpop.f32.mrb[28].mxu0 }
 0x21e   : > { %4119 = vst [vmem:[%s6638_s11 + $0xd8] sm:$0xff] %v4087_v49  ;;  %v5155_v31 = vadd.f32 %v5109_v21, %v4917_v14  ;;  %v3910_v8 = vpop.f32.mrb[29].mxu0 }
 0x21f   : > { %4117 = vst [vmem:[%s6638_s11 + $0xc8] sm:$0xff] %v4085_v44  ;;  %v5156_v6 = vadd.f32 %v3910_v8, %v2564_v26  ;;  %v5110_v1 = vpop.f32.mrb[30].mxu0 }
 0x220   : > { %v4058_v35 = vadd.f32 %v5155_v31, %v6631_v4  ;;  %v5157_v58 = vadd.f32 %v5110_v1, %v4918_v51  ;;  %v3913_v12 = vpop.f32.mrb[31].mxu0 }
 0x221   : > { %v4056_v40 = vadd.f32 %v5156_v6, %v6631_v4  ;;  %v5158_v38 = vadd.f32 %v3913_v12, %v2567_v3 }
 0x222   : > { %v4090_v30 = vmax.f32 %v4058_v35, 0.0  ;;  %v4059_v34 = vadd.f32 %v5157_v58, %v6631_v4 }
 0x223   : > { %v4088_v50 = vmax.f32 %v4056_v40, 0.0  ;;  %v4057_v29 = vadd.f32 %v5158_v38, %v6631_v4 }
 0x224   : > { %4122 = vst [vmem:[%s6638_s11 + $0xf0] sm:$0xff] %v4090_v30  ;;  %v4091_v52 = vmax.f32 %v4059_v34, 0.0 }
 0x225   : > { %4120 = vst [vmem:[%s6638_s11 + $0xe0] sm:$0xff] %v4088_v50  ;;  %v4089_v54 = vmax.f32 %v4057_v29, 0.0 }
 0x226   : > { %4123 = vst [vmem:[%s6638_s11 + $0xf8] sm:$0xff] %v4091_v52 }
 0x227   : > { %4121 = vst [vmem:[%s6638_s11 + $0xe8] sm:$0xff] %v4089_v54 }
 0x228 PF: > { %s13_s12 = sadd.s32 1, %s5496_s12  }
 0x229   : > { %p10_p4 = scmp.ge.s32.totalorder %s13_s12, 4  }
 0x22b   :  { %12 = sbr.rel (!%p10_p4) target bundleno = 1 (0x1), region = 70 }

// kernel: inception_forward.6
= control target key start
LH: loop header
LB: loop body
LE: loop exit
PB: predicated region body
PF: predicated region fallthrough
CT: control target
= control target key end

     0   :  { %s13674_s12 = smov 0   ;;  %s16303_s0 = inlined_call_operand.vmem [shape: bf16[2,20,20,128], index: 0, kind: input, shape index: {}]   ;;  %s16304_s1 = inlined_call_operand.vmem [shape: bf16[25,128,128], index: 1, kind: input, shape index: {}]   ;;  %s16305_s2 = inlined_call_operand.vmem [shape: f32[1,128], index: 2, kind: input, shape index: {}]   ;;  %s16306_s3 = inlined_call_operand.vmem [shape: f32[2,256,128], index: 3, kind: output, shape index: {}]  }
   0x1 LB: > { %s10035_s13 = sadd.s32 4294967295, %s13652_s12   ;;  %p10039_p0 = scmp.ge.s32.totalorder %s13652_s12, 1  ;;  %s13652_s12 = sphi %s13674_s12, %s13_s12  }
   0x2   : > { %p137_p1 = scmp.lt.s32.totalorder %s13652_s12, 3 }
   0x4   : > { %p138_p2 = pnand %p10039_p0, %p137_p1 }
   0x6   : > { %141 = sbr.rel (%p138_p2) target bundleno = 1117 (0x45d), region = 32 }
   0xd   : > { %v13364_v0 = vld [vmem:[%s16304_s1] sm:$0xff]   ;;  %v13366_v2 = vld [vmem:[%s16304_s1 + $0x8] sm:$0xff]   ;;  %p161_p3 = scmp.lt.s32.totalorder %s10035_s13, 1  ;;  %v13368_v4 = vld [vmem:[%s16304_s1 + $0x10] sm:$0xff]   ;;  %vm1470_vm0 = vcmask 1042432   ;;  %vm1471_vm1 = vcmask 1046532  }
   0xe   : > { %v13365_v1 = vld [vmem:[%s16304_s1 + $0x300] sm:$0xff]   ;;  %11371 = vmatprep.subr.bf16.mxu1 %v13364_v0  ;;  %v13367_v3 = vld [vmem:[%s16304_s1 + $0x308] sm:$0xff]   ;;  %v13369_v5 = vld [vmem:[%s16304_s1 + $0x310] sm:$0xff]   ;;  %v16600_v17 = vmov 0  ;;  %vm1971_vm3 = vsmask.f32 2304 }
   0xf   : > { %11947 = vmatprep.subr.bf16.mxu0 %v13365_v1  ;;  %11372 = vmatpush3.bf16.msra.mxu1 %v13364_v0  ;;  %s16983_s13 = smov (!%p161_p3, %s10035_s13), 1  ;;  %v13370_v6 = vld [vmem:[%s16304_s1 + $0x18] sm:$0xff]   ;;  %v13372_v8 = vld [vmem:[%s16304_s1 + $0x20] sm:$0xff]   ;;  %v13374_v10 = vld [vmem:[%s16304_s1 + $0x28] sm:$0xff]   ;;  %vm1972_vm4 = vsmask.f32 6416 }
  0x10   : > { %11948 = vmatpush3.bf16.msra.mxu0 %v13365_v1  ;;  %11373 = vmatprep.subr.bf16.mxu1 %v13366_v2  ;;  %v13371_v7 = vld [vmem:[%s16304_s1 + $0x318] sm:$0xff]   ;;  %s13355_s30 = smul.u32 240, %s16983_s13  ;;  %v13373_v9 = vld [vmem:[%s16304_s1 + $0x320] sm:$0xff]   ;;  %v13375_v14 = vld [vmem:[%s16304_s1 + $0x328] sm:$0xff]   ;;  %vm681_vm6 = vsmask.f32 3328 }
  0x11   : > { %11949 = vmatprep.subr.bf16.mxu0 %v13367_v3  ;;  %vm13740_vm2 = vmor %vm1470_vm0, %vm1471_vm1  ;;  %v13376_v22 = vld [vmem:[%s16304_s1 + $0x30] sm:$0xff]   ;;  %v13378_v30 = vld [vmem:[%s16304_s1 + $0x38] sm:$0xff]   ;;  %vm682_vm7 = vsmask.f32 7440  ;;  %vm2600_vm9 = vcmask 1041408   ;;  %vm2601_vm10 = vcmask 1045508  }
  0x12   : > { %s13718_s10 = scalar_lea.vmem %s16303_s0, %s13355_s30  ;;  %v16601_v17 = vsel %vm13740_vm2, 4294967295, %v16600_v17  ;;  %v13377_v28 = vld [vmem:[%s16304_s1 + $0x330] sm:$0xff]   ;;  %v13379_v36 = vld [vmem:[%s16304_s1 + $0x338] sm:$0xff]   ;;  %v13382_v49 = vld [vmem:[%s16304_s1 + $0x40] sm:$0xff]   ;;  %s10770_s24 = sshll.u32 %s16983_s13, 8 }
  0x13   : > { %11374 = vmatpush3.bf16.msra.mxu1 %v13366_v2  ;;  %v13724_v11 = vld [vmem:[%s13718_s10] sm:$0xf]  ;;  %v13727_v12 = vld [vmem:[%s13718_s10 + $0x4] sm:$0xf]  ;;  %v13730_v13 = vld [vmem:[%s13718_s10 + $0x18] sm:$0xf] }
  0x14   : > { %11950 = vmatpush3.bf16.msra.mxu0 %v13367_v3  ;;  %11375 = vmatprep.subr.bf16.mxu1 %v13368_v4  ;;  %16598 = vst [vmem:[#allocation3_spill] sm:$0xff] %v13724_v11  ;;  %16599 = vst [vmem:[#allocation4_spill] sm:$0xff] %v13727_v12  ;;  %v10043_v15 = vcombine.low %v13724_v11, %v13727_v12  ;;  %v13738_v16 = vld [vmem:[%s13718_s10 + $0x1c] sm:$0xf]  ;;  %v13745_v18 = vld [vmem:[%s13718_s10 + $0x20] sm:$0x3] }
  0x15   : > { %11951 = vmatprep.subr.bf16.mxu0 %v13369_v5  ;;  %16602 = vst [vmem:[#allocation5_spill] sm:$0xff] %v16601_v17  ;;  %v10109_v19 = vrot.slane %v13730_v13, 9  ;;  %v1489_v20 = vrot.slane %v13738_v16, 5  ;;  %v13750_v21 = vld [vmem:[%s13718_s10 + $0xc] sm:$0xf]  ;;  %v1492_v23 = vrot.slane %v13745_v18, 5  ;;  %vm14023_vm5 = vmor %vm1971_vm3, %vm1972_vm4 }
  0x16   : > { %16603 = vst [vmem:[#allocation6_spill] sm:$0xff] %v13750_v21  ;;  %11387 = vmatprep.mubr.bf16.mxu1 %v10043_v15  ;;  %v16309_v24 = vshrl.u32 %v13750_v21, 16  ;;  %v16308_v27 = vshll.u32 %v13750_v21, 16  ;;  %v13764_v29 = vld [vmem:[%s13718_s10 + $0x24] sm:$0xf]  ;;  %v13397_v48 = vld [vmem:[%s16304_s1 + $0x58] sm:$0xff]   ;;  %vm14318_vm8 = vmor %vm681_vm6, %vm682_vm7 }
  0x17   : > { %11376 = vmatpush3.bf16.msra.mxu1 %v13368_v4  ;;  %v1490_v25 = vsel %vm13740_vm2, %v10109_v19, %v1489_v20  ;;  %v1491_v26 = vrot.slane %v1489_v20, 4  ;;  %v13774_v34 = vld [vmem:[%s13718_s10 + $0x10] sm:$0xf]  ;;  %v13777_v35 = vld [vmem:[%s13718_s10 + $0x28] sm:$0xf]  ;;  %v10110_v44 = vrot.slane %v13764_v29, 9  ;;  %vm14715_vm11 = vmor %vm2600_vm9, %vm2601_vm10 }
  0x18   : > { %11952 = vmatpush3.bf16.msra.mxu0 %v13369_v5  ;;  %11377 = vmatprep.subr.bf16.mxu1 %v13370_v6  ;;  %v13788_v41 = vld [vmem:[%s13718_s10 + $0x2c] sm:$0x3]  ;;  %v13792_v42 = vrot.slane %v16309_v24, 4  ;;  %v13796_v43 = vrot.slane %v16308_v27, 5  ;;  %v1496_v45 = vrot.slane %v13777_v35, 5  ;;  %v16307_v46 = vshrl.u32 %v13774_v34, 16 }
  0x19   : > { %11953 = vmatprep.subr.bf16.mxu0 %v13371_v7  ;;  %v1493_v33 = vsel %vm13740_vm2, %v1491_v26, %v1492_v23  ;;  %v1499_v47 = vrot.slane %v13788_v41, 5  ;;  %v13808_v51 = vld [vmem:[%s13718_s10 + $0x30] sm:$0xf]  ;;  %v13383_v52 = vld [vmem:[%s16304_s1 + $0x340] sm:$0xff]   ;;  %v13814_v53 = vld [vmem:[%s13718_s10 + $0x34] sm:$0xf]  ;;  %v13828_v60 = vcombine.low %v13750_v21, %v13774_v34 }
  0x1a   : > { %v13783_v38 = vcombine.low %v1490_v25, %v1493_v33  ;;  %v1498_v50 = vrot.slane %v1496_v45, 4  ;;  %v13817_v54 = vld [vmem:[%s13718_s10 + $0x38] sm:$0x3]  ;;  %v10111_v55 = vrot.slane %v13808_v51, 9  ;;  %v1497_v56 = vsel %vm13740_vm2, %v10110_v44, %v1496_v45  ;;  %v13831_v61 = vld [vmem:[%s13718_s10 + $0x3c] sm:$0xf] }
  0x1b   : > { %11378 = vmatpush3.bf16.msra.mxu1 %v13370_v6  ;;  %v1503_v58 = vrot.slane %v13814_v53, 5  ;;  %v1506_v59 = vrot.slane %v13817_v54, 5  ;;  %16605 = vst [vmem:[#allocation8_spill] sm:$0xff] %v13828_v60  ;;  %v13834_v62 = vld [vmem:[%s13718_s10 + $0x40] sm:$0xf]  ;;  %v13841_v0 = vrot.slane %v16307_v46, 4 }
  0x1c   : > { %11954 = vmatpush3.bf16.msra.mxu0 %v13371_v7  ;;  %11379 = vmatprep.subr.bf16.mxu1 %v13372_v8  ;;  %16604 = vst [vmem:[#allocation7_spill] sm:$0xff] %v13783_v38  ;;  %v1500_v57 = vsel %vm13740_vm2, %v1498_v50, %v1499_v47  ;;  %v13837_v63 = vld [vmem:[%s13718_s10 + $0x44] sm:$0x3]  ;;  %v1510_v3 = vrot.slane %v13834_v62, 5  ;;  %v13384_v6 = vld [vmem:[%s16304_s1 + $0x348] sm:$0xff]   ;;  %v10112_v7 = vrot.slane %v13831_v61, 9 }
  0x1d   : > { %11955 = vmatprep.subr.bf16.mxu0 %v13373_v9  ;;  %11963 = vmatprep.mubr.bf16.mxu0 %v13783_v38  ;;  %16606 = vst [vmem:[#allocation9_spill] sm:$0xff] %v13837_v63  ;;  %v1504_v1 = vsel %vm13740_vm2, %v10111_v55, %v1503_v58  ;;  %v1505_v2 = vrot.slane %v1503_v58, 4  ;;  %v13847_v5 = vcombine.low %v1497_v56, %v1500_v57  ;;  %v13861_v15 = vld [vmem:[%s13718_s10 + $0x48] sm:$0xf]  ;;  %v13872_v23 = vld [vmem:[%s13718_s10 + $0x50] sm:$0x3] }
  0x1e   : > { %v13387_v20 = vld [vmem:[%s16304_s1 + $0x48] sm:$0xff]   ;;  %v10113_v25 = vrot.slane %v13861_v15, 9  ;;  %v13882_v33 = vld [vmem:[%s13718_s10 + $0x54] sm:$0xf]  ;;  %v13888_v44 = vld [vmem:[%s13718_s10 + $0x5c] sm:$0x3] }
  0x1f   : > { %11380 = vmatpush3.bf16.msra.mxu1 %v13372_v8  ;;  %16607 = vst [vmem:[#allocation10_spill] sm:$0xff] %v13847_v5  ;;  %v13855_v8 = vcombine.low %v13730_v13, %v13738_v16  ;;  %16610 = vst [vmem:[#allocation13_spill] sm:$0xff] %v13888_v44  ;;  %v10114_v50 = vrot.slane %v13882_v33, 9  ;;  %v13388_v56 = vld [vmem:[%s16304_s1 + $0x350] sm:$0xff]   ;;  %v1527_v58 = vrot.slane %v13888_v44, 5  ;;  %v16342_v21 = vshrl.u32 %v13814_v53, 16 }
  0x20   : > { %11956 = vmatpush3.bf16.msra.mxu0 %v13373_v9  ;;  %11381 = vmatprep.subr.bf16.mxu1 %v13374_v10  ;;  %v1507_v9 = vsel %vm13740_vm2, %v1505_v2, %v1506_v59  ;;  %v16350_v17 = vshrl.u32 %v13834_v62, 16 }
  0x21   : > { %11957 = vmatprep.subr.bf16.mxu0 %v13375_v14  ;;  %16608 = vst [vmem:[#allocation11_spill] sm:$0xff] %v13855_v8  ;;  %v13863_v19 = vcombine.low %v1504_v1, %v1507_v9  ;;  %v13913_v1 = vcombine.low %v13808_v51, %v13814_v53  ;;  %v16312_v9 = vshrl.u32 %v13730_v13, 16 }
  0x23   : > { %11382 = vmatpush3.bf16.msra.mxu1 %v13374_v10  ;;  %v1512_v10 = vrot.slane %v1510_v3, 4  ;;  %16609 = vst [vmem:[#allocation12_spill] sm:$0xff] %v13863_v19  ;;  %16612 = vst [vmem:[#allocation15_spill] sm:$0xff] %v13913_v1 }
  0x24   : > { %11958 = vmatpush3.bf16.msra.mxu0 %v13375_v14  ;;  %11383 = vmatprep.subr.bf16.mxu1 %v13376_v22  ;;  %v1513_v14 = vrot.slane %v13837_v63, 5 }
  0x25   : > { %11959 = vmatprep.subr.bf16.mxu0 %v13377_v28 }
  0x26   : > { %v1514_v45 = vsel %vm13740_vm2, %v1512_v10, %v1513_v14  ;;  %v13389_v14 = vld [vmem:[%s16304_s1 + $0x358] sm:$0xff]  }
  0x27   : > { %11384 = vmatpush3.bf16.msra.mxu1 %v13376_v22  ;;  %v13869_v22 = vld [vmem:[%s13718_s10 + $0x4c] sm:$0xf] }
  0x28   : > { %11960 = vmatpush3.bf16.msra.mxu0 %v13377_v28  ;;  %11385 = vmatprep.subr.bf16.mxu1 %v13378_v30  ;;  %v1517_v26 = vrot.slane %v13869_v22, 5  ;;  %v1520_v28 = vrot.slane %v13872_v23, 5  ;;  %v13948_v27 = vcombine.low %v13861_v15, %v13869_v22 }
  0x29   : > { %11961 = vmatprep.subr.bf16.mxu0 %v13379_v36 }
  0x2a   : > { %v1519_v47 = vrot.slane %v1517_v26, 4  ;;  %v1518_v57 = vsel %vm13740_vm2, %v10113_v25, %v1517_v26  ;;  %v13929_v26 = vld [vmem:[%s13718_s10 + $0x64] sm:$0xf]  ;;  %16618 = vst [vmem:[#allocation21_spill] sm:$0xff] %v13948_v27 }
  0x2b   : > { %11386 = vmatpush3.bf16.msra.mxu1 %v13378_v30  ;;  %v1511_v30 = vsel %vm13740_vm2, %v10112_v7, %v1510_v3  ;;  %v13918_v7 = vld [vmem:[%s13718_s10 + $0x60] sm:$0xf]  ;;  %16614 = vst [vmem:[#allocation17_spill] sm:$0xff] %v13929_v26  ;;  %v1531_v46 = vrot.slane %v13929_v26, 5 }
  0x2c   : > { %11962 = vmatpush3.bf16.msra.mxu0 %v13379_v36  ;;  %11419 = vmatprep.subr.bf16.mxu1 %v13382_v49  ;;  %v13885_v36 = vld [vmem:[%s13718_s10 + $0x58] sm:$0xf]  ;;  %v1521_v2 = vsel %vm13740_vm2, %v1519_v47, %v1520_v28  ;;  %v13921_v10 = vcombine.low %v1511_v30, %v1514_v45  ;;  %v13932_v28 = vld [vmem:[%s13718_s10 + $0x68] sm:$0x3]  ;;  %v10115_v47 = vrot.slane %v13918_v7, 9 }
  0x2d   : > { %11995 = vmatprep.subr.bf16.mxu0 %v13383_v52  ;;  %v1524_v55 = vrot.slane %v13885_v36, 5  ;;  %16615 = vst [vmem:[#allocation18_spill] sm:$0xff] %v13932_v28  ;;  %v1533_v40 = vrot.slane %v1531_v46, 4 }
  0x2e   : > { %11388 = vmatmul.mubr.bf16.vlgmr.msra.gmra.mrb[0].mxu1 %v13828_v60  ;;  %16613 = vst [vmem:[#allocation16_spill] sm:$0xff] %v13921_v10  ;;  %v1532_v24 = vsel %vm13740_vm2, %v10115_v47, %v1531_v46  ;;  %v16323_v60 = vshrl.u32 %v13764_v29, 16 }
  0x2f   : > { %11964 = vmatmul.mubr.bf16.vlgmr.msra.gmra.mrb[0].mxu0 %v13847_v5  ;;  %11420 = vmatpush3.bf16.msra.mxu1 %v13382_v49  ;;  %v13392_v49 = vld [vmem:[%s16304_s1 + $0x50] sm:$0xff]   ;;  %v1526_v3 = vrot.slane %v1524_v55, 4  ;;  %v1525_v25 = vsel %vm13740_vm2, %v10114_v50, %v1524_v55  ;;  %v1534_v50 = vrot.slane %v13932_v28, 5  ;;  %v13944_v55 = vcombine.low %v13831_v61, %v13834_v62 }
  0x30   : > { %11996 = vmatpush3.bf16.msra.mxu0 %v13383_v52  ;;  %11391 = vmatprep.mubr.bf16.mxu1 %v13855_v8  ;;  %v13901_v52 = vcombine.low %v13764_v29, %v13777_v35 }
  0x31   : > { %11997 = vmatprep.subr.bf16.mxu0 %v13384_v6  ;;  %11967 = vmatprep.mubr.bf16.mxu0 %v13863_v19  ;;  %v1528_v45 = vsel %vm13740_vm2, %v1526_v3, %v1527_v58  ;;  %16617 = vst [vmem:[#allocation20_spill] sm:$0xff] %v13944_v55  ;;  %v13958_v58 = vld [vmem:[%s13718_s10 + $0x70] sm:$0xf]  ;;  %v13965_v3 = vcombine.low %v13918_v7, %v13929_v26 }
  0x32   : > { %16611 = vst [vmem:[#allocation14_spill] sm:$0xff] %v13901_v52  ;;  %11421 = vmatprep.subr.bf16.mxu1 %v13387_v20  ;;  %v1538_v59 = vrot.slane %v13958_v58, 5  ;;  %v13977_v37 = vcombine.low %v1525_v25, %v1528_v45  ;;  %v1535_v47 = vsel %vm13740_vm2, %v1533_v40, %v1534_v50  ;;  %v16313_v25 = vshrl.u32 %v13738_v16, 16  ;;  %v13393_v45 = vld [vmem:[%s16304_s1 + $0x360] sm:$0xff]  }
  0x33   : > { %11422 = vmatpush3.bf16.msra.mxu1 %v13387_v20  ;;  %v13936_v20 = vcombine.low %v1518_v57, %v1521_v2  ;;  %v13955_v57 = vld [vmem:[%s13718_s10 + $0x6c] sm:$0xf]  ;;  %v13961_v2 = vld [vmem:[%s13718_s10 + $0x74] sm:$0x3]  ;;  %16620 = vst [vmem:[#allocation23_spill] sm:$0xff] %v13965_v3  ;;  %v13994_v31 = vcombine.low %v1532_v24, %v1535_v47  ;;  %v13402_v24 = vld [vmem:[%s16304_s1 + $0x60] sm:$0xff]  }
  0x34   : > { %11998 = vmatpush3.bf16.msra.mxu0 %v13384_v6  ;;  %11423 = vmatprep.subr.bf16.mxu1 %v13392_v49  ;;  %v13952_v6 = vcombine.low %v13882_v33, %v13885_v36  ;;  %v10116_v39 = vrot.slane %v13955_v57, 9  ;;  %16621 = vst [vmem:[#allocation24_spill] sm:$0xff] %v13977_v37  ;;  %v1541_v32 = vrot.slane %v13961_v2, 5  ;;  %v13983_v46 = vcombine.low %v13955_v57, %v13958_v58 }
  0x35   : > { %16616 = vst [vmem:[#allocation19_spill] sm:$0xff] %v13936_v20  ;;  %11999 = vmatprep.subr.bf16.mxu0 %v13388_v56  ;;  %v1540_v30 = vrot.slane %v1538_v59, 4  ;;  %16623 = vst [vmem:[#allocation26_spill] sm:$0xff] %v13994_v31  ;;  %v2008_v8 = vrot.slane %v16313_v25, 5  ;;  %v16626_v47 = vshll.u32 %v13738_v16, 16 }
  0x36   : > { %16619 = vst [vmem:[#allocation22_spill] sm:$0xff] %v13952_v6  ;;  %11392 = vmatmul.mubr.bf16.gmra.mrb[4].mxu1 %v13901_v52  ;;  %16622 = vst [vmem:[#allocation25_spill] sm:$0xff] %v13983_v46  ;;  %v1539_v4 = vsel %vm13740_vm2, %v10116_v39, %v1538_v59  ;;  %v2004_v39 = vrot.slane %v16312_v9, 5  ;;  %v16624_v59 = vshll.u32 %v13730_v13, 16  ;;  %v14043_v52 = vld [vmem:[%s13718_s10 + $0x7c] sm:$0xf] }
  0x37   : > { %11968 = vmatmul.mubr.bf16.gmra.mrb[4].mxu0 %v13921_v10  ;;  %11395 = vmatprep.mubr.bf16.mxu1 %v13913_v1  ;;  %v1542_v40 = vsel %vm13740_vm2, %v1540_v30, %v1541_v32  ;;  %v2013_v32 = vshrl.u32 %v13745_v18, 16  ;;  %v16627_v30 = vshll.u32 %v13745_v18, 16 }
  0x38   : > { %12000 = vmatpush3.bf16.msra.mxu0 %v13388_v56  ;;  %11971 = vmatprep.mubr.bf16.mxu0 %v13936_v20  ;;  %v2005_v50 = vrot.slane %v16624_v59, 6  ;;  %v2009_v56 = vrot.slane %v16626_v47, 6  ;;  %v13394_v59 = vld [vmem:[%s16304_s1 + $0x368] sm:$0xff]   ;;  %v16628_v47 = vmov 0 }
  0x39   : > { %12001 = vmatprep.subr.bf16.mxu0 %v13389_v14  ;;  %11424 = vmatpush3.bf16.msra.mxu1 %v13392_v49  ;;  %v14008_v49 = vcombine.low %v1539_v4, %v1542_v40  ;;  %v2016_v9 = vrot.slane %v16627_v30, 6  ;;  %v16629_v47 = vsel %vm14023_vm5, 4294967295, %v16628_v47  ;;  %v2015_v30 = vrot.slane %v2013_v32, 5  ;;  %v13406_v40 = vld [vmem:[%s16304_s1 + $0x68] sm:$0xff]  }
  0x3a   : > { %11425 = vmatprep.subr.bf16.mxu1 %v13397_v48  ;;  %v2006_v25 = vor.u32 %v2005_v50, %v2004_v39  ;;  %16630 = vst [vmem:[#allocation28_spill] sm:$0xff] %v16629_v47  ;;  %v2028_v39 = vshrl.u32 %v13788_v41, 16  ;;  %v14030_v50 = vld [vmem:[%s13718_s10 + $0x78] sm:$0xf]  ;;  %v2019_v4 = vrot.slane %v16323_v60, 5  ;;  %v16632_v32 = vshll.u32 %v13777_v35, 16 }
  0x3b   : > { %16625 = vst [vmem:[#allocation27_spill] sm:$0xff] %v14008_v49  ;;  %v2017_v20 = vor.u32 %v2016_v9, %v2015_v30  ;;  %v16633_v60 = vshrl.u32 %v13777_v35, 16  ;;  %v14059_v5 = vcombine.low %v14030_v50, %v14043_v52  ;;  %v14062_v9 = vld [vmem:[%s13718_s10 + $0x84] sm:$0xf] }
  0x3c   : > { %12002 = vmatpush3.bf16.msra.mxu0 %v13389_v14  ;;  %v2010_v14 = vor.u32 %v2009_v56, %v2008_v8  ;;  %v16631_v8 = vshll.u32 %v13764_v29, 16  ;;  %v2024_v1 = vrot.slane %v16632_v32, 6 }
  0x3d   : > { %12003 = vmatprep.subr.bf16.mxu0 %v13393_v45  ;;  %11426 = vmatpush3.bf16.msra.mxu1 %v13397_v48  ;;  %v2007_v48 = vrot.slane %v2006_v25, 4  ;;  %v13398_v25 = vld [vmem:[%s16304_s1 + $0x370] sm:$0xff]   ;;  %v2023_v10 = vrot.slane %v16633_v60, 5  ;;  %16635 = vst [vmem:[#allocation29_spill] sm:$0xff] %v14059_v5 }
  0x3e   : > { %11396 = vmatmul.mubr.bf16.gmra.mrb[8].mxu1 %v13944_v55  ;;  %11427 = vmatprep.subr.bf16.mxu1 %v13402_v24  ;;  %v2020_v56 = vrot.slane %v16631_v8, 6  ;;  %v2012_v55 = vrot.slane %v2010_v14, 4  ;;  %v2030_v8 = vrot.slane %v2028_v39, 5  ;;  %v13410_v60 = vld [vmem:[%s16304_s1 + $0x70] sm:$0xff]  }
  0x3f   : > { %11972 = vmatmul.mubr.bf16.gmra.mrb[8].mxu0 %v13977_v37  ;;  %11399 = vmatprep.mubr.bf16.mxu1 %v13948_v27  ;;  %v2011_v32 = vsel %vm14023_vm5, %v2007_v48, %v2010_v14  ;;  %v16634_v27 = vshll.u32 %v13788_v41, 16  ;;  %v2025_v14 = vor.u32 %v2024_v1, %v2023_v10  ;;  %v16343_v1 = vshll.u32 %v13817_v54, 16 }
  0x40   : > { %12004 = vmatpush3.bf16.msra.mxu0 %v13393_v45  ;;  %11975 = vmatprep.mubr.bf16.mxu0 %v13994_v31  ;;  %v2021_v37 = vor.u32 %v2020_v56, %v2019_v4  ;;  %v2018_v45 = vsel %vm14023_vm5, %v2012_v55, %v2017_v20  ;;  %v16344_v4 = vshrl.u32 %v13808_v51, 16  ;;  %v16340_v56 = vshll.u32 %v13814_v53, 16  ;;  %v14075_v31 = vld [vmem:[%s13718_s10 + $0x88] sm:$0xf] }
  0x41   : > { %v2031_v19 = vrot.slane %v16634_v27, 6  ;;  %12005 = vmatprep.subr.bf16.mxu0 %v13394_v59  ;;  %11428 = vmatpush3.bf16.msra.mxu1 %v13402_v24  ;;  %v16341_v27 = vshll.u32 %v13808_v51, 16  ;;  %v14071_v30 = vcombine.low %v2011_v32, %v2018_v45  ;;  %v2027_v38 = vrot.slane %v2025_v14, 4 }
  0x42   : > { %v2022_v39 = vrot.slane %v2021_v37, 4  ;;  %11429 = vmatprep.subr.bf16.mxu1 %v13406_v40  ;;  %v2034_v10 = vrot.slane %v16344_v4, 5  ;;  %v13399_v37 = vld [vmem:[%s16304_s1 + $0x378] sm:$0xff]   ;;  %v2039_v55 = vrot.slane %v16340_v56, 6  ;;  %v2043_v24 = vshrl.u32 %v13817_v54, 16 }
  0x43   : > { %16636 = vst [vmem:[#allocation30_spill] sm:$0xff] %v14071_v30  ;;  %v2032_v48 = vor.u32 %v2031_v19, %v2030_v8  ;;  %v2035_v20 = vrot.slane %v16341_v27, 6  ;;  %v13414_v8 = vld [vmem:[%s16304_s1 + $0x78] sm:$0xff]   ;;  %v2038_v32 = vrot.slane %v16342_v21, 5  ;;  %v2046_v45 = vrot.slane %v16343_v1, 6 }
  0x44   : > { %12006 = vmatpush3.bf16.msra.mxu0 %v13394_v59  ;;  %v2026_v19 = vsel %vm14023_vm5, %v2022_v39, %v2025_v14  ;;  %v14102_v14 = vcombine.low %v14062_v9, %v14075_v31  ;;  %v14105_v39 = vld [vmem:[%s13718_s10 + $0x90] sm:$0xf]  ;;  %v14108_v56 = vld [vmem:[%s13718_s10 + $0x94] sm:$0xf]  ;;  %v16347_v21 = vshrl.u32 %v13831_v61, 16  ;;  %v16351_v4 = vshll.u32 %v13834_v62, 16 }
  0x45   : > { %12007 = vmatprep.subr.bf16.mxu0 %v13398_v25  ;;  %v2033_v59 = vsel %vm14023_vm5, %v2027_v38, %v2032_v48  ;;  %11430 = vmatpush3.bf16.msra.mxu1 %v13406_v40  ;;  %v2036_v38 = vor.u32 %v2035_v20, %v2034_v10  ;;  %v2045_v48 = vrot.slane %v2043_v24, 5  ;;  %v2040_v1 = vor.u32 %v2039_v55, %v2038_v32  ;;  %v13403_v55 = vld [vmem:[%s16304_s1 + $0x380] sm:$0xff]  }
  0x46   : > { %16637 = vst [vmem:[#allocation31_spill] sm:$0xff] %v14102_v14  ;;  %11400 = vmatmul.mubr.bf16.gmra.mrb[12].mxu1 %v13952_v6  ;;  %v14111_v27 = vcombine.low %v2026_v19, %v2033_v59  ;;  %11431 = vmatprep.subr.bf16.mxu1 %v13410_v60  ;;  %v16352_v40 = vshll.u32 %v13831_v61, 16  ;;  %v16353_v20 = vshll.u32 %v13837_v63, 16  ;;  %v2049_v24 = vrot.slane %v16347_v21, 5 }
  0x47   : > { %11976 = vmatmul.mubr.bf16.gmra.mrb[12].mxu0 %v14008_v49  ;;  %11403 = vmatprep.mubr.bf16.mxu1 %v13965_v3  ;;  %v2037_v19 = vrot.slane %v2036_v38, 4  ;;  %v2047_v10 = vor.u32 %v2046_v45, %v2045_v48  ;;  %v2042_v59 = vrot.slane %v2040_v1, 4  ;;  %v2053_v32 = vrot.slane %v16350_v17, 5  ;;  %v14144_v17 = vld [vmem:[%s16304_s1 + $0x80] sm:$0xff]   ;;  %v13407_v49 = vld [vmem:[%s16304_s1 + $0x388] sm:$0xff]  }
  0x48   : > { %16638 = vst [vmem:[#allocation32_spill] sm:$0xff] %v14111_v27  ;;  %12008 = vmatpush3.bf16.msra.mxu0 %v13398_v25  ;;  %12011 = vmatprep.mubr.bf16.mxu0 %v14071_v30  ;;  %v2050_v25 = vrot.slane %v16352_v40, 6  ;;  %v2054_v45 = vrot.slane %v16351_v4, 6  ;;  %v2058_v48 = vshrl.u32 %v13837_v63, 16  ;;  %v2061_v21 = vrot.slane %v16353_v20, 6 }
  0x49   : > { %12009 = vmatprep.subr.bf16.mxu0 %v13399_v37  ;;  %11432 = vmatpush3.bf16.msra.mxu1 %v13410_v60  ;;  %v2041_v38 = vsel %vm14023_vm5, %v2037_v19, %v2040_v1  ;;  %v14139_v30 = vcombine.low %v14105_v39, %v14108_v56  ;;  %v2048_v60 = vsel %vm14023_vm5, %v2042_v59, %v2047_v10  ;;  %v16365_v19 = vshrl.u32 %v13861_v15, 16  ;;  %v14150_v40 = vld [vmem:[%s13718_s10 + $0x9c] sm:$0xf]  ;;  %v14153_v20 = vld [vmem:[%s13718_s10 + $0xa0] sm:$0xf] }
  0x4a   : > { %11433 = vmatprep.subr.bf16.mxu1 %v13414_v8  ;;  %v2051_v4 = vor.u32 %v2050_v25, %v2049_v24  ;;  %v2055_v1 = vor.u32 %v2054_v45, %v2053_v32  ;;  %v14155_v3 = vcombine.low %v2041_v38, %v2048_v60  ;;  %v2060_v6 = vrot.slane %v2058_v48, 5 }
  0x4b   : > { %16639 = vst [vmem:[#allocation33_spill] sm:$0xff] %v14139_v30  ;;  %v16362_v63 = vshll.u32 %v13861_v15, 16  ;;  %v16361_v10 = vshll.u32 %v13869_v22, 16  ;;  %v16363_v25 = vshrl.u32 %v13869_v22, 16  ;;  %v16364_v32 = vshll.u32 %v13872_v23, 16 }
  0x4c   : > { %12010 = vmatpush3.bf16.msra.mxu0 %v13399_v37  ;;  %16640 = vst [vmem:[#allocation34_spill] sm:$0xff] %v14155_v3  ;;  %v2052_v24 = vrot.slane %v2051_v4, 4  ;;  %v2057_v59 = vrot.slane %v2055_v1, 4  ;;  %v2062_v37 = vor.u32 %v2061_v21, %v2060_v6  ;;  %v2064_v45 = vrot.slane %v16365_v19, 5 }
  0x4d   : > { %12043 = vmatprep.subr.bf16.mxu0 %v13403_v55  ;;  %11434 = vmatpush3.bf16.msra.mxu1 %v13414_v8  ;;  %v2065_v38 = vrot.slane %v16362_v63, 6  ;;  %v2069_v48 = vrot.slane %v16361_v10, 6  ;;  %v2068_v21 = vrot.slane %v16363_v25, 5  ;;  %v2073_v6 = vshrl.u32 %v13872_v23, 16  ;;  %v14193_v25 = vld [vmem:[%s13718_s10 + $0xa8] sm:$0xf] }
  0x4e   : > { %11404 = vmatmul.mubr.bf16.gmra.mrb[16].mxu1 %v13983_v46  ;;  %11467 = vmatprep.subr.bf16.mxu1 %v14144_v17  ;;  %v2056_v4 = vsel %vm14023_vm5, %v2052_v24, %v2055_v1  ;;  %v2076_v8 = vrot.slane %v16364_v32, 6  ;;  %v2063_v60 = vsel %vm14023_vm5, %v2057_v59, %v2062_v37  ;;  %v14186_v63 = vcombine.low %v14150_v40, %v14153_v20  ;;  %v13411_v24 = vld [vmem:[%s16304_s1 + $0x390] sm:$0xff]   ;;  %v14199_v37 = vld [vmem:[%s13718_s10 + $0xac] sm:$0xf] }
  0x4f   : > { %12012 = vmatmul.mubr.bf16.vlgmr.msra.gmra.mrb[0].mxu0 %v14111_v27  ;;  %11407 = vmatprep.mubr.bf16.mxu1 %v14059_v5  ;;  %v2066_v10 = vor.u32 %v2065_v38, %v2064_v45  ;;  %v14195_v32 = vcombine.low %v2056_v4, %v2063_v60  ;;  %v2075_v19 = vrot.slane %v2073_v6, 5  ;;  %v16372_v59 = vshll.u32 %v13882_v33, 16 }
  0x50   : > { %12044 = vmatpush3.bf16.msra.mxu0 %v13403_v55  ;;  %12015 = vmatprep.mubr.bf16.mxu0 %v14155_v3  ;;  %16641 = vst [vmem:[#allocation35_spill] sm:$0xff] %v14186_v63  ;;  %v2070_v55 = vor.u32 %v2069_v48, %v2068_v21  ;;  %v16374_v38 = vshll.u32 %v13885_v36, 16  ;;  %v16373_v1 = vshrl.u32 %v13885_v36, 16  ;;  %v16643_v4 = vshrl.u32 %v13882_v33, 16 }
  0x51   : > { %16642 = vst [vmem:[#allocation36_spill] sm:$0xff] %v14195_v32  ;;  %12045 = vmatprep.subr.bf16.mxu0 %v13407_v49  ;;  %v2067_v45 = vrot.slane %v2066_v10, 4  ;;  %v2077_v5 = vor.u32 %v2076_v8, %v2075_v19  ;;  %v2080_v48 = vrot.slane %v16372_v59, 6  ;;  %v2088_v3 = vshrl.u32 %v13888_v44, 16 }
  0x52   : > { %v2072_v27 = vrot.slane %v2070_v55, 4  ;;  %v2079_v60 = vrot.slane %v16643_v4, 5  ;;  %v2083_v10 = vrot.slane %v16373_v1, 5  ;;  %v2084_v6 = vrot.slane %v16374_v38, 6 }
  0x53   : > { %v2071_v21 = vsel %vm14023_vm5, %v2067_v45, %v2070_v55  ;;  %v16644_v4 = vshll.u32 %v13888_v44, 16  ;;  %v14224_v55 = vld [vmem:[%s13718_s10 + $0xb4] sm:$0xf]  ;;  %v13415_v45 = vld [vmem:[%s16304_s1 + $0x398] sm:$0xff]   ;;  %v16383_v38 = vshll.u32 %v13918_v7, 16  ;;  %v16382_v44 = vshrl.u32 %v13929_v26, 16 }
  0x54   : > { %12046 = vmatpush3.bf16.msra.mxu0 %v13407_v49  ;;  %v2078_v19 = vsel %vm14023_vm5, %v2072_v27, %v2077_v5  ;;  %v2081_v8 = vor.u32 %v2080_v48, %v2079_v60  ;;  %v14221_v49 = vcombine.low %v14193_v25, %v14199_v37  ;;  %v2085_v5 = vor.u32 %v2084_v6, %v2083_v10  ;;  %v14234_v48 = vld [vmem:[%s13718_s10 + $0xb8] sm:$0xf] }
  0x55   : > { %v2091_v59 = vrot.slane %v16644_v4, 6  ;;  %12047 = vmatprep.subr.bf16.mxu0 %v13411_v24  ;;  %v14230_v1 = vcombine.low %v2071_v21, %v2078_v19  ;;  %v2090_v27 = vrot.slane %v2088_v3, 5  ;;  %v16384_v60 = vshrl.u32 %v13918_v7, 16 }
  0x56   : > { %16645 = vst [vmem:[#allocation37_spill] sm:$0xff] %v14221_v49  ;;  %11408 = vmatmul.mubr.bf16.gmra.mrb[20].mxu1 %v14102_v14  ;;  %v2082_v4 = vrot.slane %v2081_v8, 4  ;;  %v2087_v21 = vrot.slane %v2085_v5, 4  ;;  %v16390_v3 = vshll.u32 %v13932_v28, 16  ;;  %v2095_v8 = vrot.slane %v16383_v38, 6 }
  0x57   : > { %16646 = vst [vmem:[#allocation38_spill] sm:$0xff] %v14230_v1  ;;  %12016 = vmatmul.mubr.bf16.gmra.mrb[4].mxu0 %v14195_v32  ;;  %11411 = vmatprep.mubr.bf16.mxu1 %v14139_v30  ;;  %v2092_v10 = vor.u32 %v2091_v59, %v2090_v27  ;;  %v2094_v6 = vrot.slane %v16384_v60, 5  ;;  %v2098_v46 = vrot.slane %v16382_v44, 5  ;;  %v16647_v32 = vshll.u32 %v13929_v26, 16 }
  0x58   : > { %12019 = vmatprep.mubr.bf16.mxu0 %v14230_v1  ;;  %12048 = vmatpush3.bf16.msra.mxu0 %v13411_v24  ;;  %v2086_v19 = vsel %vm14023_vm5, %v2082_v4, %v2085_v5  ;;  %v13417_v24 = vld [vmem:[%s16304_s1 + $0x3a0] sm:$0xff]   ;;  %v2103_v27 = vshrl.u32 %v13932_v28, 16  ;;  %v2106_v5 = vrot.slane %v16390_v3, 6  ;;  %v14263_v4 = vcombine.low %v14224_v55, %v14234_v48 }
  0x59   : > { %v2099_v1 = vrot.slane %v16647_v32, 6  ;;  %12049 = vmatprep.subr.bf16.mxu0 %v13415_v45  ;;  %v2093_v59 = vsel %vm14023_vm5, %v2087_v21, %v2092_v10  ;;  %v2096_v32 = vor.u32 %v2095_v8, %v2094_v6  ;;  %v16396_v60 = vshrl.u32 %v13955_v57, 16 }
  0x5a   : > { %16648 = vst [vmem:[#allocation39_spill] sm:$0xff] %v14263_v4  ;;  %v14265_v44 = vcombine.low %v2086_v19, %v2093_v59  ;;  %v2105_v30 = vrot.slane %v2103_v27, 5  ;;  %v16395_v14 = vshll.u32 %v13955_v57, 16  ;;  %v16394_v21 = vshll.u32 %v13958_v58, 16 }
  0x5b   : > { %v2100_v38 = vor.u32 %v2099_v1, %v2098_v46  ;;  %v16393_v10 = vshrl.u32 %v13958_v58, 16  ;;  %v2097_v28 = vrot.slane %v2096_v32, 4  ;;  %v16399_v26 = vshll.u32 %v13961_v2, 16  ;;  %v13419_v46 = vld [vmem:[%s16304_s1 + $0x3a8] sm:$0xff]  }
  0x5c   : > { %16649 = vst [vmem:[#allocation40_spill] sm:$0xff] %v14265_v44  ;;  %12050 = vmatpush3.bf16.msra.mxu0 %v13415_v45  ;;  %v2109_v19 = vrot.slane %v16396_v60, 5  ;;  %v2107_v1 = vor.u32 %v2106_v5, %v2105_v30  ;;  %v2110_v6 = vrot.slane %v16395_v14, 6  ;;  %v2114_v8 = vrot.slane %v16394_v21, 6  ;;  %v14294_v21 = vld [vmem:[%s13718_s10 + $0x8] sm:$0x3] }
  0x5d   : > { %v2102_v3 = vrot.slane %v2100_v38, 4  ;;  %12051 = vmatprep.subr.bf16.mxu0 %v13417_v24  ;;  %v2113_v45 = vrot.slane %v16393_v10, 5  ;;  %v2101_v59 = vsel %vm14023_vm5, %v2097_v28, %v2100_v38  ;;  %v2118_v27 = vshrl.u32 %v13961_v2, 16  ;;  %16650 = vst [vmem:[#allocation41_spill] sm:$0xff] %v14294_v21 }
  0x5e   : > { %11412 = vmatmul.mubr.bf16.gmra.mrb[24].mxu1 %v14186_v63  ;;  %v2121_v30 = vrot.slane %v16399_v26, 6  ;;  %v2111_v32 = vor.u32 %v2110_v6, %v2109_v19  ;;  %v16652_v28 = vshrl.u32 %v13724_v11, 16  ;;  %v16402_v6 = vshll.u32 %v13727_v12, 16 }
  0x5f   : > { %12020 = vmatmul.mubr.bf16.gmra.mrb[8].mxu0 %v14265_v44  ;;  %11415 = vmatprep.mubr.bf16.mxu1 %v14221_v49  ;;  %v2108_v5 = vsel %vm14023_vm5, %v2102_v3, %v2107_v1  ;;  %v2115_v10 = vor.u32 %v2114_v8, %v2113_v45  ;;  %v2120_v60 = vrot.slane %v2118_v27, 5  ;;  %v16653_v44 = vshll.u32 %v13724_v11, 16  ;;  %v13421_v3 = vld [vmem:[%s16304_s1 + $0x3b0] sm:$0xff]   ;;  %v14309_v8 = vld [vmem:[%s13718_s10 + $0x80] sm:$0x3] }
  0x60   : > { %12052 = vmatpush3.bf16.msra.mxu0 %v13417_v24  ;;  %v14296_v14 = vcombine.low %v2101_v59, %v2108_v5  ;;  %v687_v38 = vrot.slane %v16652_v28, 4  ;;  %v2112_v19 = vrot.slane %v2111_v32, 4  ;;  %v16654_v24 = vshrl.u32 %v13727_v12, 16 }
  0x61   : > { %v690_v26 = vrot.slane %v16653_v44, 5  ;;  %12053 = vmatprep.subr.bf16.mxu0 %v13419_v46  ;;  %v2117_v1 = vrot.slane %v2115_v10, 4  ;;  %v2122_v59 = vor.u32 %v2121_v30, %v2120_v60  ;;  %v16403_v44 = vshll.u32 %v14294_v21, 16  ;;  %v14327_v60 = vld [vmem:[%s13718_s10 + $0x14] sm:$0x3] }
  0x62   : > { %16651 = vst [vmem:[#allocation42_spill] sm:$0xff] %v14296_v14  ;;  %v700_v45 = vrot.slane %v16654_v24, 4  ;;  %12023 = vmatprep.mubr.bf16.mxu0 %v14296_v14  ;;  %v16410_v5 = vshrl.u32 %v14030_v50, 16  ;;  %v2116_v28 = vsel %vm14023_vm5, %v2112_v19, %v2115_v10  ;;  %v16655_v32 = vmov 0 }
  0x63   : > { %v691_v27 = vor.u32 %v690_v26, %v687_v38  ;;  %v16656_v32 = vsel %vm14318_vm8, 4294967295, %v16655_v32  ;;  %v696_v24 = vrot.slane %v16402_v6, 5  ;;  %v2123_v30 = vsel %vm14023_vm5, %v2117_v1, %v2122_v59  ;;  %v13423_v6 = vld [vmem:[%s16304_s1 + $0x3b8] sm:$0xff]  }
  0x64   : > { %16657 = vst [vmem:[#allocation43_spill] sm:$0xff] %v16656_v32  ;;  %12054 = vmatpush3.bf16.msra.mxu0 %v13419_v46  ;;  %v706_v38 = vrot.slane %v16403_v44, 5  ;;  %v16412_v19 = vshrl.u32 %v14043_v52, 16  ;;  %v14338_v26 = vcombine.low %v2116_v28, %v2123_v30  ;;  %v16417_v14 = vshll.u32 %v14309_v8, 16 }
  0x65   : > { %v692_v10 = vrot.slane %v691_v27, 4  ;;  %12055 = vmatprep.subr.bf16.mxu0 %v13421_v3  ;;  %v701_v46 = vor.u32 %v700_v45, %v696_v24  ;;  %v2124_v1 = vrot.slane %v16410_v5, 5  ;;  %v16659_v27 = vshll.u32 %v14030_v50, 16  ;;  %v14359_v5 = vld [vmem:[%s13718_s10 + $0x8c] sm:$0x3] }
  0x66   : > { %11416 = vmatmul.mubr.bf16.gmra.mrb[28].mxu1 %v14263_v4  ;;  %16658 = vst [vmem:[#allocation44_spill] sm:$0xff] %v14338_v26  ;;  %v2128_v49 = vrot.slane %v16412_v19, 5  ;;  %v16660_v63 = vshll.u32 %v14043_v52, 16  ;;  %v2133_v28 = vshrl.u32 %v14309_v8, 16  ;;  %v2136_v30 = vrot.slane %v16417_v14, 6 }
  0x67   : > { %v697_v59 = vsel %vm14318_vm8, %v692_v10, %v696_v24  ;;  %v2125_v44 = vrot.slane %v16659_v27, 6  ;;  %12024 = vmatmul.mubr.bf16.gmra.mrb[12].mxu0 %v14338_v26  ;;  %v702_v45 = vrot.slane %v701_v46, 4  ;;  %v16661_v24 = vor.u32 %v13796_v43, %v13792_v42  ;;  %v14371_v42 = vld [vmem:[%s16304_s1 + $0x3c0] sm:$0xff]  }
  0x68   : > { %v2129_v4 = vrot.slane %v16660_v63, 6  ;;  %v16662_v19 = vshll.u32 %v13774_v34, 16  ;;  %v16420_v63 = vshll.u32 %v14327_v60, 16  ;;  %12056 = vmatpush3.bf16.msra.mxu0 %v13421_v3  ;;  %v2135_v26 = vrot.slane %v2133_v28, 5 }
  0x69   : > { %v716_v10 = vrot.slane %v16661_v24, 4  ;;  %v2126_v27 = vor.u32 %v2125_v44, %v2124_v1  ;;  %v707_v46 = vsel %vm14318_vm8, %v702_v45, %v706_v38  ;;  %v16425_v14 = vshrl.u32 %v14062_v9, 16  ;;  %12057 = vmatprep.subr.bf16.mxu0 %v13423_v6 }
  0x6a   : > { %v2130_v21 = vor.u32 %v2129_v4, %v2128_v49  ;;  %v720_v12 = vrot.slane %v16662_v19, 5  ;;  %v16424_v11 = vshll.u32 %v14062_v9, 16  ;;  %v10083_v43 = vcombine.low %v697_v59, %v707_v46  ;;  %v13418_v46 = vld [vmem:[%s16304_s1 + $0x88] sm:$0xff]  }
  0x6b   : > { %v2127_v49 = vrot.slane %v2126_v27, 4  ;;  %v2137_v44 = vor.u32 %v2136_v30, %v2135_v26  ;;  %v730_v19 = vrot.slane %v16420_v63, 5  ;;  %v16423_v1 = vshll.u32 %v14075_v31, 16 }
  0x6c   : > { %v2132_v4 = vrot.slane %v2130_v21, 4  ;;  %v721_v3 = vsel %vm14318_vm8, %v716_v10, %v720_v12  ;;  %v725_v38 = vor.u32 %v13841_v0, %v720_v12  ;;  %11435 = vmatprep.mubr.bf16.mxu1 %v10083_v43  ;;  %v16422_v28 = vshrl.u32 %v14075_v31, 16  ;;  %12058 = vmatpush3.bf16.msra.mxu0 %v13423_v6 }
  0x6d   : > { %v2131_v45 = vsel %vm14023_vm5, %v2127_v49, %v2130_v21  ;;  %v16421_v59 = vshll.u32 %v14359_v5, 16  ;;  %v2139_v24 = vrot.slane %v16425_v14, 5  ;;  %v2140_v26 = vrot.slane %v16424_v11, 6  ;;  %12091 = vmatprep.subr.bf16.mxu0 %v14371_v42 }
  0x6e   : > { %v2138_v12 = vsel %vm14023_vm5, %v2132_v4, %v2137_v44  ;;  %v726_v0 = vrot.slane %v725_v38, 4  ;;  %v2144_v30 = vrot.slane %v16423_v1, 6  ;;  %v2143_v10 = vrot.slane %v16422_v28, 5 }
  0x6f   : > { %v14392_v21 = vcombine.low %v2131_v45, %v2138_v12  ;;  %v2148_v27 = vshrl.u32 %v14359_v5, 16  ;;  %v2151_v6 = vrot.slane %v16421_v59, 6  ;;  %v2141_v49 = vor.u32 %v2140_v26, %v2139_v24  ;;  %v14409_v12 = vld [vmem:[%s13718_s10 + $0x98] sm:$0x3] }
  0x70   : > { %v731_v43 = vsel %vm14318_vm8, %v726_v0, %v730_v19  ;;  %v16664_v4 = vshrl.u32 %v13730_v13, 16  ;;  %v16665_v38 = vshll.u32 %v13730_v13, 16  ;;  %v2145_v59 = vor.u32 %v2144_v30, %v2143_v10 }
  0x71   : > { %16663 = vst [vmem:[#allocation45_spill] sm:$0xff] %v14392_v21  ;;  %12027 = vmatprep.mubr.bf16.mxu0 %v14392_v21  ;;  %v14412_v63 = vcombine.low %v721_v3, %v731_v43  ;;  %v2150_v28 = vrot.slane %v2148_v27, 5  ;;  %v16667_v1 = vshll.u32 %v13738_v16, 16  ;;  %v2142_v14 = vrot.slane %v2141_v49, 4 }
  0x72   : > { %v735_v44 = vrot.slane %v16664_v4, 4  ;;  %v738_v45 = vrot.slane %v16665_v38, 5  ;;  %v16668_v24 = vshrl.u32 %v13738_v16, 16  ;;  %v16669_v26 = vshll.u32 %v13745_v18, 16 }
  0x73   : > { %16666 = vst [vmem:[#allocation46_spill] sm:$0xff] %v14412_v63  ;;  %v744_v11 = vrot.slane %v16667_v1, 5  ;;  %11436 = vmatmul.mubr.bf16.vlgmr.msra.gmra.mrb[0].mxu1 %v14412_v63  ;;  %v2147_v4 = vrot.slane %v2145_v59, 4  ;;  %v2152_v38 = vor.u32 %v2151_v6, %v2150_v28  ;;  %v16430_v3 = vshrl.u32 %v14105_v39, 16 }
  0x74   : > { %v739_v19 = vor.u32 %v738_v45, %v735_v44  ;;  %v748_v0 = vrot.slane %v16668_v24, 4  ;;  %v754_v13 = vrot.slane %v16669_v26, 5  ;;  %v16429_v30 = vshll.u32 %v14105_v39, 16  ;;  %11468 = vmatpush3.bf16.msra.mxu1 %v14144_v17  ;;  %v13420_v17 = vld [vmem:[%s16304_s1 + $0x90] sm:$0xff]   ;;  %v13422_v26 = vld [vmem:[%s16304_s1 + $0x98] sm:$0xff]  }
  0x75   : > { %v2146_v10 = vsel %vm14023_vm5, %v2142_v14, %v2145_v59  ;;  %v16428_v16 = vshll.u32 %v14108_v56, 16  ;;  %v2153_v18 = vsel %vm14023_vm5, %v2147_v4, %v2152_v38  ;;  %v16427_v43 = vshrl.u32 %v14108_v56, 16  ;;  %11469 = vmatprep.subr.bf16.mxu1 %v13418_v46 }
  0x76   : > { %v740_v1 = vrot.slane %v739_v19, 4  ;;  %v749_v27 = vor.u32 %v748_v0, %v744_v11  ;;  %v16426_v28 = vshll.u32 %v14409_v12, 16  ;;  %v2154_v6 = vrot.slane %v16430_v3, 5 }
  0x77   : > { %v14436_v14 = vcombine.low %v2146_v10, %v2153_v18  ;;  %v2155_v44 = vrot.slane %v16429_v30, 6  ;;  %v2158_v45 = vrot.slane %v16427_v43, 5  ;;  %v2159_v19 = vrot.slane %v16428_v16, 6  ;;  %v14460_v18 = vld [vmem:[%s13718_s10 + $0xa4] sm:$0x3] }
  0x78   : > { %v745_v59 = vsel %vm14318_vm8, %v740_v1, %v744_v11  ;;  %v750_v49 = vrot.slane %v749_v27, 4  ;;  %v2163_v24 = vshrl.u32 %v14409_v12, 16  ;;  %v2166_v0 = vrot.slane %v16426_v28, 6  ;;  %11470 = vmatpush3.bf16.msra.mxu1 %v13418_v46 }
  0x79   : > { %16670 = vst [vmem:[#allocation47_spill] sm:$0xff] %v14436_v14  ;;  %12028 = vmatmul.mubr.bf16.gmra.mrb[16].mxu0 %v14436_v14  ;;  %v2156_v4 = vor.u32 %v2155_v44, %v2154_v6  ;;  %v16671_v38 = vshrl.u32 %v13764_v29, 16  ;;  %v16672_v1 = vshll.u32 %v13764_v29, 16  ;;  %v2160_v43 = vor.u32 %v2159_v19, %v2158_v45  ;;  %11471 = vmatprep.subr.bf16.mxu1 %v13420_v17 }
  0x7a   : > { %v755_v11 = vsel %vm14318_vm8, %v750_v49, %v754_v13  ;;  %v2165_v16 = vrot.slane %v2163_v24, 5  ;;  %v16674_v30 = vshll.u32 %v13777_v35, 16  ;;  %v16675_v6 = vshrl.u32 %v13777_v35, 16 }
  0x7b   : > { %v759_v10 = vrot.slane %v16671_v38, 4  ;;  %v762_v27 = vrot.slane %v16672_v1, 5  ;;  %v14462_v28 = vcombine.low %v745_v59, %v755_v11  ;;  %v2157_v63 = vrot.slane %v2156_v4, 4 }
  0x7c   : > { %v768_v3 = vrot.slane %v16674_v30, 5  ;;  %v772_v49 = vrot.slane %v16675_v6, 4  ;;  %v16676_v44 = vshll.u32 %v13788_v41, 16  ;;  %v2162_v38 = vrot.slane %v2160_v43, 4  ;;  %11472 = vmatpush3.bf16.msra.mxu1 %v13420_v17 }
  0x7d   : > { %16673 = vst [vmem:[#allocation48_spill] sm:$0xff] %v14462_v28  ;;  %v763_v13 = vor.u32 %v762_v27, %v759_v10  ;;  %11439 = vmatprep.mubr.bf16.mxu1 %v14462_v28  ;;  %v2167_v46 = vor.u32 %v2166_v0, %v2165_v16  ;;  %v16436_v59 = vshrl.u32 %v14150_v40, 16  ;;  %v16435_v45 = vshll.u32 %v14150_v40, 16  ;;  %11473 = vmatprep.subr.bf16.mxu1 %v13422_v26 }
  0x7e   : > { %v778_v29 = vrot.slane %v16676_v44, 5  ;;  %v2161_v30 = vsel %vm14023_vm5, %v2157_v63, %v2160_v43  ;;  %v773_v24 = vor.u32 %v772_v49, %v768_v3  ;;  %v16434_v11 = vshll.u32 %v14153_v20, 16  ;;  %v13424_v63 = vld [vmem:[%s16304_s1 + $0xa0] sm:$0xff]   ;;  %v13426_v49 = vld [vmem:[%s16304_s1 + $0xa8] sm:$0xff]  }
  0x7f   : > { %v764_v19 = vrot.slane %v763_v13, 4  ;;  %v2168_v35 = vsel %vm14023_vm5, %v2162_v38, %v2167_v46  ;;  %v16433_v41 = vshrl.u32 %v14153_v20, 16  ;;  %v16432_v4 = vshll.u32 %v14460_v18, 16 }
  0x80   : > { %v2169_v16 = vrot.slane %v16436_v59, 5  ;;  %v14485_v43 = vcombine.low %v2161_v30, %v2168_v35  ;;  %v774_v0 = vrot.slane %v773_v24, 4  ;;  %v2170_v10 = vrot.slane %v16435_v45, 6  ;;  %v14509_v24 = vld [vmem:[%s13718_s10 + $0xb0] sm:$0x3]  ;;  %11474 = vmatpush3.bf16.msra.mxu1 %v13422_v26 }
  0x81   : > { %v769_v17 = vsel %vm14318_vm8, %v764_v19, %v768_v3  ;;  %v2173_v1 = vrot.slane %v16433_v41, 5  ;;  %v2174_v27 = vrot.slane %v16434_v11, 6  ;;  %v2178_v13 = vshrl.u32 %v14460_v18, 16  ;;  %11475 = vmatprep.subr.bf16.mxu1 %v13424_v63 }
  0x82   : > { %16677 = vst [vmem:[#allocation49_spill] sm:$0xff] %v14485_v43  ;;  %v2181_v6 = vrot.slane %v16432_v4, 6  ;;  %12031 = vmatprep.mubr.bf16.mxu0 %v14485_v43  ;;  %v779_v3 = vsel %vm14318_vm8, %v774_v0, %v778_v29  ;;  %v2171_v44 = vor.u32 %v2170_v10, %v2169_v16  ;;  %v16678_v38 = vshrl.u32 %v13808_v51, 16 }
  0x83   : > { %v16679_v30 = vshll.u32 %v13808_v51, 16  ;;  %v14511_v35 = vcombine.low %v769_v17, %v779_v3  ;;  %v2175_v4 = vor.u32 %v2174_v27, %v2173_v1  ;;  %v2180_v41 = vrot.slane %v2178_v13, 5 }
  0x84   : > { %v783_v46 = vrot.slane %v16678_v38, 4  ;;  %v16681_v11 = vshll.u32 %v13814_v53, 16  ;;  %v2172_v59 = vrot.slane %v2171_v44, 4  ;;  %v16682_v16 = vshrl.u32 %v13814_v53, 16  ;;  %11476 = vmatpush3.bf16.msra.mxu1 %v13424_v63 }
  0x85   : > { %v786_v19 = vrot.slane %v16679_v30, 5  ;;  %16680 = vst [vmem:[#allocation50_spill] sm:$0xff] %v14511_v35  ;;  %v16683_v10 = vshll.u32 %v13817_v54, 16  ;;  %11440 = vmatmul.mubr.bf16.gmra.mrb[4].mxu1 %v14511_v35  ;;  %v2177_v38 = vrot.slane %v2175_v4, 4  ;;  %v2182_v26 = vor.u32 %v2181_v6, %v2180_v41  ;;  %11477 = vmatprep.subr.bf16.mxu1 %v13426_v49 }
  0x86   : > { %v792_v45 = vrot.slane %v16681_v11, 5  ;;  %v796_v0 = vrot.slane %v16682_v16, 4  ;;  %v16441_v17 = vshrl.u32 %v14193_v25, 16  ;;  %v16440_v1 = vshll.u32 %v14193_v25, 16 }
  0x87   : > { %v787_v29 = vor.u32 %v786_v19, %v783_v46  ;;  %v802_v51 = vrot.slane %v16683_v10, 5  ;;  %v2176_v11 = vsel %vm14023_vm5, %v2172_v59, %v2175_v4  ;;  %v16439_v3 = vshll.u32 %v14199_v37, 16  ;;  %v13428_v59 = vld [vmem:[%s16304_s1 + $0xb0] sm:$0xff]  }
  0x88   : > { %v797_v13 = vor.u32 %v796_v0, %v792_v45  ;;  %v2183_v53 = vsel %vm14023_vm5, %v2177_v38, %v2182_v26  ;;  %v16438_v54 = vshrl.u32 %v14199_v37, 16  ;;  %v16437_v44 = vshll.u32 %v14509_v24, 16  ;;  %v13430_v0 = vld [vmem:[%s16304_s1 + $0xb8] sm:$0xff]   ;;  %11478 = vmatpush3.bf16.msra.mxu1 %v13426_v49 }
  0x89   : > { %v788_v27 = vrot.slane %v787_v29, 4  ;;  %v2184_v41 = vrot.slane %v16441_v17, 5  ;;  %v14534_v4 = vcombine.low %v2176_v11, %v2183_v53  ;;  %v2185_v46 = vrot.slane %v16440_v1, 6  ;;  %11479 = vmatprep.subr.bf16.mxu1 %v13428_v59 }
  0x8a   : > { %v798_v6 = vrot.slane %v797_v13, 4  ;;  %v2188_v30 = vrot.slane %v16438_v54, 5  ;;  %v2189_v19 = vrot.slane %v16439_v3, 6  ;;  %v2193_v29 = vshrl.u32 %v14509_v24, 16  ;;  %v14558_v13 = vld [vmem:[%s13718_s10 + $0xbc] sm:$0x3] }
  0x8b   : > { %16684 = vst [vmem:[#allocation51_spill] sm:$0xff] %v14534_v4  ;;  %v793_v63 = vsel %vm14318_vm8, %v788_v27, %v792_v45  ;;  %v2196_v16 = vrot.slane %v16437_v44, 6  ;;  %12032 = vmatmul.mubr.bf16.gmra.mrb[20].mxu0 %v14534_v4  ;;  %v2186_v10 = vor.u32 %v2185_v46, %v2184_v41  ;;  %v16685_v38 = vshrl.u32 %v13831_v61, 16  ;;  %v16690_v46 = vld [vmem:[#allocation9_spill] sm:$0xff] }
  0x8c   : > { %v803_v45 = vsel %vm14318_vm8, %v798_v6, %v802_v51  ;;  %v16686_v11 = vshll.u32 %v13831_v61, 16  ;;  %v2190_v44 = vor.u32 %v2189_v19, %v2188_v30  ;;  %v2195_v54 = vrot.slane %v2193_v29, 5  ;;  %11480 = vmatpush3.bf16.msra.mxu1 %v13428_v59 }
  0x8d   : > { %v807_v26 = vrot.slane %v16685_v38, 4  ;;  %v14560_v53 = vcombine.low %v793_v63, %v803_v45  ;;  %v16688_v3 = vshll.u32 %v13834_v62, 16  ;;  %v2187_v17 = vrot.slane %v2186_v10, 4  ;;  %11481 = vmatprep.subr.bf16.mxu1 %v13430_v0 }
  0x8e   : > { %v810_v27 = vrot.slane %v16686_v11, 5  ;;  %v16689_v41 = vshrl.u32 %v13834_v62, 16  ;;  %v16691_v38 = vshll.u32 %v16690_v46, 16  ;;  %v2192_v11 = vrot.slane %v2190_v44, 4 }
  0x8f   : > { %16687 = vst [vmem:[#allocation52_spill] sm:$0xff] %v14560_v53  ;;  %v816_v1 = vrot.slane %v16688_v3, 5  ;;  %11443 = vmatprep.mubr.bf16.mxu1 %v14560_v53  ;;  %v2197_v49 = vor.u32 %v2196_v16, %v2195_v54  ;;  %v16446_v63 = vshrl.u32 %v14224_v55, 16  ;;  %v16445_v30 = vshll.u32 %v14224_v55, 16 }
  0x90   : > { %v811_v51 = vor.u32 %v810_v27, %v807_v26  ;;  %v820_v6 = vrot.slane %v16689_v41, 4  ;;  %v826_v61 = vrot.slane %v16691_v38, 5  ;;  %v2191_v3 = vsel %vm14023_vm5, %v2187_v17, %v2190_v44  ;;  %v14583_v17 = vld [vmem:[%s16304_s1 + $0xc0] sm:$0xff]   ;;  %11482 = vmatpush3.bf16.msra.mxu1 %v13430_v0 }
  0x91   : > { %v16443_v62 = vshll.u32 %v14234_v48, 16  ;;  %v2198_v45 = vsel %vm14023_vm5, %v2192_v11, %v2197_v49  ;;  %v16442_v10 = vshrl.u32 %v14234_v48, 16  ;;  %v16444_v54 = vshll.u32 %v14558_v13, 16  ;;  %v14602_v11 = vld [vmem:[%s13718_s10 + $0xc4] sm:$0xf]  ;;  %11515 = vmatprep.subr.bf16.mxu1 %v14583_v17 }
  0x92   : > { %v812_v19 = vrot.slane %v811_v51, 4  ;;  %v821_v29 = vor.u32 %v820_v6, %v816_v1  ;;  %v2199_v16 = vrot.slane %v16446_v63, 5  ;;  %v14585_v44 = vcombine.low %v2191_v3, %v2198_v45  ;;  %v14592_v51 = vld [vmem:[%s13718_s10 + $0xc0] sm:$0xf] }
  0x93   : > { %v2200_v27 = vrot.slane %v16445_v30, 6  ;;  %v2203_v41 = vrot.slane %v16442_v10, 5  ;;  %v2204_v6 = vrot.slane %v16443_v62, 6  ;;  %v2208_v46 = vshrl.u32 %v14558_v13, 16  ;;  %v14612_v10 = vld [vmem:[%s13718_s10 + $0xc8] sm:$0x3] }
  0x94   : > { %16692 = vst [vmem:[#allocation9_spill] sm:$0xff] %v14585_v44  ;;  %v817_v59 = vsel %vm14318_vm8, %v812_v19, %v816_v1  ;;  %v822_v26 = vrot.slane %v821_v29, 4  ;;  %v2211_v38 = vrot.slane %v16444_v54, 6  ;;  %12035 = vmatprep.mubr.bf16.mxu0 %v14585_v44  ;;  %v16693_v3 = vshrl.u32 %v13861_v15, 16  ;;  %16695 = vst [vmem:[#allocation53_spill] sm:$0xff] %v14612_v10 }
  0x95   : > { %v2201_v49 = vor.u32 %v2200_v27, %v2199_v16  ;;  %v16694_v29 = vshll.u32 %v13861_v15, 16  ;;  %v2205_v54 = vor.u32 %v2204_v6, %v2203_v41  ;;  %v2210_v30 = vrot.slane %v2208_v46, 5 }
  0x96   : > { %v827_v1 = vsel %vm14318_vm8, %v822_v26, %v826_v61  ;;  %v831_v19 = vrot.slane %v16693_v3, 4  ;;  %v16697_v63 = vshll.u32 %v13869_v22, 16  ;;  %v16698_v26 = vshrl.u32 %v13869_v22, 16 }
  0x97   : > { %v834_v45 = vrot.slane %v16694_v29, 5  ;;  %v14614_v62 = vcombine.low %v817_v59, %v827_v1  ;;  %v2202_v61 = vrot.slane %v2201_v49, 4  ;;  %v16699_v15 = vshll.u32 %v13872_v23, 16 }
  0x98   : > { %v840_v28 = vrot.slane %v16697_v63, 5  ;;  %v844_v27 = vrot.slane %v16698_v26, 4  ;;  %v2207_v0 = vrot.slane %v2205_v54, 4  ;;  %v2212_v59 = vor.u32 %v2211_v38, %v2210_v30 }
  0x99   : > { %16696 = vst [vmem:[#allocation54_spill] sm:$0xff] %v14614_v62  ;;  %v835_v16 = vor.u32 %v834_v45, %v831_v19  ;;  %v850_v3 = vrot.slane %v16699_v15, 5  ;;  %11444 = vmatmul.mubr.bf16.gmra.mrb[8].mxu1 %v14614_v62  ;;  %v16453_v41 = vshrl.u32 %v14592_v51, 16  ;;  %v16451_v6 = vshll.u32 %v14592_v51, 16 }
  0x9a   : > { %v2206_v63 = vsel %vm14023_vm5, %v2202_v61, %v2205_v54  ;;  %v845_v1 = vor.u32 %v844_v27, %v840_v28  ;;  %v16450_v22 = vshll.u32 %v14602_v11, 16  ;;  %v2213_v23 = vsel %vm14023_vm5, %v2207_v0, %v2212_v59  ;;  %v14642_v61 = vld [vmem:[%s13718_s10 + $0xcc] sm:$0xf]  ;;  %v14652_v0 = vld [vmem:[%s13718_s10 + $0xd0] sm:$0xf] }
  0x9b   : > { %v836_v46 = vrot.slane %v835_v16, 4  ;;  %v16449_v49 = vshrl.u32 %v14602_v11, 16  ;;  %v16452_v19 = vshll.u32 %v14612_v10, 16  ;;  %v4113_v30 = vrot.slane %v16453_v41, 5  ;;  %16701 = vst [vmem:[#allocation56_spill] sm:$0xff] %v14652_v0 }
  0x9c   : > { %v14635_v38 = vcombine.low %v2206_v63, %v2213_v23  ;;  %v846_v29 = vrot.slane %v845_v1, 4  ;;  %v4114_v45 = vrot.slane %v16451_v6, 6  ;;  %v4118_v26 = vrot.slane %v16450_v22, 6 }
  0x9d   : > { %v841_v54 = vsel %vm14318_vm8, %v836_v46, %v840_v28  ;;  %v4117_v16 = vrot.slane %v16449_v49, 5  ;;  %v4122_v27 = vshrl.u32 %v14612_v10, 16  ;;  %v4125_v15 = vrot.slane %v16452_v19, 6  ;;  %v14662_v49 = vld [vmem:[%s13718_s10 + $0xd4] sm:$0x3] }
  0x9e   : > { %16700 = vst [vmem:[#allocation55_spill] sm:$0xff] %v14635_v38  ;;  %12036 = vmatmul.mubr.bf16.gmra.mrb[24].mxu0 %v14635_v38  ;;  %v851_v28 = vsel %vm14318_vm8, %v846_v29, %v850_v3  ;;  %v4115_v59 = vor.u32 %v4114_v45, %v4113_v30  ;;  %v16702_v63 = vshrl.u32 %v13882_v33, 16  ;;  %v16703_v1 = vshll.u32 %v13882_v33, 16  ;;  %v16707_v29 = vld [vmem:[#allocation13_spill] sm:$0xff] }
  0x9f   : > { %v14664_v22 = vcombine.low %v841_v54, %v851_v28  ;;  %v4119_v6 = vor.u32 %v4118_v26, %v4117_v16  ;;  %v4124_v19 = vrot.slane %v4122_v27, 5  ;;  %v16705_v41 = vshll.u32 %v13885_v36, 16 }
  0xa0   : > { %v855_v46 = vrot.slane %v16702_v63, 4  ;;  %v858_v23 = vrot.slane %v16703_v1, 5  ;;  %v4116_v38 = vrot.slane %v4115_v59, 4  ;;  %v16706_v3 = vshrl.u32 %v13885_v36, 16 }
  0xa1   : > { %16704 = vst [vmem:[#allocation57_spill] sm:$0xff] %v14664_v22  ;;  %v864_v44 = vrot.slane %v16705_v41, 5  ;;  %v16708_v45 = vshll.u32 %v16707_v29, 16  ;;  %11447 = vmatprep.mubr.bf16.mxu1 %v14664_v22  ;;  %v4121_v33 = vrot.slane %v4119_v6, 4  ;;  %v4126_v1 = vor.u32 %v4125_v15, %v4124_v19 }
  0xa2   : > { %v859_v4 = vor.u32 %v858_v23, %v855_v46  ;;  %v868_v30 = vrot.slane %v16706_v3, 4  ;;  %v16464_v54 = vshrl.u32 %v14642_v61, 16  ;;  %v16462_v16 = vshll.u32 %v14642_v61, 16 }
  0xa3   : > { %v874_v63 = vrot.slane %v16708_v45, 5  ;;  %v4120_v26 = vsel %vm14023_vm5, %v4116_v38, %v4119_v6  ;;  %v16461_v28 = vshll.u32 %v14652_v0, 16  ;;  %v4127_v36 = vsel %vm14023_vm5, %v4121_v33, %v4126_v1 }
  0xa4   : > { %v860_v41 = vrot.slane %v859_v4, 4  ;;  %v869_v27 = vor.u32 %v868_v30, %v864_v44  ;;  %v16460_v59 = vshrl.u32 %v14652_v0, 16  ;;  %v16463_v46 = vshll.u32 %v14662_v49, 16 }
  0xa5   : > { %v5799_v19 = vrot.slane %v16464_v54, 5  ;;  %v14684_v15 = vcombine.low %v4120_v26, %v4127_v36  ;;  %v5800_v4 = vrot.slane %v16462_v16, 6  ;;  %v5804_v3 = vrot.slane %v16461_v28, 6  ;;  %v16713_v28 = vld [vmem:[#allocation17_spill] sm:$0xff] }
  0xa6   : > { %v865_v23 = vsel %vm14318_vm8, %v860_v41, %v864_v44  ;;  %v870_v6 = vrot.slane %v869_v27, 4  ;;  %v5803_v38 = vrot.slane %v16460_v59, 5  ;;  %v5808_v30 = vshrl.u32 %v14662_v49, 16 }
  0xa7   : > { %16709 = vst [vmem:[#allocation13_spill] sm:$0xff] %v14684_v15  ;;  %v5811_v29 = vrot.slane %v16463_v46, 6  ;;  %12039 = vmatprep.mubr.bf16.mxu0 %v14684_v15  ;;  %v5801_v45 = vor.u32 %v5800_v4, %v5799_v19  ;;  %v16710_v33 = vshrl.u32 %v13918_v7, 16  ;;  %v16711_v26 = vshll.u32 %v13918_v7, 16 }
  0xa8   : > { %v875_v44 = vsel %vm14318_vm8, %v870_v6, %v874_v63  ;;  %v5805_v36 = vor.u32 %v5804_v3, %v5803_v38  ;;  %v5810_v59 = vrot.slane %v5808_v30, 5  ;;  %v16714_v16 = vshll.u32 %v16713_v28, 16  ;;  %v16716_v6 = vld [vmem:[#allocation18_spill] sm:$0xff] }
  0xa9   : > { %v879_v1 = vrot.slane %v16710_v33, 4  ;;  %v882_v41 = vrot.slane %v16711_v26, 5  ;;  %v14704_v27 = vcombine.low %v865_v23, %v875_v44  ;;  %v5802_v54 = vrot.slane %v5801_v45, 4 }
  0xaa   : > { %v888_v46 = vrot.slane %v16714_v16, 5  ;;  %v16715_v63 = vshrl.u32 %v16713_v28, 16  ;;  %v16717_v4 = vshll.u32 %v16716_v6, 16  ;;  %v5807_v7 = vrot.slane %v5805_v36, 4  ;;  %v13584_v28 = vld [vmem:[%s13718_s10 + $0x18] sm:$0xf] }
  0xab   : > { %16712 = vst [vmem:[#allocation58_spill] sm:$0xff] %v14704_v27  ;;  %v883_v15 = vor.u32 %v882_v41, %v879_v1  ;;  %11448 = vmatmul.mubr.bf16.gmra.mrb[12].mxu1 %v14704_v27  ;;  %v5812_v23 = vor.u32 %v5811_v29, %v5810_v59  ;;  %v5806_v38 = vsel %vm14023_vm5, %v5802_v54, %v5805_v36  ;;  %v16718_v30 = vmov 0  ;;  %v13585_v1 = vld [vmem:[%s13718_s10 + $0x1c] sm:$0xf]  ;;  %v13586_v59 = vld [vmem:[%s13718_s10 + $0x20] sm:$0x3] }
  0xac   : > { %v892_v19 = vrot.slane %v16715_v63, 4  ;;  %v898_v33 = vrot.slane %v16717_v4, 5  ;;  %v16719_v30 = vsel %vm14715_vm11, 4294967295, %v16718_v30  ;;  %v10205_v44 = vrot.slane %v13584_v28, 10 }
  0xad   : > { %v884_v16 = vrot.slane %v883_v15, 4  ;;  %16720 = vst [vmem:[#allocation17_spill] sm:$0xff] %v16719_v30  ;;  %v5813_v45 = vsel %vm14023_vm5, %v5807_v7, %v5812_v23  ;;  %v2619_v26 = vrot.slane %v13585_v1, 6  ;;  %v2622_v29 = vrot.slane %v13586_v59, 6 }
  0xae   : > { %v893_v3 = vor.u32 %v892_v19, %v888_v46  ;;  %v16721_v41 = vshrl.u32 %v13955_v57, 16  ;;  %v14726_v54 = vcombine.low %v5806_v38, %v5813_v45  ;;  %v16723_v19 = vshll.u32 %v13955_v57, 16  ;;  %v13587_v45 = vld [vmem:[%s13718_s10 + $0x24] sm:$0xf] }
  0xaf   : > { %v889_v15 = vsel %vm14318_vm8, %v884_v16, %v888_v46  ;;  %v2620_v4 = vsel %vm14715_vm11, %v10205_v44, %v2619_v26  ;;  %v2621_v7 = vrot.slane %v2619_v26, 4  ;;  %v16724_v23 = vshll.u32 %v13958_v58, 16 }
  0xb0   : > { %v903_v63 = vrot.slane %v16721_v41, 4  ;;  %16722 = vst [vmem:[#allocation18_spill] sm:$0xff] %v14726_v54  ;;  %v894_v36 = vrot.slane %v893_v3, 4  ;;  %v906_v6 = vrot.slane %v16723_v19, 5  ;;  %v16725_v1 = vshrl.u32 %v13958_v58, 16  ;;  %12040 = vmatmul.mubr.bf16.gmra.mrb[28].mxu0 %v14726_v54 }
  0xb1   : > { %v912_v28 = vrot.slane %v16724_v23, 5  ;;  %v16726_v57 = vshll.u32 %v13961_v2, 16  ;;  %v10206_v59 = vrot.slane %v13587_v45, 10  ;;  %v2623_v26 = vsel %vm14715_vm11, %v2621_v7, %v2622_v29  ;;  %v13588_v19 = vld [vmem:[%s13718_s10 + $0x28] sm:$0xf] }
  0xb2   : > { %v916_v38 = vrot.slane %v16725_v1, 4  ;;  %v899_v46 = vsel %vm14318_vm8, %v894_v36, %v898_v33  ;;  %v907_v16 = vor.u32 %v906_v6, %v903_v63  ;;  %v2626_v58 = vrot.slane %v13588_v19, 6  ;;  %v13589_v54 = vld [vmem:[%s13718_s10 + $0x2c] sm:$0x3] }
  0xb3   : > { %v922_v3 = vrot.slane %v16726_v57, 5  ;;  %v14744_v44 = vcombine.low %v889_v15, %v899_v46  ;;  %v14749_v23 = vcombine.low %v2620_v4, %v2623_v26  ;;  %v2629_v33 = vrot.slane %v13589_v54, 6 }
  0xb4   : > { %v917_v41 = vor.u32 %v916_v38, %v912_v28  ;;  %v908_v1 = vrot.slane %v907_v16, 4  ;;  %v16729_v63 = vshrl.u32 %v14030_v50, 16  ;;  %v2627_v15 = vsel %vm14715_vm11, %v10206_v59, %v2626_v58 }
  0xb5   : > { %16727 = vst [vmem:[#allocation59_spill] sm:$0xff] %v14744_v44  ;;  %16728 = vst [vmem:[#allocation60_spill] sm:$0xff] %v14749_v23  ;;  %11451 = vmatprep.mubr.bf16.mxu1 %v14744_v44  ;;  %v2628_v29 = vrot.slane %v2626_v58, 4  ;;  %v16730_v6 = vshll.u32 %v14030_v50, 16  ;;  %12059 = vmatprep.mubr.bf16.mxu0 %v14749_v23  ;;  %v16731_v54 = vshll.u32 %v14043_v52, 16  ;;  %v16732_v46 = vshrl.u32 %v14043_v52, 16 }
  0xb6   : > { %v927_v2 = vrot.slane %v16729_v63, 4  ;;  %v918_v36 = vrot.slane %v917_v41, 4  ;;  %v913_v4 = vsel %vm14318_vm8, %v908_v1, %v912_v28  ;;  %v16733_v57 = vshll.u32 %v14309_v8, 16  ;;  %v13590_v41 = vld [vmem:[%s13718_s10 + $0x30] sm:$0xf]  ;;  %v13427_v8 = vld [vmem:[%s16304_s1 + $0x3c8] sm:$0xff]  }
  0xb7   : > { %v930_v7 = vrot.slane %v16730_v6, 5  ;;  %v936_v38 = vrot.slane %v16731_v54, 5  ;;  %v940_v16 = vrot.slane %v16732_v46, 4  ;;  %v2630_v50 = vsel %vm14715_vm11, %v2628_v29, %v2629_v33  ;;  %v13591_v63 = vld [vmem:[%s13718_s10 + $0x34] sm:$0xf] }
  0xb8   : > { %v946_v45 = vrot.slane %v16733_v57, 5  ;;  %v923_v59 = vsel %vm14318_vm8, %v918_v36, %v922_v3  ;;  %v10207_v19 = vrot.slane %v13590_v41, 10  ;;  %v14775_v58 = vcombine.low %v2627_v15, %v2630_v50  ;;  %v13592_v54 = vld [vmem:[%s13718_s10 + $0x38] sm:$0x3] }
  0xb9   : > { %v931_v26 = vor.u32 %v930_v7, %v927_v2  ;;  %v14773_v28 = vcombine.low %v913_v4, %v923_v59  ;;  %v941_v1 = vor.u32 %v940_v16, %v936_v38  ;;  %v2633_v52 = vrot.slane %v13591_v63, 6  ;;  %v13593_v63 = vld [vmem:[%s13718_s10 + $0x3c] sm:$0xf] }
  0xba   : > { %16735 = vst [vmem:[#allocation62_spill] sm:$0xff] %v14775_v58  ;;  %v2636_v3 = vrot.slane %v13592_v54, 6  ;;  %v16736_v36 = vshrl.u32 %v14062_v9, 16  ;;  %v16737_v2 = vshll.u32 %v14062_v9, 16  ;;  %12060 = vmatmul.mubr.bf16.vlgmr.msra.gmra.mrb[0].mxu0 %v14775_v58  ;;  %v16738_v46 = vshll.u32 %v14075_v31, 16 }
  0xbb   : > { %16734 = vst [vmem:[#allocation61_spill] sm:$0xff] %v14773_v28  ;;  %v932_v6 = vrot.slane %v931_v26, 4  ;;  %11452 = vmatmul.mubr.bf16.gmra.mrb[16].mxu1 %v14773_v28  ;;  %v942_v15 = vrot.slane %v941_v1, 4  ;;  %v2634_v7 = vsel %vm14715_vm11, %v10207_v19, %v2633_v52  ;;  %v2635_v4 = vrot.slane %v2633_v52, 4  ;;  %12092 = vmatpush3.bf16.msra.mxu0 %v14371_v42  ;;  %v13594_v42 = vld [vmem:[%s13718_s10 + $0x40] sm:$0xf] }
  0xbc   : > { %v951_v33 = vrot.slane %v16736_v36, 4  ;;  %v954_v29 = vrot.slane %v16737_v2, 5  ;;  %v960_v16 = vrot.slane %v16738_v46, 5  ;;  %v16739_v59 = vshrl.u32 %v14075_v31, 16  ;;  %12093 = vmatprep.subr.bf16.mxu0 %v13427_v8  ;;  %v15063_v58 = vld [vmem:[%s13718_s10 + $0xa8] sm:$0xf] }
  0xbd   : > { %v937_v57 = vsel %vm14318_vm8, %v932_v6, %v936_v38  ;;  %v16740_v26 = vshll.u32 %v14359_v5, 16  ;;  %v947_v19 = vsel %vm14318_vm8, %v942_v15, %v946_v45  ;;  %v2637_v1 = vsel %vm14715_vm11, %v2635_v4, %v2636_v3  ;;  %v13429_v5 = vld [vmem:[%s16304_s1 + $0x3d0] sm:$0xff]  }
  0xbe   : > { %v955_v9 = vor.u32 %v954_v29, %v951_v33  ;;  %v964_v50 = vrot.slane %v16739_v59, 4  ;;  %v10208_v52 = vrot.slane %v13593_v63, 10  ;;  %v2640_v54 = vrot.slane %v13594_v42, 6  ;;  %v13595_v33 = vld [vmem:[%s13718_s10 + $0x44] sm:$0x3] }
  0xbf   : > { %v970_v41 = vrot.slane %v16740_v26, 5  ;;  %v14805_v38 = vcombine.low %v937_v57, %v947_v19  ;;  %v14807_v6 = vcombine.low %v2634_v7, %v2637_v1  ;;  %v2643_v2 = vrot.slane %v13595_v33, 6  ;;  %12094 = vmatpush3.bf16.msra.mxu0 %v13427_v8  ;;  %v13431_v8 = vld [vmem:[%s16304_s1 + $0x3d8] sm:$0xff]  }
  0xc0   : > { %v956_v31 = vrot.slane %v955_v9, 4  ;;  %v965_v36 = vor.u32 %v964_v50, %v960_v16  ;;  %v2641_v45 = vsel %vm14715_vm11, %v10208_v52, %v2640_v54  ;;  %v2642_v3 = vrot.slane %v2640_v54, 4  ;;  %v13596_v52 = vld [vmem:[%s13718_s10 + $0x48] sm:$0xf]  ;;  %12095 = vmatprep.subr.bf16.mxu0 %v13429_v5 }
  0xc1   : > { %16741 = vst [vmem:[#allocation63_spill] sm:$0xff] %v14805_v38  ;;  %16742 = vst [vmem:[#allocation64_spill] sm:$0xff] %v14807_v6  ;;  %v16743_v29 = vshrl.u32 %v14105_v39, 16  ;;  %11455 = vmatprep.mubr.bf16.mxu1 %v14805_v38  ;;  %12063 = vmatprep.mubr.bf16.mxu0 %v14807_v6  ;;  %v16744_v46 = vshll.u32 %v14105_v39, 16  ;;  %v16745_v9 = vshll.u32 %v14108_v56, 16  ;;  %v16746_v26 = vshrl.u32 %v14108_v56, 16 }
  0xc2   : > { %v961_v7 = vsel %vm14318_vm8, %v956_v31, %v960_v16  ;;  %v966_v4 = vrot.slane %v965_v36, 4  ;;  %v2644_v50 = vsel %vm14715_vm11, %v2642_v3, %v2643_v2  ;;  %v16747_v1 = vshll.u32 %v14409_v12, 16  ;;  %v13597_v31 = vld [vmem:[%s13718_s10 + $0x4c] sm:$0xf]  ;;  %v13598_v12 = vld [vmem:[%s13718_s10 + $0x50] sm:$0x3] }
  0xc3   : > { %v975_v15 = vrot.slane %v16743_v29, 4  ;;  %v978_v57 = vrot.slane %v16744_v46, 5  ;;  %v984_v59 = vrot.slane %v16745_v9, 5  ;;  %v988_v19 = vrot.slane %v16746_v26, 4  ;;  %12096 = vmatpush3.bf16.msra.mxu0 %v13429_v5 }
  0xc4   : > { %v994_v63 = vrot.slane %v16747_v1, 5  ;;  %v10209_v16 = vrot.slane %v13596_v52, 10  ;;  %v971_v39 = vsel %vm14318_vm8, %v966_v4, %v970_v41  ;;  %v14834_v42 = vcombine.low %v2641_v45, %v2644_v50  ;;  %12097 = vmatprep.subr.bf16.mxu0 %v13431_v8 }
  0xc5   : > { %v979_v54 = vor.u32 %v978_v57, %v975_v15  ;;  %v2647_v36 = vrot.slane %v13597_v31, 6  ;;  %v14840_v56 = vcombine.low %v961_v7, %v971_v39  ;;  %v989_v3 = vor.u32 %v988_v19, %v984_v59  ;;  %v13599_v39 = vld [vmem:[%s13718_s10 + $0x54] sm:$0xf] }
  0xc6   : > { %16748 = vst [vmem:[#allocation65_spill] sm:$0xff] %v14834_v42  ;;  %v2650_v33 = vrot.slane %v13598_v12, 6  ;;  %v16750_v2 = vshrl.u32 %v14150_v40, 16  ;;  %12064 = vmatmul.mubr.bf16.gmra.mrb[4].mxu0 %v14834_v42  ;;  %v16751_v4 = vshll.u32 %v14150_v40, 16  ;;  %v16752_v57 = vshll.u32 %v14153_v20, 16 }
  0xc7   : > { %16749 = vst [vmem:[#allocation66_spill] sm:$0xff] %v14840_v56  ;;  %v980_v41 = vrot.slane %v979_v54, 4  ;;  %v2648_v45 = vsel %vm14715_vm11, %v10209_v16, %v2647_v36  ;;  %v2649_v15 = vrot.slane %v2647_v36, 4  ;;  %11456 = vmatmul.mubr.bf16.gmra.mrb[20].mxu1 %v14840_v56  ;;  %v990_v7 = vrot.slane %v989_v3, 4  ;;  %v13600_v36 = vld [vmem:[%s13718_s10 + $0x58] sm:$0xf]  ;;  %12098 = vmatpush3.bf16.msra.mxu0 %v13431_v8 }
  0xc8   : > { %v999_v29 = vrot.slane %v16750_v2, 4  ;;  %v1002_v46 = vrot.slane %v16751_v4, 5  ;;  %v1008_v9 = vrot.slane %v16752_v57, 5  ;;  %v16753_v50 = vshrl.u32 %v14153_v20, 16  ;;  %v13433_v20 = vld [vmem:[%s16304_s1 + $0x3e0] sm:$0xff]  }
  0xc9   : > { %v16754_v19 = vshll.u32 %v14460_v18, 16  ;;  %v985_v52 = vsel %vm14318_vm8, %v980_v41, %v984_v59  ;;  %v2651_v40 = vsel %vm14715_vm11, %v2649_v15, %v2650_v33  ;;  %v10210_v54 = vrot.slane %v13599_v39, 10  ;;  %v13601_v33 = vld [vmem:[%s13718_s10 + $0x5c] sm:$0x3]  ;;  %12099 = vmatprep.subr.bf16.mxu0 %v13433_v20  ;;  %v13602_v39 = vld [vmem:[%s13718_s10 + $0x60] sm:$0xf] }
  0xca   : > { %v1012_v26 = vrot.slane %v16753_v50, 4  ;;  %v1003_v16 = vor.u32 %v1002_v46, %v999_v29  ;;  %v995_v18 = vsel %vm14318_vm8, %v990_v7, %v994_v63  ;;  %v14867_v31 = vcombine.low %v2648_v45, %v2651_v40  ;;  %v15051_v42 = vld [vmem:[%s13718_s10 + $0xa4] sm:$0x3] }
  0xcb   : > { %v1018_v1 = vrot.slane %v16754_v19, 5  ;;  %v2654_v3 = vrot.slane %v13600_v36, 6  ;;  %v14870_v59 = vcombine.low %v985_v52, %v995_v18  ;;  %v2657_v2 = vrot.slane %v13601_v33, 6  ;;  %12100 = vmatpush3.bf16.msra.mxu0 %v13433_v20 }
  0xcc   : > { %16755 = vst [vmem:[#allocation67_spill] sm:$0xff] %v14867_v31  ;;  %v1013_v5 = vor.u32 %v1012_v26, %v1008_v9  ;;  %v1004_v12 = vrot.slane %v1003_v16, 4  ;;  %v16757_v29 = vshrl.u32 %v14193_v25, 16  ;;  %12067 = vmatprep.mubr.bf16.mxu0 %v14867_v31  ;;  %v16758_v4 = vshll.u32 %v14193_v25, 16  ;;  %v15047_v31 = vld [vmem:[%s13718_s10 + $0x9c] sm:$0xf] }
  0xcd   : > { %16756 = vst [vmem:[#allocation68_spill] sm:$0xff] %v14870_v59  ;;  %v2655_v63 = vsel %vm14715_vm11, %v10210_v54, %v2654_v3  ;;  %v2656_v45 = vrot.slane %v2654_v3, 4  ;;  %11459 = vmatprep.mubr.bf16.mxu1 %v14870_v59  ;;  %v16759_v57 = vshll.u32 %v14199_v37, 16  ;;  %v16760_v26 = vshrl.u32 %v14199_v37, 16  ;;  %v13435_v54 = vld [vmem:[%s16304_s1 + $0x3e8] sm:$0xff]  }
  0xce   : > { %v1023_v41 = vrot.slane %v16757_v29, 4  ;;  %v1014_v15 = vrot.slane %v1013_v5, 4  ;;  %v1026_v46 = vrot.slane %v16758_v4, 5  ;;  %v1009_v7 = vsel %vm14318_vm8, %v1004_v12, %v1008_v9  ;;  %v13603_v5 = vld [vmem:[%s13718_s10 + $0x64] sm:$0xf]  ;;  %12101 = vmatprep.subr.bf16.mxu0 %v13435_v54 }
  0xcf   : > { %v1032_v50 = vrot.slane %v16759_v57, 5  ;;  %v1036_v19 = vrot.slane %v16760_v26, 4  ;;  %v16761_v52 = vshll.u32 %v14509_v24, 16  ;;  %v2658_v8 = vsel %vm14715_vm11, %v2656_v45, %v2657_v2  ;;  %v13604_v12 = vld [vmem:[%s13718_s10 + $0x68] sm:$0x3]  ;;  %12102 = vmatpush3.bf16.msra.mxu0 %v13435_v54 }
  0xd0   : > { %v1019_v25 = vsel %vm14318_vm8, %v1014_v15, %v1018_v1  ;;  %v1027_v16 = vor.u32 %v1026_v46, %v1023_v41  ;;  %v10211_v9 = vrot.slane %v13602_v39, 10  ;;  %v14899_v18 = vcombine.low %v2655_v63, %v2658_v8 }
  0xd1   : > { %v1042_v40 = vrot.slane %v16761_v52, 5  ;;  %v14897_v37 = vcombine.low %v1009_v7, %v1019_v25  ;;  %v1037_v24 = vor.u32 %v1036_v19, %v1032_v50  ;;  %v2661_v36 = vrot.slane %v13603_v5, 6 }
  0xd2   : > { %16763 = vst [vmem:[#allocation70_spill] sm:$0xff] %v14899_v18  ;;  %v1028_v3 = vrot.slane %v1027_v16, 4  ;;  %v2664_v1 = vrot.slane %v13604_v12, 6  ;;  %v16764_v33 = vshrl.u32 %v14224_v55, 16  ;;  %v16765_v29 = vshll.u32 %v14224_v55, 16  ;;  %12068 = vmatmul.mubr.bf16.gmra.mrb[8].mxu0 %v14899_v18  ;;  %v13437_v55 = vld [vmem:[%s16304_s1 + $0x3f0] sm:$0xff]  }
  0xd3   : > { %16762 = vst [vmem:[#allocation69_spill] sm:$0xff] %v14897_v37  ;;  %11460 = vmatmul.mubr.bf16.gmra.mrb[24].mxu1 %v14897_v37  ;;  %v1038_v15 = vrot.slane %v1037_v24, 4  ;;  %v2662_v63 = vsel %vm14715_vm11, %v10211_v9, %v2661_v36  ;;  %v2663_v45 = vrot.slane %v2661_v36, 4  ;;  %v16766_v4 = vshll.u32 %v14234_v48, 16  ;;  %v13605_v16 = vld [vmem:[%s13718_s10 + $0x6c] sm:$0xf]  ;;  %12103 = vmatprep.subr.bf16.mxu0 %v13437_v55 }
  0xd4   : > { %v1047_v2 = vrot.slane %v16764_v33, 4  ;;  %v1050_v41 = vrot.slane %v16765_v29, 5  ;;  %v1033_v20 = vsel %vm14318_vm8, %v1028_v3, %v1032_v50  ;;  %v16767_v57 = vshrl.u32 %v14234_v48, 16  ;;  %v13606_v9 = vld [vmem:[%s13718_s10 + $0x70] sm:$0xf]  ;;  %v13439_v29 = vld [vmem:[%s16304_s1 + $0x3f8] sm:$0xff]   ;;  %12104 = vmatpush3.bf16.msra.mxu0 %v13437_v55 }
  0xd5   : > { %v1056_v46 = vrot.slane %v16766_v4, 5  ;;  %v16768_v19 = vshll.u32 %v14558_v13, 16  ;;  %v1043_v25 = vsel %vm14318_vm8, %v1038_v15, %v1042_v40  ;;  %v2665_v8 = vsel %vm14715_vm11, %v2663_v45, %v2664_v1  ;;  %v13607_v12 = vld [vmem:[%s13718_s10 + $0x74] sm:$0x3]  ;;  %v14936_v33 = vld [vmem:[%s13718_s10] sm:$0xf]  ;;  %12105 = vmatprep.subr.bf16.mxu0 %v13439_v29 }
  0xd6   : > { %v1051_v7 = vor.u32 %v1050_v41, %v1047_v2  ;;  %v1060_v26 = vrot.slane %v16767_v57, 4  ;;  %v10212_v39 = vrot.slane %v13605_v16, 10  ;;  %v2668_v50 = vrot.slane %v13606_v9, 6  ;;  %v14947_v15 = vld [vmem:[%s13718_s10 + $0x4] sm:$0xf] }
  0xd7   : > { %v1066_v52 = vrot.slane %v16768_v19, 5  ;;  %v14928_v24 = vcombine.low %v1033_v20, %v1043_v25  ;;  %v14930_v48 = vcombine.low %v2662_v63, %v2665_v8  ;;  %v2671_v1 = vrot.slane %v13607_v12, 6  ;;  %v14951_v45 = vld [vmem:[%s13718_s10 + $0x8] sm:$0x3]  ;;  %v14965_v19 = vld [vmem:[%s13718_s10 + $0x80] sm:$0x3] }
  0xd8   : > { %v1052_v5 = vrot.slane %v1051_v7, 4  ;;  %v1061_v36 = vor.u32 %v1060_v26, %v1056_v46  ;;  %v2669_v3 = vsel %vm14715_vm11, %v10212_v39, %v2668_v50  ;;  %v2670_v40 = vrot.slane %v2668_v50, 4  ;;  %v14957_v7 = vld [vmem:[%s13718_s10 + $0x78] sm:$0xf]  ;;  %v14961_v26 = vld [vmem:[%s13718_s10 + $0x7c] sm:$0xf]  ;;  %12106 = vmatpush3.bf16.msra.mxu0 %v13439_v29 }
  0xd9   : > { %16769 = vst [vmem:[#allocation71_spill] sm:$0xff] %v14928_v24  ;;  %16770 = vst [vmem:[#allocation72_spill] sm:$0xff] %v14930_v48  ;;  %v10107_v2 = vrot.slane %v14936_v33, 9  ;;  %11463 = vmatprep.mubr.bf16.mxu1 %v14928_v24  ;;  %12071 = vmatprep.mubr.bf16.mxu0 %v14930_v48  ;;  %v1475_v63 = vrot.slane %v14947_v15, 5  ;;  %v1478_v4 = vrot.slane %v14951_v45, 5  ;;  %v10213_v57 = vrot.slane %v14957_v7, 10 }
  0xda   : > { %v1057_v54 = vsel %vm14318_vm8, %v1052_v5, %v1056_v46  ;;  %v1062_v41 = vrot.slane %v1061_v36, 4  ;;  %v2672_v20 = vsel %vm14715_vm11, %v2670_v40, %v2671_v1  ;;  %v2675_v46 = vrot.slane %v14961_v26, 6  ;;  %v16775_v1 = vld [vmem:[#allocation6_spill] sm:$0xff]  ;;  %v14987_v55 = vld [vmem:[%s16304_s1 + $0x400] sm:$0xff]   ;;  %v15018_v18 = vld [vmem:[%s13718_s10 + $0x90] sm:$0xf] }
  0xdb   : > { %v2678_v25 = vrot.slane %v14965_v19, 6  ;;  %v14970_v16 = vcombine.low %v2669_v3, %v2672_v20  ;;  %v1476_v9 = vsel %vm13740_vm2, %v10107_v2, %v1475_v63  ;;  %v1477_v50 = vrot.slane %v1475_v63, 4  ;;  %v14999_v63 = vld [vmem:[%s13718_s10 + $0x84] sm:$0xf]  ;;  %12139 = vmatprep.subr.bf16.mxu0 %v14987_v55  ;;  %v15069_v37 = vld [vmem:[%s13718_s10 + $0xb0] sm:$0x3] }
  0xdc   : > { %v1067_v8 = vsel %vm14318_vm8, %v1062_v41, %v1066_v52  ;;  %v2676_v36 = vsel %vm14715_vm11, %v10213_v57, %v2675_v46  ;;  %v2677_v40 = vrot.slane %v2675_v46, 4  ;;  %v16774_v12 = vrot.slane %v13774_v34, 5  ;;  %v14995_v41 = vld [vmem:[%s13718_s10 + $0x14] sm:$0x3] }
  0xdd   : > { %16771 = vst [vmem:[#allocation73_spill] sm:$0xff] %v14970_v16  ;;  %v14974_v5 = vcombine.low %v1057_v54, %v1067_v8  ;;  %v16776_v48 = vrot.slane %v16775_v1, 9  ;;  %12072 = vmatmul.mubr.bf16.gmra.mrb[12].mxu0 %v14970_v16  ;;  %v1479_v3 = vsel %vm13740_vm2, %v1477_v50, %v1478_v4  ;;  %v10214_v20 = vrot.slane %v14999_v63, 10  ;;  %v15006_v4 = vld [vmem:[%s13718_s10 + $0x88] sm:$0xf]  ;;  %v16899_v39 = vld [vmem:[#allocation9_spill] sm:$0xff] }
  0xde   : > { %v16777_v2 = vmov %v16774_v12  ;;  %v10139_v57 = vcombine.low %v1476_v9, %v1479_v3  ;;  %v2679_v46 = vsel %vm14715_vm11, %v2677_v40, %v2678_v25  ;;  %v2682_v8 = vrot.slane %v15006_v4, 6  ;;  %v15010_v50 = vld [vmem:[%s13718_s10 + $0x8c] sm:$0x3]  ;;  %v15022_v25 = vld [vmem:[%s13718_s10 + $0x94] sm:$0xf] }
  0xdf   : > { %16773 = vst [vmem:[#allocation74_spill] sm:$0xff] %v14974_v5  ;;  %v1483_v52 = vsel %vm13740_vm2, %v16776_v48, %v16774_v12  ;;  %v1484_v54 = vrot.slane %v16777_v2, 4  ;;  %v1485_v48 = vrot.slane %v14995_v41, 5  ;;  %11464 = vmatmul.mubr.bf16.gmra.mrb[28].mxu1 %v14974_v5  ;;  %v2685_v12 = vrot.slane %v15010_v50, 6 }
  0xe0   : > { %v15013_v2 = vcombine.low %v2676_v36, %v2679_v46  ;;  %v10215_v9 = vrot.slane %v15018_v18, 10  ;;  %v2689_v40 = vrot.slane %v15022_v25, 6  ;;  %11483 = vmatprep.mubr.bf16.mxu1 %v10139_v57  ;;  %v2683_v36 = vsel %vm14715_vm11, %v10214_v20, %v2682_v8 }
  0xe1   : > { %v1486_v16 = vsel %vm13740_vm2, %v1484_v54, %v1485_v48  ;;  %v2684_v54 = vrot.slane %v2682_v8, 4  ;;  %v15030_v48 = vld [vmem:[%s13718_s10 + $0x98] sm:$0x3]  ;;  %v13434_v8 = vld [vmem:[%s16304_s1 + $0xc8] sm:$0xff]   ;;  %v10217_v32 = vrot.slane %v15063_v58, 10  ;;  %v2706_v59 = vrot.slane %v15069_v37, 6 }
  0xe2   : > { %16778 = vst [vmem:[#allocation6_spill] sm:$0xff] %v15013_v2  ;;  %v15025_v3 = vcombine.low %v1483_v52, %v1486_v16  ;;  %v2692_v46 = vrot.slane %v15030_v48, 6  ;;  %12075 = vmatprep.mubr.bf16.mxu0 %v15013_v2  ;;  %v2690_v29 = vsel %vm14715_vm11, %v10215_v9, %v2689_v40  ;;  %v2691_v57 = vrot.slane %v2689_v40, 4  ;;  %v15038_v16 = vld [vmem:[%s13718_s10 + $0xa0] sm:$0xf] }
  0xe3   : > { %v2696_v52 = vrot.slane %v15038_v16, 6  ;;  %v2686_v20 = vsel %vm14715_vm11, %v2684_v54, %v2685_v12  ;;  %v10216_v2 = vrot.slane %v15047_v31, 10  ;;  %v2699_v9 = vrot.slane %v15051_v42, 6  ;;  %v15055_v40 = vld [vmem:[%s13718_s10 + $0xac] sm:$0xf] }
  0xe4   : > { %16779 = vst [vmem:[#allocation75_spill] sm:$0xff] %v15025_v3  ;;  %v2703_v6 = vrot.slane %v15055_v40, 6  ;;  %v15058_v5 = vcombine.low %v2683_v36, %v2686_v20  ;;  %v2693_v12 = vsel %vm14715_vm11, %v2691_v57, %v2692_v46  ;;  %v16782_v20 = vld [vmem:[#allocation7_spill] sm:$0xff]  ;;  %v2608_v47 = vrot.slane %v14951_v45, 6 }
  0xe5   : > { %v2698_v54 = vrot.slane %v2696_v52, 4  ;;  %v15066_v24 = vcombine.low %v2690_v29, %v2693_v12  ;;  %v2697_v36 = vsel %vm14715_vm11, %v10216_v2, %v2696_v52  ;;  %v15080_v29 = vld [vmem:[%s13718_s10 + $0xb8] sm:$0xf]  ;;  %v13436_v2 = vld [vmem:[%s16304_s1 + $0xd0] sm:$0xff]   ;;  %v16846_v30 = vshrl.u32 %v14602_v11, 16 }
  0xe6   : > { %16780 = vst [vmem:[#allocation76_spill] sm:$0xff] %v15058_v5  ;;  %v2705_v23 = vrot.slane %v2703_v6, 4  ;;  %12076 = vmatmul.mubr.bf16.gmra.mrb[16].mxu0 %v15058_v5  ;;  %v2710_v57 = vrot.slane %v15080_v29, 6  ;;  %v2704_v12 = vsel %vm14715_vm11, %v10217_v32, %v2703_v6  ;;  %v16785_v5 = vld [vmem:[#allocation10_spill] sm:$0xff] }
  0xe7   : > { %16781 = vst [vmem:[#allocation77_spill] sm:$0xff] %v15066_v24  ;;  %11484 = vmatmul.mubr.bf16.vlgmr.msra.gmra.mrb[0].mxu1 %v15025_v3  ;;  %12079 = vmatprep.mubr.bf16.mxu0 %v15066_v24  ;;  %v2700_v46 = vsel %vm14715_vm11, %v2698_v54, %v2699_v9  ;;  %v4456_v24 = vrot.slane %v14602_v11, 6  ;;  %v15096_v9 = vld [vmem:[%s13718_s10 + $0xb4] sm:$0xf]  ;;  %v2713_v54 = vrot.slane %v14558_v13, 6 }
  0xe8   : > { %11516 = vmatpush3.bf16.msra.mxu1 %v14583_v17  ;;  %11487 = vmatprep.mubr.bf16.mxu1 %v16782_v20  ;;  %v2707_v3 = vsel %vm14715_vm11, %v2705_v23, %v2706_v59  ;;  %v15093_v52 = vcombine.low %v2697_v36, %v2700_v46  ;;  %v10218_v17 = vrot.slane %v15096_v9, 10  ;;  %v2712_v32 = vrot.slane %v2710_v57, 4  ;;  %v13438_v36 = vld [vmem:[%s16304_s1 + $0xd8] sm:$0xff]  }
  0xe9   : > { %11517 = vmatprep.subr.bf16.mxu1 %v13434_v8  ;;  %v15100_v20 = vcombine.low %v2704_v12, %v2707_v3  ;;  %v10360_v23 = vrot.slane %v14592_v51, 10  ;;  %v4458_v6 = vrot.slane %v4456_v24, 4  ;;  %v4459_v59 = vrot.slane %v14612_v10, 6 }
  0xea   : > { %16783 = vst [vmem:[#allocation78_spill] sm:$0xff] %v15093_v52  ;;  %v6142_v46 = vrot.slane %v14652_v0, 6  ;;  %v2711_v13 = vsel %vm14715_vm11, %v10218_v17, %v2710_v57  ;;  %v2714_v3 = vsel %vm14715_vm11, %v2712_v32, %v2713_v54  ;;  %v13440_v57 = vld [vmem:[%s16304_s1 + $0xe0] sm:$0xff]   ;;  %v6145_v32 = vrot.slane %v14662_v49, 6 }
  0xeb   : > { %16784 = vst [vmem:[#allocation79_spill] sm:$0xff] %v15100_v20  ;;  %v4457_v12 = vsel %vm14715_vm11, %v10360_v23, %v4456_v24  ;;  %v15124_v17 = vcombine.low %v2711_v13, %v2714_v3  ;;  %v16789_v24 = vshrl.u32 %v16775_v1, 16  ;;  %v16792_v10 = vshll.u32 %v13774_v34, 16  ;;  %v13629_v3 = vld [vmem:[%s13718_s10 + $0xc] sm:$0xf] }
  0xec   : > { %11518 = vmatpush3.bf16.msra.mxu1 %v13434_v8  ;;  %v16786_v8 = vld [vmem:[#allocation12_spill] sm:$0xff]  ;;  %v6144_v54 = vrot.slane %v6142_v46, 4 }
  0xed   : > { %11519 = vmatprep.subr.bf16.mxu1 %v13436_v2  ;;  %16787 = vst [vmem:[#allocation80_spill] sm:$0xff] %v15124_v17  ;;  %v1989_v23 = vrot.slane %v16789_v24, 5  ;;  %v1994_v0 = vrot.slane %v16792_v10, 6  ;;  %v13630_v10 = vld [vmem:[%s13718_s10 + $0x10] sm:$0xf]  ;;  %v16794_v24 = vld [vmem:[#allocation19_spill] sm:$0xff] }
  0xee   : > { %12080 = vmatmul.mubr.bf16.gmra.mrb[20].mxu0 %v15093_v52  ;;  %v4460_v52 = vsel %vm14715_vm11, %v4458_v6, %v4459_v59  ;;  %v16790_v6 = vshll.u32 %v16775_v1, 16  ;;  %v6146_v1 = vsel %vm14715_vm11, %v6144_v54, %v6145_v32  ;;  %v10117_v54 = vrot.slane %v14957_v7, 9  ;;  %v13444_v32 = vld [vmem:[%s16304_s1 + $0xf0] sm:$0xff]   ;;  %v13446_v7 = vld [vmem:[%s16304_s1 + $0xf8] sm:$0xff]  }
  0xef   : > { %11488 = vmatmul.mubr.bf16.gmra.mrb[4].mxu1 %v16785_v5  ;;  %12083 = vmatprep.mubr.bf16.mxu0 %v15100_v20  ;;  %v10487_v5 = vrot.slane %v14642_v61, 10  ;;  %v16791_v20 = vshrl.u32 %v13774_v34, 16  ;;  %v1545_v34 = vrot.slane %v14961_v26, 5 }
  0xf0   : > { %11491 = vmatprep.mubr.bf16.mxu1 %v16786_v8  ;;  %11520 = vmatpush3.bf16.msra.mxu1 %v13436_v2  ;;  %v15127_v2 = vcombine.low %v4457_v12, %v4460_v52  ;;  %v1990_v59 = vrot.slane %v16790_v6, 6  ;;  %v13442_v52 = vld [vmem:[%s16304_s1 + $0xe8] sm:$0xff]   ;;  %v10204_v12 = vrot.slane %v13629_v3, 10 }
  0xf1   : > { %11521 = vmatprep.subr.bf16.mxu1 %v13438_v36  ;;  %v1993_v8 = vrot.slane %v16791_v20, 5  ;;  %v6143_v13 = vsel %vm14715_vm11, %v10487_v5, %v6142_v46  ;;  %v16793_v20 = vld [vmem:[#allocation16_spill] sm:$0xff]  ;;  %v1998_v5 = vshrl.u32 %v14995_v41, 16 }
  0xf2   : > { %16788 = vst [vmem:[#allocation81_spill] sm:$0xff] %v15127_v2  ;;  %v1991_v6 = vor.u32 %v1990_v59, %v1989_v23  ;;  %v15152_v46 = vcombine.low %v6143_v13, %v6146_v1  ;;  %v16800_v1 = vld [vmem:[#allocation26_spill] sm:$0xff] }
  0xf4   : > { %11522 = vmatpush3.bf16.msra.mxu1 %v13438_v36  ;;  %v2612_v36 = vrot.slane %v13630_v10, 6  ;;  %16795 = vst [vmem:[#allocation16_spill] sm:$0xff] %v15152_v46  ;;  %v1992_v3 = vrot.slane %v1991_v6, 4  ;;  %v16796_v10 = vshll.u32 %v14327_v60, 16 }
  0xf5   : > { %11523 = vmatprep.subr.bf16.mxu1 %v13440_v57 }
  0xf6   : > { %12084 = vmatmul.mubr.bf16.gmra.mrb[24].mxu0 %v15124_v17  ;;  %v1995_v17 = vor.u32 %v1994_v0, %v1993_v8  ;;  %v1548_v0 = vrot.slane %v14965_v19, 5  ;;  %v2613_v60 = vsel %vm14715_vm11, %v10204_v12, %v2612_v36  ;;  %v2614_v13 = vrot.slane %v2612_v36, 4  ;;  %v16797_v19 = vld [vmem:[#allocation24_spill] sm:$0xff]  ;;  %v15186_v36 = vld [vmem:[%s16304_s1 + $0x100] sm:$0xff]  }
  0xf7   : > { %11492 = vmatmul.mubr.bf16.gmra.mrb[8].mxu1 %v16793_v20  ;;  %12087 = vmatprep.mubr.bf16.mxu0 %v15127_v2  ;;  %v2000_v2 = vrot.slane %v1998_v5, 5  ;;  %v1552_v5 = vrot.slane %v15006_v4, 5  ;;  %v1559_v12 = vrot.slane %v15022_v25, 5  ;;  %v10118_v4 = vrot.slane %v14999_v63, 9  ;;  %v16803_v63 = vld [vmem:[#allocation15_spill] sm:$0xff] }
  0xf8   : > { %11495 = vmatprep.mubr.bf16.mxu1 %v16794_v24  ;;  %11524 = vmatpush3.bf16.msra.mxu1 %v13440_v57  ;;  %v1997_v26 = vrot.slane %v1995_v17, 4  ;;  %v2001_v24 = vrot.slane %v16796_v10, 6  ;;  %v1547_v57 = vrot.slane %v1545_v34, 4  ;;  %v1996_v8 = vsel %vm14023_vm5, %v1992_v3, %v1995_v17 }
  0xf9   : > { %11525 = vmatprep.subr.bf16.mxu1 %v13442_v52  ;;  %v1573_v3 = vrot.slane %v15055_v40, 5  ;;  %v1555_v25 = vrot.slane %v15010_v50, 5  ;;  %v1554_v10 = vrot.slane %v1552_v5, 4  ;;  %v1561_v40 = vrot.slane %v1559_v12, 4 }
  0xfa   : > { %v2002_v23 = vor.u32 %v2001_v24, %v2000_v2  ;;  %v2615_v2 = vrot.slane %v14995_v41, 6  ;;  %v1546_v24 = vsel %vm13740_vm2, %v10117_v54, %v1545_v34  ;;  %v1549_v6 = vsel %vm13740_vm2, %v1547_v57, %v1548_v0 }
  0xfb   : > { %v1566_v41 = vrot.slane %v15038_v16, 5  ;;  %v10119_v16 = vrot.slane %v15018_v18, 9  ;;  %v1562_v57 = vrot.slane %v15030_v48, 5  ;;  %v10120_v0 = vrot.slane %v15047_v31, 9  ;;  %v13445_v18 = vld [vmem:[%s16304_s1 + $0x410] sm:$0xff]   ;;  %v16805_v31 = vld [vmem:[#allocation3_spill] sm:$0xff] }
  0xfc   : > { %11526 = vmatpush3.bf16.msra.mxu1 %v13442_v52  ;;  %v2003_v59 = vsel %vm14023_vm5, %v1997_v26, %v2002_v23  ;;  %v16798_v52 = vld [vmem:[#allocation14_spill] sm:$0xff]  ;;  %v2616_v34 = vsel %vm14715_vm11, %v2614_v13, %v2615_v2  ;;  %v15194_v26 = vcombine.low %v1546_v24, %v1549_v6  ;;  %v10121_v23 = vrot.slane %v15063_v58, 9  ;;  %v16808_v13 = vld [vmem:[#allocation4_spill] sm:$0xff] }
  0xfd   : > { %11527 = vmatprep.subr.bf16.mxu1 %v13444_v32  ;;  %v15173_v17 = vcombine.low %v1996_v8, %v2003_v59  ;;  %v15192_v54 = vcombine.low %v2613_v60, %v2616_v34  ;;  %v1569_v8 = vrot.slane %v15051_v42, 5  ;;  %v1568_v50 = vrot.slane %v1566_v41, 4  ;;  %v16804_v60 = vld [vmem:[#allocation27_spill] sm:$0xff] }
  0xfe   : > { %12088 = vmatmul.mubr.bf16.gmra.mrb[28].mxu0 %v15152_v46  ;;  %16802 = vst [vmem:[#allocation82_spill] sm:$0xff] %v15194_v26  ;;  %v1575_v59 = vrot.slane %v1573_v3, 4  ;;  %v16806_v48 = vshrl.u32 %v16805_v31, 16  ;;  %v16807_v42 = vshll.u32 %v16805_v31, 16  ;;  %v16809_v2 = vshrl.u32 %v16808_v13, 16  ;;  %v16811_v46 = vld [vmem:[#allocation20_spill] sm:$0xff] }
  0xff   : > { %11496 = vmatmul.mubr.bf16.gmra.mrb[12].mxu1 %v16797_v19  ;;  %12107 = vmatprep.mubr.bf16.mxu0 %v16798_v52  ;;  %16799 = vst [vmem:[#allocation24_spill] sm:$0xff] %v15173_v17  ;;  %16801 = vst [vmem:[#allocation26_spill] sm:$0xff] %v15192_v54  ;;  %v16810_v6 = vshll.u32 %v16808_v13, 16  ;;  %v1576_v31 = vrot.slane %v15069_v37, 5  ;;  %v1563_v13 = vsel %vm13740_vm2, %v1561_v40, %v1562_v57  ;;  %v13447_v37 = vld [vmem:[%s16304_s1 + $0x418] sm:$0xff]   ;;  %v16814_v40 = vld [vmem:[#allocation21_spill] sm:$0xff] }
 0x100   : > { %11499 = vmatprep.mubr.bf16.mxu1 %v16800_v1  ;;  %11528 = vmatpush3.bf16.msra.mxu1 %v13444_v32  ;;  %v13443_v32 = vld [vmem:[%s16304_s1 + $0x408] sm:$0xff]   ;;  %v1975_v58 = vrot.slane %v16807_v42, 6  ;;  %v1978_v24 = vrot.slane %v16809_v2, 5  ;;  %v1560_v42 = vsel %vm13740_vm2, %v10119_v16, %v1559_v12  ;;  %v10122_v2 = vrot.slane %v15096_v9, 9  ;;  %v13631_v16 = vld [vmem:[%s13718_s10 + $0xbc] sm:$0x3] }
 0x101   : > { %11529 = vmatprep.subr.bf16.mxu1 %v13446_v7  ;;  %v1979_v34 = vrot.slane %v16810_v6, 6  ;;  %v1983_v6 = vshrl.u32 %v14951_v45, 16  ;;  %v16815_v9 = vld [vmem:[#allocation22_spill] sm:$0xff] }
 0x104   : > { %11530 = vmatpush3.bf16.msra.mxu1 %v13446_v7  ;;  %v1974_v7 = vrot.slane %v16806_v48, 5  ;;  %v1580_v48 = vrot.slane %v15080_v29, 5  ;;  %v1980_v29 = vor.u32 %v1979_v34, %v1978_v24  ;;  %v1570_v24 = vsel %vm13740_vm2, %v1568_v50, %v1569_v8  ;;  %v13454_v8 = vld [vmem:[%s16304_s1 + $0x430] sm:$0xff]  }
 0x105   : > { %11563 = vmatprep.subr.bf16.mxu1 %v15186_v36  ;;  %v1574_v34 = vsel %vm13740_vm2, %v10121_v23, %v1573_v3  ;;  %v16821_v3 = vld [vmem:[#allocation25_spill] sm:$0xff] }
 0x106   : > { %12108 = vmatmul.mubr.bf16.vlgmr.msra.gmra.mrb[0].mxu0 %v16803_v63  ;;  %v1556_v63 = vsel %vm13740_vm2, %v1554_v10, %v1555_v25  ;;  %v15240_v25 = vcombine.low %v1560_v42, %v1563_v13  ;;  %v1582_v12 = vrot.slane %v1580_v48, 4  ;;  %v1583_v10 = vrot.slane %v13631_v16, 5  ;;  %v13451_v13 = vld [vmem:[%s16304_s1 + $0x428] sm:$0xff]   ;;  %v16826_v16 = vld [vmem:[#allocation35_spill] sm:$0xff] }
 0x107   : > { %11500 = vmatmul.mubr.bf16.gmra.mrb[16].mxu1 %v16804_v60  ;;  %12140 = vmatpush3.bf16.msra.mxu0 %v14987_v55  ;;  %v1553_v55 = vsel %vm13740_vm2, %v10118_v4, %v1552_v5  ;;  %v1976_v4 = vor.u32 %v1975_v58, %v1974_v7  ;;  %v13449_v7 = vld [vmem:[%s16304_s1 + $0x420] sm:$0xff]   ;;  %v1567_v58 = vsel %vm13740_vm2, %v10120_v0, %v1566_v41 }
 0x108   : > { %11503 = vmatprep.mubr.bf16.mxu1 %v15194_v26  ;;  %12111 = vmatprep.mubr.bf16.mxu0 %v16811_v46  ;;  %v15235_v5 = vcombine.low %v1553_v55, %v1556_v63  ;;  %16813 = vst [vmem:[#allocation4_spill] sm:$0xff] %v15240_v25  ;;  %v1985_v63 = vrot.slane %v1983_v6, 5  ;;  %v16816_v55 = vld [vmem:[#allocation41_spill] sm:$0xff]  ;;  %v1577_v42 = vsel %vm13740_vm2, %v1575_v59, %v1576_v31  ;;  %v16820_v0 = vld [vmem:[#allocation23_spill] sm:$0xff]  ;;  %v13458_v31 = vld [vmem:[%s16304_s1 + $0x438] sm:$0xff]  }
 0x109   : > { %12141 = vmatprep.subr.bf16.mxu0 %v13443_v32  ;;  %v1977_v57 = vrot.slane %v1976_v4, 4  ;;  %v16817_v46 = vshll.u32 %v16816_v55, 16  ;;  %v15265_v6 = vcombine.low %v1574_v34, %v1577_v42  ;;  %v1581_v23 = vsel %vm13740_vm2, %v10122_v2, %v1580_v48  ;;  %v16823_v48 = vld [vmem:[#allocation29_spill] sm:$0xff]  ;;  %v16824_v2 = vld [vmem:[#allocation31_spill] sm:$0xff]  ;;  %v16829_v55 = vld [vmem:[#allocation32_spill] sm:$0xff] }
 0x10a   : > { %16812 = vst [vmem:[#allocation3_spill] sm:$0xff] %v15235_v5  ;;  %v1584_v50 = vsel %vm13740_vm2, %v1582_v12, %v1583_v10  ;;  %v13460_v4 = vld [vmem:[%s16304_s1 + $0x440] sm:$0xff]   ;;  %v16825_v12 = vld [vmem:[#allocation33_spill] sm:$0xff] }
 0x10b   : > { %12142 = vmatpush3.bf16.msra.mxu0 %v13443_v32  ;;  %v1982_v32 = vrot.slane %v1980_v29, 4  ;;  %v1986_v52 = vrot.slane %v16817_v46, 6  ;;  %v15260_v46 = vcombine.low %v1567_v58, %v1570_v24  ;;  %16819 = vst [vmem:[#allocation22_spill] sm:$0xff] %v15265_v6  ;;  %v13452_v10 = vld [vmem:[%s16304_s1 + $0x110] sm:$0xff]   ;;  %v16831_v58 = vld [vmem:[#allocation34_spill] sm:$0xff] }
 0x10c   : > { %12143 = vmatprep.subr.bf16.mxu0 %v13445_v18  ;;  %v15315_v24 = vld [vmem:[%s13718_s10 + $0xc0] sm:$0xf]  ;;  %v15318_v34 = vld [vmem:[%s13718_s10 + $0xc4] sm:$0xf] }
 0x10d   : > { %16818 = vst [vmem:[#allocation21_spill] sm:$0xff] %v15260_v46  ;;  %v1987_v41 = vor.u32 %v1986_v52, %v1985_v63  ;;  %v1981_v52 = vsel %vm14023_vm5, %v1977_v57, %v1980_v29  ;;  %v13450_v29 = vld [vmem:[%s16304_s1 + $0x108] sm:$0xff]   ;;  %v16827_v57 = vld [vmem:[#allocation30_spill] sm:$0xff]  ;;  %v16828_v63 = vld [vmem:[#allocation37_spill] sm:$0xff]  ;;  %v15322_v42 = vcombine.low %v15315_v24, %v15318_v34 }
 0x10e   : > { %12112 = vmatmul.mubr.bf16.gmra.mrb[4].mxu0 %v16814_v40 }
 0x10f   : > { %11504 = vmatmul.mubr.bf16.gmra.mrb[20].mxu1 %v15235_v5  ;;  %12115 = vmatprep.mubr.bf16.mxu0 %v16815_v9  ;;  %v1988_v59 = vsel %vm14023_vm5, %v1982_v32, %v1987_v41  ;;  %v13456_v32 = vld [vmem:[%s16304_s1 + $0x118] sm:$0xff]   ;;  %16832 = vst [vmem:[#allocation23_spill] sm:$0xff] %v15322_v42  ;;  %v15328_v41 = vld [vmem:[%s13718_s10 + $0xd0] sm:$0xf] }
 0x110   : > { %11507 = vmatprep.mubr.bf16.mxu1 %v15240_v25  ;;  %12144 = vmatpush3.bf16.msra.mxu0 %v13445_v18  ;;  %v15282_v18 = vcombine.low %v1581_v23, %v1584_v50  ;;  %v13461_v23 = vld [vmem:[%s16304_s1 + $0x128] sm:$0xff]  }
 0x111   : > { %12145 = vmatprep.subr.bf16.mxu0 %v13447_v37  ;;  %v16834_v50 = vld [vmem:[#allocation36_spill] sm:$0xff] }
 0x112   : > { %16822 = vst [vmem:[#allocation41_spill] sm:$0xff] %v15282_v18 }
 0x114   : > { %12146 = vmatpush3.bf16.msra.mxu0 %v13447_v37  ;;  %v10179_v37 = vcombine.low %v1981_v52, %v1988_v59  ;;  %v15341_v52 = vld [vmem:[%s13718_s10 + $0xd8] sm:$0xf]  ;;  %v15344_v59 = vld [vmem:[%s13718_s10 + $0xdc] sm:$0xf] }
 0x115   : > { %12147 = vmatprep.subr.bf16.mxu0 %v13449_v7 }
 0x116   : > { %12116 = vmatmul.mubr.bf16.gmra.mrb[8].mxu0 %v16820_v0 }
 0x117   : > { %11508 = vmatmul.mubr.bf16.gmra.mrb[24].mxu1 %v15260_v46  ;;  %12119 = vmatprep.mubr.bf16.mxu0 %v16821_v3 }
 0x118   : > { %11511 = vmatprep.mubr.bf16.mxu1 %v15265_v6  ;;  %12148 = vmatpush3.bf16.msra.mxu0 %v13449_v7  ;;  %v16830_v7 = vld [vmem:[#allocation39_spill] sm:$0xff] }
 0x119   : > { %12149 = vmatprep.subr.bf16.mxu0 %v13451_v13 }
 0x11c   : > { %12150 = vmatpush3.bf16.msra.mxu0 %v13451_v13  ;;  %v15325_v13 = vld [vmem:[%s13718_s10 + $0xcc] sm:$0xf] }
 0x11d   : > { %12151 = vmatprep.subr.bf16.mxu0 %v13454_v8 }
 0x11e   : > { %12120 = vmatmul.mubr.bf16.gmra.mrb[12].mxu0 %v16823_v48 }
 0x11f   : > { %11512 = vmatmul.mubr.bf16.gmra.mrb[28].mxu1 %v15282_v18  ;;  %12123 = vmatprep.mubr.bf16.mxu0 %v16824_v2 }
 0x120   : > { %11531 = vmatprep.mubr.bf16.mxu1 %v10179_v37  ;;  %12152 = vmatpush3.bf16.msra.mxu0 %v13454_v8  ;;  %v15332_v8 = vcombine.low %v15325_v13, %v15328_v41  ;;  %v13463_v37 = vld [vmem:[%s16304_s1 + $0x130] sm:$0xff]  }
 0x121   : > { %12153 = vmatprep.subr.bf16.mxu0 %v13458_v31 }
 0x122   : > { %16833 = vst [vmem:[#allocation25_spill] sm:$0xff] %v15332_v8 }
 0x124   : > { %12154 = vmatpush3.bf16.msra.mxu0 %v13458_v31  ;;  %v16835_v31 = vld [vmem:[#allocation38_spill] sm:$0xff] }
 0x125   : > { %12187 = vmatprep.subr.bf16.mxu0 %v13460_v4 }
 0x126   : > { %12124 = vmatmul.mubr.bf16.gmra.mrb[16].mxu0 %v16825_v12 }
 0x127   : > { %11532 = vmatmul.mubr.bf16.vlgmr.msra.gmra.mrb[0].mxu1 %v15173_v17  ;;  %12127 = vmatprep.mubr.bf16.mxu0 %v16826_v16 }
 0x128   : > { %11564 = vmatpush3.bf16.msra.mxu1 %v15186_v36  ;;  %11535 = vmatprep.mubr.bf16.mxu1 %v16827_v57  ;;  %v13459_v36 = vld [vmem:[%s16304_s1 + $0x120] sm:$0xff]   ;;  %v10203_v57 = vrot.slane %v14936_v33, 10 }
 0x129   : > { %11565 = vmatprep.subr.bf16.mxu1 %v13450_v29 }
 0x12c   : > { %11566 = vmatpush3.bf16.msra.mxu1 %v13450_v29  ;;  %v15352_v29 = vcombine.low %v15341_v52, %v15344_v59 }
 0x12d   : > { %11567 = vmatprep.subr.bf16.mxu1 %v13452_v10 }
 0x12e   : > { %12128 = vmatmul.mubr.bf16.gmra.mrb[20].mxu0 %v16828_v63  ;;  %16836 = vst [vmem:[#allocation29_spill] sm:$0xff] %v15352_v29 }
 0x12f   : > { %11536 = vmatmul.mubr.bf16.gmra.mrb[4].mxu1 %v16829_v55  ;;  %12131 = vmatprep.mubr.bf16.mxu0 %v16830_v7 }
 0x130   : > { %11539 = vmatprep.mubr.bf16.mxu1 %v16831_v58  ;;  %11568 = vmatpush3.bf16.msra.mxu1 %v13452_v10  ;;  %v13465_v10 = vld [vmem:[%s16304_s1 + $0x138] sm:$0xff]  }
 0x131   : > { %11569 = vmatprep.subr.bf16.mxu1 %v13456_v32 }
 0x134   : > { %11570 = vmatpush3.bf16.msra.mxu1 %v13456_v32  ;;  %v16837_v32 = vld [vmem:[#allocation40_spill] sm:$0xff] }
 0x135   : > { %11571 = vmatprep.subr.bf16.mxu1 %v13459_v36 }
 0x136   : > { %12132 = vmatmul.mubr.bf16.gmra.mrb[24].mxu0 %v15322_v42 }
 0x137   : > { %11540 = vmatmul.mubr.bf16.gmra.mrb[8].mxu1 %v16834_v50  ;;  %12135 = vmatprep.mubr.bf16.mxu0 %v15332_v8  ;;  %v15364_v8 = vld [vmem:[%s16304_s1 + $0x140] sm:$0xff]  }
 0x138   : > { %11543 = vmatprep.mubr.bf16.mxu1 %v16835_v31  ;;  %11572 = vmatpush3.bf16.msra.mxu1 %v13459_v36  ;;  %v16838_v36 = vld [vmem:[#allocation42_spill] sm:$0xff] }
 0x139   : > { %11573 = vmatprep.subr.bf16.mxu1 %v13461_v23 }
 0x13c   : > { %11574 = vmatpush3.bf16.msra.mxu1 %v13461_v23  ;;  %v13462_v23 = vld [vmem:[%s16304_s1 + $0x448] sm:$0xff]  }
 0x13d   : > { %11575 = vmatprep.subr.bf16.mxu1 %v13463_v37 }
 0x13e   : > { %12136 = vmatmul.mubr.bf16.gmra.mrb[28].mxu0 %v15352_v29  ;;  %v16839_v29 = vld [vmem:[#allocation44_spill] sm:$0xff] }
 0x13f   : > { %11544 = vmatmul.mubr.bf16.gmra.mrb[12].mxu1 %v16837_v32  ;;  %12155 = vmatprep.mubr.bf16.mxu0 %v14511_v35 }
 0x140   : > { %11547 = vmatprep.mubr.bf16.mxu1 %v16838_v36  ;;  %11576 = vmatpush3.bf16.msra.mxu1 %v13463_v37  ;;  %v13464_v37 = vld [vmem:[%s16304_s1 + $0x450] sm:$0xff]  }
 0x141   : > { %11577 = vmatprep.subr.bf16.mxu1 %v13465_v10 }
 0x144   : > { %11578 = vmatpush3.bf16.msra.mxu1 %v13465_v10  ;;  %v13466_v10 = vld [vmem:[%s16304_s1 + $0x458] sm:$0xff]  }
 0x145   : > { %11611 = vmatprep.subr.bf16.mxu1 %v15364_v8 }
 0x146   : > { %12156 = vmatmul.mubr.bf16.vlgmr.msra.gmra.mrb[0].mxu0 %v14560_v53 }
 0x147   : > { %11548 = vmatmul.mubr.bf16.gmra.mrb[16].mxu1 %v16839_v29  ;;  %12188 = vmatpush3.bf16.msra.mxu0 %v13460_v4  ;;  %v2605_v4 = vrot.slane %v14947_v15, 6  ;;  %v16841_v15 = vld [vmem:[#allocation9_spill] sm:$0xff] }
 0x148   : > { %11551 = vmatprep.mubr.bf16.mxu1 %v14392_v21  ;;  %12159 = vmatprep.mubr.bf16.mxu0 %v14614_v62  ;;  %v16849_v62 = vld [vmem:[#allocation56_spill] sm:$0xff] }
 0x149   : > { %12189 = vmatprep.subr.bf16.mxu0 %v13462_v23  ;;  %v2607_v17 = vrot.slane %v2605_v4, 4  ;;  %v2606_v33 = vsel %vm14715_vm11, %v10203_v57, %v2605_v4  ;;  %v16844_v57 = vshll.u32 %v14592_v51, 16 }
 0x14b   : > { %12190 = vmatpush3.bf16.msra.mxu0 %v13462_v23  ;;  %v13468_v23 = vld [vmem:[%s16304_s1 + $0x460] sm:$0xff]   ;;  %v2609_v45 = vsel %vm14715_vm11, %v2607_v17, %v2608_v47  ;;  %v3435_v4 = vrot.slane %v16844_v57, 5 }
 0x14c   : > { %12191 = vmatprep.subr.bf16.mxu0 %v13464_v37  ;;  %v15413_v47 = vld [vmem:[%s16304_s1 + $0x480] sm:$0xff]  }
 0x14e   : > { %12160 = vmatmul.mubr.bf16.gmra.mrb[4].mxu0 %v14664_v22  ;;  %v10235_v22 = vcombine.low %v2606_v33, %v2609_v45  ;;  %v16845_v33 = vshll.u32 %v14602_v11, 16  ;;  %v16852_v11 = vld [vmem:[#allocation68_spill] sm:$0xff] }
 0x14f   : > { %11552 = vmatmul.mubr.bf16.gmra.mrb[20].mxu1 %v14436_v14  ;;  %12163 = vmatprep.mubr.bf16.mxu0 %v14704_v27  ;;  %v13470_v27 = vld [vmem:[%s16304_s1 + $0x468] sm:$0xff]  }
 0x150   : > { %11555 = vmatprep.mubr.bf16.mxu1 %v14485_v43  ;;  %12192 = vmatpush3.bf16.msra.mxu0 %v13464_v37  ;;  %v16840_v37 = vld [vmem:[#allocation51_spill] sm:$0xff]  ;;  %v3441_v45 = vrot.slane %v16845_v33, 5  ;;  %v16854_v33 = vld [vmem:[#allocation60_spill] sm:$0xff] }
 0x151   : > { %12193 = vmatprep.subr.bf16.mxu0 %v13466_v10 }
 0x154   : > { %12194 = vmatpush3.bf16.msra.mxu0 %v13466_v10  ;;  %v13472_v10 = vld [vmem:[%s16304_s1 + $0x470] sm:$0xff]  }
 0x155   : > { %12195 = vmatprep.subr.bf16.mxu0 %v13468_v23 }
 0x156   : > { %12164 = vmatmul.mubr.bf16.gmra.mrb[8].mxu0 %v14744_v44 }
 0x157   : > { %11556 = vmatmul.mubr.bf16.gmra.mrb[24].mxu1 %v16840_v37  ;;  %12167 = vmatprep.mubr.bf16.mxu0 %v14773_v28  ;;  %v13474_v28 = vld [vmem:[%s16304_s1 + $0x478] sm:$0xff]  }
 0x158   : > { %11559 = vmatprep.mubr.bf16.mxu1 %v16841_v15  ;;  %12196 = vmatpush3.bf16.msra.mxu0 %v13468_v23  ;;  %v16842_v23 = vld [vmem:[#allocation55_spill] sm:$0xff]  ;;  %v16864_v37 = vld [vmem:[#allocation62_spill] sm:$0xff] }
 0x159   : > { %12197 = vmatprep.subr.bf16.mxu0 %v13470_v27 }
 0x15c   : > { %12198 = vmatpush3.bf16.msra.mxu0 %v13470_v27  ;;  %v16843_v27 = vshrl.u32 %v14592_v51, 16  ;;  %v13469_v51 = vld [vmem:[%s16304_s1 + $0x148] sm:$0xff]  }
 0x15d   : > { %12199 = vmatprep.subr.bf16.mxu0 %v13472_v10 }
 0x15e   : > { %12168 = vmatmul.mubr.bf16.gmra.mrb[12].mxu0 %v14805_v38  ;;  %v3432_v17 = vrot.slane %v16843_v27, 4  ;;  %v16848_v38 = vshll.u32 %v14642_v61, 16  ;;  %v16851_v27 = vshrl.u32 %v16849_v62, 16 }
 0x15f   : > { %11560 = vmatmul.mubr.bf16.gmra.mrb[28].mxu1 %v16842_v23  ;;  %12171 = vmatprep.mubr.bf16.mxu0 %v14840_v56  ;;  %v3445_v56 = vrot.slane %v16846_v30, 4  ;;  %v16850_v23 = vshll.u32 %v16849_v62, 16 }
 0x160   : > { %11579 = vmatprep.mubr.bf16.mxu1 %v10235_v22  ;;  %12200 = vmatpush3.bf16.msra.mxu0 %v13472_v10  ;;  %v16847_v22 = vshrl.u32 %v14642_v61, 16  ;;  %v5121_v44 = vrot.slane %v16848_v38, 5  ;;  %v5131_v15 = vrot.slane %v16851_v27, 4  ;;  %v3436_v30 = vor.u32 %v3435_v4, %v3432_v17  ;;  %v16853_v61 = vld [vmem:[#allocation69_spill] sm:$0xff] }
 0x161   : > { %12201 = vmatprep.subr.bf16.mxu0 %v13474_v28  ;;  %v5127_v53 = vrot.slane %v16850_v23, 5  ;;  %v3446_v57 = vor.u32 %v3445_v56, %v3441_v45  ;;  %v13471_v56 = vld [vmem:[%s16304_s1 + $0x150] sm:$0xff]  }
 0x162   : > { %v5118_v10 = vrot.slane %v16847_v22, 4  ;;  %v3437_v4 = vrot.slane %v3436_v30, 4  ;;  %v16855_v38 = vld [vmem:[#allocation53_spill] sm:$0xff]  ;;  %v16861_v30 = vshll.u32 %v14662_v49, 16 }
 0x163   : > { %v5132_v17 = vor.u32 %v5131_v15, %v5127_v53  ;;  %v3447_v27 = vrot.slane %v3446_v57, 4  ;;  %v16856_v62 = vshll.u32 %v16855_v38, 16  ;;  %v16860_v15 = vshrl.u32 %v15344_v59, 16  ;;  %v15460_v38 = vld [vmem:[%s13718_s10 + $0xe0] sm:$0x3] }
 0x164   : > { %12202 = vmatpush3.bf16.msra.mxu0 %v13474_v28  ;;  %v5122_v22 = vor.u32 %v5121_v44, %v5118_v10  ;;  %v16857_v28 = vshrl.u32 %v15341_v52, 16  ;;  %v5137_v57 = vrot.slane %v16861_v30, 5  ;;  %v16866_v30 = vld [vmem:[#allocation64_spill] sm:$0xff] }
 0x165   : > { %12235 = vmatprep.subr.bf16.mxu0 %v15413_v47  ;;  %v6817_v10 = vrot.slane %v16860_v15, 4  ;;  %v5133_v35 = vrot.slane %v5132_v17, 4  ;;  %v16542_v15 = vshll.u32 %v15460_v38, 16 }
 0x166   : > { %12172 = vmatmul.mubr.bf16.gmra.mrb[16].mxu0 %v16852_v11  ;;  %v6804_v23 = vrot.slane %v16857_v28, 4  ;;  %v5123_v11 = vrot.slane %v5122_v22, 4  ;;  %v16862_v28 = vld [vmem:[#allocation71_spill] sm:$0xff] }
 0x167   : > { %11580 = vmatmul.mubr.bf16.vlgmr.msra.gmra.mrb[0].mxu1 %v15192_v54  ;;  %12175 = vmatprep.mubr.bf16.mxu0 %v16853_v61  ;;  %v3451_v54 = vrot.slane %v16856_v62, 5  ;;  %v13473_v62 = vld [vmem:[%s16304_s1 + $0x158] sm:$0xff]  }
 0x168   : > { %11612 = vmatpush3.bf16.msra.mxu1 %v15364_v8  ;;  %11583 = vmatprep.mubr.bf16.mxu1 %v16854_v33  ;;  %v16858_v8 = vshll.u32 %v15341_v52, 16  ;;  %v16859_v33 = vshll.u32 %v15344_v59, 16 }
 0x169   : > { %11613 = vmatprep.subr.bf16.mxu1 %v13469_v51  ;;  %v3452_v49 = vsel %vm14318_vm8, %v3447_v27, %v3451_v54 }
 0x16a   : > { %v6807_v61 = vrot.slane %v16858_v8, 5  ;;  %v6813_v44 = vrot.slane %v16859_v33, 5  ;;  %v3442_v33 = vsel %vm14318_vm8, %v3437_v4, %v3441_v45  ;;  %v5138_v45 = vsel %vm14318_vm8, %v5133_v35, %v5137_v57  ;;  %v13475_v4 = vld [vmem:[%s16304_s1 + $0x160] sm:$0xff]   ;;  %v13477_v35 = vld [vmem:[%s16304_s1 + $0x168] sm:$0xff]   ;;  %v13479_v57 = vld [vmem:[%s16304_s1 + $0x170] sm:$0xff]  }
 0x16b   : > { %v16884_v8 = vld [vmem:[#allocation8_spill] sm:$0xff] }
 0x16c   : > { %11614 = vmatpush3.bf16.msra.mxu1 %v13469_v51  ;;  %v16865_v51 = vld [vmem:[#allocation74_spill] sm:$0xff]  ;;  %v6808_v22 = vor.u32 %v6807_v61, %v6804_v23  ;;  %v6818_v17 = vor.u32 %v6817_v10, %v6813_v44  ;;  %v16870_v10 = vld [vmem:[#allocation67_spill] sm:$0xff] }
 0x16d   : > { %11615 = vmatprep.subr.bf16.mxu1 %v13471_v56 }
 0x16e   : > { %12176 = vmatmul.mubr.bf16.gmra.mrb[20].mxu0 %v16862_v28  ;;  %v5128_v28 = vsel %vm14318_vm8, %v5123_v11, %v5127_v53  ;;  %v6809_v61 = vrot.slane %v6808_v22, 4  ;;  %v6819_v23 = vrot.slane %v6818_v17, 4  ;;  %v16869_v53 = vld [vmem:[#allocation65_spill] sm:$0xff]  ;;  %v13483_v22 = vld [vmem:[%s16304_s1 + $0x180] sm:$0xff]   ;;  %v13478_v17 = vld [vmem:[%s16304_s1 + $0x488] sm:$0xff]  }
 0x16f   : > { %11584 = vmatmul.mubr.bf16.gmra.mrb[4].mxu1 %v16864_v37  ;;  %12179 = vmatprep.mubr.bf16.mxu0 %v16865_v51  ;;  %v15481_v51 = vcombine.low %v3442_v33, %v3452_v49  ;;  %v15483_v54 = vcombine.low %v5128_v28, %v5138_v45  ;;  %v13481_v28 = vld [vmem:[%s16304_s1 + $0x178] sm:$0xff]   ;;  %v16874_v49 = vld [vmem:[#allocation72_spill] sm:$0xff] }
 0x170   : > { %11587 = vmatprep.mubr.bf16.mxu1 %v16866_v30  ;;  %11616 = vmatpush3.bf16.msra.mxu1 %v13471_v56  ;;  %v6823_v56 = vrot.slane %v16542_v15, 5  ;;  %v6814_v11 = vsel %vm14318_vm8, %v6809_v61, %v6813_v44  ;;  %v16872_v44 = vld [vmem:[#allocation70_spill] sm:$0xff]  ;;  %v16875_v45 = vld [vmem:[#allocation12_spill] sm:$0xff] }
 0x171   : > { %11617 = vmatprep.subr.bf16.mxu1 %v13473_v62  ;;  %16867 = vst [vmem:[#allocation33_spill] sm:$0xff] %v15481_v51  ;;  %16868 = vst [vmem:[#allocation35_spill] sm:$0xff] %v15483_v54  ;;  %v16873_v33 = vld [vmem:[#allocation10_spill] sm:$0xff]  ;;  %v16883_v15 = vld [vmem:[#allocation80_spill] sm:$0xff] }
 0x172   : > { %v6824_v27 = vsel %vm14318_vm8, %v6819_v23, %v6823_v56  ;;  %v16877_v61 = vld [vmem:[#allocation6_spill] sm:$0xff]  ;;  %v13480_v23 = vld [vmem:[%s16304_s1 + $0x490] sm:$0xff]  }
 0x173   : > { %v13482_v56 = vld [vmem:[%s16304_s1 + $0x498] sm:$0xff]  }
 0x174   : > { %11618 = vmatpush3.bf16.msra.mxu1 %v13473_v62  ;;  %v15501_v62 = vcombine.low %v6814_v11, %v6824_v27  ;;  %v16879_v11 = vld [vmem:[#allocation76_spill] sm:$0xff]  ;;  %v13484_v27 = vld [vmem:[%s16304_s1 + $0x4a0] sm:$0xff]  }
 0x175   : > { %11619 = vmatprep.subr.bf16.mxu1 %v13475_v4 }
 0x176   : > { %12180 = vmatmul.mubr.bf16.gmra.mrb[24].mxu0 %v15481_v51  ;;  %16871 = vst [vmem:[#allocation37_spill] sm:$0xff] %v15501_v62 }
 0x177   : > { %11588 = vmatmul.mubr.bf16.gmra.mrb[8].mxu1 %v16869_v53  ;;  %12183 = vmatprep.mubr.bf16.mxu0 %v15483_v54  ;;  %v13487_v54 = vld [vmem:[%s16304_s1 + $0x190] sm:$0xff]  }
 0x178   : > { %11591 = vmatprep.mubr.bf16.mxu1 %v16870_v10  ;;  %11620 = vmatpush3.bf16.msra.mxu1 %v13475_v4  ;;  %v16876_v4 = vld [vmem:[#allocation73_spill] sm:$0xff] }
 0x179   : > { %11621 = vmatprep.subr.bf16.mxu1 %v13477_v35 }
 0x17c   : > { %11622 = vmatpush3.bf16.msra.mxu1 %v13477_v35  ;;  %v16878_v35 = vld [vmem:[#allocation19_spill] sm:$0xff] }
 0x17d   : > { %11623 = vmatprep.subr.bf16.mxu1 %v13479_v57 }
 0x17e   : > { %12184 = vmatmul.mubr.bf16.gmra.mrb[28].mxu0 %v15501_v62  ;;  %v16885_v62 = vld [vmem:[#allocation11_spill] sm:$0xff] }
 0x17f   : > { %11592 = vmatmul.mubr.bf16.gmra.mrb[12].mxu1 %v16872_v44  ;;  %12203 = vmatprep.mubr.bf16.mxu0 %v16873_v33 }
 0x180   : > { %11595 = vmatprep.mubr.bf16.mxu1 %v16874_v49  ;;  %11624 = vmatpush3.bf16.msra.mxu1 %v13479_v57  ;;  %v13486_v57 = vld [vmem:[%s16304_s1 + $0x4a8] sm:$0xff]  }
 0x181   : > { %11625 = vmatprep.subr.bf16.mxu1 %v13481_v28 }
 0x184   : > { %11626 = vmatpush3.bf16.msra.mxu1 %v13481_v28  ;;  %v16881_v28 = vld [vmem:[#allocation78_spill] sm:$0xff] }
 0x185   : > { %11659 = vmatprep.subr.bf16.mxu1 %v13483_v22 }
 0x186   : > { %12204 = vmatmul.mubr.bf16.vlgmr.msra.gmra.mrb[0].mxu0 %v16875_v45 }
 0x187   : > { %11596 = vmatmul.mubr.bf16.gmra.mrb[16].mxu1 %v16876_v4  ;;  %12236 = vmatpush3.bf16.msra.mxu0 %v15413_v47  ;;  %v16880_v47 = vld [vmem:[#allocation77_spill] sm:$0xff] }
 0x188   : > { %11599 = vmatprep.mubr.bf16.mxu1 %v16877_v61  ;;  %12207 = vmatprep.mubr.bf16.mxu0 %v16793_v20 }
 0x189   : > { %12237 = vmatprep.subr.bf16.mxu0 %v13478_v17 }
 0x18b   : > { %12238 = vmatpush3.bf16.msra.mxu0 %v13478_v17  ;;  %v16882_v17 = vld [vmem:[#allocation79_spill] sm:$0xff] }
 0x18c   : > { %12239 = vmatprep.subr.bf16.mxu0 %v13480_v23 }
 0x18e   : > { %12208 = vmatmul.mubr.bf16.gmra.mrb[4].mxu0 %v16878_v35 }
 0x18f   : > { %11600 = vmatmul.mubr.bf16.gmra.mrb[20].mxu1 %v16879_v11  ;;  %12211 = vmatprep.mubr.bf16.mxu0 %v16797_v19 }
 0x190   : > { %11603 = vmatprep.mubr.bf16.mxu1 %v16880_v47  ;;  %12240 = vmatpush3.bf16.msra.mxu0 %v13480_v23  ;;  %v13488_v23 = vld [vmem:[%s16304_s1 + $0x4b0] sm:$0xff]  }
 0x191   : > { %12241 = vmatprep.subr.bf16.mxu0 %v13482_v56 }
 0x194   : > { %12242 = vmatpush3.bf16.msra.mxu0 %v13482_v56  ;;  %v13490_v56 = vld [vmem:[%s16304_s1 + $0x4b8] sm:$0xff]  }
 0x195   : > { %12243 = vmatprep.subr.bf16.mxu0 %v13484_v27 }
 0x196   : > { %12212 = vmatmul.mubr.bf16.gmra.mrb[8].mxu0 %v16800_v1 }
 0x197   : > { %11604 = vmatmul.mubr.bf16.gmra.mrb[24].mxu1 %v16881_v28  ;;  %12215 = vmatprep.mubr.bf16.mxu0 %v16804_v60 }
 0x198   : > { %11607 = vmatprep.mubr.bf16.mxu1 %v16882_v17  ;;  %12244 = vmatpush3.bf16.msra.mxu0 %v13484_v27  ;;  %v15554_v27 = vld [vmem:[%s16304_s1 + $0x4c0] sm:$0xff]  }
 0x199   : > { %12245 = vmatprep.subr.bf16.mxu0 %v13486_v57 }
 0x19c   : > { %12246 = vmatpush3.bf16.msra.mxu0 %v13486_v57  ;;  %v13485_v57 = vld [vmem:[%s16304_s1 + $0x188] sm:$0xff]  }
 0x19d   : > { %12247 = vmatprep.subr.bf16.mxu0 %v13488_v23 }
 0x19e   : > { %12216 = vmatmul.mubr.bf16.gmra.mrb[12].mxu0 %v15194_v26  ;;  %v13636_v26 = vld [vmem:[%s13718_s10 + $0xc8] sm:$0x3] }
 0x19f   : > { %11608 = vmatmul.mubr.bf16.gmra.mrb[28].mxu1 %v16883_v15  ;;  %12219 = vmatprep.mubr.bf16.mxu0 %v15235_v5  ;;  %v10309_v5 = vrot.slane %v15315_v24, 9  ;;  %v3785_v60 = vrot.slane %v13636_v26, 5 }
 0x1a0   : > { %11627 = vmatprep.mubr.bf16.mxu1 %v16884_v8  ;;  %12248 = vmatpush3.bf16.msra.mxu0 %v13488_v23  ;;  %v3782_v8 = vrot.slane %v15318_v34, 5  ;;  %v16886_v23 = vld [vmem:[#allocation14_spill] sm:$0xff]  ;;  %v13637_v34 = vld [vmem:[%s13718_s10 + $0xd4] sm:$0x3] }
 0x1a1   : > { %12249 = vmatprep.subr.bf16.mxu0 %v13490_v56 }
 0x1a2   : > { %v3783_v26 = vsel %vm13740_vm2, %v10309_v5, %v3782_v8 }
 0x1a4   : > { %12250 = vmatpush3.bf16.msra.mxu0 %v13490_v56  ;;  %v5468_v56 = vrot.slane %v15328_v41, 5  ;;  %v13489_v41 = vld [vmem:[%s16304_s1 + $0x198] sm:$0xff]  }
 0x1a5   : > { %12283 = vmatprep.subr.bf16.mxu0 %v15554_v27 }
 0x1a6   : > { %12220 = vmatmul.mubr.bf16.gmra.mrb[16].mxu0 %v15240_v25  ;;  %v3784_v25 = vrot.slane %v3782_v8, 4 }
 0x1a7   : > { %11628 = vmatmul.mubr.bf16.vlgmr.msra.gmra.mrb[0].mxu1 %v16885_v62  ;;  %12223 = vmatprep.mubr.bf16.mxu0 %v15260_v46  ;;  %v10436_v62 = vrot.slane %v15325_v13, 9  ;;  %v5470_v46 = vrot.slane %v5468_v56, 4  ;;  %v7154_v13 = vrot.slane %v15344_v59, 5 }
 0x1a8   : > { %11660 = vmatpush3.bf16.msra.mxu1 %v13483_v22  ;;  %11631 = vmatprep.mubr.bf16.mxu1 %v16886_v23  ;;  %v5471_v22 = vrot.slane %v13637_v34, 5  ;;  %v16887_v23 = vld [vmem:[#allocation15_spill] sm:$0xff]  ;;  %v3786_v24 = vsel %vm13740_vm2, %v3784_v25, %v3785_v60  ;;  %v10563_v60 = vrot.slane %v15341_v52, 9 }
 0x1a9   : > { %11661 = vmatprep.subr.bf16.mxu1 %v13485_v57  ;;  %v5469_v34 = vsel %vm13740_vm2, %v10436_v62, %v5468_v56  ;;  %v15592_v5 = vcombine.low %v3783_v26, %v3786_v24  ;;  %v7156_v25 = vrot.slane %v7154_v13, 4  ;;  %v13495_v56 = vld [vmem:[%s16304_s1 + $0x1b0] sm:$0xff]   ;;  %v13494_v26 = vld [vmem:[%s16304_s1 + $0x4c8] sm:$0xff]  }
 0x1aa   : > { %v13496_v24 = vld [vmem:[%s16304_s1 + $0x4d0] sm:$0xff]  }
 0x1ac   : > { %11662 = vmatpush3.bf16.msra.mxu1 %v13485_v57  ;;  %v16888_v57 = vld [vmem:[#allocation20_spill] sm:$0xff] }
 0x1ad   : > { %11663 = vmatprep.subr.bf16.mxu1 %v13487_v54 }
 0x1ae   : > { %12224 = vmatmul.mubr.bf16.gmra.mrb[20].mxu0 %v15265_v6  ;;  %v5472_v6 = vsel %vm13740_vm2, %v5470_v46, %v5471_v22  ;;  %v13493_v46 = vld [vmem:[%s16304_s1 + $0x1a8] sm:$0xff]  }
 0x1af   : > { %11632 = vmatmul.mubr.bf16.gmra.mrb[4].mxu1 %v16887_v23  ;;  %12227 = vmatprep.mubr.bf16.mxu0 %v15282_v18  ;;  %v13491_v18 = vld [vmem:[%s16304_s1 + $0x1a0] sm:$0xff]   ;;  %v15594_v8 = vcombine.low %v5469_v34, %v5472_v6  ;;  %v7155_v6 = vsel %vm13740_vm2, %v10563_v60, %v7154_v13  ;;  %v13498_v13 = vld [vmem:[%s16304_s1 + $0x4d8] sm:$0xff]   ;;  %v13502_v34 = vld [vmem:[%s16304_s1 + $0x4e8] sm:$0xff]  }
 0x1b0   : > { %11635 = vmatprep.mubr.bf16.mxu1 %v16888_v57  ;;  %11664 = vmatpush3.bf16.msra.mxu1 %v13487_v54  ;;  %v7157_v54 = vrot.slane %v15460_v38, 5  ;;  %v13504_v60 = vld [vmem:[%s16304_s1 + $0x4f0] sm:$0xff]  }
 0x1b1   : > { %11665 = vmatprep.subr.bf16.mxu1 %v13489_v41  ;;  %16889 = vst [vmem:[#allocation32_spill] sm:$0xff] %v15594_v8 }
 0x1b2   : > { %v7158_v62 = vsel %vm13740_vm2, %v7156_v25, %v7157_v54  ;;  %v13506_v25 = vld [vmem:[%s16304_s1 + $0x4f8] sm:$0xff]  }
 0x1b3   : > { %v15612_v22 = vcombine.low %v7155_v6, %v7158_v62  ;;  %v16891_v54 = vld [vmem:[#allocation46_spill] sm:$0xff]  ;;  %v13501_v6 = vld [vmem:[%s16304_s1 + $0x1c8] sm:$0xff]  }
 0x1b4   : > { %11666 = vmatpush3.bf16.msra.mxu1 %v13489_v41  ;;  %v13497_v41 = vld [vmem:[%s16304_s1 + $0x1b8] sm:$0xff]   ;;  %v16892_v62 = vld [vmem:[#allocation48_spill] sm:$0xff] }
 0x1b5   : > { %11667 = vmatprep.subr.bf16.mxu1 %v13491_v18  ;;  %16890 = vst [vmem:[#allocation39_spill] sm:$0xff] %v15612_v22 }
 0x1b6   : > { %12228 = vmatmul.mubr.bf16.gmra.mrb[24].mxu0 %v15592_v5 }
 0x1b7   : > { %11636 = vmatmul.mubr.bf16.gmra.mrb[8].mxu1 %v16814_v40  ;;  %12231 = vmatprep.mubr.bf16.mxu0 %v15594_v8 }
 0x1b8   : > { %11639 = vmatprep.mubr.bf16.mxu1 %v16815_v9  ;;  %11668 = vmatpush3.bf16.msra.mxu1 %v13491_v18  ;;  %v13499_v18 = vld [vmem:[%s16304_s1 + $0x1c0] sm:$0xff]  }
 0x1b9   : > { %11669 = vmatprep.subr.bf16.mxu1 %v13493_v46 }
 0x1bc   : > { %11670 = vmatpush3.bf16.msra.mxu1 %v13493_v46  ;;  %v13508_v46 = vld [vmem:[%s16304_s1 + $0x500] sm:$0xff]  }
 0x1bd   : > { %11671 = vmatprep.subr.bf16.mxu1 %v13495_v56 }
 0x1be   : > { %12232 = vmatmul.mubr.bf16.gmra.mrb[28].mxu0 %v15612_v22  ;;  %v16901_v22 = vld [vmem:[#allocation55_spill] sm:$0xff] }
 0x1bf   : > { %11640 = vmatmul.mubr.bf16.gmra.mrb[12].mxu1 %v16820_v0  ;;  %12251 = vmatprep.mubr.bf16.mxu0 %v16829_v55 }
 0x1c0   : > { %11643 = vmatprep.mubr.bf16.mxu1 %v16821_v3  ;;  %11672 = vmatpush3.bf16.msra.mxu1 %v13495_v56  ;;  %v16893_v56 = vld [vmem:[#allocation51_spill] sm:$0xff] }
 0x1c1   : > { %11673 = vmatprep.subr.bf16.mxu1 %v13497_v41 }
 0x1c4   : > { %11674 = vmatpush3.bf16.msra.mxu1 %v13497_v41  ;;  %v16894_v41 = vld [vmem:[#allocation50_spill] sm:$0xff] }
 0x1c5   : > { %11707 = vmatprep.subr.bf16.mxu1 %v13499_v18 }
 0x1c6   : > { %12252 = vmatmul.mubr.bf16.vlgmr.msra.gmra.mrb[0].mxu0 %v16831_v58 }
 0x1c7   : > { %11644 = vmatmul.mubr.bf16.gmra.mrb[16].mxu1 %v16823_v48  ;;  %12284 = vmatpush3.bf16.msra.mxu0 %v15554_v27  ;;  %v13500_v27 = vld [vmem:[%s16304_s1 + $0x4e0] sm:$0xff]  }
 0x1c8   : > { %11647 = vmatprep.mubr.bf16.mxu1 %v16824_v2  ;;  %12255 = vmatprep.mubr.bf16.mxu0 %v16834_v50 }
 0x1c9   : > { %12285 = vmatprep.subr.bf16.mxu0 %v13494_v26 }
 0x1cb   : > { %12286 = vmatpush3.bf16.msra.mxu0 %v13494_v26  ;;  %v13503_v26 = vld [vmem:[%s16304_s1 + $0x1d0] sm:$0xff]  }
 0x1cc   : > { %12287 = vmatprep.subr.bf16.mxu0 %v13496_v24 }
 0x1ce   : > { %12256 = vmatmul.mubr.bf16.gmra.mrb[4].mxu0 %v16835_v31 }
 0x1cf   : > { %11648 = vmatmul.mubr.bf16.gmra.mrb[20].mxu1 %v16825_v12  ;;  %12259 = vmatprep.mubr.bf16.mxu0 %v16837_v32 }
 0x1d0   : > { %11651 = vmatprep.mubr.bf16.mxu1 %v16826_v16  ;;  %12288 = vmatpush3.bf16.msra.mxu0 %v13496_v24  ;;  %v16895_v24 = vshrl.u32 %v15341_v52, 16 }
 0x1d1   : > { %12289 = vmatprep.subr.bf16.mxu0 %v13498_v13 }
 0x1d4   : > { %12290 = vmatpush3.bf16.msra.mxu0 %v13498_v13  ;;  %v7485_v13 = vrot.slane %v16895_v24, 5  ;;  %v16900_v24 = vld [vmem:[#allocation52_spill] sm:$0xff] }
 0x1d5   : > { %12291 = vmatprep.subr.bf16.mxu0 %v13500_v27 }
 0x1d6   : > { %12260 = vmatmul.mubr.bf16.gmra.mrb[8].mxu0 %v16838_v36 }
 0x1d7   : > { %11652 = vmatmul.mubr.bf16.gmra.mrb[24].mxu1 %v16828_v63  ;;  %12263 = vmatprep.mubr.bf16.mxu0 %v16839_v29 }
 0x1d8   : > { %11655 = vmatprep.mubr.bf16.mxu1 %v16830_v7  ;;  %12292 = vmatpush3.bf16.msra.mxu0 %v13500_v27  ;;  %v16896_v27 = vshll.u32 %v15341_v52, 16 }
 0x1d9   : > { %12293 = vmatprep.subr.bf16.mxu0 %v13502_v34 }
 0x1dc   : > { %12294 = vmatpush3.bf16.msra.mxu0 %v13502_v34  ;;  %v7486_v34 = vrot.slane %v16896_v27, 6 }
 0x1dd   : > { %12295 = vmatprep.subr.bf16.mxu0 %v13504_v60 }
 0x1de   : > { %12264 = vmatmul.mubr.bf16.gmra.mrb[12].mxu0 %v14392_v21  ;;  %v7487_v27 = vor.u32 %v7486_v34, %v7485_v13  ;;  %v16904_v13 = vld [vmem:[#allocation13_spill] sm:$0xff]  ;;  %v16906_v34 = vld [vmem:[#allocation18_spill] sm:$0xff] }
 0x1df   : > { %11656 = vmatmul.mubr.bf16.gmra.mrb[28].mxu1 %v15322_v42  ;;  %12267 = vmatprep.mubr.bf16.mxu0 %v14436_v14 }
 0x1e0   : > { %11675 = vmatprep.mubr.bf16.mxu1 %v16891_v54  ;;  %12296 = vmatpush3.bf16.msra.mxu0 %v13504_v60  ;;  %v16897_v60 = vshrl.u32 %v15344_v59, 16  ;;  %v16898_v54 = vshll.u32 %v15344_v59, 16  ;;  %v7488_v14 = vrot.slane %v7487_v27, 4  ;;  %v16908_v27 = vld [vmem:[#allocation58_spill] sm:$0xff] }
 0x1e1   : > { %12297 = vmatprep.subr.bf16.mxu0 %v13506_v25 }
 0x1e4   : > { %12298 = vmatpush3.bf16.msra.mxu0 %v13506_v25  ;;  %v7489_v25 = vrot.slane %v16897_v60, 5 }
 0x1e5   : > { %12331 = vmatprep.subr.bf16.mxu0 %v13508_v46 }
 0x1e6   : > { %12268 = vmatmul.mubr.bf16.gmra.mrb[16].mxu0 %v14485_v43  ;;  %v16903_v43 = vld [vmem:[#allocation54_spill] sm:$0xff] }
 0x1e7   : > { %11676 = vmatmul.mubr.bf16.vlgmr.msra.gmra.mrb[0].mxu1 %v16892_v62  ;;  %12271 = vmatprep.mubr.bf16.mxu0 %v16893_v56  ;;  %v7490_v62 = vrot.slane %v16898_v54, 6  ;;  %v16902_v56 = vshll.u32 %v15460_v38, 16 }
 0x1e8   : > { %11708 = vmatpush3.bf16.msra.mxu1 %v13499_v18  ;;  %11679 = vmatprep.mubr.bf16.mxu1 %v16894_v41  ;;  %v7494_v18 = vshrl.u32 %v15460_v38, 16  ;;  %v13505_v41 = vld [vmem:[%s16304_s1 + $0x1d8] sm:$0xff]  }
 0x1e9   : > { %11709 = vmatprep.subr.bf16.mxu1 %v13501_v6  ;;  %v7491_v8 = vor.u32 %v7490_v62, %v7489_v25  ;;  %v7497_v54 = vrot.slane %v16902_v56, 6  ;;  %v13509_v62 = vld [vmem:[%s16304_s1 + $0x1e8] sm:$0xff]   ;;  %v16905_v56 = vld [vmem:[#allocation57_spill] sm:$0xff] }
 0x1ea   : > { %v7496_v60 = vrot.slane %v7494_v18, 5 }
 0x1eb   : > { %v7492_v25 = vsel %vm14023_vm5, %v7488_v14, %v7491_v8  ;;  %v16910_v14 = vld [vmem:[#allocation59_spill] sm:$0xff] }
 0x1ec   : > { %11710 = vmatpush3.bf16.msra.mxu1 %v13501_v6  ;;  %v13507_v6 = vld [vmem:[%s16304_s1 + $0x1e0] sm:$0xff]   ;;  %v7498_v21 = vor.u32 %v7497_v54, %v7496_v60  ;;  %v13513_v54 = vld [vmem:[%s16304_s1 + $0x1f8] sm:$0xff]  }
 0x1ed   : > { %11711 = vmatprep.subr.bf16.mxu1 %v13503_v26 }
 0x1ee   : > { %12272 = vmatmul.mubr.bf16.gmra.mrb[20].mxu0 %v16899_v39  ;;  %v7493_v39 = vrot.slane %v7491_v8, 4  ;;  %v13510_v8 = vld [vmem:[%s16304_s1 + $0x508] sm:$0xff]  }
 0x1ef   : > { %11680 = vmatmul.mubr.bf16.gmra.mrb[4].mxu1 %v16900_v24  ;;  %12275 = vmatprep.mubr.bf16.mxu0 %v16901_v22 }
 0x1f0   : > { %11683 = vmatprep.mubr.bf16.mxu1 %v16903_v43  ;;  %11712 = vmatpush3.bf16.msra.mxu1 %v13503_v26  ;;  %v7499_v18 = vsel %vm14023_vm5, %v7493_v39, %v7498_v21  ;;  %v16911_v21 = vld [vmem:[#allocation61_spill] sm:$0xff]  ;;  %v13515_v39 = vld [vmem:[%s16304_s1 + $0x200] sm:$0xff]  }
 0x1f1   : > { %11713 = vmatprep.subr.bf16.mxu1 %v13505_v41  ;;  %v15710_v60 = vcombine.low %v7492_v25, %v7499_v18  ;;  %v13512_v25 = vld [vmem:[%s16304_s1 + $0x510] sm:$0xff]   ;;  %v13514_v18 = vld [vmem:[%s16304_s1 + $0x518] sm:$0xff]   ;;  %v16916_v26 = vld [vmem:[#allocation71_spill] sm:$0xff] }
 0x1f3   : > { %16909 = vst [vmem:[#allocation34_spill] sm:$0xff] %v15710_v60 }
 0x1f4   : > { %11714 = vmatpush3.bf16.msra.mxu1 %v13505_v41  ;;  %v13511_v41 = vld [vmem:[%s16304_s1 + $0x1f0] sm:$0xff]  }
 0x1f5   : > { %11715 = vmatprep.subr.bf16.mxu1 %v13507_v6 }
 0x1f6   : > { %12276 = vmatmul.mubr.bf16.gmra.mrb[24].mxu0 %v16904_v13 }
 0x1f7   : > { %11684 = vmatmul.mubr.bf16.gmra.mrb[8].mxu1 %v16905_v56  ;;  %12279 = vmatprep.mubr.bf16.mxu0 %v16906_v34  ;;  %v16918_v34 = vld [vmem:[#allocation75_spill] sm:$0xff] }
 0x1f8   : > { %11687 = vmatprep.mubr.bf16.mxu1 %v16908_v27  ;;  %11716 = vmatpush3.bf16.msra.mxu1 %v13507_v6  ;;  %v16912_v6 = vld [vmem:[#allocation63_spill] sm:$0xff] }
 0x1f9   : > { %11717 = vmatprep.subr.bf16.mxu1 %v13509_v62 }
 0x1fc   : > { %11718 = vmatpush3.bf16.msra.mxu1 %v13509_v62  ;;  %v16913_v62 = vld [vmem:[#allocation66_spill] sm:$0xff] }
 0x1fd   : > { %11719 = vmatprep.subr.bf16.mxu1 %v13511_v41 }
 0x1fe   : > { %12280 = vmatmul.mubr.bf16.gmra.mrb[28].mxu0 %v15710_v60  ;;  %v16917_v60 = vld [vmem:[#allocation74_spill] sm:$0xff] }
 0x1ff   : > { %11688 = vmatmul.mubr.bf16.gmra.mrb[12].mxu1 %v16910_v14  ;;  %12299 = vmatprep.mubr.bf16.mxu0 %v16864_v37 }
 0x200   : > { %11691 = vmatprep.mubr.bf16.mxu1 %v16911_v21  ;;  %11720 = vmatpush3.bf16.msra.mxu1 %v13511_v41  ;;  %v16914_v41 = vld [vmem:[#allocation68_spill] sm:$0xff] }
 0x201   : > { %11721 = vmatprep.subr.bf16.mxu1 %v13513_v54 }
 0x204   : > { %11722 = vmatpush3.bf16.msra.mxu1 %v13513_v54  ;;  %v13516_v54 = vld [vmem:[%s16304_s1 + $0x520] sm:$0xff]  }
 0x205   : > { %11755 = vmatprep.subr.bf16.mxu1 %v13515_v39 }
 0x206   : > { %12300 = vmatmul.mubr.bf16.vlgmr.msra.gmra.mrb[0].mxu0 %v16866_v30 }
 0x207   : > { %11692 = vmatmul.mubr.bf16.gmra.mrb[16].mxu1 %v16912_v6  ;;  %12332 = vmatpush3.bf16.msra.mxu0 %v13508_v46  ;;  %v16915_v46 = vld [vmem:[#allocation69_spill] sm:$0xff] }
 0x208   : > { %11695 = vmatprep.mubr.bf16.mxu1 %v16913_v62  ;;  %12303 = vmatprep.mubr.bf16.mxu0 %v16869_v53 }
 0x209   : > { %12333 = vmatprep.subr.bf16.mxu0 %v13510_v8 }
 0x20b   : > { %12334 = vmatpush3.bf16.msra.mxu0 %v13510_v8  ;;  %v13518_v8 = vld [vmem:[%s16304_s1 + $0x528] sm:$0xff]  }
 0x20c   : > { %12335 = vmatprep.subr.bf16.mxu0 %v13512_v25 }
 0x20e   : > { %12304 = vmatmul.mubr.bf16.gmra.mrb[4].mxu0 %v16870_v10 }
 0x20f   : > { %11696 = vmatmul.mubr.bf16.gmra.mrb[20].mxu1 %v16914_v41  ;;  %12307 = vmatprep.mubr.bf16.mxu0 %v16872_v44 }
 0x210   : > { %11699 = vmatprep.mubr.bf16.mxu1 %v16915_v46  ;;  %12336 = vmatpush3.bf16.msra.mxu0 %v13512_v25  ;;  %v13520_v25 = vld [vmem:[%s16304_s1 + $0x530] sm:$0xff]  }
 0x211   : > { %12337 = vmatprep.subr.bf16.mxu0 %v13514_v18 }
 0x214   : > { %12338 = vmatpush3.bf16.msra.mxu0 %v13514_v18  ;;  %v13522_v18 = vld [vmem:[%s16304_s1 + $0x538] sm:$0xff]  }
 0x215   : > { %12339 = vmatprep.subr.bf16.mxu0 %v13516_v54 }
 0x216   : > { %12308 = vmatmul.mubr.bf16.gmra.mrb[8].mxu0 %v16874_v49 }
 0x217   : > { %11700 = vmatmul.mubr.bf16.gmra.mrb[24].mxu1 %v16916_v26  ;;  %12311 = vmatprep.mubr.bf16.mxu0 %v16876_v4 }
 0x218   : > { %11703 = vmatprep.mubr.bf16.mxu1 %v16917_v60  ;;  %12340 = vmatpush3.bf16.msra.mxu0 %v13516_v54  ;;  %v13524_v54 = vld [vmem:[%s16304_s1 + $0x540] sm:$0xff]  }
 0x219   : > { %12341 = vmatprep.subr.bf16.mxu0 %v13518_v8 }
 0x21c   : > { %12342 = vmatpush3.bf16.msra.mxu0 %v13518_v8  ;;  %v13517_v8 = vld [vmem:[%s16304_s1 + $0x208] sm:$0xff]  }
 0x21d   : > { %12343 = vmatprep.subr.bf16.mxu0 %v13520_v25 }
 0x21e   : > { %12312 = vmatmul.mubr.bf16.gmra.mrb[12].mxu0 %v16877_v61  ;;  %v16919_v61 = vld [vmem:[#allocation7_spill] sm:$0xff] }
 0x21f   : > { %11704 = vmatmul.mubr.bf16.gmra.mrb[28].mxu1 %v15481_v51  ;;  %12315 = vmatprep.mubr.bf16.mxu0 %v16879_v11 }
 0x220   : > { %11723 = vmatprep.mubr.bf16.mxu1 %v16918_v34  ;;  %12344 = vmatpush3.bf16.msra.mxu0 %v13520_v25  ;;  %v13519_v34 = vld [vmem:[%s16304_s1 + $0x210] sm:$0xff]   ;;  %v13521_v25 = vld [vmem:[%s16304_s1 + $0x218] sm:$0xff]  }
 0x221   : > { %12345 = vmatprep.subr.bf16.mxu0 %v13522_v18 }
 0x224   : > { %12346 = vmatpush3.bf16.msra.mxu0 %v13522_v18 }
 0x225   : > { %12379 = vmatprep.subr.bf16.mxu0 %v13524_v54 }
 0x226   : > { %12316 = vmatmul.mubr.bf16.gmra.mrb[16].mxu0 %v16880_v47 }
 0x227   : > { %11724 = vmatmul.mubr.bf16.vlgmr.msra.gmra.mrb[0].mxu1 %v16919_v61  ;;  %12319 = vmatprep.mubr.bf16.mxu0 %v16881_v28  ;;  %v7828_v61 = vrot.slane %v15344_v59, 6  ;;  %v16920_v59 = vld [vmem:[#allocation81_spill] sm:$0xff] }
 0x228   : > { %11756 = vmatpush3.bf16.msra.mxu1 %v13515_v39  ;;  %11727 = vmatprep.mubr.bf16.mxu1 %v16873_v33  ;;  %v13523_v33 = vld [vmem:[%s16304_s1 + $0x220] sm:$0xff]   ;;  %v10614_v39 = vrot.slane %v15341_v52, 10 }
 0x229   : > { %11757 = vmatprep.subr.bf16.mxu1 %v13517_v8  ;;  %v7830_v18 = vrot.slane %v7828_v61, 4 }
 0x22a   : > { %v7829_v28 = vsel %vm14715_vm11, %v10614_v39, %v7828_v61  ;;  %v16924_v61 = vld [vmem:[#allocation27_spill] sm:$0xff] }
 0x22b   : > { %v16926_v39 = vld [vmem:[#allocation3_spill] sm:$0xff] }
 0x22c   : > { %11758 = vmatpush3.bf16.msra.mxu1 %v13517_v8  ;;  %v7831_v8 = vrot.slane %v15460_v38, 6  ;;  %v13527_v38 = vld [vmem:[%s16304_s1 + $0x230] sm:$0xff]  }
 0x22d   : > { %11759 = vmatprep.subr.bf16.mxu1 %v13519_v34 }
 0x22e   : > { %12320 = vmatmul.mubr.bf16.gmra.mrb[20].mxu0 %v16882_v17  ;;  %v7832_v52 = vsel %vm14715_vm11, %v7830_v18, %v7831_v8  ;;  %v13528_v18 = vld [vmem:[%s16304_s1 + $0x550] sm:$0xff]   ;;  %v13530_v8 = vld [vmem:[%s16304_s1 + $0x558] sm:$0xff]  }
 0x22f   : > { %11728 = vmatmul.mubr.bf16.gmra.mrb[4].mxu1 %v16875_v45  ;;  %12323 = vmatprep.mubr.bf16.mxu0 %v16883_v15  ;;  %v13525_v15 = vld [vmem:[%s16304_s1 + $0x228] sm:$0xff]   ;;  %v16930_v17 = vld [vmem:[#allocation41_spill] sm:$0xff] }
 0x230   : > { %11731 = vmatprep.mubr.bf16.mxu1 %v16793_v20  ;;  %11760 = vmatpush3.bf16.msra.mxu1 %v13519_v34  ;;  %v16921_v34 = vld [vmem:[#allocation16_spill] sm:$0xff] }
 0x231   : > { %11761 = vmatprep.subr.bf16.mxu1 %v13521_v25 }
 0x234   : > { %11762 = vmatpush3.bf16.msra.mxu1 %v13521_v25  ;;  %v15799_v25 = vcombine.low %v7829_v28, %v7832_v52  ;;  %v13531_v28 = vld [vmem:[%s16304_s1 + $0x240] sm:$0xff]  }
 0x235   : > { %11763 = vmatprep.subr.bf16.mxu1 %v13523_v33  ;;  %v13532_v52 = vld [vmem:[%s16304_s1 + $0x560] sm:$0xff]  }
 0x236   : > { %12324 = vmatmul.mubr.bf16.gmra.mrb[24].mxu0 %v16920_v59  ;;  %16923 = vst [vmem:[#allocation36_spill] sm:$0xff] %v15799_v25 }
 0x237   : > { %11732 = vmatmul.mubr.bf16.gmra.mrb[8].mxu1 %v16878_v35  ;;  %12327 = vmatprep.mubr.bf16.mxu0 %v16921_v34  ;;  %v13529_v34 = vld [vmem:[%s16304_s1 + $0x238] sm:$0xff]  }
 0x238   : > { %11735 = vmatprep.mubr.bf16.mxu1 %v16797_v19  ;;  %11764 = vmatpush3.bf16.msra.mxu1 %v13523_v33  ;;  %v16925_v33 = vld [vmem:[#allocation82_spill] sm:$0xff] }
 0x239   : > { %11765 = vmatprep.subr.bf16.mxu1 %v13525_v15 }
 0x23c   : > { %11766 = vmatpush3.bf16.msra.mxu1 %v13525_v15  ;;  %v13526_v15 = vld [vmem:[%s16304_s1 + $0x548] sm:$0xff]  }
 0x23d   : > { %11767 = vmatprep.subr.bf16.mxu1 %v13527_v38 }
 0x23e   : > { %12328 = vmatmul.mubr.bf16.gmra.mrb[28].mxu0 %v15799_v25  ;;  %v16931_v25 = vld [vmem:[#allocation24_spill] sm:$0xff] }
 0x23f   : > { %11736 = vmatmul.mubr.bf16.gmra.mrb[12].mxu1 %v16800_v1  ;;  %12347 = vmatprep.mubr.bf16.mxu0 %v16887_v23 }
 0x240   : > { %11739 = vmatprep.mubr.bf16.mxu1 %v16924_v61  ;;  %11768 = vmatpush3.bf16.msra.mxu1 %v13527_v38  ;;  %v13534_v38 = vld [vmem:[%s16304_s1 + $0x568] sm:$0xff]  }
 0x241   : > { %11769 = vmatprep.subr.bf16.mxu1 %v13529_v34 }
 0x244   : > { %11770 = vmatpush3.bf16.msra.mxu1 %v13529_v34  ;;  %v16927_v34 = vld [vmem:[#allocation4_spill] sm:$0xff] }
 0x245   : > { %11803 = vmatprep.subr.bf16.mxu1 %v13531_v28 }
 0x246   : > { %12348 = vmatmul.mubr.bf16.vlgmr.msra.gmra.mrb[0].mxu0 %v16888_v57 }
 0x247   : > { %11740 = vmatmul.mubr.bf16.gmra.mrb[16].mxu1 %v16925_v33  ;;  %12380 = vmatpush3.bf16.msra.mxu0 %v13524_v54  ;;  %v16928_v54 = vld [vmem:[#allocation21_spill] sm:$0xff] }
 0x248   : > { %11743 = vmatprep.mubr.bf16.mxu1 %v16926_v39  ;;  %12351 = vmatprep.mubr.bf16.mxu0 %v16814_v40 }
 0x249   : > { %12381 = vmatprep.subr.bf16.mxu0 %v13526_v15 }
 0x24b   : > { %12382 = vmatpush3.bf16.msra.mxu0 %v13526_v15  ;;  %v16929_v15 = vld [vmem:[#allocation22_spill] sm:$0xff] }
 0x24c   : > { %12383 = vmatprep.subr.bf16.mxu0 %v13528_v18 }
 0x24e   : > { %12352 = vmatmul.mubr.bf16.gmra.mrb[4].mxu0 %v16815_v9 }
 0x24f   : > { %11744 = vmatmul.mubr.bf16.gmra.mrb[20].mxu1 %v16927_v34  ;;  %12355 = vmatprep.mubr.bf16.mxu0 %v16820_v0 }
 0x250   : > { %11747 = vmatprep.mubr.bf16.mxu1 %v16928_v54  ;;  %12384 = vmatpush3.bf16.msra.mxu0 %v13528_v18  ;;  %v13536_v18 = vld [vmem:[%s16304_s1 + $0x570] sm:$0xff]  }
 0x251   : > { %12385 = vmatprep.subr.bf16.mxu0 %v13530_v8 }
 0x254   : > { %12386 = vmatpush3.bf16.msra.mxu0 %v13530_v8  ;;  %v13539_v8 = vld [vmem:[%s16304_s1 + $0x578] sm:$0xff]  }
 0x255   : > { %12387 = vmatprep.subr.bf16.mxu0 %v13532_v52 }
 0x256   : > { %12356 = vmatmul.mubr.bf16.gmra.mrb[8].mxu0 %v16821_v3 }
 0x257   : > { %11748 = vmatmul.mubr.bf16.gmra.mrb[24].mxu1 %v16929_v15  ;;  %12359 = vmatprep.mubr.bf16.mxu0 %v16823_v48 }
 0x258   : > { %11751 = vmatprep.mubr.bf16.mxu1 %v16930_v17  ;;  %12388 = vmatpush3.bf16.msra.mxu0 %v13532_v52  ;;  %v13541_v52 = vld [vmem:[%s16304_s1 + $0x580] sm:$0xff]  }
 0x259   : > { %12389 = vmatprep.subr.bf16.mxu0 %v13534_v38 }
 0x25c   : > { %12390 = vmatpush3.bf16.msra.mxu0 %v13534_v38  ;;  %v13533_v38 = vld [vmem:[%s16304_s1 + $0x248] sm:$0xff]  }
 0x25d   : > { %12391 = vmatprep.subr.bf16.mxu0 %v13536_v18 }
 0x25e   : > { %12360 = vmatmul.mubr.bf16.gmra.mrb[12].mxu0 %v16824_v2  ;;  %v16932_v2 = vld [vmem:[#allocation30_spill] sm:$0xff] }
 0x25f   : > { %11752 = vmatmul.mubr.bf16.gmra.mrb[28].mxu1 %v15592_v5  ;;  %12363 = vmatprep.mubr.bf16.mxu0 %v16825_v12 }
 0x260   : > { %11771 = vmatprep.mubr.bf16.mxu1 %v16931_v25  ;;  %12392 = vmatpush3.bf16.msra.mxu0 %v13536_v18  ;;  %v13535_v25 = vld [vmem:[%s16304_s1 + $0x250] sm:$0xff]   ;;  %v13537_v18 = vld [vmem:[%s16304_s1 + $0x258] sm:$0xff]  }
 0x261   : > { %12393 = vmatprep.subr.bf16.mxu0 %v13539_v8 }
 0x264   : > { %12394 = vmatpush3.bf16.msra.mxu0 %v13539_v8  ;;  %v16934_v8 = vld [vmem:[#allocation29_spill] sm:$0xff] }
 0x265   : > { %12427 = vmatprep.subr.bf16.mxu0 %v13541_v52 }
 0x266   : > { %12364 = vmatmul.mubr.bf16.gmra.mrb[16].mxu0 %v16826_v16 }
 0x267   : > { %11772 = vmatmul.mubr.bf16.vlgmr.msra.gmra.mrb[0].mxu1 %v16932_v2  ;;  %12367 = vmatprep.mubr.bf16.mxu0 %v16828_v63  ;;  %v13540_v2 = vld [vmem:[%s16304_s1 + $0x260] sm:$0xff]  }
 0x268   : > { %11804 = vmatpush3.bf16.msra.mxu1 %v13531_v28  ;;  %11775 = vmatprep.mubr.bf16.mxu1 %v16829_v55  ;;  %v13542_v55 = vld [vmem:[%s16304_s1 + $0x268] sm:$0xff]   ;;  %v16933_v28 = vld [vmem:[#allocation25_spill] sm:$0xff] }
 0x269   : > { %11805 = vmatprep.subr.bf16.mxu1 %v13533_v38 }
 0x26c   : > { %11806 = vmatpush3.bf16.msra.mxu1 %v13533_v38  ;;  %v15878_v38 = vld [vmem:[%s13718_s10 + $0xe4] sm:$0xf] }
 0x26d   : > { %11807 = vmatprep.subr.bf16.mxu1 %v13535_v25 }
 0x26e   : > { %12368 = vmatmul.mubr.bf16.gmra.mrb[20].mxu0 %v16830_v7 }
 0x26f   : > { %11776 = vmatmul.mubr.bf16.gmra.mrb[4].mxu1 %v16831_v58  ;;  %12371 = vmatprep.mubr.bf16.mxu0 %v15322_v42 }
 0x270   : > { %11779 = vmatprep.mubr.bf16.mxu1 %v16834_v50  ;;  %11808 = vmatpush3.bf16.msra.mxu1 %v13535_v25  ;;  %v15881_v25 = vld [vmem:[%s13718_s10 + $0xe8] sm:$0xf] }
 0x271   : > { %11809 = vmatprep.subr.bf16.mxu1 %v13537_v18  ;;  %v10656_v42 = vcombine.low %v15878_v38, %v15881_v25 }
 0x274   : > { %11810 = vmatpush3.bf16.msra.mxu1 %v13537_v18  ;;  %v13544_v18 = vld [vmem:[%s16304_s1 + $0x270] sm:$0xff]  }
 0x275   : > { %11811 = vmatprep.subr.bf16.mxu1 %v13540_v2 }
 0x276   : > { %12372 = vmatmul.mubr.bf16.gmra.mrb[24].mxu0 %v16933_v28 }
 0x277   : > { %11780 = vmatmul.mubr.bf16.gmra.mrb[8].mxu1 %v16835_v31  ;;  %12375 = vmatprep.mubr.bf16.mxu0 %v16934_v8  ;;  %v13546_v8 = vld [vmem:[%s16304_s1 + $0x278] sm:$0xff]  }
 0x278   : > { %11783 = vmatprep.mubr.bf16.mxu1 %v16837_v32  ;;  %11812 = vmatpush3.bf16.msra.mxu1 %v13540_v2  ;;  %v13548_v2 = vld [vmem:[%s16304_s1 + $0x280] sm:$0xff]  }
 0x279   : > { %11813 = vmatprep.subr.bf16.mxu1 %v13542_v55 }
 0x27c   : > { %11814 = vmatpush3.bf16.msra.mxu1 %v13542_v55  ;;  %v13543_v55 = vld [vmem:[%s16304_s1 + $0x588] sm:$0xff]  }
 0x27d   : > { %11815 = vmatprep.subr.bf16.mxu1 %v13544_v18 }
 0x27e   : > { %12376 = vmatmul.mubr.bf16.gmra.mrb[28].mxu0 %v10656_v42  ;;  %v16935_v42 = vld [vmem:[#allocation45_spill] sm:$0xff] }
 0x27f   : > { %11784 = vmatmul.mubr.bf16.gmra.mrb[12].mxu1 %v16838_v36  ;;  %12395 = vmatprep.mubr.bf16.mxu0 %v16900_v24  ;;  %v16936_v24 = vld [vmem:[#allocation47_spill] sm:$0xff] }
 0x280   : > { %11787 = vmatprep.mubr.bf16.mxu1 %v16839_v29  ;;  %11816 = vmatpush3.bf16.msra.mxu1 %v13544_v18  ;;  %v13545_v18 = vld [vmem:[%s16304_s1 + $0x590] sm:$0xff]  }
 0x281   : > { %11817 = vmatprep.subr.bf16.mxu1 %v13546_v8 }
 0x284   : > { %11818 = vmatpush3.bf16.msra.mxu1 %v13546_v8  ;;  %v13547_v8 = vld [vmem:[%s16304_s1 + $0x598] sm:$0xff]  }
 0x285   : > { %11851 = vmatprep.subr.bf16.mxu1 %v13548_v2 }
 0x286   : > { %12396 = vmatmul.mubr.bf16.vlgmr.msra.gmra.mrb[0].mxu0 %v16903_v43  ;;  %v16937_v43 = vld [vmem:[#allocation49_spill] sm:$0xff] }
 0x287   : > { %11788 = vmatmul.mubr.bf16.gmra.mrb[16].mxu1 %v16935_v42  ;;  %12428 = vmatpush3.bf16.msra.mxu0 %v13541_v52  ;;  %v16938_v52 = vld [vmem:[#allocation51_spill] sm:$0xff] }
 0x288   : > { %11791 = vmatprep.mubr.bf16.mxu1 %v16936_v24  ;;  %12399 = vmatprep.mubr.bf16.mxu0 %v16905_v56  ;;  %v13549_v56 = vld [vmem:[%s16304_s1 + $0x5a0] sm:$0xff]  }
 0x289   : > { %12429 = vmatprep.subr.bf16.mxu0 %v13543_v55 }
 0x28b   : > { %12430 = vmatpush3.bf16.msra.mxu0 %v13543_v55  ;;  %v13551_v55 = vld [vmem:[%s16304_s1 + $0x5a8] sm:$0xff]  }
 0x28c   : > { %12431 = vmatprep.subr.bf16.mxu0 %v13545_v18 }
 0x28e   : > { %12400 = vmatmul.mubr.bf16.gmra.mrb[4].mxu0 %v16908_v27  ;;  %v16939_v27 = vld [vmem:[#allocation9_spill] sm:$0xff] }
 0x28f   : > { %11792 = vmatmul.mubr.bf16.gmra.mrb[20].mxu1 %v16937_v43  ;;  %12403 = vmatprep.mubr.bf16.mxu0 %v16910_v14 }
 0x290   : > { %11795 = vmatprep.mubr.bf16.mxu1 %v16938_v52  ;;  %12432 = vmatpush3.bf16.msra.mxu0 %v13545_v18  ;;  %v13553_v18 = vld [vmem:[%s16304_s1 + $0x5b0] sm:$0xff]  }
 0x291   : > { %12433 = vmatprep.subr.bf16.mxu0 %v13547_v8 }
 0x294   : > { %12434 = vmatpush3.bf16.msra.mxu0 %v13547_v8  ;;  %v13555_v8 = vld [vmem:[%s16304_s1 + $0x5b8] sm:$0xff]  }
 0x295   : > { %12435 = vmatprep.subr.bf16.mxu0 %v13549_v56 }
 0x296   : > { %12404 = vmatmul.mubr.bf16.gmra.mrb[8].mxu0 %v16911_v21 }
 0x297   : > { %11796 = vmatmul.mubr.bf16.gmra.mrb[24].mxu1 %v16939_v27  ;;  %12407 = vmatprep.mubr.bf16.mxu0 %v16912_v6  ;;  %v16940_v6 = vld [vmem:[#allocation26_spill] sm:$0xff] }
 0x298   : > { %11799 = vmatprep.mubr.bf16.mxu1 %v16901_v22  ;;  %12436 = vmatpush3.bf16.msra.mxu0 %v13549_v56  ;;  %v15938_v56 = vld [vmem:[%s16304_s1 + $0x5c0] sm:$0xff]  }
 0x299   : > { %12437 = vmatprep.subr.bf16.mxu0 %v13551_v55 }
 0x29c   : > { %12438 = vmatpush3.bf16.msra.mxu0 %v13551_v55  ;;  %v13550_v55 = vld [vmem:[%s16304_s1 + $0x288] sm:$0xff]  }
 0x29d   : > { %12439 = vmatprep.subr.bf16.mxu0 %v13553_v18 }
 0x29e   : > { %12408 = vmatmul.mubr.bf16.gmra.mrb[12].mxu0 %v16913_v62  ;;  %v16941_v62 = vld [vmem:[#allocation60_spill] sm:$0xff] }
 0x29f   : > { %11800 = vmatmul.mubr.bf16.gmra.mrb[28].mxu1 %v16904_v13  ;;  %12411 = vmatprep.mubr.bf16.mxu0 %v16914_v41  ;;  %v16593_v41 = vshll.u32 %v15881_v25, 16 }
 0x2a0   : > { %11819 = vmatprep.mubr.bf16.mxu1 %v16940_v6  ;;  %12440 = vmatpush3.bf16.msra.mxu0 %v13553_v18  ;;  %v16592_v6 = vshrl.u32 %v15878_v38, 16  ;;  %v16591_v18 = vshll.u32 %v15878_v38, 16 }
 0x2a1   : > { %12441 = vmatprep.subr.bf16.mxu0 %v13555_v8  ;;  %v8499_v21 = vrot.slane %v16593_v41, 5 }
 0x2a4   : > { %12442 = vmatpush3.bf16.msra.mxu0 %v13555_v8  ;;  %v16594_v8 = vshrl.u32 %v15881_v25, 16 }
 0x2a5   : > { %12475 = vmatprep.subr.bf16.mxu0 %v15938_v56 }
 0x2a6   : > { %12412 = vmatmul.mubr.bf16.gmra.mrb[16].mxu0 %v16915_v46  ;;  %v13552_v46 = vld [vmem:[%s16304_s1 + $0x290] sm:$0xff]   ;;  %v8503_v14 = vrot.slane %v16594_v8, 4 }
 0x2a7   : > { %11820 = vmatmul.mubr.bf16.vlgmr.msra.gmra.mrb[0].mxu1 %v16941_v62  ;;  %12415 = vmatprep.mubr.bf16.mxu0 %v16916_v26  ;;  %v8490_v62 = vrot.slane %v16592_v6, 4  ;;  %v8493_v26 = vrot.slane %v16591_v18, 5 }
 0x2a8   : > { %11852 = vmatpush3.bf16.msra.mxu1 %v13548_v2  ;;  %11823 = vmatprep.mubr.bf16.mxu1 %v16864_v37  ;;  %v15964_v2 = vld [vmem:[%s13718_s10 + $0xec] sm:$0x3]  ;;  %v13554_v37 = vld [vmem:[%s16304_s1 + $0x298] sm:$0xff]   ;;  %v8504_v6 = vor.u32 %v8503_v14, %v8499_v21  ;;  %v16942_v14 = vld [vmem:[#allocation35_spill] sm:$0xff]  ;;  %s16231_s10 = scalar_lea.vmem %s16306_s3, %s10770_s24 }
 0x2a9   : > { %11853 = vmatprep.subr.bf16.mxu1 %v13550_v55  ;;  %v8494_v18 = vor.u32 %v8493_v26, %v8490_v62  ;;  %v8507_v41 = vshll.u32 %v15964_v2, 16  ;;  %v13558_v26 = vld [vmem:[%s16304_s1 + $0x2a8] sm:$0xff]  }
 0x2aa   : > { %v8505_v13 = vrot.slane %v8504_v6, 4  ;;  %v13566_v62 = vld [vmem:[%s16304_s1 + $0x2c8] sm:$0xff]  }
 0x2ab   : > { %v8495_v8 = vrot.slane %v8494_v18, 4  ;;  %v13560_v18 = vld [vmem:[%s16304_s1 + $0x2b0] sm:$0xff]  }
 0x2ac   : > { %11854 = vmatpush3.bf16.msra.mxu1 %v13550_v55  ;;  %v13556_v55 = vld [vmem:[%s16304_s1 + $0x2a0] sm:$0xff]  }
 0x2ad   : > { %11855 = vmatprep.subr.bf16.mxu1 %v13552_v46 }
 0x2ae   : > { %12416 = vmatmul.mubr.bf16.gmra.mrb[20].mxu0 %v16917_v60  ;;  %v8509_v60 = vrot.slane %v8507_v41, 5 }
 0x2af   : > { %11824 = vmatmul.mubr.bf16.gmra.mrb[4].mxu1 %v16866_v30  ;;  %12419 = vmatprep.mubr.bf16.mxu0 %v15481_v51  ;;  %v8500_v51 = vsel %vm14318_vm8, %v8495_v8, %v8499_v21  ;;  %v13563_v21 = vld [vmem:[%s16304_s1 + $0x5d8] sm:$0xff]   ;;  %v13569_v8 = vld [vmem:[%s16304_s1 + $0x5f0] sm:$0xff]  }
 0x2b0   : > { %11827 = vmatprep.mubr.bf16.mxu1 %v16869_v53  ;;  %11856 = vmatpush3.bf16.msra.mxu1 %v13552_v46  ;;  %v16943_v46 = vld [vmem:[#allocation37_spill] sm:$0xff]  ;;  %v8510_v6 = vsel %vm14318_vm8, %v8505_v13, %v8509_v60  ;;  %v13564_v13 = vld [vmem:[%s16304_s1 + $0x2c0] sm:$0xff]   ;;  %v16945_v60 = vld [vmem:[#allocation6_spill] sm:$0xff] }
 0x2b1   : > { %11857 = vmatprep.subr.bf16.mxu1 %v13554_v37 }
 0x2b4   : > { %11858 = vmatpush3.bf16.msra.mxu1 %v13554_v37  ;;  %v10681_v37 = vcombine.low %v8500_v51, %v8510_v6  ;;  %v13559_v51 = vld [vmem:[%s16304_s1 + $0x5c8] sm:$0xff]   ;;  %v16950_v6 = vld [vmem:[#allocation14_spill] sm:$0xff] }
 0x2b5   : > { %11859 = vmatprep.subr.bf16.mxu1 %v13556_v55 }
 0x2b6   : > { %12420 = vmatmul.mubr.bf16.gmra.mrb[24].mxu0 %v16942_v14 }
 0x2b7   : > { %11828 = vmatmul.mubr.bf16.gmra.mrb[8].mxu1 %v16870_v10  ;;  %12423 = vmatprep.mubr.bf16.mxu0 %v16943_v46  ;;  %v13562_v46 = vld [vmem:[%s16304_s1 + $0x2b8] sm:$0xff]  }
 0x2b8   : > { %11831 = vmatprep.mubr.bf16.mxu1 %v16872_v44  ;;  %11860 = vmatpush3.bf16.msra.mxu1 %v13556_v55  ;;  %v13571_v55 = vld [vmem:[%s16304_s1 + $0x5f8] sm:$0xff]  }
 0x2b9   : > { %11861 = vmatprep.subr.bf16.mxu1 %v13558_v26 }
 0x2bc   : > { %11862 = vmatpush3.bf16.msra.mxu1 %v13558_v26  ;;  %v13573_v26 = vld [vmem:[%s16304_s1 + $0x600] sm:$0xff]  }
 0x2bd   : > { %11863 = vmatprep.subr.bf16.mxu1 %v13560_v18 }
 0x2be   : > { %12424 = vmatmul.mubr.bf16.gmra.mrb[28].mxu0 %v10681_v37  ;;  %v13570_v37 = vld [vmem:[%s16304_s1 + $0x2d8] sm:$0xff]  }
 0x2bf   : > { %11832 = vmatmul.mubr.bf16.gmra.mrb[12].mxu1 %v16874_v49  ;;  %12443 = vmatprep.mubr.bf16.mxu0 %v16875_v45  ;;  %v13561_v45 = vld [vmem:[%s16304_s1 + $0x5d0] sm:$0xff]  }
 0x2c0   : > { %11835 = vmatprep.mubr.bf16.mxu1 %v16876_v4  ;;  %11864 = vmatpush3.bf16.msra.mxu1 %v13560_v18  ;;  %v13568_v18 = vld [vmem:[%s16304_s1 + $0x2d0] sm:$0xff]  }
 0x2c1   : > { %11865 = vmatprep.subr.bf16.mxu1 %v13562_v46 }
 0x2c4   : > { %11866 = vmatpush3.bf16.msra.mxu1 %v13562_v46  ;;  %v8840_v46 = vrot.slane %v15881_v25, 5 }
 0x2c5   : > { %11899 = vmatprep.subr.bf16.mxu1 %v13564_v13 }
 0x2c6   : > { %12444 = vmatmul.mubr.bf16.vlgmr.msra.gmra.mrb[0].mxu0 %v16793_v20  ;;  %v16946_v20 = vld [vmem:[#allocation78_spill] sm:$0xff] }
 0x2c7   : > { %11836 = vmatmul.mubr.bf16.gmra.mrb[16].mxu1 %v16945_v60  ;;  %12476 = vmatpush3.bf16.msra.mxu0 %v15938_v56  ;;  %v13567_v56 = vld [vmem:[%s16304_s1 + $0x5e8] sm:$0xff]  }
 0x2c8   : > { %11839 = vmatprep.mubr.bf16.mxu1 %v16879_v11  ;;  %12447 = vmatprep.mubr.bf16.mxu0 %v16878_v35  ;;  %v13565_v35 = vld [vmem:[%s16304_s1 + $0x5e0] sm:$0xff]  }
 0x2c9   : > { %12477 = vmatprep.subr.bf16.mxu0 %v13559_v51 }
 0x2cb   : > { %12478 = vmatpush3.bf16.msra.mxu0 %v13559_v51  ;;  %v8842_v51 = vrot.slane %v8840_v46, 4 }
 0x2cc   : > { %12479 = vmatprep.subr.bf16.mxu0 %v13561_v45 }
 0x2ce   : > { %12448 = vmatmul.mubr.bf16.gmra.mrb[4].mxu0 %v16797_v19  ;;  %v16947_v19 = vld [vmem:[#allocation79_spill] sm:$0xff] }
 0x2cf   : > { %11840 = vmatmul.mubr.bf16.gmra.mrb[20].mxu1 %v16880_v47  ;;  %12451 = vmatprep.mubr.bf16.mxu0 %v16800_v1  ;;  %v16948_v1 = vld [vmem:[#allocation80_spill] sm:$0xff] }
 0x2d0   : > { %11843 = vmatprep.mubr.bf16.mxu1 %v16946_v20  ;;  %12480 = vmatpush3.bf16.msra.mxu0 %v13561_v45  ;;  %v8843_v45 = vrot.slane %v15964_v2, 5 }
 0x2d1   : > { %12481 = vmatprep.subr.bf16.mxu0 %v13563_v21 }
 0x2d4   : > { %12482 = vmatpush3.bf16.msra.mxu0 %v13563_v21  ;;  %v16951_v21 = vld [vmem:[#allocation32_spill] sm:$0xff] }
 0x2d5   : > { %12483 = vmatprep.subr.bf16.mxu0 %v13565_v35 }
 0x2d6   : > { %12452 = vmatmul.mubr.bf16.gmra.mrb[8].mxu0 %v16924_v61  ;;  %v16949_v61 = vld [vmem:[#allocation11_spill] sm:$0xff] }
 0x2d7   : > { %11844 = vmatmul.mubr.bf16.gmra.mrb[24].mxu1 %v16947_v19  ;;  %12455 = vmatprep.mubr.bf16.mxu0 %v16925_v33 }
 0x2d8   : > { %11847 = vmatprep.mubr.bf16.mxu1 %v16948_v1  ;;  %12484 = vmatpush3.bf16.msra.mxu0 %v13565_v35  ;;  %v13641_v35 = vld [vmem:[%s16304_s1 + $0x318] sm:$0xff]  }
 0x2d9   : > { %12485 = vmatprep.subr.bf16.mxu0 %v13567_v56 }
 0x2dc   : > { %12486 = vmatpush3.bf16.msra.mxu0 %v13567_v56 }
 0x2dd   : > { %12487 = vmatprep.subr.bf16.mxu0 %v13569_v8 }
 0x2de   : > { %12456 = vmatmul.mubr.bf16.gmra.mrb[12].mxu0 %v16926_v39 }
 0x2df   : > { %11848 = vmatmul.mubr.bf16.gmra.mrb[28].mxu1 %v16920_v59  ;;  %12459 = vmatprep.mubr.bf16.mxu0 %v16927_v34 }
 0x2e0   : > { %11867 = vmatprep.mubr.bf16.mxu1 %v16949_v61  ;;  %12488 = vmatpush3.bf16.msra.mxu0 %v13569_v8  ;;  %v8844_v8 = vsel %vm13740_vm2, %v8842_v51, %v8843_v45 }
 0x2e1   : > { %12489 = vmatprep.subr.bf16.mxu0 %v13571_v55 }
 0x2e4   : > { %12490 = vmatpush3.bf16.msra.mxu0 %v13571_v55  ;;  %v13576_v55 = vld [vmem:[%s16304_s1 + $0x2f0] sm:$0xff]  }
 0x2e5   : > { %12523 = vmatprep.subr.bf16.mxu0 %v13573_v26 }
 0x2e6   : > { %12460 = vmatmul.mubr.bf16.gmra.mrb[16].mxu0 %v16928_v54 }
 0x2e7   : > { %11868 = vmatmul.mubr.bf16.vlgmr.msra.gmra.mrb[0].mxu1 %v16950_v6  ;;  %12463 = vmatprep.mubr.bf16.mxu0 %v16929_v15  ;;  %v16954_v6 = vld [vmem:[#allocation31_spill] sm:$0xff] }
 0x2e8   : > { %11900 = vmatpush3.bf16.msra.mxu1 %v13564_v13  ;;  %11871 = vmatprep.mubr.bf16.mxu1 %v16887_v23  ;;  %v13572_v23 = vld [vmem:[%s16304_s1 + $0x2e0] sm:$0xff]   ;;  %v10690_v13 = vrot.slane %v15878_v38, 9 }
 0x2e9   : > { %11901 = vmatprep.subr.bf16.mxu1 %v13566_v62 }
 0x2ea   : > { %v8841_v56 = vsel %vm13740_vm2, %v10690_v13, %v8840_v46  ;;  %v16963_v46 = vld [vmem:[#allocation54_spill] sm:$0xff] }
 0x2eb   : > { %v10707_v61 = vcombine.low %v8841_v56, %v8844_v8 }
 0x2ec   : > { %11902 = vmatpush3.bf16.msra.mxu1 %v13566_v62  ;;  %v13638_v62 = vld [vmem:[%s16304_s1 + $0x300] sm:$0xff]  }
 0x2ed   : > { %11903 = vmatprep.subr.bf16.mxu1 %v13568_v18 }
 0x2ee   : > { %12464 = vmatmul.mubr.bf16.gmra.mrb[20].mxu0 %v16930_v17 }
 0x2ef   : > { %11872 = vmatmul.mubr.bf16.gmra.mrb[4].mxu1 %v16888_v57  ;;  %12467 = vmatprep.mubr.bf16.mxu0 %v15592_v5  ;;  %v13574_v57 = vld [vmem:[%s16304_s1 + $0x2e8] sm:$0xff]  }
 0x2f0   : > { %11875 = vmatprep.mubr.bf16.mxu1 %v16814_v40  ;;  %11904 = vmatpush3.bf16.msra.mxu1 %v13568_v18  ;;  %v16952_v40 = vld [vmem:[#allocation39_spill] sm:$0xff]  ;;  %v9180_v18 = vshrl.u32 %v15964_v2, 16 }
 0x2f1   : > { %11905 = vmatprep.subr.bf16.mxu1 %v13570_v37 }
 0x2f2   : > { %v9182_v45 = vrot.slane %v9180_v18, 5 }
 0x2f4   : > { %11906 = vmatpush3.bf16.msra.mxu1 %v13570_v37  ;;  %v13640_v37 = vld [vmem:[%s16304_s1 + $0x310] sm:$0xff]  }
 0x2f5   : > { %11907 = vmatprep.subr.bf16.mxu1 %v13572_v23 }
 0x2f6   : > { %12468 = vmatmul.mubr.bf16.gmra.mrb[24].mxu0 %v16951_v21 }
 0x2f7   : > { %11876 = vmatmul.mubr.bf16.gmra.mrb[8].mxu1 %v16815_v9  ;;  %12471 = vmatprep.mubr.bf16.mxu0 %v16952_v40  ;;  %v13578_v9 = vld [vmem:[%s16304_s1 + $0x2f8] sm:$0xff]   ;;  %v16965_v40 = vld [vmem:[#allocation57_spill] sm:$0xff] }
 0x2f8   : > { %11879 = vmatprep.mubr.bf16.mxu1 %v16820_v0  ;;  %11908 = vmatpush3.bf16.msra.mxu1 %v13572_v23  ;;  %v13575_v0 = vld [vmem:[%s16304_s1 + $0x608] sm:$0xff]   ;;  %v16964_v23 = vld [vmem:[#allocation13_spill] sm:$0xff] }
 0x2f9   : > { %11909 = vmatprep.subr.bf16.mxu1 %v13574_v57 }
 0x2fc   : > { %11910 = vmatpush3.bf16.msra.mxu1 %v13574_v57  ;;  %v9183_v57 = vrot.slane %v8507_v41, 6  ;;  %v16967_v41 = vld [vmem:[#allocation58_spill] sm:$0xff] }
 0x2fd   : > { %11911 = vmatprep.subr.bf16.mxu1 %v13576_v55 }
 0x2fe   : > { %12472 = vmatmul.mubr.bf16.gmra.mrb[28].mxu0 %v10707_v61  ;;  %v9184_v8 = vor.u32 %v9183_v57, %v9182_v45  ;;  %v16966_v61 = vld [vmem:[#allocation18_spill] sm:$0xff] }
 0x2ff   : > { %11880 = vmatmul.mubr.bf16.gmra.mrb[12].mxu1 %v16821_v3  ;;  %12491 = vmatprep.mubr.bf16.mxu0 %v16831_v58  ;;  %v13577_v3 = vld [vmem:[%s16304_s1 + $0x610] sm:$0xff]   ;;  %v13581_v58 = vld [vmem:[%s16304_s1 + $0x628] sm:$0xff]  }
 0x300   : > { %11883 = vmatprep.mubr.bf16.mxu1 %v16823_v48  ;;  %11912 = vmatpush3.bf16.msra.mxu1 %v13576_v55  ;;  %v13579_v48 = vld [vmem:[%s16304_s1 + $0x618] sm:$0xff]   ;;  %v13642_v55 = vld [vmem:[%s16304_s1 + $0x320] sm:$0xff]  }
 0x301   : > { %11913 = vmatprep.subr.bf16.mxu1 %v13578_v9 }
 0x304   : > { %11914 = vmatpush3.bf16.msra.mxu1 %v13578_v9  ;;  %v16968_v9 = vld [vmem:[#allocation34_spill] sm:$0xff] }
 0x305   : > { %12571 = vmatprep.subr.bf16.mxu1 %v13638_v62 }
 0x306   : > { %12492 = vmatmul.mubr.bf16.vlgmr.msra.gmra.mrb[0].mxu0 %v16834_v50  ;;  %v13583_v50 = vld [vmem:[%s16304_s1 + $0x638] sm:$0xff]  }
 0x307   : > { %11884 = vmatmul.mubr.bf16.gmra.mrb[16].mxu1 %v16954_v6  ;;  %12524 = vmatpush3.bf16.msra.mxu0 %v13573_v26  ;;  %v16962_v26 = vshll.u32 %v15881_v25, 16 }
 0x308   : > { %11887 = vmatprep.mubr.bf16.mxu1 %v16825_v12  ;;  %12495 = vmatprep.mubr.bf16.mxu0 %v16835_v31  ;;  %v13580_v12 = vld [vmem:[%s16304_s1 + $0x620] sm:$0xff]   ;;  %v16957_v31 = vld [vmem:[#allocation50_spill] sm:$0xff] }
 0x309   : > { %12525 = vmatprep.subr.bf16.mxu0 %v13575_v0 }
 0x30b   : > { %12526 = vmatpush3.bf16.msra.mxu0 %v13575_v0 }
 0x30c   : > { %12527 = vmatprep.subr.bf16.mxu0 %v13577_v3 }
 0x30e   : > { %12496 = vmatmul.mubr.bf16.gmra.mrb[4].mxu0 %v16837_v32  ;;  %v13639_v32 = vld [vmem:[%s16304_s1 + $0x308] sm:$0xff]  }
 0x30f   : > { %11888 = vmatmul.mubr.bf16.gmra.mrb[20].mxu1 %v16826_v16  ;;  %12499 = vmatprep.mubr.bf16.mxu0 %v16838_v36  ;;  %v16955_v16 = vld [vmem:[#allocation23_spill] sm:$0xff] }
 0x310   : > { %11891 = vmatprep.mubr.bf16.mxu1 %v16828_v63  ;;  %12528 = vmatpush3.bf16.msra.mxu0 %v13577_v3  ;;  %v13582_v63 = vld [vmem:[%s16304_s1 + $0x630] sm:$0xff]   ;;  %v16970_v3 = vld [vmem:[#allocation59_spill] sm:$0xff] }
 0x311   : > { %12529 = vmatprep.subr.bf16.mxu0 %v13579_v48 }
 0x314   : > { %12530 = vmatpush3.bf16.msra.mxu0 %v13579_v48  ;;  %v13643_v48 = vld [vmem:[%s16304_s1 + $0x328] sm:$0xff]  }
 0x315   : > { %12531 = vmatprep.subr.bf16.mxu0 %v13580_v12 }
 0x316   : > { %12500 = vmatmul.mubr.bf16.gmra.mrb[8].mxu0 %v16839_v29  ;;  %v16958_v29 = vld [vmem:[#allocation52_spill] sm:$0xff] }
 0x317   : > { %11892 = vmatmul.mubr.bf16.gmra.mrb[24].mxu1 %v16830_v7  ;;  %12503 = vmatprep.mubr.bf16.mxu0 %v16935_v42  ;;  %v16956_v7 = vld [vmem:[#allocation48_spill] sm:$0xff]  ;;  %v16961_v42 = vshrl.u32 %v15881_v25, 16 }
 0x318   : > { %11895 = vmatprep.mubr.bf16.mxu1 %v16955_v16  ;;  %12532 = vmatpush3.bf16.msra.mxu0 %v13580_v12  ;;  %v16971_v16 = vld [vmem:[#allocation61_spill] sm:$0xff] }
 0x319   : > { %12533 = vmatprep.subr.bf16.mxu0 %v13581_v58 }
 0x31c   : > { %12534 = vmatpush3.bf16.msra.mxu0 %v13581_v58  ;;  %v13644_v58 = vld [vmem:[%s16304_s1 + $0x330] sm:$0xff]  }
 0x31d   : > { %12535 = vmatprep.subr.bf16.mxu0 %v13582_v63 }
 0x31e   : > { %12504 = vmatmul.mubr.bf16.gmra.mrb[12].mxu0 %v16936_v24  ;;  %v16960_v24 = vshll.u32 %v15878_v38, 16 }
 0x31f   : > { %11896 = vmatmul.mubr.bf16.gmra.mrb[28].mxu1 %v16933_v28  ;;  %12507 = vmatprep.mubr.bf16.mxu0 %v16937_v43  ;;  %v16959_v43 = vshrl.u32 %v15878_v38, 16 }
 0x320   : > { %11915 = vmatprep.mubr.bf16.mxu1 %v16956_v7  ;;  %12536 = vmatpush3.bf16.msra.mxu0 %v13582_v63  ;;  %v9172_v28 = vrot.slane %v16960_v24, 6  ;;  %v16972_v63 = vld [vmem:[#allocation63_spill] sm:$0xff]  ;;  %v16973_v7 = vld [vmem:[#allocation66_spill] sm:$0xff] }
 0x321   : > { %12537 = vmatprep.subr.bf16.mxu0 %v13583_v50  ;;  %v9171_v36 = vrot.slane %v16959_v43, 5 }
 0x323   : > { %v9173_v13 = vor.u32 %v9172_v28, %v9171_v36 }
 0x324   : > { %12538 = vmatpush3.bf16.msra.mxu0 %v13583_v50  ;;  %v13645_v50 = vld [vmem:[%s16304_s1 + $0x338] sm:$0xff]  }
 0x325   : > { %v9174_v56 = vrot.slane %v9173_v13, 4 }
 0x326   : > { %12508 = vmatmul.mubr.bf16.gmra.mrb[16].mxu0 %v16938_v52  ;;  %v9175_v52 = vrot.slane %v16961_v42, 5  ;;  %v16224_v42 = vld [vmem:[%s16305_s2] ss:$0 sm:$0xff] }
 0x327   : > { %11916 = vmatmul.mubr.bf16.vlgmr.msra.gmra.mrb[0].mxu1 %v16957_v31  ;;  %12511 = vmatprep.mubr.bf16.mxu0 %v16939_v27  ;;  %v9176_v27 = vrot.slane %v16962_v26, 6  ;;  %v16974_v31 = vld [vmem:[#allocation68_spill] sm:$0xff] }
 0x328   : > { %12579 = vmatpush3.bf16.msra.mxu1 %v13638_v62  ;;  %11919 = vmatprep.mubr.bf16.mxu1 %v16958_v29  ;;  %v16976_v29 = vld [vmem:[#allocation71_spill] sm:$0xff] }
 0x329   : > { %12572 = vmatprep.subr.bf16.mxu1 %v13639_v32  ;;  %v9177_v51 = vor.u32 %v9176_v27, %v9175_v52 }
 0x32b   : > { %v9178_v62 = vsel %vm14023_vm5, %v9174_v56, %v9177_v51 }
 0x32c   : > { %12580 = vmatpush3.bf16.msra.mxu1 %v13639_v32  ;;  %v16977_v32 = vld [vmem:[#allocation74_spill] sm:$0xff] }
 0x32d   : > { %12573 = vmatprep.subr.bf16.mxu1 %v13640_v37 }
 0x32e   : > { %12512 = vmatmul.mubr.bf16.gmra.mrb[20].mxu0 %v16901_v22  ;;  %v9179_v22 = vrot.slane %v9177_v51, 4 }
 0x32f   : > { %11920 = vmatmul.mubr.bf16.gmra.mrb[4].mxu1 %v16963_v46  ;;  %12515 = vmatprep.mubr.bf16.mxu0 %v16964_v23 }
 0x330   : > { %11923 = vmatprep.mubr.bf16.mxu1 %v16965_v40  ;;  %12581 = vmatpush3.bf16.msra.mxu1 %v13640_v37  ;;  %v9185_v6 = vsel %vm14023_vm5, %v9179_v22, %v9184_v8 }
 0x331   : > { %12574 = vmatprep.subr.bf16.mxu1 %v13641_v35  ;;  %v10732_v12 = vcombine.low %v9178_v62, %v9185_v6 }
 0x334   : > { %12582 = vmatpush3.bf16.msra.mxu1 %v13641_v35 }
 0x335   : > { %12575 = vmatprep.subr.bf16.mxu1 %v13642_v55 }
 0x336   : > { %12516 = vmatmul.mubr.bf16.gmra.mrb[24].mxu0 %v16966_v61 }
 0x337   : > { %11924 = vmatmul.mubr.bf16.gmra.mrb[8].mxu1 %v16967_v41  ;;  %12519 = vmatprep.mubr.bf16.mxu0 %v16968_v9 }
 0x338   : > { %11927 = vmatprep.mubr.bf16.mxu1 %v16970_v3  ;;  %12583 = vmatpush3.bf16.msra.mxu1 %v13642_v55 }
 0x339   : > { %12576 = vmatprep.subr.bf16.mxu1 %v13643_v48 }
 0x33c   : > { %12584 = vmatpush3.bf16.msra.mxu1 %v13643_v48 }
 0x33d   : > { %12577 = vmatprep.subr.bf16.mxu1 %v13644_v58 }
 0x33e   : > { %12520 = vmatmul.mubr.bf16.gmra.mrb[28].mxu0 %v10732_v12 }
 0x33f   : > { %11928 = vmatmul.mubr.bf16.gmra.mrb[12].mxu1 %v16971_v16  ;;  %12539 = vmatprep.mubr.bf16.mxu0 %v16866_v30  ;;  %v16975_v30 = vld [vmem:[#allocation69_spill] sm:$0xff] }
 0x340   : > { %11931 = vmatprep.mubr.bf16.mxu1 %v16972_v63  ;;  %12585 = vmatpush3.bf16.msra.mxu1 %v13644_v58 }
 0x341   : > { %12578 = vmatprep.subr.bf16.mxu1 %v13645_v50 }
 0x344   : > { %12586 = vmatpush3.bf16.msra.mxu1 %v13645_v50 }
 0x346   : > { %12540 = vmatmul.mubr.bf16.vlgmr.msra.gmra.mrb[0].mxu0 %v16869_v53  ;;  %v16978_v53 = vld [vmem:[#allocation33_spill] sm:$0xff] }
 0x347   : > { %11932 = vmatmul.mubr.bf16.gmra.mrb[16].mxu1 %v16973_v7  ;;  %12543 = vmatprep.mubr.bf16.mxu0 %v16870_v10  ;;  %v9514_v10 = vrot.slane %v15881_v25, 6 }
 0x348   : > { %11935 = vmatprep.mubr.bf16.mxu1 %v16974_v31 }
 0x34e   : > { %12544 = vmatmul.mubr.bf16.gmra.mrb[4].mxu0 %v16872_v44  ;;  %v10741_v44 = vrot.slane %v15878_v38, 10 }
 0x34f   : > { %11936 = vmatmul.mubr.bf16.gmra.mrb[20].mxu1 %v16975_v30  ;;  %12547 = vmatprep.mubr.bf16.mxu0 %v16874_v49  ;;  %v9516_v49 = vrot.slane %v9514_v10, 4 }
 0x350   : > { %11939 = vmatprep.mubr.bf16.mxu1 %v16976_v29 }
 0x356   : > { %12548 = vmatmul.mubr.bf16.gmra.mrb[8].mxu0 %v16876_v4  ;;  %v9517_v4 = vrot.slane %v15964_v2, 6 }
 0x357   : > { %11940 = vmatmul.mubr.bf16.gmra.mrb[24].mxu1 %v16977_v32  ;;  %12551 = vmatprep.mubr.bf16.mxu0 %v16945_v60 }
 0x358   : > { %11943 = vmatprep.mubr.bf16.mxu1 %v16978_v53 }
 0x35e   : > { %12552 = vmatmul.mubr.bf16.gmra.mrb[12].mxu0 %v16879_v11  ;;  %v16979_v11 = vld [vmem:[#allocation16_spill] sm:$0xff] }
 0x35f   : > { %11944 = vmatmul.mubr.bf16.gmra.mrb[28].mxu1 %v16942_v14  ;;  %12555 = vmatprep.mubr.bf16.mxu0 %v16880_v47  ;;  %v16980_v47 = vld [vmem:[#allocation36_spill] sm:$0xff] }
 0x360   : > { %11979 = vmatprep.mubr.bf16.mxu1 %v16925_v33 }
 0x366   : > { %12556 = vmatmul.mubr.bf16.gmra.mrb[16].mxu0 %v16946_v20 }
 0x367   : > { %11980 = vmatmul.mubr.bf16.vlgmr.msra.gmra.mrb[16].mxu1 %v16926_v39  ;;  %12559 = vmatprep.mubr.bf16.mxu0 %v16947_v19  ;;  %v9515_v39 = vsel %vm14715_vm11, %v10741_v44, %v9514_v10 }
 0x368   : > { %11983 = vmatprep.mubr.bf16.mxu1 %v16927_v34 }
 0x36e   : > { %12560 = vmatmul.mubr.bf16.gmra.mrb[20].mxu0 %v16948_v1 }
 0x36f   : > { %11984 = vmatmul.mubr.bf16.gmra.mrb[20].mxu1 %v16928_v54  ;;  %12563 = vmatprep.mubr.bf16.mxu0 %v16920_v59  ;;  %v9518_v59 = vsel %vm14715_vm11, %v9516_v49, %v9517_v4 }
 0x370   : > { %11987 = vmatprep.mubr.bf16.mxu1 %v16929_v15  ;;  %v10758_v34 = vcombine.low %v9515_v39, %v9518_v59 }
 0x376   : > { %12564 = vmatmul.mubr.bf16.gmra.mrb[24].mxu0 %v16979_v11 }
 0x377   : > { %11988 = vmatmul.mubr.bf16.gmra.mrb[24].mxu1 %v16930_v17  ;;  %12567 = vmatprep.mubr.bf16.mxu0 %v16980_v47 }
 0x378   : > { %11991 = vmatprep.mubr.bf16.mxu1 %v15592_v5 }
 0x37e   : > { %12568 = vmatmul.mubr.bf16.gmra.mrb[28].mxu0 %v10758_v34 }
 0x37f   : > { %11992 = vmatmul.mubr.bf16.gmra.mrb[28].mxu1 %v16951_v21 }
 0x3fa   : > { %v11917_v54 = vpop.f32.mrb[0].mxu1 }
 0x3fb   : > { %v5274_v15 = vpop.f32.mrb[1].mxu1 }
 0x3fc   : > { %v11918_v38 = vpop.f32.mrb[2].mxu1 }
 0x3fd   : > { %v5277_v25 = vpop.f32.mrb[3].mxu1 }
 0x402   : > { %v11921_v17 = vpop.f32.mrb[4].mxu1 }
 0x403   : > { %v5290_v2 = vpop.f32.mrb[5].mxu1 }
 0x404   : > { %v11922_v14 = vpop.f32.mrb[6].mxu1 }
 0x405   : > { %v5293_v60 = vpop.f32.mrb[7].mxu1 }
 0x40a   : > { %v11925_v20 = vpop.f32.mrb[8].mxu1 }
 0x40b   : > { %v5306_v19 = vpop.f32.mrb[9].mxu1 }
 0x40c   : > { %v11926_v1 = vpop.f32.mrb[10].mxu1 }
 0x40d   : > { %v5309_v43 = vpop.f32.mrb[11].mxu1 }
 0x412   : > { %v16213_v36 = vpop.f32.mrb[12].mxu1 }
 0x413   : > { %v16215_v5 = vpop.f32.mrb[13].mxu1 }
 0x414   : > { %v16217_v24 = vpop.f32.mrb[14].mxu1 }
 0x415   : > { %v16219_v21 = vpop.f32.mrb[15].mxu1 }
 0x419   : > { %v12541_v28 = vpop.f32.mrb[0].mxu0 }
 0x41a   : > { %v12587_v52 = vadd.f32 %v12541_v28, %v11917_v54  ;;  %v9654_v26 = vpop.f32.mrb[1].mxu0 }
 0x41b   : > { %v12588_v27 = vadd.f32 %v9654_v26, %v5274_v15  ;;  %v12542_v18 = vpop.f32.mrb[2].mxu0 }
 0x41c   : > { %v9886_v37 = vadd.f32 %v12587_v52, %v16224_v42  ;;  %v12589_v46 = vadd.f32 %v12542_v18, %v11918_v38  ;;  %v9657_v23 = vpop.f32.mrb[3].mxu0 }
 0x41d   : > { %v9884_v13 = vadd.f32 %v12588_v27, %v16224_v42  ;;  %v12590_v51 = vadd.f32 %v9657_v23, %v5277_v25 }
 0x41e   : > { %v9918_v45 = vmax.f32 %v9886_v37, 0.0  ;;  %v9887_v57 = vadd.f32 %v12589_v46, %v16224_v42 }
 0x41f   : > { %v9916_v40 = vmax.f32 %v9884_v13, 0.0  ;;  %v9885_v35 = vadd.f32 %v12590_v51, %v16224_v42 }
 0x420   : > { %9950 = vst [vmem:[%s16231_s10 + $0x10] sm:$0xff] %v9918_v45  ;;  %v9919_v56 = vmax.f32 %v9887_v57, 0.0 }
 0x421   : > { %9948 = vst [vmem:[%s16231_s10] sm:$0xff] %v9916_v40  ;;  %v9917_v22 = vmax.f32 %v9885_v35, 0.0  ;;  %v12545_v8 = vpop.f32.mrb[4].mxu0 }
 0x422   : > { %9951 = vst [vmem:[%s16231_s10 + $0x18] sm:$0xff] %v9919_v56  ;;  %v12591_v55 = vadd.f32 %v12545_v8, %v11921_v17  ;;  %v9670_v61 = vpop.f32.mrb[5].mxu0 }
 0x423   : > { %9949 = vst [vmem:[%s16231_s10 + $0x8] sm:$0xff] %v9917_v22  ;;  %v12592_v41 = vadd.f32 %v9670_v61, %v5290_v2  ;;  %v12546_v9 = vpop.f32.mrb[6].mxu0 }
 0x424   : > { %v9890_v0 = vadd.f32 %v12591_v55, %v16224_v42  ;;  %v12593_v62 = vadd.f32 %v12546_v9, %v11922_v14  ;;  %v9673_v6 = vpop.f32.mrb[7].mxu0 }
 0x425   : > { %v9888_v3 = vadd.f32 %v12592_v41, %v16224_v42  ;;  %v12594_v48 = vadd.f32 %v9673_v6, %v5293_v60 }
 0x426   : > { %v9922_v12 = vmax.f32 %v9890_v0, 0.0  ;;  %v9891_v58 = vadd.f32 %v12593_v62, %v16224_v42 }
 0x427   : > { %v9920_v16 = vmax.f32 %v9888_v3, 0.0  ;;  %v9889_v63 = vadd.f32 %v12594_v48, %v16224_v42 }
 0x428   : > { %9954 = vst [vmem:[%s16231_s10 + $0x30] sm:$0xff] %v9922_v12  ;;  %v9923_v50 = vmax.f32 %v9891_v58, 0.0 }
 0x429   : > { %9952 = vst [vmem:[%s16231_s10 + $0x20] sm:$0xff] %v9920_v16  ;;  %v9921_v7 = vmax.f32 %v9889_v63, 0.0  ;;  %v12549_v31 = vpop.f32.mrb[8].mxu0 }
 0x42a   : > { %9955 = vst [vmem:[%s16231_s10 + $0x38] sm:$0xff] %v9923_v50  ;;  %v12595_v30 = vadd.f32 %v12549_v31, %v11925_v20  ;;  %v9686_v29 = vpop.f32.mrb[9].mxu0 }
 0x42b   : > { %9953 = vst [vmem:[%s16231_s10 + $0x28] sm:$0xff] %v9921_v7  ;;  %v12596_v32 = vadd.f32 %v9686_v29, %v5306_v19  ;;  %v12550_v53 = vpop.f32.mrb[10].mxu0 }
 0x42c   : > { %v9894_v10 = vadd.f32 %v12595_v30, %v16224_v42  ;;  %v12597_v44 = vadd.f32 %v12550_v53, %v11926_v1  ;;  %v9689_v49 = vpop.f32.mrb[11].mxu0 }
 0x42d   : > { %v9892_v4 = vadd.f32 %v12596_v32, %v16224_v42  ;;  %v12598_v11 = vadd.f32 %v9689_v49, %v5309_v43 }
 0x42e   : > { %v9926_v47 = vmax.f32 %v9894_v10, 0.0  ;;  %v9895_v33 = vadd.f32 %v12597_v44, %v16224_v42 }
 0x42f   : > { %v9924_v39 = vmax.f32 %v9892_v4, 0.0  ;;  %v9893_v59 = vadd.f32 %v12598_v11, %v16224_v42 }
 0x430   : > { %9958 = vst [vmem:[%s16231_s10 + $0x50] sm:$0xff] %v9926_v47  ;;  %v9927_v34 = vmax.f32 %v9895_v33, 0.0 }
 0x431   : > { %9956 = vst [vmem:[%s16231_s10 + $0x40] sm:$0xff] %v9924_v39  ;;  %v9925_v54 = vmax.f32 %v9893_v59, 0.0  ;;  %v12553_v15 = vpop.f32.mrb[12].mxu0 }
 0x432   : > { %9959 = vst [vmem:[%s16231_s10 + $0x58] sm:$0xff] %v9927_v34  ;;  %v12599_v38 = vadd.f32 %v12553_v15, %v16213_v36  ;;  %v9702_v25 = vpop.f32.mrb[13].mxu0 }
 0x433   : > { %9957 = vst [vmem:[%s16231_s10 + $0x48] sm:$0xff] %v9925_v54  ;;  %v12600_v17 = vadd.f32 %v9702_v25, %v16215_v5  ;;  %v12554_v2 = vpop.f32.mrb[14].mxu0 }
 0x434   : > { %v9898_v14 = vadd.f32 %v12599_v38, %v16224_v42  ;;  %v12601_v60 = vadd.f32 %v12554_v2, %v16217_v24  ;;  %v9705_v20 = vpop.f32.mrb[15].mxu0 }
 0x435   : > { %v9896_v19 = vadd.f32 %v12600_v17, %v16224_v42  ;;  %v12602_v1 = vadd.f32 %v9705_v20, %v16219_v21 }
 0x436   : > { %v9930_v43 = vmax.f32 %v9898_v14, 0.0  ;;  %v9899_v36 = vadd.f32 %v12601_v60, %v16224_v42 }
 0x437   : > { %v9928_v28 = vmax.f32 %v9896_v19, 0.0  ;;  %v9897_v52 = vadd.f32 %v12602_v1, %v16224_v42 }
 0x438   : > { %9962 = vst [vmem:[%s16231_s10 + $0x70] sm:$0xff] %v9930_v43  ;;  %v9931_v5 = vmax.f32 %v9899_v36, 0.0 }
 0x439   : > { %9960 = vst [vmem:[%s16231_s10 + $0x60] sm:$0xff] %v9928_v28  ;;  %v9929_v26 = vmax.f32 %v9897_v52, 0.0  ;;  %v12557_v27 = vpop.f32.mrb[16].mxu0 }
 0x43a   : > { %9963 = vst [vmem:[%s16231_s10 + $0x78] sm:$0xff] %v9931_v5  ;;  %v11981_v18 = vpop.f32.mrb[16].mxu1  ;;  %v9718_v24 = vpop.f32.mrb[17].mxu0 }
 0x43b   : > { %9961 = vst [vmem:[%s16231_s10 + $0x68] sm:$0xff] %v9929_v26  ;;  %v12603_v37 = vadd.f32 %v12557_v27, %v11981_v18  ;;  %v5672_v46 = vpop.f32.mrb[17].mxu1  ;;  %v12558_v23 = vpop.f32.mrb[18].mxu0 }
 0x43c   : > { %v12604_v21 = vadd.f32 %v9718_v24, %v5672_v46  ;;  %v11982_v13 = vpop.f32.mrb[18].mxu1  ;;  %v9721_v51 = vpop.f32.mrb[19].mxu0 }
 0x43d   : > { %v9902_v45 = vadd.f32 %v12603_v37, %v16224_v42  ;;  %v12605_v57 = vadd.f32 %v12558_v23, %v11982_v13  ;;  %v5675_v40 = vpop.f32.mrb[19].mxu1 }
 0x43e   : > { %v9900_v35 = vadd.f32 %v12604_v21, %v16224_v42  ;;  %v12606_v56 = vadd.f32 %v9721_v51, %v5675_v40 }
 0x43f   : > { %v9934_v22 = vmax.f32 %v9902_v45, 0.0  ;;  %v9903_v8 = vadd.f32 %v12605_v57, %v16224_v42 }
 0x440   : > { %v9932_v55 = vmax.f32 %v9900_v35, 0.0  ;;  %v9901_v61 = vadd.f32 %v12606_v56, %v16224_v42 }
 0x441   : > { %9966 = vst [vmem:[%s16231_s10 + $0x90] sm:$0xff] %v9934_v22  ;;  %v9935_v41 = vmax.f32 %v9903_v8, 0.0  ;;  %v12561_v9 = vpop.f32.mrb[20].mxu0 }
 0x442   : > { %9964 = vst [vmem:[%s16231_s10 + $0x80] sm:$0xff] %v9932_v55  ;;  %v9933_v0 = vmax.f32 %v9901_v61, 0.0  ;;  %v11985_v62 = vpop.f32.mrb[20].mxu1  ;;  %v9734_v6 = vpop.f32.mrb[21].mxu0 }
 0x443   : > { %9967 = vst [vmem:[%s16231_s10 + $0x98] sm:$0xff] %v9935_v41  ;;  %v12607_v3 = vadd.f32 %v12561_v9, %v11985_v62  ;;  %v5688_v48 = vpop.f32.mrb[21].mxu1  ;;  %v12562_v12 = vpop.f32.mrb[22].mxu0 }
 0x444   : > { %9965 = vst [vmem:[%s16231_s10 + $0x88] sm:$0xff] %v9933_v0  ;;  %v12608_v58 = vadd.f32 %v9734_v6, %v5688_v48  ;;  %v11986_v16 = vpop.f32.mrb[22].mxu1  ;;  %v9737_v63 = vpop.f32.mrb[23].mxu0 }
 0x445   : > { %v9906_v50 = vadd.f32 %v12607_v3, %v16224_v42  ;;  %v12609_v7 = vadd.f32 %v12562_v12, %v11986_v16  ;;  %v5691_v31 = vpop.f32.mrb[23].mxu1 }
 0x446   : > { %v9904_v30 = vadd.f32 %v12608_v58, %v16224_v42  ;;  %v12610_v29 = vadd.f32 %v9737_v63, %v5691_v31 }
 0x447   : > { %v9938_v32 = vmax.f32 %v9906_v50, 0.0  ;;  %v9907_v53 = vadd.f32 %v12609_v7, %v16224_v42 }
 0x448   : > { %v9936_v10 = vmax.f32 %v9904_v30, 0.0  ;;  %v9905_v44 = vadd.f32 %v12610_v29, %v16224_v42 }
 0x449   : > { %9970 = vst [vmem:[%s16231_s10 + $0xb0] sm:$0xff] %v9938_v32  ;;  %v9939_v49 = vmax.f32 %v9907_v53, 0.0  ;;  %v12565_v4 = vpop.f32.mrb[24].mxu0 }
 0x44a   : > { %9968 = vst [vmem:[%s16231_s10 + $0xa0] sm:$0xff] %v9936_v10  ;;  %v9937_v11 = vmax.f32 %v9905_v44, 0.0  ;;  %v11989_v47 = vpop.f32.mrb[24].mxu1  ;;  %v9750_v33 = vpop.f32.mrb[25].mxu0 }
 0x44b   : > { %9971 = vst [vmem:[%s16231_s10 + $0xb8] sm:$0xff] %v9939_v49  ;;  %v12611_v39 = vadd.f32 %v12565_v4, %v11989_v47  ;;  %v5704_v59 = vpop.f32.mrb[25].mxu1  ;;  %v12566_v34 = vpop.f32.mrb[26].mxu0 }
 0x44c   : > { %9969 = vst [vmem:[%s16231_s10 + $0xa8] sm:$0xff] %v9937_v11  ;;  %v12612_v54 = vadd.f32 %v9750_v33, %v5704_v59  ;;  %v11990_v15 = vpop.f32.mrb[26].mxu1  ;;  %v9753_v38 = vpop.f32.mrb[27].mxu0 }
 0x44d   : > { %v9910_v25 = vadd.f32 %v12611_v39, %v16224_v42  ;;  %v12613_v17 = vadd.f32 %v12566_v34, %v11990_v15  ;;  %v5707_v2 = vpop.f32.mrb[27].mxu1 }
 0x44e   : > { %v9908_v14 = vadd.f32 %v12612_v54, %v16224_v42  ;;  %v12614_v60 = vadd.f32 %v9753_v38, %v5707_v2 }
 0x44f   : > { %v9942_v20 = vmax.f32 %v9910_v25, 0.0  ;;  %v9911_v19 = vadd.f32 %v12613_v17, %v16224_v42 }
 0x450   : > { %v9940_v1 = vmax.f32 %v9908_v14, 0.0  ;;  %v9909_v43 = vadd.f32 %v12614_v60, %v16224_v42 }
 0x451   : > { %9974 = vst [vmem:[%s16231_s10 + $0xd0] sm:$0xff] %v9942_v20  ;;  %v9943_v36 = vmax.f32 %v9911_v19, 0.0  ;;  %v12569_v28 = vpop.f32.mrb[28].mxu0 }
 0x452   : > { %9972 = vst [vmem:[%s16231_s10 + $0xc0] sm:$0xff] %v9940_v1  ;;  %v9941_v52 = vmax.f32 %v9909_v43, 0.0  ;;  %v11993_v5 = vpop.f32.mrb[28].mxu1  ;;  %v9766_v26 = vpop.f32.mrb[29].mxu0 }
 0x453   : > { %9975 = vst [vmem:[%s16231_s10 + $0xd8] sm:$0xff] %v9943_v36  ;;  %v12615_v27 = vadd.f32 %v12569_v28, %v11993_v5  ;;  %v5720_v18 = vpop.f32.mrb[29].mxu1  ;;  %v12570_v24 = vpop.f32.mrb[30].mxu0 }
 0x454   : > { %9973 = vst [vmem:[%s16231_s10 + $0xc8] sm:$0xff] %v9941_v52  ;;  %v12616_v37 = vadd.f32 %v9766_v26, %v5720_v18  ;;  %v11994_v46 = vpop.f32.mrb[30].mxu1  ;;  %v9769_v23 = vpop.f32.mrb[31].mxu0 }
 0x455   : > { %v9914_v21 = vadd.f32 %v12615_v27, %v16224_v42  ;;  %v12617_v13 = vadd.f32 %v12570_v24, %v11994_v46  ;;  %v5723_v51 = vpop.f32.mrb[31].mxu1 }
 0x456   : > { %v9912_v45 = vadd.f32 %v12616_v37, %v16224_v42  ;;  %v12618_v57 = vadd.f32 %v9769_v23, %v5723_v51 }
 0x457   : > { %v9946_v40 = vmax.f32 %v9914_v21, 0.0  ;;  %v9915_v35 = vadd.f32 %v12617_v13, %v16224_v42 }
 0x458   : > { %v9944_v56 = vmax.f32 %v9912_v45, 0.0  ;;  %v9913_v22 = vadd.f32 %v12618_v57, %v16224_v42 }
 0x459   : > { %9978 = vst [vmem:[%s16231_s10 + $0xf0] sm:$0xff] %v9946_v40  ;;  %v9947_v8 = vmax.f32 %v9915_v35, 0.0 }
 0x45a   : > { %9976 = vst [vmem:[%s16231_s10 + $0xe0] sm:$0xff] %v9944_v56  ;;  %v9945_v55 = vmax.f32 %v9913_v22, 0.0 }
 0x45b   : > { %9979 = vst [vmem:[%s16231_s10 + $0xf8] sm:$0xff] %v9947_v8 }
 0x45c   : > { %9977 = vst [vmem:[%s16231_s10 + $0xe8] sm:$0xff] %v9945_v55 }
 0x45d PF: > { %s13_s12 = sadd.s32 1, %s13652_s12  }
 0x45e   : > { %p10_p4 = scmp.ge.s32.totalorder %s13_s12, 4  }
 0x460   :  { %12 = sbr.rel (!%p10_p4) target bundleno = 1 (0x1), region = 86 }

</bundles_post_ra>
